<compile_context>
chip_gen: v6e
topology: v6e:2x2x1
jax: 0.10.0
libtpu: 0.0.40
codegen_flags: <defaults>
</compile_context>

<pallas_src>
import jax
import jax.numpy as jnp
import numpy as np
from jax.experimental import pallas as pl
from jax.experimental.pallas import tpu as pltpu


def _async_memory_updater_kernel(
    dt_ref, x_ref, h_ref, feat_ref,
    tw_ref, tb_ref, wx_ref, wt_ref, bih_ref, wh_ref, bhh_ref, nfw_ref, nfb_ref,
    mem_out_ref, h_out_ref,
):
    f32 = jnp.float32

    # --- TimeEncode: cos((ts - mem_ts) * w + b); dt precomputed in the wrapper ------------
    dt = dt_ref[...]                                                    # [TN, 1] f32
    time_feat = jnp.cos(dt * tw_ref[...] + tb_ref[...])                 # [TN, dim_time] f32
    tf = time_feat.astype(wt_ref.dtype)

    x = x_ref[...]                                                      # [TN, dim_in]
    h = h_ref[...]                                                      # [TN, H]
    hf = h.astype(f32)

    # --- rnn_updater: GRUCell(cat([mem_input, time_feat], 1), mem), per-gate weights -------
    # Per-gate weight stacks avoid slicing a 3H-lane result at non-128-aligned offsets.
    def gates(g):
        i_g = (jnp.dot(x, wx_ref[g], preferred_element_type=f32)
               + jnp.dot(tf, wt_ref[g], preferred_element_type=f32)
               + bih_ref[g])                                            # [TN, H] f32
        h_g = jnp.dot(h, wh_ref[g], preferred_element_type=f32) + bhh_ref[g]
        return i_g, h_g

    i_r, h_r = gates(0)
    i_z, h_z = gates(1)
    i_n, h_n = gates(2)
    r = jax.nn.sigmoid(i_r + h_r)
    z = jax.nn.sigmoid(i_z + h_z)
    n = jnp.tanh(i_n + r * h_n)
    updated_memory = (1.0 - z) * n + z * hf                             # [TN, H] f32

    # mode='local' (gamma == 1): shared-node blend is the identity -> elided (no mask DMA).
    mem_out_ref[...] = updated_memory.astype(mem_out_ref.dtype)

    # --- combine_node_feature, dim_node_feat != dim_hid:
    #     b.srcdata['h'] = updated_memory + node_feat_map(b.srcdata['h'])
    h_feat = (jnp.dot(feat_ref[...], nfw_ref[...], preferred_element_type=f32)
              + nfb_ref[...])                                           # [TN, H] f32
    h_out_ref[...] = (updated_memory + h_feat).astype(h_out_ref.dtype)

    # TODO(synk): mailbox set_memory_* / all-reduce / p2p side effects (param branch) and the
    # 'historical' gamma/filter/his_mem path are distributed host bookkeeping, not lowered here.


def async_memory_updater_forward(ts, mem_ts, mem_input, mem, node_feat, params,
                                 *, tile_n=256, io_dtype=None):
    N, dim_in = mem_input.shape
    H = mem.shape[1]
    dim_time = params["time_w"].shape[1]
    dim_node_feat = node_feat.shape[1]

    if io_dtype is None:
        io_dtype = mem_input.dtype
    cast = lambda a: a.astype(io_dtype)

    # Narrow-input fusion: one [N, 1] dt input instead of two (ts, mem_ts) lane-sparse tiles.
    dt = (ts - mem_ts).astype(jnp.float32)
    x, h, feat = cast(mem_input), cast(mem), cast(node_feat)
    wx, wt = cast(params["w_ih_x"]), cast(params["w_ih_t"])
    wh, nfw = cast(params["w_hh"]), cast(params["nf_w"])
    # biases / time-encode params stay f32 (tiny; added post-dot in f32; safe on v5e).
    tw = params["time_w"].astype(jnp.float32)
    tb = params["time_b"].astype(jnp.float32)
    bih = params["b_ih"].astype(jnp.float32)
    bhh = params["b_hh"].astype(jnp.float32)
    nfb = params["nf_b"].astype(jnp.float32)

    # Keep >= 2 grid steps when possible so both v7x TensorCores get work.
    if N > 8 and pl.cdiv(N, tile_n) < 2:
        tile_n = max(8, ((pl.cdiv(N, 2) + 7) // 8) * 8)
    n_tiles = pl.cdiv(N, tile_n)
    n_pad = n_tiles * tile_n
    if n_pad != N:
        pad = lambda a: jnp.pad(a, ((0, n_pad - N), (0, 0)))
        dt, x, h, feat = pad(dt), pad(x), pad(h), pad(feat)

    row = lambda i: (i, 0)        # node-tiled arrays
    rep2 = lambda i: (0, 0)       # replicated 2-D weights
    rep3 = lambda i: (0, 0, 0)    # replicated per-gate weight stacks

    grid_spec = pltpu.PrefetchScalarGridSpec(
        num_scalar_prefetch=0,
        grid=(n_tiles,),
        in_specs=[
            pl.BlockSpec((tile_n, 1), row),               # dt = ts - mem_ts
            pl.BlockSpec((tile_n, dim_in), row),          # mem_input
            pl.BlockSpec((tile_n, H), row),               # mem (GRU hidden)
            pl.BlockSpec((tile_n, dim_node_feat), row),   # node feature h
            pl.BlockSpec((1, dim_time), rep2),            # time_enc w
            pl.BlockSpec((1, dim_time), rep2),            # time_enc b
            pl.BlockSpec((3, dim_in, H), rep3),           # W_ih (mem_input part), per-gate
            pl.BlockSpec((3, dim_time, H), rep3),         # W_ih (time_feat part), per-gate
            pl.BlockSpec((3, 1, H), rep3),                # b_ih per-gate
            pl.BlockSpec((3, H, H), rep3),                # W_hh per-gate
            pl.BlockSpec((3, 1, H), rep3),                # b_hh per-gate
            pl.BlockSpec((dim_node_feat, H), rep2),       # node_feat_map W
            pl.BlockSpec((1, H), rep2),                   # node_feat_map b
        ],
        out_specs=[
            pl.BlockSpec((tile_n, H), row),               # updated_memory
            pl.BlockSpec((tile_n, H), row),               # new b.srcdata['h']
        ],
    )

    in_list = (dt, x, h, feat, tw, tb, wx, wt, bih, wh, bhh, nfw, nfb)
    nbytes = lambda a: int(a.size) * a.dtype.itemsize
    out_bytes = 2 * n_pad * H * jnp.dtype(io_dtype).itemsize
    cost = pl.CostEstimate(
        flops=2 * n_pad * (dim_in + dim_time + H) * 3 * H + 2 * n_pad * dim_node_feat * H,
        transcendentals=n_pad * (dim_time + 3 * H),
        bytes_accessed=sum(nbytes(a) for a in in_list) + out_bytes,
    )

    mem_out, h_out = pl.pallas_call(
        _async_memory_updater_kernel,
        grid_spec=grid_spec,
        out_shape=(
            jax.ShapeDtypeStruct((n_pad, H), io_dtype),
            jax.ShapeDtypeStruct((n_pad, H), io_dtype),
        ),
        compiler_params=pltpu.CompilerParams(
            dimension_semantics=("parallel",),
        ),
        cost_estimate=cost,
    )(*in_list)

    return mem_out[:N], h_out[:N]


def _reference(ts, mem_ts, mem_input, mem, node_feat,
               w_ih, w_hh, b_ih, b_hh, nf_w, nf_b, time_w, time_b):
    """Pure-JAX replica of the forward semantics (torch weight orientation)."""
    dt = ts - mem_ts
    tf = jnp.cos(dt * time_w + time_b)
    xin = jnp.concatenate([mem_input, tf], axis=1)
    gi = xin @ w_ih.T + b_ih
    gh = mem @ w_hh.T + b_hh
    i_r, i_z, i_n = jnp.split(gi, 3, axis=1)
    h_r, h_z, h_n = jnp.split(gh, 3, axis=1)
    r = jax.nn.sigmoid(i_r + h_r)
    z = jax.nn.sigmoid(i_z + h_z)
    n = jnp.tanh(i_n + r * h_n)
    upd = (1.0 - z) * n + z * mem
    h_new = upd + (node_feat @ nf_w.T + nf_b)
    return upd, h_new


if __name__ == "__main__":
    # small shapes: N nodes (non-multiple of tile_n to exercise padding), dim_in, dim_time,
    # dim_hid, dim_node_feat
    N, dim_in, dim_time, dim_hid, dim_node_feat = 300, 32, 16, 32, 24
    H = dim_hid

    key = jax.random.PRNGKey(0)
    ks = jax.random.split(key, 11)

    ts = jax.random.uniform(ks[0], (N, 1), jnp.float32, 10.0, 100.0)
    mem_ts = ts - jax.random.uniform(ks[1], (N, 1), jnp.float32, 0.0, 10.0)
    mem_input = jax.random.normal(ks[2], (N, dim_in), jnp.float32)
    mem = jax.random.normal(ks[3], (N, dim_hid), jnp.float32)
    node_feat = jax.random.normal(ks[4], (N, dim_node_feat), jnp.float32)

    # Deterministic parameter init (GRUCell(dim_in + dim_time, dim_hid), Linear, TimeEncode)
    s = 0.1
    w_ih = s * jax.random.normal(ks[5], (3 * H, dim_in + dim_time), jnp.float32)
    w_hh = s * jax.random.normal(ks[6], (3 * H, H), jnp.float32)
    b_ih = s * jax.random.normal(ks[7], (3 * H,), jnp.float32)
    b_hh = s * jax.random.normal(ks[8], (3 * H,), jnp.float32)
    nf_w = s * jax.random.normal(ks[9], (H, dim_node_feat), jnp.float32)
    nf_b = s * jax.random.normal(ks[10], (H,), jnp.float32)
    # TGL TimeEncode init: w = 1 / 10**linspace(0, 9, dim_time), b = 0
    time_w = jnp.asarray((1.0 / (10.0 ** np.linspace(0, 9, dim_time))).astype(np.float32)
                         ).reshape(1, dim_time)
    time_b = jnp.zeros((1, dim_time), jnp.float32)

    # Repack weights for the kernel: per-gate [in, H] stacks (torch gate order r, z, n).
    split_gates = lambda w: jnp.stack([w[g * H:(g + 1) * H, :].T for g in range(3)], axis=0)
    params = {
        "time_w": time_w,
        "time_b": time_b,
        "w_ih_x": split_gates(w_ih[:, :dim_in]),     # [3, dim_in, H]
        "w_ih_t": split_gates(w_ih[:, dim_in:]),     # [3, dim_time, H]
        "b_ih": b_ih.reshape(3, 1, H),
        "w_hh": split_gates(w_hh),                   # [3, H, H]
        "b_hh": b_hh.reshape(3, 1, H),
        "nf_w": nf_w.T,                              # [dim_node_feat, H]
        "nf_b": nf_b.reshape(1, H),
    }

    ref_mem, ref_h = _reference(ts, mem_ts, mem_input, mem, node_feat,
                                w_ih, w_hh, b_ih, b_hh, nf_w, nf_b, time_w, time_b)

    # f32 I/O path (tight numeric check).
    upd_mem, h_new = async_memory_updater_forward(
        ts, mem_ts, mem_input, mem, node_feat, params, tile_n=256)
    jax.block_until_ready((upd_mem, h_new))
    np.testing.assert_allclose(np.asarray(upd_mem), np.asarray(ref_mem), rtol=1e-4, atol=1e-4)
    np.testing.assert_allclose(np.asarray(h_new), np.asarray(ref_h), rtol=1e-4, atol=1e-4)

    # bf16 I/O path (HBM-bound win on v6e/v7x); in-kernel math stays f32. Loose storage check.
    upd_mem_bf, h_new_bf = async_memory_updater_forward(
        ts, mem_ts, mem_input, mem, node_feat, params, tile_n=256, io_dtype=jnp.bfloat16)
    jax.block_until_ready((upd_mem_bf, h_new_bf))
    np.testing.assert_allclose(np.asarray(upd_mem_bf, dtype=np.float32),
                               np.asarray(ref_mem), rtol=0.0, atol=1e-1)
    np.testing.assert_allclose(np.asarray(h_new_bf, dtype=np.float32),
                               np.asarray(ref_h), rtol=0.0, atol=1e-1)

    print("KERNEL_OK")
</pallas_src>

<mosaic_0001>
module attributes {stable_mosaic.version = 11 : i64} {
  func.func @_async_memory_updater_kernel(%arg0: i32, %arg1: memref<256x1xf32, #tpu.memory_space<vmem>>, %arg2: memref<256x32xf32, #tpu.memory_space<vmem>>, %arg3: memref<256x32xf32, #tpu.memory_space<vmem>>, %arg4: memref<256x24xf32, #tpu.memory_space<vmem>>, %arg5: memref<1x16xf32, #tpu.memory_space<vmem>>, %arg6: memref<1x16xf32, #tpu.memory_space<vmem>>, %arg7: memref<3x32x32xf32, #tpu.memory_space<vmem>>, %arg8: memref<3x16x32xf32, #tpu.memory_space<vmem>>, %arg9: memref<3x1x32xf32, #tpu.memory_space<vmem>>, %arg10: memref<3x32x32xf32, #tpu.memory_space<vmem>>, %arg11: memref<3x1x32xf32, #tpu.memory_space<vmem>>, %arg12: memref<24x32xf32, #tpu.memory_space<vmem>>, %arg13: memref<1x32xf32, #tpu.memory_space<vmem>>, %arg14: memref<256x32xf32, #tpu.memory_space<vmem>>, %arg15: memref<256x32xf32, #tpu.memory_space<vmem>>) attributes {dimension_semantics = [#tpu.dimension_semantics<parallel>], iteration_bounds = array<i64: 2>, scalar_prefetch = 0 : i64, scratch_operands = 0 : i64, tpu.core_type = #tpu.core_type<tc>, window_params = [{transform_indices = @transform_0, window_bounds = array<i64: 256, 1>}, {transform_indices = @transform_1, window_bounds = array<i64: 256, 32>}, {transform_indices = @transform_2, window_bounds = array<i64: 256, 32>}, {transform_indices = @transform_3, window_bounds = array<i64: 256, 24>}, {pipeline_mode = #tpu.pipeline_mode<synchronous>, transform_indices = @transform_4, window_bounds = array<i64: 1, 16>}, {pipeline_mode = #tpu.pipeline_mode<synchronous>, transform_indices = @transform_5, window_bounds = array<i64: 1, 16>}, {pipeline_mode = #tpu.pipeline_mode<synchronous>, transform_indices = @transform_6, window_bounds = array<i64: 3, 32, 32>}, {pipeline_mode = #tpu.pipeline_mode<synchronous>, transform_indices = @transform_7, window_bounds = array<i64: 3, 16, 32>}, {pipeline_mode = #tpu.pipeline_mode<synchronous>, transform_indices = @transform_8, window_bounds = array<i64: 3, 1, 32>}, {pipeline_mode = #tpu.pipeline_mode<synchronous>, transform_indices = @transform_9, window_bounds = array<i64: 3, 32, 32>}, {pipeline_mode = #tpu.pipeline_mode<synchronous>, transform_indices = @transform_10, window_bounds = array<i64: 3, 1, 32>}, {pipeline_mode = #tpu.pipeline_mode<synchronous>, transform_indices = @transform_11, window_bounds = array<i64: 24, 32>}, {pipeline_mode = #tpu.pipeline_mode<synchronous>, transform_indices = @transform_12, window_bounds = array<i64: 1, 32>}, {transform_indices = @transform_13, window_bounds = array<i64: 256, 32>}, {transform_indices = @transform_14, window_bounds = array<i64: 256, 32>}]} {
    %c0 = arith.constant 0 : index
    %c0_0 = arith.constant 0 : index
    %0 = vector.load %arg1[%c0, %c0_0] : memref<256x1xf32, #tpu.memory_space<vmem>>, vector<256x1xf32>
    %c0_1 = arith.constant 0 : index
    %c0_2 = arith.constant 0 : index
    %1 = vector.load %arg5[%c0_1, %c0_2] : memref<1x16xf32, #tpu.memory_space<vmem>>, vector<1x16xf32>
    %2 = vector.broadcast %0 : vector<256x1xf32> to vector<256x16xf32>
    %3 = vector.broadcast %1 : vector<1x16xf32> to vector<256x16xf32>
    %4 = arith.mulf %2, %3 : vector<256x16xf32>
    %c0_3 = arith.constant 0 : index
    %c0_4 = arith.constant 0 : index
    %5 = vector.load %arg6[%c0_3, %c0_4] : memref<1x16xf32, #tpu.memory_space<vmem>>, vector<1x16xf32>
    %6 = vector.broadcast %5 : vector<1x16xf32> to vector<256x16xf32>
    %7 = arith.addf %4, %6 : vector<256x16xf32>
    %8 = math.cos %7 : vector<256x16xf32>
    %c0_5 = arith.constant 0 : index
    %c0_6 = arith.constant 0 : index
    %9 = vector.load %arg2[%c0_5, %c0_6] : memref<256x32xf32, #tpu.memory_space<vmem>>, vector<256x32xf32>
    %c0_7 = arith.constant 0 : index
    %c0_8 = arith.constant 0 : index
    %10 = vector.load %arg3[%c0_7, %c0_8] : memref<256x32xf32, #tpu.memory_space<vmem>>, vector<256x32xf32>
    %c0_9 = arith.constant 0 : index
    %c0_10 = arith.constant 0 : index
    %c0_11 = arith.constant 0 : index
    %11 = vector.load %arg7[%c0_9, %c0_10, %c0_11] : memref<3x32x32xf32, #tpu.memory_space<vmem>>, vector<1x32x32xf32>
    %12 = vector.shape_cast %11 : vector<1x32x32xf32> to vector<32x32xf32>
    %cst = arith.constant dense<0.000000e+00> : vector<256x32xf32>
    %13 = tpu.matmul %9, %12, %cst {dimension_numbers = #tpu.dot_dimension_numbers<[1], [0], [0], [1], [0, 0, 1, 1], [], []>} : vector<256x32xf32>, vector<32x32xf32>, vector<256x32xf32> -> vector<256x32xf32>
    %c0_12 = arith.constant 0 : index
    %c0_13 = arith.constant 0 : index
    %c0_14 = arith.constant 0 : index
    %14 = vector.load %arg8[%c0_12, %c0_13, %c0_14] : memref<3x16x32xf32, #tpu.memory_space<vmem>>, vector<1x16x32xf32>
    %15 = vector.shape_cast %14 : vector<1x16x32xf32> to vector<16x32xf32>
    %cst_15 = arith.constant dense<0.000000e+00> : vector<256x32xf32>
    %16 = tpu.matmul %8, %15, %cst_15 {dimension_numbers = #tpu.dot_dimension_numbers<[1], [0], [0], [1], [0, 0, 1, 1], [], []>} : vector<256x16xf32>, vector<16x32xf32>, vector<256x32xf32> -> vector<256x32xf32>
    %17 = arith.addf %13, %16 : vector<256x32xf32>
    %c0_16 = arith.constant 0 : index
    %c0_17 = arith.constant 0 : index
    %c0_18 = arith.constant 0 : index
    %18 = vector.load %arg9[%c0_16, %c0_17, %c0_18] : memref<3x1x32xf32, #tpu.memory_space<vmem>>, vector<1x1x32xf32>
    %19 = vector.shape_cast %18 : vector<1x1x32xf32> to vector<1x32xf32>
    %20 = vector.broadcast %19 : vector<1x32xf32> to vector<256x32xf32>
    %21 = arith.addf %17, %20 : vector<256x32xf32>
    %c0_19 = arith.constant 0 : index
    %c0_20 = arith.constant 0 : index
    %c0_21 = arith.constant 0 : index
    %22 = vector.load %arg10[%c0_19, %c0_20, %c0_21] : memref<3x32x32xf32, #tpu.memory_space<vmem>>, vector<1x32x32xf32>
    %23 = vector.shape_cast %22 : vector<1x32x32xf32> to vector<32x32xf32>
    %cst_22 = arith.constant dense<0.000000e+00> : vector<256x32xf32>
    %24 = tpu.matmul %10, %23, %cst_22 {dimension_numbers = #tpu.dot_dimension_numbers<[1], [0], [0], [1], [0, 0, 1, 1], [], []>} : vector<256x32xf32>, vector<32x32xf32>, vector<256x32xf32> -> vector<256x32xf32>
    %c0_23 = arith.constant 0 : index
    %c0_24 = arith.constant 0 : index
    %c0_25 = arith.constant 0 : index
    %25 = vector.load %arg11[%c0_23, %c0_24, %c0_25] : memref<3x1x32xf32, #tpu.memory_space<vmem>>, vector<1x1x32xf32>
    %26 = vector.shape_cast %25 : vector<1x1x32xf32> to vector<1x32xf32>
    %27 = vector.broadcast %26 : vector<1x32xf32> to vector<256x32xf32>
    %28 = arith.addf %24, %27 : vector<256x32xf32>
    %c1 = arith.constant 1 : index
    %c0_26 = arith.constant 0 : index
    %c0_27 = arith.constant 0 : index
    %29 = vector.load %arg7[%c1, %c0_26, %c0_27] : memref<3x32x32xf32, #tpu.memory_space<vmem>>, vector<1x32x32xf32>
    %30 = vector.shape_cast %29 : vector<1x32x32xf32> to vector<32x32xf32>
    %cst_28 = arith.constant dense<0.000000e+00> : vector<256x32xf32>
    %31 = tpu.matmul %9, %30, %cst_28 {dimension_numbers = #tpu.dot_dimension_numbers<[1], [0], [0], [1], [0, 0, 1, 1], [], []>} : vector<256x32xf32>, vector<32x32xf32>, vector<256x32xf32> -> vector<256x32xf32>
    %c1_29 = arith.constant 1 : index
    %c0_30 = arith.constant 0 : index
    %c0_31 = arith.constant 0 : index
    %32 = vector.load %arg8[%c1_29, %c0_30, %c0_31] : memref<3x16x32xf32, #tpu.memory_space<vmem>>, vector<1x16x32xf32>
    %33 = vector.shape_cast %32 : vector<1x16x32xf32> to vector<16x32xf32>
    %cst_32 = arith.constant dense<0.000000e+00> : vector<256x32xf32>
    %34 = tpu.matmul %8, %33, %cst_32 {dimension_numbers = #tpu.dot_dimension_numbers<[1], [0], [0], [1], [0, 0, 1, 1], [], []>} : vector<256x16xf32>, vector<16x32xf32>, vector<256x32xf32> -> vector<256x32xf32>
    %35 = arith.addf %31, %34 : vector<256x32xf32>
    %c1_33 = arith.constant 1 : index
    %c0_34 = arith.constant 0 : index
    %c0_35 = arith.constant 0 : index
    %36 = vector.load %arg9[%c1_33, %c0_34, %c0_35] : memref<3x1x32xf32, #tpu.memory_space<vmem>>, vector<1x1x32xf32>
    %37 = vector.shape_cast %36 : vector<1x1x32xf32> to vector<1x32xf32>
    %38 = vector.broadcast %37 : vector<1x32xf32> to vector<256x32xf32>
    %39 = arith.addf %35, %38 : vector<256x32xf32>
    %c1_36 = arith.constant 1 : index
    %c0_37 = arith.constant 0 : index
    %c0_38 = arith.constant 0 : index
    %40 = vector.load %arg10[%c1_36, %c0_37, %c0_38] : memref<3x32x32xf32, #tpu.memory_space<vmem>>, vector<1x32x32xf32>
    %41 = vector.shape_cast %40 : vector<1x32x32xf32> to vector<32x32xf32>
    %cst_39 = arith.constant dense<0.000000e+00> : vector<256x32xf32>
    %42 = tpu.matmul %10, %41, %cst_39 {dimension_numbers = #tpu.dot_dimension_numbers<[1], [0], [0], [1], [0, 0, 1, 1], [], []>} : vector<256x32xf32>, vector<32x32xf32>, vector<256x32xf32> -> vector<256x32xf32>
    %c1_40 = arith.constant 1 : index
    %c0_41 = arith.constant 0 : index
    %c0_42 = arith.constant 0 : index
    %43 = vector.load %arg11[%c1_40, %c0_41, %c0_42] : memref<3x1x32xf32, #tpu.memory_space<vmem>>, vector<1x1x32xf32>
    %44 = vector.shape_cast %43 : vector<1x1x32xf32> to vector<1x32xf32>
    %45 = vector.broadcast %44 : vector<1x32xf32> to vector<256x32xf32>
    %46 = arith.addf %42, %45 : vector<256x32xf32>
    %c2 = arith.constant 2 : index
    %c0_43 = arith.constant 0 : index
    %c0_44 = arith.constant 0 : index
    %47 = vector.load %arg7[%c2, %c0_43, %c0_44] : memref<3x32x32xf32, #tpu.memory_space<vmem>>, vector<1x32x32xf32>
    %48 = vector.shape_cast %47 : vector<1x32x32xf32> to vector<32x32xf32>
    %cst_45 = arith.constant dense<0.000000e+00> : vector<256x32xf32>
    %49 = tpu.matmul %9, %48, %cst_45 {dimension_numbers = #tpu.dot_dimension_numbers<[1], [0], [0], [1], [0, 0, 1, 1], [], []>} : vector<256x32xf32>, vector<32x32xf32>, vector<256x32xf32> -> vector<256x32xf32>
    %c2_46 = arith.constant 2 : index
    %c0_47 = arith.constant 0 : index
    %c0_48 = arith.constant 0 : index
    %50 = vector.load %arg8[%c2_46, %c0_47, %c0_48] : memref<3x16x32xf32, #tpu.memory_space<vmem>>, vector<1x16x32xf32>
    %51 = vector.shape_cast %50 : vector<1x16x32xf32> to vector<16x32xf32>
    %cst_49 = arith.constant dense<0.000000e+00> : vector<256x32xf32>
    %52 = tpu.matmul %8, %51, %cst_49 {dimension_numbers = #tpu.dot_dimension_numbers<[1], [0], [0], [1], [0, 0, 1, 1], [], []>} : vector<256x16xf32>, vector<16x32xf32>, vector<256x32xf32> -> vector<256x32xf32>
    %53 = arith.addf %49, %52 : vector<256x32xf32>
    %c2_50 = arith.constant 2 : index
    %c0_51 = arith.constant 0 : index
    %c0_52 = arith.constant 0 : index
    %54 = vector.load %arg9[%c2_50, %c0_51, %c0_52] : memref<3x1x32xf32, #tpu.memory_space<vmem>>, vector<1x1x32xf32>
    %55 = vector.shape_cast %54 : vector<1x1x32xf32> to vector<1x32xf32>
    %56 = vector.broadcast %55 : vector<1x32xf32> to vector<256x32xf32>
    %57 = arith.addf %53, %56 : vector<256x32xf32>
    %c2_53 = arith.constant 2 : index
    %c0_54 = arith.constant 0 : index
    %c0_55 = arith.constant 0 : index
    %58 = vector.load %arg10[%c2_53, %c0_54, %c0_55] : memref<3x32x32xf32, #tpu.memory_space<vmem>>, vector<1x32x32xf32>
    %59 = vector.shape_cast %58 : vector<1x32x32xf32> to vector<32x32xf32>
    %cst_56 = arith.constant dense<0.000000e+00> : vector<256x32xf32>
    %60 = tpu.matmul %10, %59, %cst_56 {dimension_numbers = #tpu.dot_dimension_numbers<[1], [0], [0], [1], [0, 0, 1, 1], [], []>} : vector<256x32xf32>, vector<32x32xf32>, vector<256x32xf32> -> vector<256x32xf32>
    %c2_57 = arith.constant 2 : index
    %c0_58 = arith.constant 0 : index
    %c0_59 = arith.constant 0 : index
    %61 = vector.load %arg11[%c2_57, %c0_58, %c0_59] : memref<3x1x32xf32, #tpu.memory_space<vmem>>, vector<1x1x32xf32>
    %62 = vector.shape_cast %61 : vector<1x1x32xf32> to vector<1x32xf32>
    %63 = vector.broadcast %62 : vector<1x32xf32> to vector<256x32xf32>
    %64 = arith.addf %60, %63 : vector<256x32xf32>
    %65 = arith.addf %21, %28 : vector<256x32xf32>
    %66 = arith.negf %65 : vector<256x32xf32>
    %67 = math.exp %66 : vector<256x32xf32>
    %cst_60 = arith.constant 1.000000e+00 : f32
    %68 = vector.broadcast %cst_60 : f32 to vector<256x32xf32>
    %69 = arith.addf %68, %67 : vector<256x32xf32>
    %70 = arith.divf %68, %69 : vector<256x32xf32>
    %71 = arith.addf %39, %46 : vector<256x32xf32>
    %72 = arith.negf %71 : vector<256x32xf32>
    %73 = math.exp %72 : vector<256x32xf32>
    %cst_61 = arith.constant 1.000000e+00 : f32
    %74 = vector.broadcast %cst_61 : f32 to vector<256x32xf32>
    %75 = arith.addf %74, %73 : vector<256x32xf32>
    %76 = arith.divf %74, %75 : vector<256x32xf32>
    %77 = arith.mulf %70, %64 : vector<256x32xf32>
    %78 = arith.addf %57, %77 : vector<256x32xf32>
    %79 = math.tanh %78 : vector<256x32xf32>
    %cst_62 = arith.constant 1.000000e+00 : f32
    %80 = vector.broadcast %cst_62 : f32 to vector<256x32xf32>
    %81 = arith.subf %80, %76 : vector<256x32xf32>
    %82 = arith.mulf %81, %79 : vector<256x32xf32>
    %83 = arith.mulf %76, %10 : vector<256x32xf32>
    %84 = arith.addf %82, %83 : vector<256x32xf32>
    %c0_63 = arith.constant 0 : index
    %c0_64 = arith.constant 0 : index
    %85 = vector.load %arg14[%c0_63, %c0_64] : memref<256x32xf32, #tpu.memory_space<vmem>>, vector<256x32xf32>
    tpu.vector_store %arg14[%c0_63, %c0_64], %84 {strides = array<i32>} : memref<256x32xf32, #tpu.memory_space<vmem>>, vector<256x32xf32>,
    %c0_65 = arith.constant 0 : index
    %c0_66 = arith.constant 0 : index
    %86 = vector.load %arg4[%c0_65, %c0_66] : memref<256x24xf32, #tpu.memory_space<vmem>>, vector<256x24xf32>
    %c0_67 = arith.constant 0 : index
    %c0_68 = arith.constant 0 : index
    %87 = vector.load %arg12[%c0_67, %c0_68] : memref<24x32xf32, #tpu.memory_space<vmem>>, vector<24x32xf32>
    %cst_69 = arith.constant dense<0.000000e+00> : vector<256x32xf32>
    %88 = tpu.matmul %86, %87, %cst_69 {dimension_numbers = #tpu.dot_dimension_numbers<[1], [0], [0], [1], [0, 0, 1, 1], [], []>} : vector<256x24xf32>, vector<24x32xf32>, vector<256x32xf32> -> vector<256x32xf32>
    %c0_70 = arith.constant 0 : index
    %c0_71 = arith.constant 0 : index
    %89 = vector.load %arg13[%c0_70, %c0_71] : memref<1x32xf32, #tpu.memory_space<vmem>>, vector<1x32xf32>
    %90 = vector.broadcast %89 : vector<1x32xf32> to vector<256x32xf32>
    %91 = arith.addf %88, %90 : vector<256x32xf32>
    %92 = arith.addf %84, %91 : vector<256x32xf32>
    %c0_72 = arith.constant 0 : index
    %c0_73 = arith.constant 0 : index
    %93 = vector.load %arg15[%c0_72, %c0_73] : memref<256x32xf32, #tpu.memory_space<vmem>>, vector<256x32xf32>
    tpu.vector_store %arg15[%c0_72, %c0_73], %92 {strides = array<i32>} : memref<256x32xf32, #tpu.memory_space<vmem>>, vector<256x32xf32>,
    return
  }
  func.func @transform_0(%arg0: i32) -> (i32, i32) {
    %c0_i32 = arith.constant 0 : i32
    %c0_i32_0 = arith.constant 0 : i32
    return %arg0, %c0_i32 : i32, i32
  }
  func.func @transform_1(%arg0: i32) -> (i32, i32) {
    %c0_i32 = arith.constant 0 : i32
    %c0_i32_0 = arith.constant 0 : i32
    return %arg0, %c0_i32 : i32, i32
  }
  func.func @transform_2(%arg0: i32) -> (i32, i32) {
    %c0_i32 = arith.constant 0 : i32
    %c0_i32_0 = arith.constant 0 : i32
    return %arg0, %c0_i32 : i32, i32
  }
  func.func @transform_3(%arg0: i32) -> (i32, i32) {
    %c0_i32 = arith.constant 0 : i32
    %c0_i32_0 = arith.constant 0 : i32
    return %arg0, %c0_i32 : i32, i32
  }
  func.func @transform_4(%arg0: i32) -> (i32, i32) {
    %c0_i32 = arith.constant 0 : i32
    %c0_i32_0 = arith.constant 0 : i32
    %c0_i32_1 = arith.constant 0 : i32
    return %c0_i32, %c0_i32_0 : i32, i32
  }
  func.func @transform_5(%arg0: i32) -> (i32, i32) {
    %c0_i32 = arith.constant 0 : i32
    %c0_i32_0 = arith.constant 0 : i32
    %c0_i32_1 = arith.constant 0 : i32
    return %c0_i32, %c0_i32_0 : i32, i32
  }
  func.func @transform_6(%arg0: i32) -> (i32, i32, i32) {
    %c0_i32 = arith.constant 0 : i32
    %c0_i32_0 = arith.constant 0 : i32
    %c0_i32_1 = arith.constant 0 : i32
    %c0_i32_2 = arith.constant 0 : i32
    return %c0_i32, %c0_i32_0, %c0_i32_1 : i32, i32, i32
  }
  func.func @transform_7(%arg0: i32) -> (i32, i32, i32) {
    %c0_i32 = arith.constant 0 : i32
    %c0_i32_0 = arith.constant 0 : i32
    %c0_i32_1 = arith.constant 0 : i32
    %c0_i32_2 = arith.constant 0 : i32
    return %c0_i32, %c0_i32_0, %c0_i32_1 : i32, i32, i32
  }
  func.func @transform_8(%arg0: i32) -> (i32, i32, i32) {
    %c0_i32 = arith.constant 0 : i32
    %c0_i32_0 = arith.constant 0 : i32
    %c0_i32_1 = arith.constant 0 : i32
    %c0_i32_2 = arith.constant 0 : i32
    return %c0_i32, %c0_i32_0, %c0_i32_1 : i32, i32, i32
  }
  func.func @transform_9(%arg0: i32) -> (i32, i32, i32) {
    %c0_i32 = arith.constant 0 : i32
    %c0_i32_0 = arith.constant 0 : i32
    %c0_i32_1 = arith.constant 0 : i32
    %c0_i32_2 = arith.constant 0 : i32
    return %c0_i32, %c0_i32_0, %c0_i32_1 : i32, i32, i32
  }
  func.func @transform_10(%arg0: i32) -> (i32, i32, i32) {
    %c0_i32 = arith.constant 0 : i32
    %c0_i32_0 = arith.constant 0 : i32
    %c0_i32_1 = arith.constant 0 : i32
    %c0_i32_2 = arith.constant 0 : i32
    return %c0_i32, %c0_i32_0, %c0_i32_1 : i32, i32, i32
  }
  func.func @transform_11(%arg0: i32) -> (i32, i32) {
    %c0_i32 = arith.constant 0 : i32
    %c0_i32_0 = arith.constant 0 : i32
    %c0_i32_1 = arith.constant 0 : i32
    return %c0_i32, %c0_i32_0 : i32, i32
  }
  func.func @transform_12(%arg0: i32) -> (i32, i32) {
    %c0_i32 = arith.constant 0 : i32
    %c0_i32_0 = arith.constant 0 : i32
    %c0_i32_1 = arith.constant 0 : i32
    return %c0_i32, %c0_i32_0 : i32, i32
  }
  func.func @transform_13(%arg0: i32) -> (i32, i32) {
    %c0_i32 = arith.constant 0 : i32
    %c0_i32_0 = arith.constant 0 : i32
    return %arg0, %c0_i32 : i32, i32
  }
  func.func @transform_14(%arg0: i32) -> (i32, i32) {
    %c0_i32 = arith.constant 0 : i32
    %c0_i32_0 = arith.constant 0 : i32
    return %arg0, %c0_i32 : i32, i32
  }
}

</mosaic_0001>

<bundles_post_ra>
// kernel: tpu_custom_call.1
= control target key start
LH: loop header
LB: loop body
LE: loop exit
PB: predicated region body
PF: predicated region fallthrough
CT: control target
= control target key end

     0   :  { %s10146_s29 = smov 0   ;;  %s16816_s0 = inlined_call_operand.vmem [shape: f32[512,1], index: 0, kind: input, shape index: {}]   ;;  %s16817_s1 = inlined_call_operand.vmem [shape: f32[512,32], index: 1, kind: input, shape index: {}]   ;;  %s16818_s2 = inlined_call_operand.vmem [shape: f32[512,32], index: 2, kind: input, shape index: {}]   ;;  %s16819_s3 = inlined_call_operand.vmem [shape: f32[512,24], index: 3, kind: input, shape index: {}]   ;;  %s16820_s4 = inlined_call_operand.vmem [shape: f32[1,16], index: 4, kind: input, shape index: {}]   ;;  %s16821_s5 = inlined_call_operand.vmem [shape: f32[1,16], index: 5, kind: input, shape index: {}]   ;;  %s16822_s6 = inlined_call_operand.vmem [shape: f32[3,32,32], index: 6, kind: input, shape index: {}]   ;;  %s16823_s7 = inlined_call_operand.vmem [shape: f32[3,16,32], index: 7, kind: input, shape index: {}]   ;;  %s16824_s8 = inlined_call_operand.vmem [shape: f32[3,1,32], index: 8, kind: input, shape index: {}]   ;;  %s16825_s9 = inlined_call_operand.vmem [shape: f32[3,32,32], index: 9, kind: input, shape index: {}]   ;;  %s16826_s10 = inlined_call_operand.vmem [shape: f32[3,1,32], index: 10, kind: input, shape index: {}]   ;;  %s16827_s11 = inlined_call_operand.vmem [shape: f32[24,32], index: 11, kind: input, shape index: {}]   ;;  %s16828_s12 = inlined_call_operand.vmem [shape: f32[1,32], index: 12, kind: input, shape index: {}]   ;;  %s16829_s13 = inlined_call_operand.vmem [shape: f32[512,32], index: 13, kind: output, shape index: {0}]   ;;  %s16830_s14 = inlined_call_operand.vmem [shape: f32[512,32], index: 14, kind: output, shape index: {1}]  }
   0x1 LB: > { %s7932_s30 = sadd.s32 4294967295, %s10062_s29   ;;  %p7936_p0 = scmp.ge.s32.totalorder %s10062_s29, 1  ;;  %s10062_s29 = sphi %s10146_s29, %s25_s29  }
   0x2   : > { %p449_p1 = scmp.lt.s32.totalorder %s10062_s29, 3 }
   0x4   : > { %p450_p2 = pnand %p7936_p0, %p449_p1 }
   0x6   : > { %453 = sbr.rel (%p450_p2) target bundleno = 1475 (0x5c3), region = 72 }
   0xb   : > { %s7937_s15 = sshll.u32 %s7932_s30, 5  ;;  %v10064_v0 = vmov 0   ;;  %v4184_v21 = vld [vmem:[%s16822_s6 + $0x18] sm:$0xff]  ;;  %v4183_v26 = vld [vmem:[%s16822_s6 + $0x10] sm:$0xff]  ;;  %v4182_v29 = vld [vmem:[%s16822_s6 + $0x8] sm:$0xff]  ;;  %vm16944_vm0 = vcmask 261120  }
   0xc   : > { %9539 = vset.pattern.permute.xlu1 %v10064_v0  ;;  %9538 = vset.pattern.permute.xlu0 %v10064_v0  ;;  %p516_p3 = scmp.lt.s32.totalorder %s7937_s15, 63  ;;  %v4181_v34 = vld [vmem:[%s16822_s6] sm:$0xff] }
   0xd   : > { %8901 = vmatprep.subr.mxu1 %v4184_v21  ;;  %v10244_v53 = vld [vmem:[%s16820_s4] ss:$0 sm:$0xff] }
   0xe   : > { %s18296_s15 = smov (!%p516_p3, %s7937_s15), 63  ;;  %8902 = vmatpush3.msra.mxu1 %v4184_v21  ;;  %v10253_v57 = vld [vmem:[%s16821_s5] ss:$0 sm:$0xff] }
   0xf   : > { %s10154_s16 = sshll.u32 %s18296_s15, 3  ;;  %8903 = vmatprep.subr.mxu1 %v4183_v26 }
  0x10   : > { %s10160_s19 = scalar_lea.vmem %s16816_s0, %s10154_s16  ;;  %8904 = vmatpush3.msra.mxu1 %v4183_v26  ;;  %s10208_s15 = scalar_lea.vmem %s16817_s1, %s10154_s16 }
  0x11   : > { %v553_v1 = vld [vmem:[%s10160_s19 + $0x10] sm:$0xff]  ;;  %v551_v2 = vld [vmem:[%s10160_s19] sm:$0xff]  ;;  %v554_v3 = vld [vmem:[%s10160_s19 + $0x18] sm:$0xff]  ;;  %8905 = vmatprep.subr.mxu1 %v4182_v29  ;;  %s14469_s18 = scalar_lea.vmem %s16818_s2, %s10154_s16  ;;  %s14964_s21 = scalar_lea.vmem %s16819_s3, %s10154_s16 }
  0x12   : > { %596 = vperm.xlu1 %9539, %v553_v1   ;;  %586 = vperm.xlu0 %9538, %v551_v2   ;;  %v552_v4 = vld [vmem:[%s10160_s19 + $0x8] sm:$0xff]  ;;  %v555_v6 = vld [vmem:[%s10160_s19 + $0x20] sm:$0xff]  ;;  %v558_v7 = vld [vmem:[%s10160_s19 + $0x38] sm:$0xff]  ;;  %s16421_s17 = scalar_lea.vmem %s16829_s13, %s10154_s16 }
  0x13   : > { %v556_v5 = vld [vmem:[%s10160_s19 + $0x28] sm:$0xff]  ;;  %v557_v8 = vld [vmem:[%s10160_s19 + $0x30] sm:$0xff]  ;;  %v559_v10 = vld [vmem:[%s10160_s19 + $0x40] sm:$0xff]  ;;  %8906 = vmatpush3.msra.mxu1 %v4182_v29 }
  0x14   : > { %v560_v9 = vld [vmem:[%s10160_s19 + $0x48] sm:$0xff]  ;;  %v562_v11 = vld [vmem:[%s10160_s19 + $0x58] sm:$0xff]  ;;  %v561_v12 = vld [vmem:[%s10160_s19 + $0x50] sm:$0xff]  ;;  %8907 = vmatprep.subr.mxu1 %v4181_v34 }
  0x15   : > { %v564_v13 = vld [vmem:[%s10160_s19 + $0x68] sm:$0xff]  ;;  %v563_v14 = vld [vmem:[%s10160_s19 + $0x60] sm:$0xff]  ;;  %v566_v15 = vld [vmem:[%s10160_s19 + $0x78] sm:$0xff]  ;;  %8908 = vmatpush3.msra.mxu1 %v4181_v34 }
  0x16   : > { %601 = vperm.xlu1 %9539, %v554_v3   ;;  %591 = vperm.xlu0 %9538, %v552_v4   ;;  %v565_v16 = vld [vmem:[%s10160_s19 + $0x70] sm:$0xff]  ;;  %v568_v17 = vld [vmem:[%s10160_s19 + $0x88] sm:$0xff]  ;;  %v567_v18 = vld [vmem:[%s10160_s19 + $0x80] sm:$0xff] }
  0x17   : > { %v570_v19 = vld [vmem:[%s10160_s19 + $0x98] sm:$0xff]  ;;  %v569_v20 = vld [vmem:[%s10160_s19 + $0x90] sm:$0xff]  ;;  %v572_v22 = vld [vmem:[%s10160_s19 + $0xa8] sm:$0xff] }
  0x18   : > { %v571_v23 = vld [vmem:[%s10160_s19 + $0xa0] sm:$0xff]  ;;  %v574_v24 = vld [vmem:[%s10160_s19 + $0xb8] sm:$0xff]  ;;  %v573_v25 = vld [vmem:[%s10160_s19 + $0xb0] sm:$0xff] }
  0x19   : > { %v576_v27 = vld [vmem:[%s10160_s19 + $0xc8] sm:$0xff]  ;;  %v575_v28 = vld [vmem:[%s10160_s19 + $0xc0] sm:$0xff]  ;;  %v578_v30 = vld [vmem:[%s10160_s19 + $0xd8] sm:$0xff] }
  0x1a   : > { %611 = vperm.xlu1 %9539, %v556_v5   ;;  %606 = vperm.xlu0 %9538, %v555_v6   ;;  %v577_v31 = vld [vmem:[%s10160_s19 + $0xd0] sm:$0xff]  ;;  %v580_v32 = vld [vmem:[%s10160_s19 + $0xe8] sm:$0xff]  ;;  %v579_v33 = vld [vmem:[%s10160_s19 + $0xe0] sm:$0xff] }
  0x1b   : > { %v4117_v35 = vld [vmem:[%s10208_s15] sm:$0xff]  ;;  %v582_v36 = vld [vmem:[%s10160_s19 + $0xf8] sm:$0xff]  ;;  %v581_v37 = vld [vmem:[%s10160_s19 + $0xf0] sm:$0xff] }
  0x1c   : > { %8909 = vmatprep.mubr.msk.f32.mxu1 %vm16944_vm0, %v4117_v35  ;;  %v4118_v38 = vld [vmem:[%s10208_s15 + $0x8] sm:$0xff]  ;;  %v4119_v39 = vld [vmem:[%s10208_s15 + $0x10] sm:$0xff]  ;;  %v4120_v40 = vld [vmem:[%s10208_s15 + $0x18] sm:$0xff] }
  0x1d   : > { %8910 = vmatmul.mubr.msk.f32.vlgmr.msra.gmra.mxu1 %vm16944_vm0, %v4118_v38  ;;  %v4121_v41 = vld [vmem:[%s10208_s15 + $0x20] sm:$0xff]  ;;  %v4122_v42 = vld [vmem:[%s10208_s15 + $0x28] sm:$0xff]  ;;  %v4123_v43 = vld [vmem:[%s10208_s15 + $0x30] sm:$0xff] }
  0x1e   : > { %621 = vperm.xlu1 %9539, %v558_v7   ;;  %616 = vperm.xlu0 %9538, %v557_v8   ;;  %v4124_v44 = vld [vmem:[%s10208_s15 + $0x38] sm:$0xff]  ;;  %v4125_v45 = vld [vmem:[%s10208_s15 + $0x40] sm:$0xff]  ;;  %v4126_v46 = vld [vmem:[%s10208_s15 + $0x48] sm:$0xff] }
  0x1f   : > { %8912 = vmatprep.mubr.msk.f32.mxu1 %vm16944_vm0, %v4119_v39  ;;  %v4127_v47 = vld [vmem:[%s10208_s15 + $0x50] sm:$0xff]  ;;  %v4128_v48 = vld [vmem:[%s10208_s15 + $0x58] sm:$0xff]  ;;  %v4129_v49 = vld [vmem:[%s10208_s15 + $0x60] sm:$0xff] }
  0x20   : > { %v4130_v50 = vld [vmem:[%s10208_s15 + $0x68] sm:$0xff]  ;;  %v4131_v52 = vld [vmem:[%s10208_s15 + $0x70] sm:$0xff]  ;;  %v4132_v54 = vld [vmem:[%s10208_s15 + $0x78] sm:$0xff] }
  0x21   : > { %8913 = vmatmul.mubr.msk.f32.gmra.mxu1 %vm16944_vm0, %v4120_v40  ;;  %v4133_v2 = vld [vmem:[%s10208_s15 + $0x80] sm:$0xff]  ;;  %v4134_v5 = vld [vmem:[%s10208_s15 + $0x88] sm:$0xff]  ;;  %v4139_v34 = vld [vmem:[%s10208_s15 + $0xb0] sm:$0xff] }
  0x22   : > { %631 = vperm.xlu1 %9539, %v560_v9   ;;  %626 = vperm.xlu0 %9538, %v559_v10   ;;  %v4137_v26 = vld [vmem:[%s10208_s15 + $0xa0] sm:$0xff]  ;;  %v4138_v29 = vld [vmem:[%s10208_s15 + $0xa8] sm:$0xff]  ;;  %v4140_v39 = vld [vmem:[%s10208_s15 + $0xb8] sm:$0xff] }
  0x23   : > { %8915 = vmatprep.mubr.msk.f32.mxu1 %vm16944_vm0, %v4121_v41 }
  0x25   : > { %8916 = vmatmul.mubr.msk.f32.gmra.mxu1 %vm16944_vm0, %v4122_v42 }
  0x26   : > { %641 = vperm.xlu1 %9539, %v562_v11   ;;  %636 = vperm.xlu0 %9538, %v561_v12  }
  0x27   : > { %8918 = vmatprep.mubr.msk.f32.mxu1 %vm16944_vm0, %v4123_v43 }
  0x29   : > { %8919 = vmatmul.mubr.msk.f32.gmra.mxu1 %vm16944_vm0, %v4124_v44 }
  0x2a   : > { %651 = vperm.xlu1 %9539, %v564_v13   ;;  %646 = vperm.xlu0 %9538, %v563_v14  }
  0x2b   : > { %8921 = vmatprep.mubr.msk.f32.mxu1 %vm16944_vm0, %v4125_v45  ;;  %v4141_v45 = vld [vmem:[%s10208_s15 + $0xc0] sm:$0xff] }
  0x2d   : > { %8922 = vmatmul.mubr.msk.f32.gmra.mxu1 %vm16944_vm0, %v4126_v46 }
  0x2e   : > { %661 = vperm.xlu1 %9539, %v566_v15   ;;  %656 = vperm.xlu0 %9538, %v565_v16   ;;  %v4135_v16 = vld [vmem:[%s10208_s15 + $0x90] sm:$0xff] }
  0x2f   : > { %8924 = vmatprep.mubr.msk.f32.mxu1 %vm16944_vm0, %v4127_v47  ;;  %v4142_v47 = vld [vmem:[%s10208_s15 + $0xc8] sm:$0xff] }
  0x31   : > { %8925 = vmatmul.mubr.msk.f32.gmra.mxu1 %vm16944_vm0, %v4128_v48 }
  0x32   : > { %671 = vperm.xlu1 %9539, %v568_v17   ;;  %666 = vperm.xlu0 %9538, %v567_v18  }
  0x33   : > { %8927 = vmatprep.mubr.msk.f32.mxu1 %vm16944_vm0, %v4129_v49 }
  0x35   : > { %8928 = vmatmul.mubr.msk.f32.gmra.mxu1 %vm16944_vm0, %v4130_v50 }
  0x36   : > { %681 = vperm.xlu1 %9539, %v570_v19   ;;  %676 = vperm.xlu0 %9538, %v569_v20   ;;  %v4136_v20 = vld [vmem:[%s10208_s15 + $0x98] sm:$0xff] }
  0x37   : > { %8930 = vmatprep.mubr.msk.f32.mxu1 %vm16944_vm0, %v4131_v52 }
  0x39   : > { %8931 = vmatmul.mubr.msk.f32.gmra.mxu1 %vm16944_vm0, %v4132_v54 }
  0x3a   : > { %691 = vperm.xlu1 %9539, %v572_v22   ;;  %686 = vperm.xlu0 %9538, %v571_v23  }
  0x3b   : > { %8933 = vmatprep.mubr.msk.f32.mxu1 %vm16944_vm0, %v4133_v2 }
  0x3d   : > { %8934 = vmatmul.mubr.msk.f32.gmra.mxu1 %vm16944_vm0, %v4134_v5 }
  0x3e   : > { %701 = vperm.xlu1 %9539, %v574_v24   ;;  %696 = vperm.xlu0 %9538, %v573_v25  }
  0x3f   : > { %8936 = vmatprep.mubr.msk.f32.mxu1 %vm16944_vm0, %v4135_v16 }
  0x41   : > { %8937 = vmatmul.mubr.msk.f32.gmra.mxu1 %vm16944_vm0, %v4136_v20 }
  0x42   : > { %711 = vperm.xlu1 %9539, %v576_v27   ;;  %706 = vperm.xlu0 %9538, %v575_v28  }
  0x43   : > { %8939 = vmatprep.mubr.msk.f32.mxu1 %vm16944_vm0, %v4137_v26 }
  0x45   : > { %8940 = vmatmul.mubr.msk.f32.gmra.mxu1 %vm16944_vm0, %v4138_v29 }
  0x46   : > { %721 = vperm.xlu1 %9539, %v578_v30   ;;  %716 = vperm.xlu0 %9538, %v577_v31  }
  0x47   : > { %8942 = vmatprep.mubr.msk.f32.mxu1 %vm16944_vm0, %v4139_v34 }
  0x49   : > { %8943 = vmatmul.mubr.msk.f32.gmra.mxu1 %vm16944_vm0, %v4140_v39 }
  0x4a   : > { %731 = vperm.xlu1 %9539, %v580_v32   ;;  %726 = vperm.xlu0 %9538, %v579_v33  }
  0x4b   : > { %8945 = vmatprep.mubr.msk.f32.mxu1 %vm16944_vm0, %v4141_v45 }
  0x4d   : > { %8946 = vmatmul.mubr.msk.f32.gmra.mxu1 %vm16944_vm0, %v4142_v47 }
  0x4e   : > { %741 = vperm.xlu1 %9539, %v582_v36   ;;  %736 = vperm.xlu0 %9538, %v581_v37  }
  0x8d   : > { %v597_v51 = vpop.permute.xlu1 %596  ;;  %v587_v55 = vpop.permute.xlu0 %586 }
  0x8e   : > { %v752_v56 = vmul.f32 %v10244_v53, %v597_v51  ;;  %v750_v0 = vmul.f32 %v10244_v53, %v587_v55 }
  0x90   : > { %v10256_v59 = vadd.f32 %v10253_v57, %v752_v56  ;;  %v10273_v7 = vadd.f32 %v10253_v57, %v750_v0  ;;  %v4144_v0 = vld [vmem:[%s10208_s15 + $0xd8] sm:$0xff] }
  0x91   : > { %v602_v58 = vpop.permute.xlu1 %601  ;;  %v592_v60 = vpop.permute.xlu0 %591 }
  0x92   : > { %v753_v61 = vmul.f32 %v10244_v53, %v602_v58  ;;  %v751_v62 = vmul.f32 %v10244_v53, %v592_v60  ;;  %v1030_v63 = vand.u32 2139095040, %v10256_v59  ;;  %v824_v13 = vand.u32 2139095040, %v10273_v7  ;;  %v4143_v60 = vld [vmem:[%s10208_s15 + $0xd0] sm:$0xff] }
  0x93   : > { %v16831_v40 = vand.u32 2147483647, %v10273_v7  ;;  %8948 = vmatprep.mubr.msk.f32.mxu1 %vm16944_vm0, %v4143_v60 }
  0x94   : > { %v10263_v1 = vadd.f32 %v10253_v57, %v753_v61  ;;  %v10267_v3 = vadd.f32 %v10253_v57, %v751_v62  ;;  %v1031_v6 = vshrl.u32 %v1030_v63, 23  ;;  %v825_v22 = vshrl.u32 %v824_v13, 23  ;;  %8949 = vmatmul.mubr.msk.f32.gmra.mxu1 %vm16944_vm0, %v4144_v0 }
  0x95   : > { %v612_v4 = vpop.permute.xlu1 %611  ;;  %v607_v12 = vpop.permute.xlu0 %606  ;;  %v10314_v50 = vand.u32 8388607, %v16831_v40  ;;  %v16846_v13 = vmov 920167782  }
  0x96   : > { %v1133_v8 = vand.u32 2139095040, %v10263_v1  ;;  %v755_v9 = vmul.f32 %v10244_v53, %v612_v4  ;;  %v927_v10 = vand.u32 2139095040, %v10267_v3  ;;  %v7959_v11 = vadd.s32 4294967169, %v1031_v6 }
  0x97   : > { %v754_v18 = vmul.f32 %v10244_v53, %v607_v12  ;;  %v7951_v30 = vadd.s32 4294967169, %v825_v22 }
  0x98   : > { %v1134_v14 = vshrl.u32 %v1133_v8, 23  ;;  %v10280_v15 = vadd.f32 %v10253_v57, %v755_v9  ;;  %v928_v17 = vshrl.u32 %v927_v10, 23  ;;  %v1037_v21 = vadd.s32 1, %v7959_v11 }
  0x99   : > { %v622_v19 = vpop.permute.xlu1 %621  ;;  %v10291_v28 = vadd.f32 %v10253_v57, %v754_v18  ;;  %v617_v38 = vpop.permute.xlu0 %616  ;;  %v831_v41 = vadd.s32 1, %v7951_v30  ;;  %v16832_v8 = vmov 2102212464   ;;  %v4186_v30 = vld [vmem:[%s16823_s7 + $0x8] sm:$0xff] }
  0x9a   : > { %17160 = vst [vmem:[#allocation2_spill] sm:$0xff] %v10280_v15  ;;  %v7963_v23 = vadd.s32 4294967169, %v1134_v14  ;;  %v1339_v24 = vand.u32 2139095040, %v10280_v15  ;;  %v757_v25 = vmul.f32 %v10244_v53, %v622_v19  ;;  %v7955_v27 = vadd.s32 4294967169, %v928_v17  ;;  %v4145_v19 = vld [vmem:[%s10208_s15 + $0xe0] sm:$0xff]  ;;  %8849 = vmatprep.subr.mxu0 %v4186_v30 }
  0x9b   : > { %vm1038_vm1 = vcmp.gt.s32.totalorder %v1037_v21, 0  ;;  %v1236_v37 = vand.u32 2139095040, %v10291_v28  ;;  %vm832_vm4 = vcmp.gt.s32.totalorder %v831_v41, 0  ;;  %v756_v52 = vmul.f32 %v10244_v53, %v617_v38  ;;  %8951 = vmatprep.mubr.msk.f32.mxu1 %vm16944_vm0, %v4145_v19  ;;  %8850 = vmatpush3.msra.mxu0 %v4186_v30 }
  0x9c   : > { %v1140_v31 = vadd.s32 1, %v7963_v23  ;;  %v10297_v32 = vadd.f32 %v10253_v57, %v757_v25  ;;  %v1340_v33 = vshrl.u32 %v1339_v24, 23  ;;  %v1039_v35 = vsel %vm1038_vm1, %v1037_v21, 0  ;;  %v4146_v24 = vld [vmem:[%s10208_s15 + $0xe8] sm:$0xff]  ;;  %v4147_v25 = vld [vmem:[%s10208_s15 + $0xf0] sm:$0xff] }
  0x9d   : > { %v934_v36 = vadd.s32 1, %v7955_v27  ;;  %v10306_v43 = vand.u32 31, %v1039_v35  ;;  %v1237_v46 = vshrl.u32 %v1236_v37, 23  ;;  %v632_v49 = vpop.permute.xlu1 %631  ;;  %v627_v54 = vpop.permute.xlu0 %626  ;;  %v10326_v2 = vshrl.u32 %v1039_v35, 5  ;;  %8952 = vmatmul.mubr.msk.f32.gmra.mxu1 %vm16944_vm0, %v4146_v24 }
  0x9e   : > { %17161 = vst [vmem:[#allocation3_spill] sm:$0xff] %v10297_v32  ;;  %vm1141_vm2 = vcmp.gt.s32.totalorder %v1140_v31, 0  ;;  %v1545_v42 = vand.u32 2139095040, %v10297_v32  ;;  %v7971_v44 = vadd.s32 4294967169, %v1340_v33  ;;  %v759_v63 = vmul.f32 %v10244_v53, %v632_v49  ;;  %8954 = vmatprep.mubr.msk.f32.mxu1 %vm16944_vm0, %v4147_v25 }
  0x9f   : > { %vm935_vm3 = vcmp.gt.s32.totalorder %v934_v36, 0  ;;  %v1142_v48 = vsel %vm1141_vm2, %v1140_v31, 0  ;;  %v10318_v55 = vsub.s32 32, %v10306_v43  ;;  %v7967_v62 = vadd.s32 4294967169, %v1237_v46 }
  0xa0   : > { %v1546_v51 = vshrl.u32 %v1545_v42, 23  ;;  %v936_v56 = vsel %vm935_vm3, %v934_v36, 0  ;;  %v1346_v58 = vadd.s32 1, %v7971_v44  ;;  %v10321_v61 = vand.u32 31, %v1142_v48  ;;  %v4148_v36 = vld [vmem:[%s10208_s15 + $0xf8] sm:$0xff] }
  0xa1   : > { %v833_v4 = vsel %vm832_vm4, %v831_v41, 0  ;;  %v758_v5 = vmul.f32 %v10244_v53, %v627_v54  ;;  %v1053_v9 = vshll.u32 %v16832_v8, %v10306_v43  ;;  %v10333_v10 = vand.u32 31, %v936_v56  ;;  %v642_v42 = vpop.permute.xlu1 %641  ;;  %8955 = vmatmul.mubr.msk.f32.gmra.mxu1 %vm16944_vm0, %v4148_v36 }
  0xa2   : > { %v7979_v11 = vadd.s32 4294967169, %v1546_v51  ;;  %v10336_v12 = vadd.f32 %v10253_v57, %v756_v52  ;;  %v1054_v14 = vshrl.u32 %v16846_v13, %v10318_v55  ;;  %v10342_v16 = vshll.u32 %v16846_v13, %v10306_v43 }
  0xa3   : > { %v16852_v17 = vmov 1326507024   ;;  %vm1347_vm5 = vcmp.gt.s32.totalorder %v1346_v58, 0  ;;  %v10347_v20 = vshrl.u32 %v833_v4, 5  ;;  %v10350_v21 = vsub.s32 32, %v10321_v61 }
  0xa4   : > { %17162 = vst [vmem:[#allocation4_spill] sm:$0xff] %v10336_v12  ;;  %v1057_v18 = vshrl.u32 %v16852_v17, %v10318_v55  ;;  %v1243_v22 = vadd.s32 1, %v7967_v62  ;;  %v10353_v23 = vadd.f32 %v10253_v57, %v759_v63  ;;  %vm1062_vm6 = vcmp.lt.s32.totalorder %v10326_v2, 4 }
  0xa5   : > { %v10359_v26 = vand.u32 31, %v833_v4  ;;  %v10361_v27 = vshrl.u32 %v1142_v48, 5  ;;  %v10364_v29 = vadd.f32 %v10253_v57, %v758_v5  ;;  %v10371_v31 = vsub.s32 32, %v10333_v10  ;;  %v652_v19 = vpop.permute.xlu1 %651 }
  0xa6   : > { %17163 = vst [vmem:[#allocation5_spill] sm:$0xff] %v10353_v23  ;;  %v1348_v33 = vsel %vm1347_vm5, %v1346_v58, 0  ;;  %v1552_v34 = vadd.s32 1, %v7979_v11  ;;  %v1442_v35 = vand.u32 2139095040, %v10336_v12  ;;  %v10377_v37 = vor.u32 %v1054_v14, %v1053_v9 }
  0xa7   : > { %17164 = vst [vmem:[#allocation6_spill] sm:$0xff] %v10364_v29  ;;  %v1058_v38 = vor.u32 %v1057_v18, %v10342_v16  ;;  %v1156_v39 = vshll.u32 %v16832_v8, %v10321_v61  ;;  %v10382_v41 = vshrl.u32 %v936_v56, 5  ;;  %v1157_v44 = vshrl.u32 %v16846_v13, %v10350_v21  ;;  %v637_v56 = vpop.permute.xlu0 %636 }
  0xa8   : > { %v1160_v45 = vshrl.u32 %v16852_v17, %v10350_v21  ;;  %vm1244_vm7 = vcmp.gt.s32.totalorder %v1243_v22, 0  ;;  %v1751_v46 = vand.u32 2139095040, %v10353_v23  ;;  %v1159_v47 = vshll.u32 %v16846_v13, %v10321_v61 }
  0xa9   : > { %vm1165_vm8 = vcmp.lt.s32.totalorder %v10361_v27, 4  ;;  %v10392_v48 = vand.u32 31, %v1348_v33  ;;  %v1648_v49 = vand.u32 2139095040, %v10364_v29  ;;  %v951_v51 = vshrl.u32 %v16846_v13, %v10371_v31  ;;  %v662_v12 = vpop.permute.xlu1 %661 }
  0xaa   : > { %vm1553_vm9 = vcmp.gt.s32.totalorder %v1552_v34, 0  ;;  %v1443_v52 = vshrl.u32 %v1442_v35, 23  ;;  %v761_v54 = vmul.f32 %v10244_v53, %v642_v42  ;;  %v10402_v58 = vsel %vm1062_vm6, %v10377_v37, 920167782 }
  0xab   : > { %17165 = vst [vmem:[#allocation7_spill] sm:$0xff] %v10392_v48  ;;  %v950_v60 = vshll.u32 %v16832_v8, %v10333_v10  ;;  %v954_v62 = vshrl.u32 %v16852_v17, %v10371_v31  ;;  %v1245_v63 = vsel %vm1244_vm7, %v1243_v22, 0  ;;  %v10408_v0 = vor.u32 %v1157_v44, %v1156_v39 }
  0xac   : > { %v1161_v4 = vor.u32 %v1160_v45, %v1159_v47  ;;  %v953_v5 = vshll.u32 %v16846_v13, %v10333_v10  ;;  %v1752_v9 = vshrl.u32 %v1751_v46, 23  ;;  %v10413_v11 = vsub.s32 32, %v10392_v48 }
  0xad   : > { %v1554_v14 = vsel %vm1553_vm9, %v1552_v34, 0  ;;  %v1649_v16 = vshrl.u32 %v1648_v49, 23  ;;  %v760_v18 = vmul.f32 %v10244_v53, %v637_v56  ;;  %v10416_v24 = vor.u32 %v951_v51, %v950_v60 }
  0xae   : > { %17166 = vst [vmem:[#allocation8_spill] sm:$0xff] %v10413_v11  ;;  %v10418_v25 = vand.u32 31, %v1245_v63  ;;  %v7975_v22 = vadd.s32 4294967169, %v1443_v52  ;;  %v10421_v30 = vadd.f32 %v10253_v57, %v761_v54  ;;  %v10425_v35 = vsel %vm1062_vm6, %v1058_v38, 1326507024 }
  0xaf   : > { %v955_v36 = vor.u32 %v954_v62, %v953_v5  ;;  %vm959_vm10 = vcmp.lt.s32.totalorder %v10382_v41, 4  ;;  %v10428_v34 = vshrl.u32 %v1348_v33, 5  ;;  %v10433_v39 = vsel %vm1165_vm8, %v10408_v0, 920167782 }
  0xb0   : > { %17167 = vst [vmem:[#allocation9_spill] sm:$0xff] %v10418_v25  ;;  %17168 = vst [vmem:[#allocation10_spill] sm:$0xff] %v10421_v30  ;;  %v10435_v42 = vand.u32 31, %v1554_v14  ;;  %v7987_v44 = vadd.s32 4294967169, %v1752_v9  ;;  %v763_v45 = vmul.f32 %v10244_v53, %v652_v19  ;;  %v10440_v46 = vsel %vm1165_vm8, %v1161_v4, 1326507024  ;;  %v647_v19 = vpop.permute.xlu0 %646 }
  0xb1   : > { %17169 = vst [vmem:[#allocation11_spill] sm:$0xff] %v10428_v34  ;;  %v1363_v38 = vshrl.u32 %v16846_v13, %v10413_v11  ;;  %v7983_v47 = vadd.s32 4294967169, %v1649_v16  ;;  %v10445_v33 = vadd.f32 %v10253_v57, %v760_v18  ;;  %v10450_v49 = vsel %vm959_vm10, %v10416_v24, 920167782 }
  0xb2   : > { %17170 = vst [vmem:[#allocation12_spill] sm:$0xff] %v10435_v42  ;;  %v10453_v51 = vsub.s32 32, %v10418_v25  ;;  %v1449_v52 = vadd.s32 1, %v7975_v22  ;;  %v1957_v54 = vand.u32 2139095040, %v10421_v30  ;;  %v10458_v56 = vsel %vm959_vm10, %v955_v36, 1326507024 }
  0xb3   : > { %17171 = vst [vmem:[#allocation13_spill] sm:$0xff] %v10445_v33  ;;  %v1362_v60 = vshll.u32 %v16832_v8, %v10392_v48  ;;  %v1365_v62 = vshll.u32 %v16846_v13, %v10392_v48  ;;  %v1366_v4 = vshrl.u32 %v16852_v17, %v10413_v11  ;;  %v10466_v5 = vshrl.u32 %v1245_v63, 5 }
  0xb4   : > { %17172 = vst [vmem:[#allocation14_spill] sm:$0xff] %v10453_v51  ;;  %v10469_v9 = vsub.s32 32, %v10435_v42  ;;  %v1758_v16 = vadd.s32 1, %v7987_v44  ;;  %v10472_v18 = vadd.f32 %v10253_v57, %v763_v45  ;;  %vm1371_vm11 = vcmp.lt.s32.totalorder %v10428_v34, 4 }
  0xb5   : > { %17173 = vst [vmem:[#allocation15_spill] sm:$0xff] %v10466_v5  ;;  %v10474_v22 = vor.u32 %v1363_v38, %v1362_v60  ;;  %v1655_v36 = vadd.s32 1, %v7983_v47  ;;  %v1854_v40 = vand.u32 2139095040, %v10445_v33  ;;  %v1260_v6 = vshrl.u32 %v16846_v13, %v10453_v51 }
  0xb6   : > { %17174 = vst [vmem:[#allocation16_spill] sm:$0xff] %v10469_v9  ;;  %17175 = vst [vmem:[#allocation17_spill] sm:$0xff] %v10472_v18  ;;  %v1263_v63 = vshrl.u32 %v16852_v17, %v10453_v51  ;;  %vm1450_vm12 = vcmp.gt.s32.totalorder %v1449_v52, 0  ;;  %v1958_v8 = vshrl.u32 %v1957_v54, 23  ;;  %v1367_v44 = vor.u32 %v1366_v4, %v1365_v62 }
  0xb7   : > { %17176 = vst [vmem:[#allocation18_spill] sm:$0xff] %v10474_v22  ;;  %v17177_v45 = vmov 2102212464   ;;  %v1262_v38 = vshll.u32 %v16846_v13, %v10418_v25  ;;  %v762_v60 = vmul.f32 %v10244_v53, %v647_v19  ;;  %vm1268_vm13 = vcmp.lt.s32.totalorder %v10466_v5, 4 }
  0xb8   : > { %v1259_v30 = vshll.u32 %v17177_v45, %v10418_v25  ;;  %v1569_v47 = vshrl.u32 %v16846_v13, %v10469_v9  ;;  %vm1759_vm14 = vcmp.gt.s32.totalorder %v1758_v16, 0  ;;  %v2163_v33 = vand.u32 2139095040, %v10472_v18 }
  0xb9   : > { %v1572_v54 = vshrl.u32 %v16852_v17, %v10469_v9  ;;  %v1451_v62 = vsel %vm1450_vm12, %v1449_v52, 0  ;;  %vm1656_vm15 = vcmp.gt.s32.totalorder %v1655_v36, 0  ;;  %v1855_v4 = vshrl.u32 %v1854_v40, 23  ;;  %v657_v40 = vpop.permute.xlu0 %656 }
  0xba   : > { %v10496_v23 = vsel %vm1371_vm11, %v10474_v22, 920167782  ;;  %v10498_v19 = vor.u32 %v1260_v6, %v1259_v30  ;;  %v1264_v29 = vor.u32 %v1263_v63, %v1262_v38  ;;  %v7995_v32 = vadd.s32 4294967169, %v1958_v8 }
  0xbb   : > { %17178 = vst [vmem:[#allocation19_spill] sm:$0xff] %v10496_v23  ;;  %v1568_v13 = vshll.u32 %v17177_v45, %v10435_v42  ;;  %v17180_v18 = vmov 920167782   ;;  %v1760_v17 = vsel %vm1759_vm14, %v1758_v16, 0  ;;  %v10505_v52 = vadd.f32 %v10253_v57, %v762_v60 }
  0xbc   : > { %17179 = vst [vmem:[#allocation20_spill] sm:$0xff] %v10498_v19  ;;  %v1571_v48 = vshll.u32 %v17180_v18, %v10435_v42  ;;  %v10507_v9 = vshrl.u32 %v1554_v14, 5  ;;  %v10509_v22 = vand.u32 31, %v1451_v62  ;;  %v1657_v6 = vsel %vm1656_vm15, %v1655_v36, 0 }
  0xbd   : > { %17181 = vst [vmem:[#allocation21_spill] sm:$0xff] %v10505_v52  ;;  %v2164_v30 = vshrl.u32 %v2163_v33, 23  ;;  %v10511_v63 = vor.u32 %v1569_v47, %v1568_v13  ;;  %v7991_v38 = vadd.s32 4294967169, %v1855_v4  ;;  %v765_v23 = vmul.f32 %v10244_v53, %v662_v12 }
  0xbe   : > { %17182 = vst [vmem:[#allocation22_spill] sm:$0xff] %v10507_v9  ;;  %17183 = vst [vmem:[#allocation23_spill] sm:$0xff] %v10509_v22  ;;  %v1573_v8 = vor.u32 %v1572_v54, %v1571_v48  ;;  %v10516_v42 = vsel %vm1371_vm11, %v1367_v44, 1326507024  ;;  %v10518_v16 = vand.u32 31, %v1760_v17  ;;  %v1964_v60 = vadd.s32 1, %v7995_v32 }
  0xbf   : > { %17184 = vst [vmem:[#allocation24_spill] sm:$0xff] %v10511_v63  ;;  %17185 = vst [vmem:[#allocation25_spill] sm:$0xff] %v10516_v42  ;;  %v764_v14 = vmul.f32 %v10244_v53, %v657_v40  ;;  %v10524_v36 = vsel %vm1268_vm13, %v10498_v19, 920167782  ;;  %v10528_v13 = vsel %vm1268_vm13, %v1264_v29, 1326507024  ;;  %v10549_v4 = vadd.f32 %v10253_v57, %v765_v23 }
  0xc0   : > { %17186 = vst [vmem:[#allocation26_spill] sm:$0xff] %v10518_v16  ;;  %17187 = vst [vmem:[#allocation27_spill] sm:$0xff] %v10524_v36  ;;  %v10530_v48 = vand.u32 31, %v1657_v6  ;;  %v2060_v12 = vand.u32 2139095040, %v10505_v52  ;;  %vm1577_vm1 = vcmp.lt.s32.totalorder %v10507_v9, 4  ;;  %v10534_v33 = vshrl.u32 %v1451_v62, 5 }
  0xc1   : > { %17188 = vst [vmem:[#allocation28_spill] sm:$0xff] %v10528_v13  ;;  %v10537_v32 = vsub.s32 32, %v10509_v22  ;;  %v8003_v44 = vadd.s32 4294967169, %v2164_v30  ;;  %v10542_v47 = vsel %vm1577_vm1, %v10511_v63, 920167782  ;;  %v1861_v54 = vadd.s32 1, %v7991_v38 }
  0xc2   : > { %17189 = vst [vmem:[#allocation29_spill] sm:$0xff] %v10530_v48  ;;  %17190 = vst [vmem:[#allocation30_spill] sm:$0xff] %v10534_v33  ;;  %v10546_v29 = vsel %vm1577_vm1, %v1573_v8, 1326507024  ;;  %v1465_v62 = vshll.u32 %v17177_v45, %v10509_v22  ;;  %v10554_v40 = vsub.s32 32, %v10518_v16  ;;  %vm1965_vm2 = vcmp.gt.s32.totalorder %v1964_v60, 0 }
  0xc3   : > { %17191 = vst [vmem:[#allocation31_spill] sm:$0xff] %v10537_v32  ;;  %17192 = vst [vmem:[#allocation32_spill] sm:$0xff] %v10542_v47  ;;  %v10557_v30 = vadd.f32 %v10253_v57, %v764_v14  ;;  %v1468_v52 = vshll.u32 %v17180_v18, %v10509_v22  ;;  %v10561_v63 = vshrl.u32 %v1760_v17, 5  ;;  %v10564_v8 = vsub.s32 32, %v10530_v48  ;;  %v672_v22 = vpop.permute.xlu1 %671 }
  0xc4   : > { %17193 = vst [vmem:[#allocation33_spill] sm:$0xff] %v10546_v29  ;;  %17194 = vst [vmem:[#allocation34_spill] sm:$0xff] %v10549_v4  ;;  %v2061_v23 = vshrl.u32 %v2060_v12, 23  ;;  %v1466_v38 = vshrl.u32 %v17180_v18, %v10537_v32  ;;  %vm1474_vm3 = vcmp.lt.s32.totalorder %v10534_v33, 4  ;;  %v10569_v29 = vshrl.u32 %v1657_v6, 5 }
  0xc5   : > { %17195 = vst [vmem:[#allocation35_spill] sm:$0xff] %v10554_v40  ;;  %17196 = vst [vmem:[#allocation36_spill] sm:$0xff] %v10557_v30  ;;  %v2170_v47 = vadd.s32 1, %v8003_v44  ;;  %v17200_v14 = vmov 1326507024   ;;  %v1966_v42 = vsel %vm1965_vm2, %v1964_v60, 0  ;;  %v1774_v34 = vshll.u32 %v17177_v45, %v10518_v16 }
  0xc6   : > { %17197 = vst [vmem:[#allocation37_spill] sm:$0xff] %v10561_v63  ;;  %17198 = vst [vmem:[#allocation38_spill] sm:$0xff] %v10564_v8  ;;  %v1469_v9 = vshrl.u32 %v17200_v14, %v10537_v32  ;;  %vm1862_vm4 = vcmp.gt.s32.totalorder %v1861_v54, 0  ;;  %v2369_v17 = vand.u32 2139095040, %v10549_v4  ;;  %v1775_v12 = vshrl.u32 %v17180_v18, %v10554_v40 }
  0xc7   : > { %17199 = vst [vmem:[#allocation39_spill] sm:$0xff] %v10569_v29  ;;  %v1777_v11 = vshll.u32 %v17180_v18, %v10518_v16  ;;  %v2266_v6 = vand.u32 2139095040, %v10557_v30  ;;  %v1778_v44 = vshrl.u32 %v17200_v14, %v10554_v40  ;;  %vm1783_vm5 = vcmp.lt.s32.totalorder %v10561_v63, 4 }
  0xc8   : > { %v1672_v60 = vshrl.u32 %v17180_v18, %v10564_v8  ;;  %v7999_v4 = vadd.s32 4294967169, %v2061_v23  ;;  %v10586_v32 = vand.u32 31, %v1966_v42  ;;  %v1863_v15 = vsel %vm1862_vm4, %v1861_v54, 0 }
  0xc9   : > { %vm2171_vm7 = vcmp.gt.s32.totalorder %v2170_v47, 0  ;;  %v767_v19 = vmul.f32 %v10244_v53, %v672_v22  ;;  %v10589_v13 = vor.u32 %v1466_v38, %v1465_v62  ;;  %v1470_v16 = vor.u32 %v1469_v9, %v1468_v52  ;;  %v667_v38 = vpop.permute.xlu0 %666 }
  0xca   : > { %17201 = vst [vmem:[#allocation40_spill] sm:$0xff] %v10586_v32  ;;  %v1675_v30 = vshrl.u32 %v17200_v14, %v10564_v8  ;;  %v2370_v36 = vshrl.u32 %v2369_v17, 23  ;;  %v10593_v40 = vor.u32 %v1775_v12, %v1774_v34  ;;  %v1671_v5 = vshll.u32 %v17177_v45, %v10530_v48 }
  0xcb   : > { %17202 = vst [vmem:[#allocation41_spill] sm:$0xff] %v10589_v13  ;;  %v1674_v23 = vshll.u32 %v17180_v18, %v10530_v48  ;;  %v2267_v51 = vshrl.u32 %v2266_v6, 23  ;;  %v1779_v54 = vor.u32 %v1778_v44, %v1777_v11  ;;  %v10599_v25 = vand.u32 31, %v1863_v15 }
  0xcc   : > { %17203 = vst [vmem:[#allocation42_spill] sm:$0xff] %v10593_v40  ;;  %v2172_v22 = vsel %vm2171_vm7, %v2170_v47, 0  ;;  %v2067_v62 = vadd.s32 1, %v7999_v4  ;;  %v10601_v9 = vor.u32 %v1672_v60, %v1671_v5  ;;  %vm1680_vm9 = vcmp.lt.s32.totalorder %v10569_v29, 4 }
  0xcd   : > { %17204 = vst [vmem:[#allocation43_spill] sm:$0xff] %v10599_v25  ;;  %v10605_v34 = vsub.s32 32, %v10586_v32  ;;  %v10608_v52 = vadd.f32 %v10253_v57, %v767_v19  ;;  %v10613_v17 = vsel %vm1474_vm3, %v10589_v13, 920167782  ;;  %v10617_v11 = vsel %vm1474_vm3, %v1470_v16, 1326507024 }
  0xce   : > { %17205 = vst [vmem:[#allocation44_spill] sm:$0xff] %v10601_v9  ;;  %17208 = vst [vmem:[#allocation47_spill] sm:$0xff] %v10613_v17  ;;  %v1676_v47 = vor.u32 %v1675_v30, %v1674_v23  ;;  %v8011_v5 = vadd.s32 4294967169, %v2370_v36  ;;  %v10622_v4 = vsel %vm1783_vm5, %v10593_v40, 920167782  ;;  %v10624_v12 = vand.u32 31, %v2172_v22 }
  0xcf   : > { %17206 = vst [vmem:[#allocation45_spill] sm:$0xff] %v10605_v34  ;;  %17207 = vst [vmem:[#allocation46_spill] sm:$0xff] %v10608_v52  ;;  %v8007_v19 = vadd.s32 4294967169, %v2267_v51  ;;  %v766_v6 = vmul.f32 %v10244_v53, %v667_v38  ;;  %v10629_v44 = vsel %vm1783_vm5, %v1779_v54, 1326507024  ;;  %v10631_v60 = vshrl.u32 %v1966_v42, 5  ;;  %v682_v54 = vpop.permute.xlu1 %681 }
  0xd0   : > { %17209 = vst [vmem:[#allocation48_spill] sm:$0xff] %v10617_v11  ;;  %17210 = vst [vmem:[#allocation49_spill] sm:$0xff] %v10622_v4  ;;  %v10634_v16 = vsub.s32 32, %v10599_v25  ;;  %vm2068_vm12 = vcmp.gt.s32.totalorder %v2067_v62, 0  ;;  %v10639_v36 = vsel %vm1680_vm9, %v10601_v9, 920167782  ;;  %v1981_v51 = vshrl.u32 %v17180_v18, %v10605_v34 }
  0xd1   : > { %17211 = vst [vmem:[#allocation50_spill] sm:$0xff] %v10624_v12  ;;  %17212 = vst [vmem:[#allocation51_spill] sm:$0xff] %v10629_v44  ;;  %v1984_v30 = vshrl.u32 %v17200_v14, %v10605_v34  ;;  %v2575_v23 = vand.u32 2139095040, %v10608_v52  ;;  %v10648_v42 = vsel %vm1680_vm9, %v1676_v47, 1326507024  ;;  %v1980_v38 = vshll.u32 %v17177_v45, %v10586_v32 }
  0xd2   : > { %17213 = vst [vmem:[#allocation52_spill] sm:$0xff] %v10631_v60  ;;  %17214 = vst [vmem:[#allocation53_spill] sm:$0xff] %v10634_v16  ;;  %v1983_v4 = vshll.u32 %v17180_v18, %v10586_v32  ;;  %v2376_v40 = vadd.s32 1, %v8011_v5  ;;  %v10655_v44 = vsub.s32 32, %v10624_v12  ;;  %v2069_v63 = vsel %vm2068_vm12, %v2067_v62, 0 }
  0xd3   : > { %17215 = vst [vmem:[#allocation54_spill] sm:$0xff] %v10639_v36  ;;  %17216 = vst [vmem:[#allocation55_spill] sm:$0xff] %v10648_v42  ;;  %v2273_v36 = vadd.s32 1, %v8007_v19  ;;  %v10658_v34 = vadd.f32 %v10253_v57, %v766_v6  ;;  %v10660_v52 = vshrl.u32 %v1863_v15, 5  ;;  %v1878_v47 = vshrl.u32 %v17180_v18, %v10634_v16  ;;  %v677_v19 = vpop.permute.xlu0 %676 }
  0xd4   : > { %17217 = vst [vmem:[#allocation56_spill] sm:$0xff] %v10655_v44  ;;  %v1881_v9 = vshrl.u32 %v17200_v14, %v10634_v16  ;;  %v769_v42 = vmul.f32 %v10244_v53, %v682_v54  ;;  %v10667_v32 = vor.u32 %v1981_v51, %v1980_v38  ;;  %v1985_v5 = vor.u32 %v1984_v30, %v1983_v4 }
  0xd5   : > { %17218 = vst [vmem:[#allocation57_spill] sm:$0xff] %v10658_v34  ;;  %17219 = vst [vmem:[#allocation58_spill] sm:$0xff] %v10660_v52  ;;  %vm17075_vm14 = vcmp.lt.s32.totalorder %v10631_v60, 4  ;;  %v2576_v62 = vshrl.u32 %v2575_v23, 23  ;;  %v1877_v6 = vshll.u32 %v17177_v45, %v10599_v25  ;;  %v1880_v15 = vshll.u32 %v17180_v18, %v10599_v25 }
  0xd6   : > { %17220 = vst [vmem:[#allocation59_spill] sm:$0xff] %v10667_v32  ;;  %v10674_v29 = vand.u32 31, %v2069_v63  ;;  %vm2377_vm15 = vcmp.gt.s32.totalorder %v2376_v40, 0  ;;  %v2187_v16 = vshrl.u32 %v17180_v18, %v10655_v44  ;;  %v2190_v51 = vshrl.u32 %v17200_v14, %v10655_v44 }
  0xd7   : > { %vm2274_vm2 = vcmp.gt.s32.totalorder %v2273_v36, 0  ;;  %v2472_v4 = vand.u32 2139095040, %v10658_v34  ;;  %v10681_v30 = vor.u32 %v1878_v47, %v1877_v6  ;;  %v1882_v23 = vor.u32 %v1881_v9, %v1880_v15  ;;  %v692_v6 = vpop.permute.xlu1 %691 }
  0xd8   : > { %17221 = vst [vmem:[#allocation60_spill] sm:$0xff] %v10674_v29  ;;  %vm1886_vm4 = vcmp.lt.s32.totalorder %v10660_v52, 4  ;;  %v10685_v54 = vadd.f32 %v10253_v57, %v769_v42  ;;  %v2186_v38 = vshll.u32 %v17177_v45, %v10624_v12  ;;  %v2189_v25 = vshll.u32 %v17180_v18, %v10624_v12  ;;  %v4873_v52 = vld [vmem:[%s16825_s9 + $0x18] sm:$0xff] }
  0xd9   : > { %17222 = vst [vmem:[#allocation61_spill] sm:$0xff] %v10681_v30  ;;  %v2378_v8 = vsel %vm2377_vm15, %v2376_v40, 0  ;;  %v8019_v48 = vadd.s32 4294967169, %v2576_v62  ;;  %v10691_v44 = vshrl.u32 %v2172_v22, 5  ;;  %v10694_v34 = vsub.s32 32, %v10674_v29  ;;  %v687_v40 = vpop.permute.xlu0 %686 }
  0xda   : > { %17223 = vst [vmem:[#allocation62_spill] sm:$0xff] %v10685_v54  ;;  %v2275_v47 = vsel %vm2274_vm2, %v2273_v36, 0  ;;  %v768_v9 = vmul.f32 %v10244_v53, %v677_v19  ;;  %v10700_v42 = vsel %vm17075_vm14, %v10667_v32, 920167782  ;;  %v10702_v15 = vor.u32 %v2187_v16, %v2186_v38 }
  0xdb   : > { %17224 = vst [vmem:[#allocation63_spill] sm:$0xff] %v10691_v44  ;;  %17225 = vst [vmem:[#allocation64_spill] sm:$0xff] %v10694_v34  ;;  %v2191_v13 = vor.u32 %v2190_v51, %v2189_v25  ;;  %v2473_v12 = vshrl.u32 %v2472_v4, 23  ;;  %v10706_v22 = vsel %vm17075_vm14, %v1985_v5, 1326507024  ;;  %v10713_v62 = vand.u32 31, %v2378_v8 }
  0xdc   : > { %17226 = vst [vmem:[#allocation65_spill] sm:$0xff] %v10700_v42  ;;  %17227 = vst [vmem:[#allocation66_spill] sm:$0xff] %v10702_v15  ;;  %v10711_v36 = vsel %vm1886_vm4, %v10681_v30, 920167782  ;;  %v2781_v19 = vand.u32 2139095040, %v10685_v54  ;;  %v10720_v25 = vand.u32 31, %v2275_v47  ;;  %v771_v4 = vmul.f32 %v10244_v53, %v692_v6 }
  0xdd   : > { %17228 = vst [vmem:[#allocation67_spill] sm:$0xff] %v10706_v22  ;;  %17229 = vst [vmem:[#allocation68_spill] sm:$0xff] %v10711_v36  ;;  %v10718_v16 = vsel %vm1886_vm4, %v1882_v23, 1326507024  ;;  %v2582_v51 = vadd.s32 1, %v8019_v48  ;;  %vm16961_vm7 = vcmp.lt.s32.totalorder %v10691_v44, 4  ;;  %v2084_v5 = vshrl.u32 %v17180_v18, %v10694_v34 }
  0xde   : > { %17230 = vst [vmem:[#allocation69_spill] sm:$0xff] %v10713_v62  ;;  %17231 = vst [vmem:[#allocation70_spill] sm:$0xff] %v10718_v16  ;;  %v10727_v38 = vadd.f32 %v10253_v57, %v768_v9  ;;  %v770_v42 = vmul.f32 %v10244_v53, %v687_v40  ;;  %v10733_v23 = vsel %vm16961_vm7, %v10702_v15, 920167782  ;;  %v10737_v48 = vsel %vm16961_vm7, %v2191_v13, 1326507024  ;;  %v702_v13 = vpop.permute.xlu1 %701 }
  0xdf   : > { %17232 = vst [vmem:[#allocation71_spill] sm:$0xff] %v10720_v25  ;;  %17234 = vst [vmem:[#allocation73_spill] sm:$0xff] %v10733_v23  ;;  %v10739_v6 = vshrl.u32 %v2069_v63, 5  ;;  %v8015_v54 = vadd.s32 4294967169, %v2473_v12  ;;  %v2083_v32 = vshll.u32 %v17177_v45, %v10674_v29  ;;  %v10743_v22 = vshrl.u32 %v2378_v8, 5 }
  0xe0   : > { %17233 = vst [vmem:[#allocation72_spill] sm:$0xff] %v10727_v38  ;;  %17235 = vst [vmem:[#allocation74_spill] sm:$0xff] %v10737_v48  ;;  %v10746_v9 = vsub.s32 32, %v10713_v62  ;;  %v2782_v40 = vshrl.u32 %v2781_v19, 23  ;;  %v2087_v15 = vshrl.u32 %v17200_v14, %v10694_v34  ;;  %v10751_v23 = vsub.s32 32, %v10720_v25 }
  0xe1   : > { %17236 = vst [vmem:[#allocation75_spill] sm:$0xff] %v10743_v22  ;;  %vm2583_vm12 = vcmp.gt.s32.totalorder %v2582_v51, 0  ;;  %v10754_v63 = vadd.f32 %v10253_v57, %v771_v4  ;;  %v10756_v12 = vor.u32 %v2084_v5, %v2083_v32  ;;  %v2086_v8 = vshll.u32 %v17180_v18, %v10674_v29 }
  0xe2   : > { %17237 = vst [vmem:[#allocation76_spill] sm:$0xff] %v10746_v9  ;;  %17238 = vst [vmem:[#allocation77_spill] sm:$0xff] %v10751_v23  ;;  %v2678_v48 = vand.u32 2139095040, %v10727_v38  ;;  %v10762_v19 = vadd.f32 %v10253_v57, %v770_v42  ;;  %vm16962_vm15 = vcmp.lt.s32.totalorder %v10739_v6, 4  ;;  %v2392_v44 = vshll.u32 %v17177_v45, %v10713_v62 }
  0xe3   : > { %17239 = vst [vmem:[#allocation78_spill] sm:$0xff] %v10754_v63  ;;  %17240 = vst [vmem:[#allocation79_spill] sm:$0xff] %v10756_v12  ;;  %v2395_v4 = vshll.u32 %v17180_v18, %v10713_v62  ;;  %v2479_v34 = vadd.s32 1, %v8015_v54  ;;  %v2393_v32 = vshrl.u32 %v17180_v18, %v10746_v9  ;;  %v2396_v5 = vshrl.u32 %v17200_v14, %v10746_v9 }
  0xe4   : > { %17241 = vst [vmem:[#allocation80_spill] sm:$0xff] %v10762_v19  ;;  %v2584_v29 = vsel %vm2583_vm12, %v2582_v51, 0  ;;  %v8027_v38 = vadd.s32 4294967169, %v2782_v40  ;;  %v2088_v60 = vor.u32 %v2087_v15, %v2086_v8  ;;  %vm16948_vm2 = vcmp.lt.s32.totalorder %v10743_v22, 4  ;;  %v697_v51 = vpop.permute.xlu0 %696 }
  0xe5   : > { %v2290_v42 = vshrl.u32 %v17180_v18, %v10751_v23  ;;  %v2987_v30 = vand.u32 2139095040, %v10754_v63  ;;  %v10780_v54 = vsel %vm16962_vm15, %v10756_v12, 920167782  ;;  %v10782_v62 = vshrl.u32 %v2275_v47, 5  ;;  %v712_v63 = vpop.permute.xlu1 %711  ;;  %v8182_v12 = vld [vmem:[%s16823_s7 + $0x18] sm:$0xff]  ;;  %v4185_v47 = vld [vmem:[%s16823_s7] sm:$0xff] }
  0xe6   : > { %17242 = vst [vmem:[#allocation81_spill] sm:$0xff] %v10780_v54  ;;  %v2679_v16 = vshrl.u32 %v2678_v48, 23  ;;  %v2884_v9 = vand.u32 2139095040, %v10762_v19  ;;  %v2289_v15 = vshll.u32 %v17177_v45, %v10720_v25  ;;  %v10787_v40 = vand.u32 31, %v2584_v29  ;;  %v8181_v48 = vld [vmem:[%s16823_s7 + $0x10] sm:$0xff]  ;;  %9013 = vmatprep.subr.mxu1 %v8182_v12  ;;  %8851 = vmatprep.subr.mxu0 %v4185_v47 }
  0xe7   : > { %17243 = vst [vmem:[#allocation82_spill] sm:$0xff] %v10782_v62  ;;  %vm2480_vm12 = vcmp.gt.s32.totalorder %v2479_v34, 0  ;;  %v773_v8 = vmul.f32 %v10244_v53, %v702_v13  ;;  %v10799_v19 = vor.u32 %v2393_v32, %v2392_v44  ;;  %v2397_v54 = vor.u32 %v2396_v5, %v2395_v4  ;;  %9014 = vmatpush3.msra.mxu1 %v8182_v12 }
  0xe8   : > { %17244 = vst [vmem:[#allocation83_spill] sm:$0xff] %v10787_v40  ;;  %v2293_v36 = vshrl.u32 %v17200_v14, %v10751_v23  ;;  %v2788_v13 = vadd.s32 1, %v8027_v38  ;;  %v10806_v11 = vor.u32 %v2290_v42, %v2289_v15  ;;  %v2292_v17 = vshll.u32 %v17180_v18, %v10720_v25  ;;  %8852 = vmatpush3.msra.mxu0 %v4185_v47 }
  0xe9   : > { %17245 = vst [vmem:[#allocation84_spill] sm:$0xff] %v10799_v19  ;;  %v2988_v33 = vshrl.u32 %v2987_v30, 23  ;;  %v772_v44 = vmul.f32 %v10244_v53, %v697_v51  ;;  %v2481_v4 = vsel %vm2480_vm12, %v2479_v34, 0  ;;  %v8023_v32 = vadd.s32 4294967169, %v2679_v16  ;;  %9015 = vmatprep.subr.mxu1 %v8181_v48  ;;  %8957 = vmatprep.subr.mxu0 %v4873_v52 }
  0xea   : > { %17246 = vst [vmem:[#allocation85_spill] sm:$0xff] %v10806_v11  ;;  %v2885_v38 = vshrl.u32 %v2884_v9, 23  ;;  %v775_v5 = vmul.f32 %v10244_v53, %v712_v63  ;;  %v10815_v42 = vsel %vm16962_vm15, %v2088_v60, 1326507024  ;;  %vm16960_vm0 = vcmp.lt.s32.totalorder %v10782_v62, 4  ;;  %9016 = vmatpush3.msra.mxu1 %v8181_v48  ;;  %v707_v60 = vpop.permute.xlu0 %706 }
  0xeb   : > { %v10819_v30 = vsub.s32 32, %v10787_v40  ;;  %v10822_v12 = vadd.f32 %v10253_v57, %v773_v8  ;;  %v10827_v34 = vsel %vm16948_vm2, %v10799_v19, 920167782  ;;  %v2294_v16 = vor.u32 %v2293_v36, %v2292_v17 }
  0xec   : > { %17249 = vst [vmem:[#allocation88_spill] sm:$0xff] %v10827_v34  ;;  %vm2789_vm12 = vcmp.gt.s32.totalorder %v2788_v13, 0  ;;  %v10830_v52 = vadd.f32 %v10253_v57, %v772_v44  ;;  %v10834_v9 = vsel %vm16948_vm2, %v2397_v54, 1326507024  ;;  %v10836_v63 = vshrl.u32 %v2584_v29, 5  ;;  %v722_v34 = vpop.permute.xlu1 %721 }
  0xed   : > { %17247 = vst [vmem:[#allocation86_spill] sm:$0xff] %v10819_v30  ;;  %17248 = vst [vmem:[#allocation87_spill] sm:$0xff] %v10822_v12  ;;  %v10838_v51 = vand.u32 31, %v2481_v4  ;;  %v8035_v15 = vadd.s32 4294967169, %v2988_v33  ;;  %v10843_v8 = vsel %vm16960_vm0, %v10806_v11, 920167782  ;;  %v10846_v47 = vadd.f32 %v10253_v57, %v775_v5 }
  0xee   : > { %17250 = vst [vmem:[#allocation89_spill] sm:$0xff] %v10830_v52  ;;  %17251 = vst [vmem:[#allocation90_spill] sm:$0xff] %v10834_v9  ;;  %v2685_v17 = vadd.s32 1, %v8023_v32  ;;  %v8031_v36 = vadd.s32 4294967169, %v2885_v38  ;;  %v2599_v48 = vshrl.u32 %v17180_v18, %v10819_v30  ;;  %v2790_v54 = vsel %vm2789_vm12, %v2788_v13, 0 }
  0xef   : > { %17252 = vst [vmem:[#allocation91_spill] sm:$0xff] %v10836_v63  ;;  %17253 = vst [vmem:[#allocation92_spill] sm:$0xff] %v10838_v51  ;;  %v3193_v29 = vand.u32 2139095040, %v10822_v12  ;;  %v774_v44 = vmul.f32 %v10244_v53, %v707_v60  ;;  %v10854_v33 = vsel %vm16960_vm0, %v2294_v16, 1326507024  ;;  %v2598_v19 = vshll.u32 %v17177_v45, %v10787_v40 }
  0xf0   : > { %17254 = vst [vmem:[#allocation93_spill] sm:$0xff] %v10843_v8  ;;  %17255 = vst [vmem:[#allocation94_spill] sm:$0xff] %v10846_v47  ;;  %v2602_v32 = vshrl.u32 %v17200_v14, %v10819_v30  ;;  %v3090_v38 = vand.u32 2139095040, %v10830_v52  ;;  %v2601_v5 = vshll.u32 %v17180_v18, %v10787_v40  ;;  %vm16978_vm12 = vcmp.lt.s32.totalorder %v10836_v63, 4 }
  0xf1   : > { %17256 = vst [vmem:[#allocation95_spill] sm:$0xff] %v10854_v33  ;;  %v10865_v13 = vsub.s32 32, %v10838_v51  ;;  %v2994_v60 = vadd.s32 1, %v8035_v15  ;;  %v10867_v12 = vand.u32 31, %v2790_v54  ;;  %vm2686_vm2 = vcmp.gt.s32.totalorder %v2685_v17, 0 }
  0xf2   : > { %v2891_v16 = vadd.s32 1, %v8031_v36  ;;  %v3399_v9 = vand.u32 2139095040, %v10846_v47  ;;  %v10870_v22 = vor.u32 %v2599_v48, %v2598_v19  ;;  %v10872_v30 = vshrl.u32 %v2481_v4, 5 }
  0xf3   : > { %17257 = vst [vmem:[#allocation96_spill] sm:$0xff] %v10865_v13  ;;  %17258 = vst [vmem:[#allocation97_spill] sm:$0xff] %v10867_v12  ;;  %v3194_v52 = vshrl.u32 %v3193_v29, 23  ;;  %v10875_v40 = vadd.f32 %v10253_v57, %v774_v44  ;;  %v2603_v11 = vor.u32 %v2602_v32, %v2601_v5  ;;  %v2495_v33 = vshll.u32 %v17177_v45, %v10838_v51 }
  0xf4   : > { %17259 = vst [vmem:[#allocation98_spill] sm:$0xff] %v10870_v22  ;;  %17260 = vst [vmem:[#allocation99_spill] sm:$0xff] %v10872_v30  ;;  %v2498_v15 = vshll.u32 %v17180_v18, %v10838_v51  ;;  %v3091_v8 = vshrl.u32 %v3090_v38, 23  ;;  %v2496_v36 = vshrl.u32 %v17180_v18, %v10865_v13  ;;  %v2687_v47 = vsel %vm2686_vm2, %v2685_v17, 0 }
  0xf5   : > { %17261 = vst [vmem:[#allocation100_spill] sm:$0xff] %v10875_v40  ;;  %vm2995_vm0 = vcmp.gt.s32.totalorder %v2994_v60, 0  ;;  %v777_v19 = vmul.f32 %v10244_v53, %v722_v34  ;;  %v2499_v4 = vshrl.u32 %v17200_v14, %v10865_v13  ;;  %v10887_v48 = vsub.s32 32, %v10867_v12 }
  0xf6   : > { %vm2892_vm7 = vcmp.gt.s32.totalorder %v2891_v16, 0  ;;  %v3400_v29 = vshrl.u32 %v3399_v9, 23  ;;  %v10892_v44 = vsel %vm16978_vm12, %v10870_v22, 920167782  ;;  %vm16981_vm15 = vcmp.lt.s32.totalorder %v10872_v30, 4 }
  0xf7   : > { %17262 = vst [vmem:[#allocation101_spill] sm:$0xff] %v10887_v48  ;;  %17263 = vst [vmem:[#allocation102_spill] sm:$0xff] %v10892_v44  ;;  %v8043_v32 = vadd.s32 4294967169, %v3194_v52  ;;  %v3296_v17 = vand.u32 2139095040, %v10875_v40  ;;  %v10896_v38 = vshrl.u32 %v2790_v54, 5  ;;  %v10898_v34 = vand.u32 31, %v2687_v47 }
  0xf8   : > { %v2996_v5 = vsel %vm2995_vm0, %v2994_v60, 0  ;;  %v8039_v13 = vadd.s32 4294967169, %v3091_v8  ;;  %v10902_v51 = vsel %vm16978_vm12, %v2603_v11, 1326507024  ;;  %v10904_v9 = vor.u32 %v2496_v36, %v2495_v33  ;;  %v717_v36 = vpop.permute.xlu0 %716 }
  0xf9   : > { %17264 = vst [vmem:[#allocation103_spill] sm:$0xff] %v10896_v38  ;;  %17265 = vst [vmem:[#allocation104_spill] sm:$0xff] %v10898_v34  ;;  %v2893_v62 = vsel %vm2892_vm7, %v2891_v16, 0  ;;  %v10907_v44 = vadd.f32 %v10253_v57, %v777_v19  ;;  %v2500_v22 = vor.u32 %v2499_v4, %v2498_v15  ;;  %v2804_v52 = vshll.u32 %v17177_v45, %v10867_v12 }
  0xfa   : > { %17266 = vst [vmem:[#allocation105_spill] sm:$0xff] %v10902_v51  ;;  %17267 = vst [vmem:[#allocation106_spill] sm:$0xff] %v10904_v9  ;;  %v2805_v54 = vshrl.u32 %v17180_v18, %v10887_v48  ;;  %v8051_v40 = vadd.s32 4294967169, %v3400_v29  ;;  %v2807_v8 = vshll.u32 %v17180_v18, %v10867_v12  ;;  %v10915_v60 = vand.u32 31, %v2996_v5 }
  0xfb   : > { %17268 = vst [vmem:[#allocation107_spill] sm:$0xff] %v10907_v44  ;;  %v3200_v11 = vadd.s32 1, %v8043_v32  ;;  %v3297_v33 = vshrl.u32 %v3296_v17, 23  ;;  %vm17025_vm0 = vcmp.lt.s32.totalorder %v10896_v38, 4  ;;  %v10919_v57 = vsub.s32 32, %v10898_v34 }
  0xfc   : > { %17269 = vst [vmem:[#allocation108_spill] sm:$0xff] %v10915_v60  ;;  %v10921_v16 = vand.u32 31, %v2893_v62  ;;  %v3097_v15 = vadd.s32 1, %v8039_v13  ;;  %v10926_v19 = vsel %vm16981_vm15, %v10904_v9, 920167782  ;;  %v2808_v4 = vshrl.u32 %v17200_v14, %v10887_v48 }
  0xfd   : > { %17270 = vst [vmem:[#allocation109_spill] sm:$0xff] %v10919_v57  ;;  %17272 = vst [vmem:[#allocation111_spill] sm:$0xff] %v10926_v19  ;;  %v10930_v29 = vshrl.u32 %v2687_v47, 5  ;;  %v3605_v32 = vand.u32 2139095040, %v10907_v44  ;;  %v10935_v17 = vsel %vm16981_vm15, %v2500_v22, 1326507024  ;;  %v10937_v12 = vor.u32 %v2805_v54, %v2804_v52 }
  0xfe   : > { %17271 = vst [vmem:[#allocation110_spill] sm:$0xff] %v10921_v16  ;;  %17274 = vst [vmem:[#allocation113_spill] sm:$0xff] %v10935_v17  ;;  %v2701_v13 = vshll.u32 %v17177_v45, %v10898_v34  ;;  %v3406_v51 = vadd.s32 1, %v8051_v40  ;;  %v10942_v63 = vsub.s32 32, %v10915_v60  ;;  %vm3201_vm7 = vcmp.gt.s32.totalorder %v3200_v11, 0 }
  0xff   : > { %17273 = vst [vmem:[#allocation112_spill] sm:$0xff] %v10930_v29  ;;  %17275 = vst [vmem:[#allocation114_spill] sm:$0xff] %v10937_v12  ;;  %v8047_v19 = vadd.s32 4294967169, %v3297_v33  ;;  %v776_v47 = vmul.f32 %v10244_v53, %v717_v36  ;;  %v2702_v44 = vshrl.u32 %v17180_v18, %v10919_v57  ;;  %v2705_v22 = vshrl.u32 %v17200_v14, %v10919_v57 }
 0x100   : > { %17276 = vst [vmem:[#allocation115_spill] sm:$0xff] %v10942_v63  ;;  %v10950_v52 = vsub.s32 32, %v10921_v16  ;;  %vm3098_vm2 = vcmp.gt.s32.totalorder %v3097_v15, 0  ;;  %v2809_v54 = vor.u32 %v2808_v4, %v2807_v8  ;;  %v2704_v40 = vshll.u32 %v17180_v18, %v10898_v34  ;;  %v10967_v4 = vld [vmem:[%s16821_s5] ss:$0 sm:$0xff] }
 0x101   : > { %vm17060_vm12 = vcmp.lt.s32.totalorder %v10930_v29, 4  ;;  %v3606_v48 = vshrl.u32 %v3605_v32, 23  ;;  %v10958_v53 = vsel %vm17025_vm0, %v10937_v12, 920167782  ;;  %v10960_v33 = vshrl.u32 %v2996_v5, 5 }
 0x102   : > { %17277 = vst [vmem:[#allocation116_spill] sm:$0xff] %v10950_v52  ;;  %17278 = vst [vmem:[#allocation117_spill] sm:$0xff] %v10958_v53  ;;  %v3202_v36 = vsel %vm3201_vm7, %v3200_v11, 0  ;;  %vm3407_vm15 = vcmp.gt.s32.totalorder %v3406_v51, 0  ;;  %v3011_v57 = vshrl.u32 %v17180_v18, %v10942_v63  ;;  %v3099_v9 = vsel %vm3098_vm2, %v3097_v15, 0 }
 0x103   : > { %17279 = vst [vmem:[#allocation118_spill] sm:$0xff] %v10960_v33  ;;  %v3303_v8 = vadd.s32 1, %v8047_v19  ;;  %v10970_v32 = vadd.f32 %v10967_v4, %v776_v47  ;;  %v10972_v34 = vor.u32 %v2702_v44, %v2701_v13  ;;  %v2706_v53 = vor.u32 %v2705_v22, %v2704_v40 }
 0x104   : > { %v3014_v5 = vshrl.u32 %v17200_v14, %v10942_v63  ;;  %v2908_v11 = vshrl.u32 %v17180_v18, %v10950_v52  ;;  %v3010_v15 = vshll.u32 %v17177_v45, %v10915_v60  ;;  %v10980_v19 = vand.u32 31, %v3202_v36 }
 0x105   : > { %17280 = vst [vmem:[#allocation119_spill] sm:$0xff] %v10970_v32  ;;  %17281 = vst [vmem:[#allocation120_spill] sm:$0xff] %v10972_v34  ;;  %v3408_v12 = vsel %vm3407_vm15, %v3406_v51, 0  ;;  %v8059_v17 = vadd.s32 4294967169, %v3606_v48  ;;  %v3013_v47 = vshll.u32 %v17180_v18, %v10915_v60  ;;  %v2907_v44 = vshll.u32 %v17177_v45, %v10921_v16 }
 0x106   : > { %17282 = vst [vmem:[#allocation121_spill] sm:$0xff] %v10980_v19  ;;  %v2911_v13 = vshrl.u32 %v17200_v14, %v10950_v52  ;;  %v10988_v22 = vand.u32 31, %v3099_v9  ;;  %v10990_v40 = vor.u32 %v3011_v57, %v3010_v15  ;;  %v10992_v63 = vshrl.u32 %v2893_v62, 5 }
 0x107   : > { %vm3304_vm7 = vcmp.gt.s32.totalorder %v3303_v8, 0  ;;  %v3502_v30 = vand.u32 2139095040, %v10970_v32  ;;  %v3015_v51 = vor.u32 %v3014_v5, %v3013_v47  ;;  %v10995_v48 = vor.u32 %v2908_v11, %v2907_v44 }
 0x108   : > { %17283 = vst [vmem:[#allocation122_spill] sm:$0xff] %v10988_v22  ;;  %17284 = vst [vmem:[#allocation123_spill] sm:$0xff] %v10990_v40  ;;  %v2910_v60 = vshll.u32 %v17180_v18, %v10921_v16  ;;  %v10999_v23 = vand.u32 31, %v3408_v12  ;;  %v11003_v52 = vsel %vm17025_vm0, %v2809_v54, 1326507024  ;;  %vm17017_vm15 = vcmp.lt.s32.totalorder %v10960_v33, 4 }
 0x109   : > { %17285 = vst [vmem:[#allocation124_spill] sm:$0xff] %v10992_v63  ;;  %17286 = vst [vmem:[#allocation125_spill] sm:$0xff] %v10995_v48  ;;  %v11007_v62 = vsub.s32 32, %v10980_v19  ;;  %v3612_v57 = vadd.s32 1, %v8059_v17  ;;  %v11012_v5 = vsel %vm17060_vm12, %v10972_v34, 920167782 }
 0x10a   : > { %17287 = vst [vmem:[#allocation126_spill] sm:$0xff] %v10999_v23  ;;  %17288 = vst [vmem:[#allocation127_spill] sm:$0xff] %v11003_v52  ;;  %v2912_v11 = vor.u32 %v2911_v13, %v2910_v60  ;;  %v11015_v15 = vsub.s32 32, %v10988_v22  ;;  %v3305_v47 = vsel %vm3304_vm7, %v3303_v8, 0  ;;  %v11019_v54 = vsel %vm17060_vm12, %v2706_v53, 1326507024  ;;  %v732_v52 = vpop.permute.xlu1 %731 }
 0x10b   : > { %17289 = vst [vmem:[#allocation128_spill] sm:$0xff] %v11007_v62  ;;  %17290 = vst [vmem:[#allocation129_spill] sm:$0xff] %v11012_v5  ;;  %v11024_v44 = vsel %vm17017_vm15, %v10990_v40, 920167782  ;;  %vm17024_vm2 = vcmp.lt.s32.totalorder %v10992_v63, 4  ;;  %v3503_v17 = vshrl.u32 %v3502_v30, 23  ;;  %v3217_v13 = vshrl.u32 %v17180_v18, %v11007_v62 }
 0x10c   : > { %17291 = vst [vmem:[#allocation130_spill] sm:$0xff] %v11015_v15  ;;  %17292 = vst [vmem:[#allocation131_spill] sm:$0xff] %v11019_v54  ;;  %v11028_v32 = vsub.s32 32, %v10359_v26  ;;  %v11032_v60 = vsel %vm17017_vm15, %v3015_v51, 1326507024  ;;  %v11040_v8 = vsub.s32 32, %v10999_v23  ;;  %v3220_v30 = vshrl.u32 %v17200_v14, %v11007_v62 }
 0x10d   : > { %17293 = vst [vmem:[#allocation132_spill] sm:$0xff] %v11024_v44  ;;  %17294 = vst [vmem:[#allocation133_spill] sm:$0xff] %v11032_v60  ;;  %v11037_v53 = vsel %vm17024_vm2, %v10995_v48, 920167782  ;;  %v11046_v44 = vand.u32 31, %v3305_v47  ;;  %vm3613_vm7 = vcmp.gt.s32.totalorder %v3612_v57, 0  ;;  %v3216_v60 = vshll.u32 %v17177_v45, %v10980_v19 }
 0x10e   : > { %17295 = vst [vmem:[#allocation134_spill] sm:$0xff] %v11037_v53  ;;  %17296 = vst [vmem:[#allocation135_spill] sm:$0xff] %v11040_v8  ;;  %v11050_v51 = vsel %vm17024_vm2, %v2912_v11, 1326507024  ;;  %v11052_v40 = vshrl.u32 %v3202_v36, 5  ;;  %v3114_v33 = vshrl.u32 %v17180_v18, %v11015_v15  ;;  %v3219_v53 = vshll.u32 %v17180_v18, %v10980_v19 }
 0x10f   : > { %17297 = vst [vmem:[#allocation136_spill] sm:$0xff] %v11046_v44  ;;  %17298 = vst [vmem:[#allocation137_spill] sm:$0xff] %v11050_v51  ;;  %v11060_v48 = vshrl.u32 %v3099_v9, 5  ;;  %v3113_v62 = vshll.u32 %v17177_v45, %v10988_v22  ;;  %v8055_v16 = vadd.s32 4294967169, %v3503_v17  ;;  %v3117_v11 = vshrl.u32 %v17200_v14, %v11015_v15 }
 0x110   : > { %17299 = vst [vmem:[#allocation138_spill] sm:$0xff] %v11052_v40  ;;  %v3423_v36 = vshrl.u32 %v17180_v18, %v11040_v8  ;;  %v3426_v51 = vshrl.u32 %v17200_v14, %v11040_v8  ;;  %v3614_v63 = vsel %vm3613_vm7, %v3612_v57, 0  ;;  %v11070_v38 = vor.u32 %v3217_v13, %v3216_v60 }
 0x111   : > { %17300 = vst [vmem:[#allocation139_spill] sm:$0xff] %v11060_v48  ;;  %v3221_v19 = vor.u32 %v3220_v30, %v3219_v53  ;;  %v11072_v9 = vshrl.u32 %v3408_v12, 5  ;;  %v11075_v34 = vsub.s32 32, %v11046_v44  ;;  %v11077_v17 = vor.u32 %v3114_v33, %v3113_v62  ;;  %v11091_v53 = vld [vmem:[%s16820_s4] ss:$0 sm:$0xff] }
 0x112   : > { %17301 = vst [vmem:[#allocation140_spill] sm:$0xff] %v11070_v38  ;;  %v3116_v15 = vshll.u32 %v17180_v18, %v10988_v22  ;;  %v3422_v54 = vshll.u32 %v17177_v45, %v10999_v23  ;;  %v3425_v57 = vshll.u32 %v17180_v18, %v10999_v23  ;;  %vm17031_vm7 = vcmp.lt.s32.totalorder %v11052_v40, 4 }
 0x113   : > { %17302 = vst [vmem:[#allocation141_spill] sm:$0xff] %v11072_v9  ;;  %17303 = vst [vmem:[#allocation142_spill] sm:$0xff] %v11075_v34  ;;  %v11086_v60 = vand.u32 31, %v3614_v63  ;;  %v3509_v12 = vadd.s32 1, %v8055_v16  ;;  %v779_v33 = vmul.f32 %v11091_v53, %v732_v52  ;;  %vm17059_vm15 = vcmp.lt.s32.totalorder %v11060_v48, 4 }
 0x114   : > { %17304 = vst [vmem:[#allocation143_spill] sm:$0xff] %v11077_v17  ;;  %v3118_v62 = vor.u32 %v3117_v11, %v3116_v15  ;;  %v11095_v13 = vor.u32 %v3423_v36, %v3422_v54  ;;  %v3427_v30 = vor.u32 %v3426_v51, %v3425_v57  ;;  %v11100_v23 = vsel %vm17031_vm7, %v11070_v38, 920167782  ;;  %v727_v11 = vpop.permute.xlu0 %726  ;;  %v742_v36 = vpop.permute.xlu1 %741 }
 0x115   : > { %17305 = vst [vmem:[#allocation144_spill] sm:$0xff] %v11086_v60  ;;  %17307 = vst [vmem:[#allocation146_spill] sm:$0xff] %v11100_v23  ;;  %v11102_v8 = vshrl.u32 %v3305_v47, 5  ;;  %v3320_v16 = vshrl.u32 %v17180_v18, %v11075_v34  ;;  %v3323_v22 = vshrl.u32 %v17200_v14, %v11075_v34  ;;  %v11110_v52 = vsel %vm17031_vm7, %v3221_v19, 1326507024 }
 0x116   : > { %17306 = vst [vmem:[#allocation145_spill] sm:$0xff] %v11095_v13  ;;  %17309 = vst [vmem:[#allocation148_spill] sm:$0xff] %v11110_v52  ;;  %v11115_v15 = vsel %vm17059_vm15, %v11077_v17, 920167782  ;;  %vm17057_vm2 = vcmp.lt.s32.totalorder %v11072_v9, 4  ;;  %v3319_v47 = vshll.u32 %v17177_v45, %v11046_v44  ;;  %v3322_v54 = vshll.u32 %v17180_v18, %v11046_v44 }
 0x117   : > { %17308 = vst [vmem:[#allocation147_spill] sm:$0xff] %v11102_v8  ;;  %17310 = vst [vmem:[#allocation149_spill] sm:$0xff] %v11115_v15  ;;  %v11123_v51 = vsub.s32 32, %v11086_v60  ;;  %vm3510_vm0 = vcmp.gt.s32.totalorder %v3509_v12, 0  ;;  %v11126_v19 = vadd.f32 %v10967_v4, %v779_v33  ;;  %v11130_v57 = vsel %vm17059_vm15, %v3118_v62, 1326507024 }
 0x118   : > { %17313 = vst [vmem:[#allocation152_spill] sm:$0xff] %v11130_v57  ;;  %v11135_v34 = vsel %vm17057_vm2, %v11095_v13, 920167782  ;;  %v11139_v44 = vsel %vm17057_vm2, %v3427_v30, 1326507024  ;;  %v11141_v38 = vor.u32 %v3320_v16, %v3319_v47  ;;  %v3324_v52 = vor.u32 %v3323_v22, %v3322_v54  ;;  %v737_v17 = vpop.permute.xlu0 %736 }
 0x119   : > { %17311 = vst [vmem:[#allocation150_spill] sm:$0xff] %v11123_v51  ;;  %17312 = vst [vmem:[#allocation151_spill] sm:$0xff] %v11126_v19  ;;  %vm17058_vm7 = vcmp.lt.s32.totalorder %v11102_v8, 4  ;;  %v11144_v33 = vshrl.u32 %v3614_v63, 5  ;;  %v3511_v23 = vsel %vm3510_vm0, %v3509_v12, 0  ;;  %v778_v62 = vmul.f32 %v11091_v53, %v727_v11 }
 0x11a   : > { %17314 = vst [vmem:[#allocation153_spill] sm:$0xff] %v11135_v34  ;;  %17315 = vst [vmem:[#allocation154_spill] sm:$0xff] %v11139_v44  ;;  %v781_v40 = vmul.f32 %v11091_v53, %v742_v36  ;;  %v3629_v13 = vshrl.u32 %v17180_v18, %v11123_v51  ;;  %v3811_v34 = vand.u32 2139095040, %v11126_v19  ;;  %v17037_v9 = vmov 2475754826  }
 0x11b   : > { %17316 = vst [vmem:[#allocation155_spill] sm:$0xff] %v11141_v38  ;;  %v839_v30 = vshrl.u32 %v17037_v9, %v11028_v32  ;;  %v3628_v22 = vshll.u32 %v17177_v45, %v11086_v60  ;;  %v3631_v63 = vshll.u32 %v17180_v18, %v11086_v60  ;;  %v17041_v12 = vmov 2131351028  }
 0x11c   : > { %v842_v16 = vshrl.u32 %v17041_v12, %v11028_v32  ;;  %v845_v47 = vshrl.u32 %v17177_v45, %v11028_v32  ;;  %v11164_v54 = vsel %vm17058_vm7, %v11141_v38, 920167782  ;;  %v11168_v11 = vsel %vm17058_vm7, %v3324_v52, 1326507024 }
 0x11d   : > { %17317 = vst [vmem:[#allocation156_spill] sm:$0xff] %v11164_v54  ;;  %17318 = vst [vmem:[#allocation157_spill] sm:$0xff] %v11168_v11  ;;  %v3632_v36 = vshrl.u32 %v17200_v14, %v11123_v51  ;;  %v17051_v9 = vmov 683565275   ;;  %vm17069_vm0 = vcmp.lt.s32.totalorder %v11144_v33, 4  ;;  %v11175_v12 = vshrl.u32 %v3511_v23, 5 }
 0x11e   : > { %v838_v19 = vshll.u32 %v17051_v9, %v10359_v26  ;;  %v11177_v60 = vand.u32 31, %v3511_v23  ;;  %v17319_v44 = vmov 2475754826   ;;  %v17320_v38 = vmov 2131351028  }
 0x11f   : > { %v841_v54 = vshll.u32 %v17319_v44, %v10359_v26  ;;  %v844_v52 = vshll.u32 %v17320_v38, %v10359_v26  ;;  %v11183_v11 = vor.u32 %v3629_v13, %v3628_v22  ;;  %v3812_v8 = vshrl.u32 %v3811_v34, 23 }
 0x120   : > { %v11186_v51 = vadd.f32 %v10967_v4, %v778_v62  ;;  %v840_v9 = vor.u32 %v839_v30, %v838_v19  ;;  %v847_v23 = vshll.u32 %v17177_v45, %v10359_v26  ;;  %v848_v48 = vshrl.u32 %v17180_v18, %v11028_v32 }
 0x121   : > { %17321 = vst [vmem:[#allocation158_spill] sm:$0xff] %v11183_v11  ;;  %v843_v57 = vor.u32 %v842_v16, %v841_v54  ;;  %v846_v15 = vor.u32 %v845_v47, %v844_v52  ;;  %v3633_v5 = vor.u32 %v3632_v36, %v3631_v63  ;;  %v11193_v29 = vadd.f32 %v10967_v4, %v781_v40 }
 0x122   : > { %17322 = vst [vmem:[#allocation159_spill] sm:$0xff] %v11186_v51  ;;  %v850_v34 = vshll.u32 %v17180_v18, %v10359_v26  ;;  %v851_v13 = vshrl.u32 %v17200_v14, %v11028_v32  ;;  %v11200_v19 = vsub.s32 32, %v11177_v60  ;;  %v11204_v62 = vshll.u32 %v17177_v45, %v11177_v60 }
 0x123   : > { %17323 = vst [vmem:[#allocation160_spill] sm:$0xff] %v11193_v29  ;;  %v11207_v30 = vmul.f32 %v11091_v53, %v737_v17  ;;  %v849_v22 = vor.u32 %v848_v48, %v847_v23  ;;  %v17324_v40 = vmov 683565275   ;;  %vm853_vm2 = vcmp.lt.s32.totalorder %v10347_v20, 1 }
 0x124   : > { %v837_v63 = vshrl.u32 %v17324_v40, %v11028_v32  ;;  %v852_v16 = vor.u32 %v851_v13, %v850_v34  ;;  %vm856_vm7 = vcmp.lt.s32.totalorder %v10347_v20, 4  ;;  %vm855_vm15 = vcmp.lt.s32.totalorder %v10347_v20, 3 }
 0x125   : > { %v858_v26 = vsel %vm856_vm7, %v846_v15, 2102212464  ;;  %v861_v47 = vsel %vm853_vm2, %v840_v9, %v843_v57  ;;  %v862_v54 = vsel %vm856_vm7, %v849_v22, 920167782  ;;  %vm854_vm12 = vcmp.lt.s32.totalorder %v10347_v20, 2 }
 0x126   : > { %v857_v36 = vsel %vm853_vm2, %v837_v63, %v840_v9  ;;  %v863_v52 = vsel %vm855_vm15, %v846_v15, %v862_v54  ;;  %v865_v17 = vsel %vm853_vm2, %v843_v57, %v846_v15  ;;  %v859_v53 = vsel %vm855_vm15, %v843_v57, %v858_v26 }
 0x127   : > { %v864_v48 = vsel %vm854_vm12, %v861_v47, %v863_v52  ;;  %v866_v32 = vsel %vm856_vm7, %v852_v16, 1326507024  ;;  %v17325_v23 = vor.u32 8388608, %v10314_v50  ;;  %v11222_v13 = vsel %vm17069_vm0, %v11183_v11, 920167782 }
 0x128   : > { %17326 = vst [vmem:[#allocation161_spill] sm:$0xff] %v11222_v13  ;;  %v11226_v25 = vshll.u32 %v17180_v18, %v11177_v60  ;;  %v867_v9 = vsel %vm855_vm15, %v849_v22, %v866_v32  ;;  %v17063_v15 = vand.u32 2147483647, %v10267_v3  ;;  %v11231_v57 = vsel %vm17069_vm0, %v3633_v5, 1326507024 }
 0x129   : > { %v869_v34 = vshll.u32 %v17325_v23, 8  ;;  %17327 = vst [vmem:[#allocation162_spill] sm:$0xff] %v11231_v57  ;;  %v868_v50 = vsel %vm854_vm12, %v865_v17, %v867_v9  ;;  %v8067_v26 = vadd.s32 4294967169, %v3812_v8  ;;  %v860_v47 = vsel %vm854_vm12, %v857_v36, %v859_v53 }
 0x12a   : > { %v3708_v22 = vand.u32 2139095040, %v11186_v51  ;;  %v931_v5 = vand.u32 8388607, %v17063_v15  ;;  %v941_v32 = vshll.u32 %v17324_v40, %v10333_v10  ;;  %v942_v17 = vshrl.u32 %v17319_v44, %v10371_v31 }
 0x12b   : > { %v11235_v63 = vmul.u32.u64.low %v869_v34, %v864_v48  ;;  %v11236_v16 = vmul.u32.u64.high %v869_v34, %v864_v48, %v11235_v63  ;;  %v11241_v54 = vmul.u32.u64.low %v869_v34, %v868_v50  ;;  %v11242_v52 = vmul.u32.u64.high %v869_v34, %v868_v50, %v11241_v54 }
 0x12c   : > { %v944_v8 = vshll.u32 %v17319_v44, %v10333_v10  ;;  %v945_v20 = vshrl.u32 %v17320_v38, %v10371_v31  ;;  %v947_v36 = vshll.u32 %v17320_v38, %v10333_v10  ;;  %v948_v53 = vshrl.u32 %v17177_v45, %v10371_v31 }
 0x12d   : > { %v3526_v48 = vshrl.u32 %v17180_v18, %v11200_v19  ;;  %v876_v23 = vmul.u32 %v869_v34, %v860_v47  ;;  %v879_v9 = vadd.s32 1, %v11236_v16  ;;  %v943_v50 = vor.u32 %v942_v17, %v941_v32 }
 0x12e   : > { %vm878_vm12 = vc.u32 %v11242_v52, %v11235_v63  ;;  %v932_v54 = vor.u32 8388608, %v931_v5  ;;  %v946_v15 = vor.u32 %v945_v20, %v944_v8  ;;  %v949_v51 = vor.u32 %v948_v53, %v947_v36 }
 0x12f   : > { %v11266_v13 = vshrl.u32 %v17200_v14, %v11200_v19  ;;  %v880_v10 = vsel %vm878_vm12, %v879_v9, %v11236_v16  ;;  %vm956_vm15 = vcmp.lt.s32.totalorder %v10382_v41, 1  ;;  %vm958_vm2 = vcmp.lt.s32.totalorder %v10382_v41, 3 }
 0x130   : > { %v4017_v34 = vand.u32 2139095040, %v11193_v29  ;;  %v881_v47 = vadd.s32 %v880_v10, %v876_v23  ;;  %v964_v32 = vsel %vm956_vm15, %v943_v50, %v946_v15  ;;  %v966_v5 = vsel %vm958_vm2, %v949_v51, %v10450_v49 }
 0x131   : > { %vm957_vm7 = vcmp.lt.s32.totalorder %v10382_v41, 2  ;;  %v961_v17 = vsel %vm959_vm10, %v949_v51, 2102212464  ;;  %v968_v16 = vsel %vm956_vm15, %v946_v15, %v949_v51  ;;  %v970_v8 = vsel %vm958_vm2, %v10416_v24, %v10458_v56 }
 0x132   : > { %v882_v20 = vadd.s32 536870912, %v881_v47  ;;  %v967_v36 = vsel %vm957_vm7, %v964_v32, %v966_v5  ;;  %v971_v49 = vsel %vm957_vm7, %v968_v16, %v970_v8  ;;  %v972_v53 = vshll.u32 %v932_v54, 8 }
 0x133   : > { %v3818_v23 = vadd.s32 1, %v8067_v26  ;;  %v11292_v9 = vadd.f32 %v10967_v4, %v11207_v30  ;;  %v940_v51 = vshrl.u32 %v17324_v40, %v10371_v31  ;;  %v17071_v10 = vand.u32 2147483647, %v10256_v59 }
 0x134   : > { %v3709_v29 = vshrl.u32 %v3708_v22, 23  ;;  %v11297_v24 = vshrl.u32 %v882_v20, 30  ;;  %v11299_v56 = vmul.u32.u64.low %v972_v53, %v971_v49  ;;  %v11300_v11 = vmul.u32.u64.high %v972_v53, %v971_v49, %v11299_v56 }
 0x135   : > { %17328 = vst [vmem:[#allocation163_spill] sm:$0xff] %v11292_v9  ;;  %vm17074_vm10 = vcmp.lt.s32.totalorder %v11175_v12, 4  ;;  %v960_v26 = vsel %vm956_vm15, %v940_v51, %v943_v50  ;;  %v962_v4 = vsel %vm958_vm2, %v946_v15, %v961_v17  ;;  %v1034_v22 = vand.u32 8388607, %v17071_v10 }
 0x136   : > { %v11307_v30 = vmul.u32.u64.low %v972_v53, %v967_v36  ;;  %v11308_v54 = vmul.u32.u64.high %v972_v53, %v967_v36, %v11307_v30  ;;  %v884_v31 = vshll.u32 %v11297_v24, 30  ;;  %v1044_v32 = vshll.u32 %v17324_v40, %v10306_v43 }
 0x137   : > { %v1045_v5 = vshrl.u32 %v17319_v44, %v10318_v55  ;;  %v11319_v50 = vor.u32 %v3526_v48, %v11204_v62  ;;  %v3530_v15 = vor.u32 %v11266_v13, %v11226_v25  ;;  %v1047_v17 = vshll.u32 %v17319_v44, %v10306_v43 }
 0x138   : > { %v1048_v16 = vshrl.u32 %v17320_v38, %v10318_v55  ;;  %v4018_v8 = vshrl.u32 %v4017_v34, 23  ;;  %v11327_v20 = vsub.s32 %v881_v47, %v884_v31  ;;  %v963_v36 = vsel %vm957_vm7, %v960_v26, %v962_v4 }
 0x139   : > { %vm981_vm12 = vc.u32 %v11300_v11, %v11307_v30  ;;  %v982_v62 = vadd.s32 1, %v11308_v54  ;;  %v1046_v48 = vor.u32 %v1045_v5, %v1044_v32  ;;  %v1050_v25 = vshll.u32 %v17320_v38, %v10306_v43 }
 0x13a   : > { %v1049_v49 = vor.u32 %v1048_v16, %v1047_v17  ;;  %v3914_v13 = vand.u32 2139095040, %v11292_v9  ;;  %v887_v51 = vsub.s32 0, %v11327_v20  ;;  %v1035_v34 = vor.u32 8388608, %v1034_v22 }
 0x13b   : > { %v1051_v47 = vshrl.u32 %v17177_v45, %v10318_v55  ;;  %vm3819_vm15 = vcmp.gt.s32.totalorder %v3818_v23, 0  ;;  %v8063_v41 = vadd.s32 4294967169, %v3709_v29  ;;  %v979_v56 = vmul.u32 %v972_v53, %v963_v36 }
 0x13c   : > { %v983_v26 = vsel %vm981_vm12, %v982_v62, %v11308_v54  ;;  %v7952_v4 = vmin.u32 %v887_v51, %v11327_v20  ;;  %v1043_v31 = vshrl.u32 %v17324_v40, %v10318_v55  ;;  %vm1059_vm2 = vcmp.lt.s32.totalorder %v10326_v2, 1 }
 0x13d   : > { %vm1061_vm7 = vcmp.lt.s32.totalorder %v10326_v2, 3  ;;  %v984_v43 = vadd.s32 %v983_v26, %v979_v56  ;;  %v1052_v32 = vor.u32 %v1051_v47, %v1050_v25  ;;  %v1067_v22 = vsel %vm1059_vm2, %v1046_v48, %v1049_v49 }
 0x13e   : > { %v1073_v29 = vsel %vm1061_vm7, %v10377_v37, %v10425_v35  ;;  %v11355_v53 = vsel %vm17074_vm10, %v11319_v50, 920167782  ;;  %v889_v55 = vclz %v7952_v4  ;;  %vm1060_vm12 = vcmp.lt.s32.totalorder %v10326_v2, 2 }
 0x13f   : > { %v1075_v54 = vshll.u32 %v1035_v34, 8  ;;  %v985_v5 = vadd.s32 536870912, %v984_v43  ;;  %v1064_v17 = vsel %vm1062_vm6, %v1052_v32, 2102212464  ;;  %v1069_v16 = vsel %vm1061_vm7, %v1052_v32, %v10402_v58 }
 0x140   : > { %v1071_v37 = vsel %vm1059_vm2, %v1049_v49, %v1052_v32  ;;  %v3820_v35 = vsel %vm3819_vm15, %v3818_v23, 0  ;;  %v7953_v36 = vadd.s32 4294967294, %v889_v55  ;;  %v1070_v62 = vsel %vm1060_vm12, %v1067_v22, %v1069_v16 }
 0x141   : > { %v1074_v25 = vsel %vm1060_vm12, %v1071_v37, %v1073_v29  ;;  %vm823_vm0 = vcmp.lt.s32.totalorder %v10273_v7, 0  ;;  %v11371_v51 = vshrl.u32 %v985_v5, 30  ;;  %v1063_v34 = vsel %vm1059_vm2, %v1043_v31, %v1046_v48 }
 0x142   : > { %v11375_v58 = vmul.u32.u64.low %v1075_v54, %v1074_v25  ;;  %v11376_v47 = vmul.u32.u64.high %v1075_v54, %v1074_v25, %v11375_v58  ;;  %vm7954_vm6 = vcmp.lt.s32.totalorder %v7953_v36, 0  ;;  %v1065_v23 = vsel %vm1061_vm7, %v1049_v49, %v1064_v17 }
 0x143   : > { %v11380_v56 = vmul.u32.u64.low %v1075_v54, %v1070_v62  ;;  %v11381_v26 = vmul.u32.u64.high %v1075_v54, %v1070_v62, %v11380_v56  ;;  %v11386_v4 = vsel %vm17074_vm10, %v3530_v15, 1326507024  ;;  %v8075_v32 = vadd.s32 4294967169, %v4018_v8 }
 0x144   : > { %v892_v22 = vsel %vm7954_vm6, 0, %v7953_v36  ;;  %v987_v29 = vshll.u32 %v11371_v51, 30  ;;  %v11389_v48 = vand.u32 31, %v3820_v35  ;;  %v877_v31 = vadd.s32 %v11235_v63, %v11242_v52 }
 0x145   : > { %v893_v55 = vsub.s32 32, %v892_v22  ;;  %v897_v5 = vsub.s32 4294967266, %v892_v22  ;;  %v17329_v49 = vand.u32 2147483647, %v10273_v7  ;;  %v907_v15 = vsub.s32 4, %v11297_v24 }
 0x146   : > { %v11400_v16 = vsub.s32 %v984_v43, %v987_v29  ;;  %v1066_v8 = vsel %vm1060_vm12, %v1063_v34, %v1065_v23  ;;  %vm1084_vm2 = vc.u32 %v11376_v47, %v11380_v56  ;;  %v894_v63 = vshll.u32 %v11327_v20, %v892_v22 }
 0x147   : > { %vm11395_vm15 = vcmp.le.f32.partialorder %v17329_v49, 0.7853982  ;;  %v895_v52 = vshrl.u32 %v877_v31, %v893_v55  ;;  %v898_v37 = vadd.s32 127, %v897_v5  ;;  %v1085_v36 = vadd.s32 1, %v11381_v26 }
 0x148   : > { %v11408_v62 = vshrl.u32 %v3820_v35, 5  ;;  %v11410_v25 = vadd.s32 1, %v8063_v41  ;;  %v11412_v58 = vshrl.u32 %v3914_v13, 23  ;;  %v990_v43 = vsub.s32 0, %v11400_v16 }
 0x149   : > { %v896_v29 = vor.u32 %v895_v52, %v894_v63  ;;  %v899_v2 = vshll.u32 %v898_v37, 23  ;;  %v1082_v34 = vmul.u32 %v1075_v54, %v1066_v8  ;;  %v1086_v23 = vsel %vm1084_vm2, %v1085_v36, %v11381_v26 }
 0x14a   : > { %v11417_v49 = vsub.s32 32, %v11389_v48  ;;  %v11419_v20 = vadd.s32 1, %v8075_v32  ;;  %v7956_v22 = vmin.u32 %v990_v43, %v11400_v16  ;;  %v17070_v35 = vand.u32 2147483647, %v10263_v1 }
 0x14b   : > { %v11425_v13 = vshll.u32 %v17177_v45, %v11389_v48  ;;  %v900_v41 = vor.u32 4788187, %v899_v2  ;;  %v908_v54 = vsel %vm823_vm0, %v907_v15, %v11297_v24  ;;  %v1087_v31 = vadd.s32 %v1086_v23, %v1082_v34 }
 0x14c   : > { %v903_v26 = vcvt.s32.f32 %v896_v29  ;;  %v980_v55 = vadd.s32 %v11307_v30, %v11300_v11  ;;  %v992_v32 = vclz %v7956_v22  ;;  %v1148_v5 = vshrl.u32 %v17319_v44, %v10350_v21 }
 0x14d   : > { %v901_v8 = vand.u32 2147483647, %v900_v41  ;;  %v1088_v63 = vadd.s32 536870912, %v1087_v31  ;;  %v1151_v52 = vshrl.u32 %v17320_v38, %v10350_v21  ;;  %v1154_v37 = vshrl.u32 %v17177_v45, %v10350_v21 }
 0x14e   : > { %v7957_v36 = vadd.s32 4294967294, %v992_v32  ;;  %v1137_v24 = vand.u32 8388607, %v17070_v35  ;;  %v1147_v15 = vshll.u32 %v17324_v40, %v10321_v61  ;;  %v1153_v11 = vshll.u32 %v17320_v38, %v10321_v61 }
 0x14f   : > { %v904_v30 = vmul.f32 %v903_v26, %v901_v8  ;;  %v910_v43 = vsel %vm11395_vm15, 0, %v908_v54  ;;  %vm926_vm7 = vcmp.lt.s32.totalorder %v10267_v3, 0  ;;  %v11447_v29 = vshrl.u32 %v1088_v63, 30 }
 0x150   : > { %v1150_v2 = vshll.u32 %v17319_v44, %v10321_v61  ;;  %vm7958_vm12 = vcmp.lt.s32.totalorder %v7957_v36, 0  ;;  %v1010_v34 = vsub.s32 4, %v11371_v51  ;;  %v1149_v23 = vor.u32 %v1148_v5, %v1147_v15 }
 0x151   : > { %v1155_v22 = vor.u32 %v1154_v37, %v1153_v11  ;;  %v905_v41 = vxor.u32 2147483648, %v904_v30  ;;  %v995_v32 = vsel %vm7958_vm12, 0, %v7957_v36  ;;  %v1090_v35 = vshll.u32 %v11447_v29, 30 }
 0x152   : > { %v1152_v26 = vor.u32 %v1151_v52, %v1150_v2  ;;  %v996_v8 = vsub.s32 32, %v995_v32  ;;  %v1000_v10 = vsub.s32 4294967266, %v995_v32  ;;  %v1138_v54 = vor.u32 8388608, %v1137_v24 }
 0x153   : > { %v1146_v63 = vshrl.u32 %v17324_v40, %v10350_v21  ;;  %v906_v9 = vsel %vm823_vm0, %v905_v41, %v904_v30  ;;  %v997_v61 = vshll.u32 %v11400_v16, %v995_v32  ;;  %v11458_v57 = vsub.s32 %v1087_v31, %v1090_v35 }
 0x154   : > { %vm1162_vm6 = vcmp.lt.s32.totalorder %v10361_v27, 1  ;;  %v909_v5 = vsel %vm11395_vm15, %v10273_v7, %v906_v9  ;;  %v998_v52 = vshrl.u32 %v980_v55, %v996_v8  ;;  %v1001_v37 = vadd.s32 127, %v1000_v10 }
 0x155   : > { %v1167_v36 = vsel %vm1165_vm8, %v1155_v22, 2102212464  ;;  %9540 = vcosq.f32 %v909_v5  ;;  %v1093_v21 = vsub.s32 0, %v11458_v57  ;;  %vm1164_vm0 = vcmp.lt.s32.totalorder %v10361_v27, 3 }
 0x156   : > { %v1170_v16 = vsel %vm1162_vm6, %v1149_v23, %v1152_v26  ;;  %9542 = vsinq.f32 %v909_v5  ;;  %v999_v35 = vor.u32 %v998_v52, %v997_v61  ;;  %v1002_v31 = vshll.u32 %v1001_v37, 23 }
 0x157   : > { %v1172_v9 = vsel %vm1164_vm0, %v1155_v22, %v10433_v39  ;;  %v11473_v17 = vand.u32 3, %v910_v43  ;;  %v7960_v10 = vmin.u32 %v1093_v21, %v11458_v57  ;;  %v1166_v55 = vsel %vm1162_vm6, %v1146_v63, %v1149_v23 }
 0x158   : > { %v1168_v24 = vsel %vm1164_vm0, %v1152_v26, %v1167_v36  ;;  %v1003_v15 = vor.u32 4788187, %v1002_v31  ;;  %v11483_v11 = vsel %vm926_vm7, %v1010_v34, %v11371_v51  ;;  %vm1163_vm8 = vcmp.lt.s32.totalorder %v10361_v27, 2 }
 0x159   : > { %v1174_v39 = vsel %vm1162_vm6, %v1152_v26, %v1155_v22  ;;  %v1095_v30 = vclz %v7960_v10  ;;  %v1173_v43 = vsel %vm1163_vm8, %v1170_v16, %v1172_v9  ;;  %v1176_v2 = vsel %vm1164_vm0, %v10408_v0, %v10440_v46  ;;  %v17335_v9 = vld [vmem:[#allocation9_spill] sm:$0xff] }
 0x15a   : > { %v1178_v23 = vshll.u32 %v1138_v54, 8  ;;  %v1004_v41 = vand.u32 2147483647, %v1003_v15  ;;  %v1006_v32 = vcvt.s32.f32 %v999_v35  ;;  %v1169_v8 = vsel %vm1163_vm8, %v1166_v55, %v1168_v24  ;;  %v17336_v55 = vld [vmem:[#allocation14_spill] sm:$0xff] }
 0x15b   : > { %v1177_v63 = vsel %vm1163_vm8, %v1174_v39, %v1176_v2  ;;  %v7961_v61 = vadd.s32 4294967294, %v1095_v30  ;;  %v1233_v5 = vand.u32 2147483647, %v10291_v28  ;;  %v17332_v22 = vand.u32 2147483647, %v10267_v3 }
 0x15c   : > { %v11492_v51 = vmul.u32.u64.low %v1178_v23, %v1177_v63  ;;  %v11493_v34 = vmul.u32.u64.high %v1178_v23, %v1177_v63, %v11492_v51  ;;  %v1007_v52 = vmul.f32 %v1006_v32, %v1004_v41  ;;  %vm916_vm2 = vcmp.eq.s32.totalorder %v11473_v17, 0 }
 0x15d   : > { %vm11498_vm15 = vcmp.le.f32.partialorder %v17332_v22, 0.7853982  ;;  %v11502_v27 = vmul.u32.u64.low %v1178_v23, %v1173_v43  ;;  %v11503_v0 = vmul.u32.u64.high %v1178_v23, %v1173_v43, %v11502_v27  ;;  %vm919_vm12 = vcmp.eq.s32.totalorder %v11473_v17, 2 }
 0x15e   : > { %v1083_v46 = vadd.s32 %v11380_v56, %v11376_v47  ;;  %vm7962_vm6 = vcmp.lt.s32.totalorder %v7961_v61, 0  ;;  %vm915_vm0 = vcmp.lt.s32.totalorder %v11473_v17, 2  ;;  %vm4187_vm8 = vcmask 130048  }
 0x15f   : > { %v1008_v54 = vxor.u32 2147483648, %v1007_v52  ;;  %v1013_v37 = vsel %vm11498_vm15, 0, %v11483_v11  ;;  %v1098_v36 = vsel %vm7962_vm6, 0, %v7961_v61  ;;  %v1185_v21 = vmul.u32 %v1178_v23, %v1169_v8 }
 0x160   : > { %vm913_vm10 = vweird.f32 %v10273_v7  ;;  %v1099_v16 = vsub.s32 32, %v1098_v36  ;;  %v1103_v35 = vsub.s32 4294967266, %v1098_v36  ;;  %v1240_v31 = vand.u32 8388607, %v1233_v5  ;;  %v17339_v7 = vld [vmem:[#allocation27_spill] sm:$0xff] }
 0x161   : > { %v1250_v47 = vshll.u32 %v17324_v40, %v17335_v9  ;;  %v1009_v56 = vsel %vm926_vm7, %v1008_v54, %v1007_v52  ;;  %vm1187_vm14 = vc.u32 %v11493_v34, %v11502_v27  ;;  %v1188_v10 = vadd.s32 1, %v11503_v0 }
 0x162   : > { %v1251_v24 = vshrl.u32 %v17319_v44, %v17336_v55  ;;  %v1012_v15 = vsel %vm11498_vm15, %v10267_v3, %v1009_v56  ;;  %vm1029_vm6 = vcmp.lt.s32.totalorder %v10256_v59, 0  ;;  %v1100_v11 = vshll.u32 %v11458_v57, %v1098_v36  ;;  %v9541_v43 = vpop.eup %9540 }
 0x163   : > { %v1101_v39 = vshrl.u32 %v1083_v46, %v1099_v16  ;;  %v1104_v30 = vadd.s32 127, %v1103_v35  ;;  %9544 = vcosq.f32 %v1012_v15  ;;  %v1189_v2 = vsel %vm1187_vm14, %v1188_v10, %v11503_v0  ;;  %v9543_v32 = vpop.eup %9542 }
 0x164   : > { %v1253_v23 = vshll.u32 %v17319_v44, %v17335_v9  ;;  %v1254_v41 = vshrl.u32 %v17320_v38, %v17336_v55  ;;  %v920_v8 = vxor.u32 2147483648, %v9541_v43  ;;  %9546 = vsinq.f32 %v1012_v15 }
 0x165   : > { %v1102_v63 = vor.u32 %v1101_v39, %v1100_v11  ;;  %v1105_v61 = vshll.u32 %v1104_v30, 23  ;;  %v917_v51 = vxor.u32 2147483648, %v9543_v32  ;;  %v1190_v22 = vadd.s32 %v1189_v2, %v1185_v21 }
 0x166   : > { %v1256_v57 = vshll.u32 %v17320_v38, %v17335_v9  ;;  %v1257_v26 = vshrl.u32 %v17177_v45, %v17336_v55  ;;  %v921_v52 = vsel %vm919_vm12, %v920_v8, %v9543_v32  ;;  %v1252_v46 = vor.u32 %v1251_v24, %v1250_v47  ;;  %v17338_v47 = vld [vmem:[#allocation15_spill] sm:$0xff]  ;;  %v17340_v32 = vld [vmem:[#allocation28_spill] sm:$0xff] }
 0x167   : > { %v1106_v0 = vor.u32 4788187, %v1105_v61  ;;  %v1255_v54 = vor.u32 %v1254_v41, %v1253_v23  ;;  %v918_v36 = vsel %vm916_vm2, %v9541_v43, %v917_v51  ;;  %v1113_v16 = vsub.s32 4, %v11447_v29  ;;  %v17341_v8 = vld [vmem:[#allocation20_spill] sm:$0xff] }
 0x168   : > { %v1191_v35 = vadd.s32 536870912, %v1190_v22  ;;  %v1258_v56 = vor.u32 %v1257_v26, %v1256_v57  ;;  %v922_v21 = vsel %vm915_vm0, %v918_v36, %v921_v52  ;;  %v1109_v10 = vcvt.s32.f32 %v1102_v63 }
 0x169   : > { %v1107_v9 = vand.u32 2147483647, %v1106_v0  ;;  %v1241_v15 = vor.u32 8388608, %v1240_v31  ;;  %v11549_v11 = vsel %vm913_vm10, nan, %v922_v21  ;;  %vm1265_vm14 = vcmp.lt.s32.totalorder %v17338_v47, 1 }
 0x16a   : > { %17337 = vst [vmem:[#allocation9_spill] sm:$0xff] %v11549_v11  ;;  %v11551_v39 = vshrl.u32 %v1191_v35, 30  ;;  %vm1267_vm7 = vcmp.lt.s32.totalorder %v17338_v47, 3  ;;  %8853 = vmatprep.mubr.msk.f32.mxu0 %vm4187_vm8, %v11549_v11  ;;  %9017 = vmatprep.mubr.msk.f32.mxu1 %vm4187_vm8, %v11549_v11  ;;  %v1017_v17 = vand.u32 3, %v1013_v37  ;;  %v1273_v31 = vsel %vm1265_vm14, %v1252_v46, %v1255_v54 }
 0x16b   : > { %v1110_v24 = vmul.f32 %v1109_v10, %v1107_v9  ;;  %v1275_v30 = vsel %vm1267_vm7, %v1258_v56, %v17339_v7  ;;  %v1114_v43 = vsel %vm1029_vm6, %v1113_v16, %v11447_v29  ;;  %vm1266_vm10 = vcmp.lt.s32.totalorder %v17338_v47, 2 }
 0x16c   : > { %v1193_v2 = vshll.u32 %v11551_v39, 30  ;;  %v1270_v23 = vsel %vm1268_vm13, %v1258_v56, 2102212464  ;;  %v1277_v41 = vsel %vm1265_vm14, %v1255_v54, %v1258_v56  ;;  %v1279_v63 = vsel %vm1267_vm7, %v17341_v8, %v17340_v32 }
 0x16d   : > { %v1111_v37 = vxor.u32 2147483648, %v1110_v24  ;;  %v1281_v61 = vshll.u32 %v1241_v15, 8  ;;  %vm1016_vm15 = vweird.f32 %v10267_v3  ;;  %v1249_v51 = vshrl.u32 %v17324_v40, %v17336_v55 }
 0x16e   : > { %v11578_v29 = vsub.s32 %v1190_v22, %v1193_v2  ;;  %v1276_v57 = vsel %vm1266_vm10, %v1273_v31, %v1275_v30  ;;  %v1280_v26 = vsel %vm1266_vm10, %v1277_v41, %v1279_v63  ;;  %v17342_v52 = vand.u32 2147483647, %v10256_v59 }
 0x16f   : > { %v1112_v36 = vsel %vm1029_vm6, %v1111_v37, %v1110_v24  ;;  %v11594_v22 = vmul.u32.u64.low %v1281_v61, %v1280_v26  ;;  %v11595_v16 = vmul.u32.u64.high %v1281_v61, %v1280_v26, %v11594_v22  ;;  %v1269_v56 = vsel %vm1265_vm14, %v1249_v51, %v1252_v46 }
 0x170   : > { %vm11588_vm13 = vcmp.le.f32.partialorder %v17342_v52, 0.7853982  ;;  %v1196_v35 = vsub.s32 0, %v11578_v29  ;;  %v1271_v21 = vsel %vm1267_vm7, %v1255_v54, %v1270_v23  ;;  %v9545_v9 = vpop.eup %9544  ;;  %vm1019_vm2 = vcmp.eq.s32.totalorder %v1017_v17, 0  ;;  %v17345_v54 = vld [vmem:[#allocation2_spill] sm:$0xff] }
 0x171   : > { %v1115_v55 = vsel %vm11588_vm13, %v10256_v59, %v1112_v36  ;;  %v1116_v10 = vsel %vm11588_vm13, 0, %v1114_v43  ;;  %v11607_v15 = vmul.u32.u64.low %v1281_v61, %v1276_v57  ;;  %v11608_v24 = vmul.u32.u64.high %v1281_v61, %v1276_v57, %v11607_v15  ;;  %v9547_v31 = vpop.eup %9546 }
 0x172   : > { %9548 = vcosq.f32 %v1115_v55  ;;  %v1023_v7 = vxor.u32 2147483648, %v9545_v9  ;;  %v7964_v30 = vmin.u32 %v1196_v35, %v11578_v29  ;;  %v1020_v2 = vxor.u32 2147483648, %v9547_v31  ;;  %v9990_v35 = vld [vmem:[%s16825_s9 + $0x18] sm:$0xff] }
 0x173   : > { %9550 = vsinq.f32 %v1115_v55  ;;  %vm1022_vm12 = vcmp.eq.s32.totalorder %v1017_v17, 2  ;;  %v1272_v46 = vsel %vm1266_vm10, %v1269_v56, %v1271_v21  ;;  %v17077_v23 = vand.u32 2147483647, %v17345_v54 }
 0x174   : > { %v1024_v37 = vsel %vm1022_vm12, %v1023_v7, %v9547_v31  ;;  %v11615_v43 = vand.u32 3, %v1116_v10  ;;  %v1198_v41 = vclz %v7964_v30  ;;  %vm1290_vm0 = vc.u32 %v11595_v16, %v11607_v15 }
 0x175   : > { %vm1018_vm6 = vcmp.lt.s32.totalorder %v1017_v17, 2  ;;  %v1021_v32 = vsel %vm1019_vm2, %v9545_v9, %v1020_v2  ;;  %vm1132_vm14 = vcmp.lt.s32.totalorder %v10263_v1, 0  ;;  %v1291_v8 = vadd.s32 1, %v11608_v24  ;;  %v17347_v17 = vld [vmem:[#allocation8_spill] sm:$0xff] }
 0x176   : > { %v1025_v63 = vsel %vm1018_vm6, %v1021_v32, %v1024_v37  ;;  %v7965_v51 = vadd.s32 4294967294, %v1198_v41  ;;  %v1216_v47 = vsub.s32 4, %v11551_v39  ;;  %v1288_v57 = vmul.u32 %v1281_v61, %v1272_v46  ;;  %v17348_v61 = vld [vmem:[#allocation7_spill] sm:$0xff] }
 0x177   : > { %v11624_v26 = vsel %vm1016_vm15, nan, %v1025_v63  ;;  %v1292_v52 = vsel %vm1290_vm0, %v1291_v8, %v11608_v24  ;;  %v11629_v0 = vand.u32 8388607, %v17077_v23  ;;  %v1354_v36 = vshrl.u32 %v17319_v44, %v17347_v17 }
 0x178   : > { %17346 = vst [vmem:[#allocation14_spill] sm:$0xff] %v11624_v26  ;;  %8854 = vmatmul.mubr.msk.f32.vlgmr.msra.gmra.mxu0 %vm4187_vm8, %v11624_v26  ;;  %9018 = vmatmul.mubr.msk.f32.vlgmr.msra.gmra.mxu1 %vm4187_vm8, %v11624_v26  ;;  %vm1125_vm7 = vcmp.eq.s32.totalorder %v11615_v43, 2  ;;  %vm7966_vm10 = vcmp.lt.s32.totalorder %v7965_v51, 0  ;;  %v1293_v3 = vadd.s32 %v1292_v52, %v1288_v57  ;;  %v1353_v22 = vshll.u32 %v17324_v40, %v17348_v61 }
 0x179   : > { %v1357_v55 = vshrl.u32 %v17320_v38, %v17347_v17  ;;  %8958 = vmatpush3.msra.mxu0 %v9990_v35  ;;  %vm1122_vm15 = vcmp.eq.s32.totalorder %v11615_v43, 0  ;;  %v1201_v56 = vsel %vm7966_vm10, 0, %v7965_v51  ;;  %v1356_v21 = vshll.u32 %v17319_v44, %v17348_v61 }
 0x17a   : > { %v1359_v9 = vshll.u32 %v17320_v38, %v17348_v61  ;;  %v1360_v10 = vshrl.u32 %v17177_v45, %v17347_v17  ;;  %vm1121_vm13 = vcmp.lt.s32.totalorder %v11615_v43, 2  ;;  %v17349_v24 = vand.u32 2147483647, %v10263_v1  ;;  %v17352_v61 = vld [vmem:[#allocation11_spill] sm:$0xff] }
 0x17b   : > { %v1186_v7 = vadd.s32 %v11502_v27, %v11493_v34  ;;  %v1202_v30 = vsub.s32 32, %v1201_v56  ;;  %v1206_v2 = vsub.s32 4294967266, %v1201_v56  ;;  %v1294_v46 = vadd.s32 536870912, %v1293_v3 }
 0x17c   : > { %vm11655_vm2 = vcmp.le.f32.partialorder %v17349_v24, 0.7853982  ;;  %vm1119_vm12 = vweird.f32 %v10256_v59  ;;  %v1217_v37 = vsel %vm1132_vm14, %v1216_v47, %v11551_v39  ;;  %v1355_v41 = vor.u32 %v1354_v36, %v1353_v22 }
 0x17d   : > { %v1358_v32 = vor.u32 %v1357_v55, %v1356_v21  ;;  %v1361_v8 = vor.u32 %v1360_v10, %v1359_v9  ;;  %v1203_v63 = vshll.u32 %v11578_v29, %v1201_v56  ;;  %v1204_v51 = vshrl.u32 %v1186_v7, %v1202_v30  ;;  %v17353_v56 = vld [vmem:[#allocation19_spill] sm:$0xff]  ;;  %v4872_v9 = vld [vmem:[%s16825_s9 + $0x10] sm:$0xff]  ;;  %v17354_v30 = vld [vmem:[#allocation25_spill] sm:$0xff] }
 0x17e   : > { %v1207_v57 = vadd.s32 127, %v1206_v2  ;;  %v11666_v52 = vshrl.u32 %v1294_v46, 30  ;;  %v1344_v34 = vor.u32 8388608, %v11629_v0  ;;  %v1352_v27 = vshrl.u32 %v17324_v40, %v17347_v17  ;;  %v17355_v2 = vld [vmem:[#allocation18_spill] sm:$0xff]  ;;  %8959 = vmatprep.subr.mxu0 %v4872_v9 }
 0x17f   : > { %vm1368_vm0 = vcmp.lt.s32.totalorder %v17352_v61, 1  ;;  %vm1370_vm6 = vcmp.lt.s32.totalorder %v17352_v61, 3  ;;  %v9549_v35 = vpop.eup %9548  ;;  %v1205_v39 = vor.u32 %v1204_v51, %v1203_v63  ;;  %v1373_v29 = vsel %vm1371_vm11, %v1361_v8, 2102212464  ;;  %8960 = vmatpush3.msra.mxu0 %v4872_v9 }
 0x180   : > { %v1208_v47 = vshll.u32 %v1207_v57, 23  ;;  %v1296_v36 = vshll.u32 %v11666_v52, 30  ;;  %v9551_v22 = vpop.eup %9550  ;;  %v1126_v55 = vxor.u32 2147483648, %v9549_v35  ;;  %v1376_v0 = vsel %vm1368_vm0, %v1355_v41, %v1358_v32 }
 0x181   : > { %v1378_v17 = vsel %vm1370_vm6, %v1361_v8, %v17353_v56  ;;  %v1380_v21 = vsel %vm1368_vm0, %v1358_v32, %v1361_v8  ;;  %v1123_v10 = vxor.u32 2147483648, %v9551_v22  ;;  %v1382_v46 = vsel %vm1370_vm6, %v17355_v2, %v17354_v30 }
 0x182   : > { %v1209_v24 = vor.u32 4788187, %v1208_v47  ;;  %v11686_v7 = vsub.s32 %v1293_v3, %v1296_v36  ;;  %v1127_v63 = vsel %vm1125_vm7, %v1126_v55, %v9551_v22  ;;  %vm1369_vm11 = vcmp.lt.s32.totalorder %v17352_v61, 2  ;;  %v17357_v55 = vld [vmem:[#allocation4_spill] sm:$0xff] }
 0x183   : > { %v1372_v8 = vsel %vm1368_vm0, %v1352_v27, %v1355_v41  ;;  %v1374_v51 = vsel %vm1370_vm6, %v1358_v32, %v1373_v29  ;;  %v1124_v3 = vsel %vm1122_vm15, %v9549_v35, %v1123_v10  ;;  %v1212_v47 = vcvt.s32.f32 %v1205_v39 }
 0x184   : > { %v1210_v57 = vand.u32 2147483647, %v1209_v24  ;;  %v1299_v36 = vsub.s32 0, %v11686_v7  ;;  %v1128_v56 = vsel %vm1121_vm13, %v1124_v3, %v1127_v63  ;;  %v1219_v22 = vsel %vm11655_vm2, 0, %v1217_v37 }
 0x185   : > { %v1379_v41 = vsel %vm1369_vm11, %v1376_v0, %v1378_v17  ;;  %v1383_v32 = vsel %vm1369_vm11, %v1380_v21, %v1382_v46  ;;  %v11712_v27 = vsel %vm1119_vm12, nan, %v1128_v56  ;;  %v1384_v29 = vshll.u32 %v1344_v34, 8 }
 0x186   : > { %17356 = vst [vmem:[#allocation15_spill] sm:$0xff] %v11712_v27  ;;  %v1213_v35 = vmul.f32 %v1212_v47, %v1210_v57  ;;  %v7968_v39 = vmin.u32 %v1299_v36, %v11686_v7  ;;  %v11717_v43 = vshll.u32 %v17180_v18, %v11389_v48  ;;  %v11720_v37 = vadd.s32 4294967169, %v11412_v58  ;;  %8856 = vmatprep.mubr.msk.f32.mxu0 %vm4187_vm8, %v11712_v27  ;;  %v17358_v57 = vld [vmem:[#allocation31_spill] sm:$0xff] }
 0x187   : > { %9020 = vmatprep.mubr.msk.f32.mxu1 %vm4187_vm8, %v11712_v27  ;;  %v1375_v59 = vsel %vm1369_vm11, %v1372_v8, %v1374_v51  ;;  %v17076_v0 = vand.u32 2147483647, %v17357_v55  ;;  %v11729_v21 = vmul.u32.u64.low %v1384_v29, %v1383_v32  ;;  %v11730_v9 = vmul.u32.u64.high %v1384_v29, %v1383_v32, %v11729_v21 }
 0x188   : > { %v1214_v17 = vxor.u32 2147483648, %v1213_v35  ;;  %v1301_v34 = vclz %v7968_v39  ;;  %v11734_v58 = vshrl.u32 %v17180_v18, %v11417_v49  ;;  %v11736_v10 = vand.u32 3, %v1219_v22 }
 0x189   : > { %v11738_v24 = vmul.u32.u64.low %v1384_v29, %v1379_v41  ;;  %v11739_v30 = vmul.u32.u64.high %v1384_v29, %v1379_v41, %v11738_v24  ;;  %v1289_v2 = vadd.s32 %v11607_v15, %v11595_v16  ;;  %v1391_v51 = vmul.u32 %v1384_v29, %v1375_v59  ;;  %v17359_v16 = vld [vmem:[#allocation23_spill] sm:$0xff] }
 0x18a   : > { %v1215_v61 = vsel %vm1132_vm14, %v1214_v17, %v1213_v35  ;;  %v7969_v46 = vadd.s32 4294967294, %v1301_v34  ;;  %v1446_v3 = vand.u32 8388607, %v17076_v0  ;;  %v1457_v47 = vshrl.u32 %v17319_v44, %v17358_v57  ;;  %v17360_v0 = vld [vmem:[#allocation30_spill] sm:$0xff] }
 0x18b   : > { %v1218_v8 = vsel %vm11655_vm2, %v10263_v1, %v1215_v61  ;;  %vm1393_vm14 = vc.u32 %v11730_v9, %v11738_v24  ;;  %v1456_v15 = vshll.u32 %v17324_v40, %v17359_v16  ;;  %v1394_v31 = vadd.s32 1, %v11739_v30 }
 0x18c   : > { %9552 = vcosq.f32 %v1218_v8  ;;  %vm7970_vm7 = vcmp.lt.s32.totalorder %v7969_v46, 0  ;;  %v1455_v56 = vshrl.u32 %v17324_v40, %v17358_v57  ;;  %v1459_v35 = vshll.u32 %v17319_v44, %v17359_v16 }
 0x18d   : > { %9554 = vsinq.f32 %v1218_v8  ;;  %v1304_v36 = vsel %vm7970_vm7, 0, %v7969_v46  ;;  %v1458_v32 = vor.u32 %v1457_v47, %v1456_v15  ;;  %v1395_v39 = vsel %vm1393_vm14, %v1394_v31, %v11739_v30 }
 0x18e   : > { %v1305_v22 = vsub.s32 32, %v1304_v36  ;;  %v1309_v41 = vsub.s32 4294967266, %v1304_v36  ;;  %v1460_v29 = vshrl.u32 %v17320_v38, %v17358_v57  ;;  %v1462_v59 = vshll.u32 %v17320_v38, %v17359_v16 }
 0x18f   : > { %v1463_v17 = vshrl.u32 %v17177_v45, %v17358_v57  ;;  %v1306_v34 = vshll.u32 %v11686_v7, %v1304_v36  ;;  %v1396_v46 = vadd.s32 %v1395_v39, %v1391_v51  ;;  %v1447_v8 = vor.u32 8388608, %v1446_v3  ;;  %v17361_v57 = vld [vmem:[#allocation47_spill] sm:$0xff]  ;;  %v17363_v39 = vld [vmem:[#allocation41_spill] sm:$0xff] }
 0x190   : > { %v1307_v21 = vshrl.u32 %v1289_v2, %v1305_v22  ;;  %v1310_v61 = vadd.s32 127, %v1309_v41  ;;  %v1461_v47 = vor.u32 %v1460_v29, %v1459_v35  ;;  %vm1471_vm10 = vcmp.lt.s32.totalorder %v17360_v0, 1  ;;  %v17362_v35 = vld [vmem:[#allocation48_spill] sm:$0xff] }
 0x191   : > { %v1464_v15 = vor.u32 %v1463_v17, %v1462_v59  ;;  %v1397_v23 = vadd.s32 536870912, %v1396_v46  ;;  %vm1473_vm15 = vcmp.lt.s32.totalorder %v17360_v0, 3  ;;  %vm1472_vm13 = vcmp.lt.s32.totalorder %v17360_v0, 2 }
 0x192   : > { %v1308_v30 = vor.u32 %v1307_v21, %v1306_v34  ;;  %v1311_v31 = vshll.u32 %v1310_v61, 23  ;;  %v1479_v63 = vsel %vm1471_vm10, %v1458_v32, %v1461_v47  ;;  %v1475_v36 = vsel %vm1471_vm10, %v1455_v56, %v1458_v32 }
 0x193   : > { %v1476_v16 = vsel %vm1474_vm3, %v1464_v15, 2102212464  ;;  %v1481_v7 = vsel %vm1473_vm15, %v1464_v15, %v17361_v57  ;;  %v1483_v2 = vsel %vm1471_vm10, %v1461_v47, %v1464_v15  ;;  %v11778_v3 = vshrl.u32 %v1397_v23, 30 }
 0x194   : > { %v1312_v51 = vor.u32 4788187, %v1311_v31  ;;  %vm3716_vm2 = vcmp.gt.s32.totalorder %v11410_v25, 0  ;;  %vm4025_vm12 = vcmp.gt.s32.totalorder %v11419_v20, 0  ;;  %v1315_v22 = vcvt.s32.f32 %v1308_v30 }
 0x195   : > { %v1482_v41 = vsel %vm1472_vm13, %v1479_v63, %v1481_v7  ;;  %v1485_v29 = vsel %vm1473_vm15, %v17363_v39, %v17362_v35  ;;  %v1487_v59 = vshll.u32 %v1447_v8, 8  ;;  %v1399_v23 = vshll.u32 %v11778_v3, 30 }
 0x196   : > { %v1313_v17 = vand.u32 2147483647, %v1312_v51  ;;  %v1477_v56 = vsel %vm1473_vm15, %v1461_v47, %v1476_v16  ;;  %v1486_v32 = vsel %vm1472_vm13, %v1483_v2, %v1485_v29  ;;  %v11803_v15 = vshrl.u32 %v17200_v14, %v11417_v49 }
 0x197   : > { %v11794_v34 = vmul.u32.u64.low %v1487_v59, %v1486_v32  ;;  %v11795_v21 = vmul.u32.u64.high %v1487_v59, %v1486_v32, %v11794_v34  ;;  %v11797_v61 = vmul.u32.u64.low %v1487_v59, %v1482_v41  ;;  %v11798_v63 = vmul.u32.u64.high %v1487_v59, %v1482_v41, %v11797_v61 }
 0x198   : > { %vm1235_vm3 = vcmp.lt.s32.totalorder %v10291_v28, 0  ;;  %v1316_v8 = vmul.f32 %v1315_v22, %v1313_v17  ;;  %v11806_v30 = vsub.s32 %v1396_v46, %v1399_v23  ;;  %vm1222_vm0 = vweird.f32 %v10263_v1 }
 0x199   : > { %v9553_v47 = vpop.eup %9552  ;;  %vm1224_vm6 = vcmp.lt.s32.totalorder %v11736_v10, 2  ;;  %vm11812_vm11 = vcmp.le.f32.partialorder %v1233_v5, 0.7853982  ;;  %v17366_v16 = vsub.s32 4, %v11666_v52  ;;  %v1478_v22 = vsel %vm1472_vm13, %v1475_v36, %v1477_v56 }
 0x19a   : > { %v9555_v7 = vpop.eup %9554  ;;  %v1229_v46 = vxor.u32 2147483648, %v9553_v47  ;;  %v1317_v2 = vxor.u32 2147483648, %v1316_v8  ;;  %v1402_v51 = vsub.s32 0, %v11806_v30  ;;  %vm1228_vm7 = vcmp.eq.s32.totalorder %v11736_v10, 2 }
 0x19b   : > { %v1320_v57 = vsel %vm1235_vm3, %v17366_v16, %v11666_v52  ;;  %v1226_v41 = vxor.u32 2147483648, %v9555_v7  ;;  %vm1496_vm14 = vc.u32 %v11795_v21, %v11797_v61  ;;  %v1497_v5 = vadd.s32 1, %v11798_v63 }
 0x19c   : > { %vm1225_vm10 = vcmp.eq.s32.totalorder %v11736_v10, 0  ;;  %v1230_v35 = vsel %vm1228_vm7, %v1229_v46, %v9555_v7  ;;  %v1318_v52 = vsel %vm1235_vm3, %v1317_v2, %v1316_v8  ;;  %v7972_v39 = vmin.u32 %v1402_v51, %v11806_v30  ;;  %v17370_v46 = vld [vmem:[#allocation12_spill] sm:$0xff] }
 0x19d   : > { %v1227_v29 = vsel %vm1225_vm10, %v9553_v47, %v1226_v41  ;;  %v1321_v0 = vsel %vm11812_vm11, %v10291_v28, %v1318_v52  ;;  %v1322_v36 = vsel %vm11812_vm11, 0, %v1320_v57  ;;  %v1494_v17 = vmul.u32 %v1487_v59, %v1478_v22  ;;  %v17368_v47 = vld [vmem:[#allocation3_spill] sm:$0xff] }
 0x19e   : > { %v1231_v23 = vsel %vm1224_vm6, %v1227_v29, %v1230_v35  ;;  %9556 = vcosq.f32 %v1321_v0  ;;  %v1404_v56 = vclz %v7972_v39  ;;  %v1498_v32 = vsel %vm1496_vm14, %v1497_v5, %v11798_v63 }
 0x19f   : > { %v11842_v34 = vsel %vm1222_vm0, nan, %v1231_v23  ;;  %9558 = vsinq.f32 %v1321_v0  ;;  %v1499_v8 = vadd.s32 %v1498_v32, %v1494_v17  ;;  %v17078_v16 = vand.u32 2147483647, %v17368_v47 }
 0x1a0   : > { %17367 = vst [vmem:[#allocation27_spill] sm:$0xff] %v11842_v34  ;;  %v11848_v31 = vsel %vm3716_vm2, %v11410_v25, 0  ;;  %v11853_v10 = vsel %vm4025_vm12, %v11419_v20, 0  ;;  %8857 = vmatmul.mubr.msk.f32.gmra.mxu0 %vm4187_vm8, %v11842_v34  ;;  %9021 = vmatmul.mubr.msk.f32.gmra.mxu1 %vm4187_vm8, %v11842_v34  ;;  %v11859_v1 = vand.u32 3, %v1322_v36  ;;  %v7973_v59 = vadd.s32 4294967294, %v1404_v56  ;;  %v17369_v25 = vld [vmem:[#allocation16_spill] sm:$0xff] }
 0x1a1   : > { %v1392_v63 = vadd.s32 %v11738_v24, %v11730_v9  ;;  %v1500_v57 = vadd.s32 536870912, %v1499_v8  ;;  %v1560_v7 = vshrl.u32 %v17319_v44, %v17369_v25  ;;  %v1563_v20 = vshrl.u32 %v17320_v38, %v17369_v25 }
 0x1a2   : > { %vm7974_vm15 = vcmp.lt.s32.totalorder %v7973_v59, 0  ;;  %v1559_v2 = vshll.u32 %v17324_v40, %v17370_v46  ;;  %v1562_v51 = vshll.u32 %v17319_v44, %v17370_v46  ;;  %v1566_v22 = vshrl.u32 %v17177_v45, %v17369_v25 }
 0x1a3   : > { %v1407_v41 = vsel %vm7974_vm15, 0, %v7973_v59  ;;  %v11873_v5 = vshrl.u32 %v1500_v57, 30  ;;  %v1549_v9 = vand.u32 8388607, %v17078_v16  ;;  %v1565_v24 = vshll.u32 %v17320_v38, %v17370_v46 }
 0x1a4   : > { %v1408_v35 = vsub.s32 32, %v1407_v41  ;;  %v1412_v52 = vsub.s32 4294967266, %v1407_v41  ;;  %v1561_v39 = vor.u32 %v1560_v7, %v1559_v2  ;;  %v1564_v29 = vor.u32 %v1563_v20, %v1562_v51  ;;  %v17371_v7 = vld [vmem:[#allocation22_spill] sm:$0xff]  ;;  %v17372_v51 = vld [vmem:[#allocation32_spill] sm:$0xff] }
 0x1a5   : > { %vm1338_vm13 = vcmp.lt.s32.totalorder %v17345_v54, 0  ;;  %v1422_v0 = vsub.s32 4, %v11778_v3  ;;  %v1502_v36 = vshll.u32 %v11873_v5, 30  ;;  %v1567_v17 = vor.u32 %v1566_v22, %v1565_v24 }
 0x1a6   : > { %vm1328_vm2 = vcmp.eq.s32.totalorder %v11859_v1, 0  ;;  %v1409_v23 = vshll.u32 %v11806_v30, %v1407_v41  ;;  %v1410_v56 = vshrl.u32 %v1392_v63, %v1408_v35  ;;  %v1413_v32 = vadd.s32 127, %v1412_v52 }
 0x1a7   : > { %vm1327_vm12 = vcmp.lt.s32.totalorder %v11859_v1, 2  ;;  %vm1331_vm3 = vcmp.eq.s32.totalorder %v11859_v1, 2  ;;  %v11886_v59 = vsub.s32 %v1499_v8, %v1502_v36  ;;  %v1550_v57 = vor.u32 8388608, %v1549_v9 }
 0x1a8   : > { %vm1574_vm0 = vcmp.lt.s32.totalorder %v17371_v7, 1  ;;  %v1411_v20 = vor.u32 %v1410_v56, %v1409_v23  ;;  %v1414_v46 = vshll.u32 %v1413_v32, 23  ;;  %vm1576_vm6 = vcmp.lt.s32.totalorder %v17371_v7, 3  ;;  %v17373_v32 = vld [vmem:[#allocation33_spill] sm:$0xff] }
 0x1a9   : > { %v1582_v2 = vsel %vm1574_vm0, %v1561_v39, %v1564_v29  ;;  %v11895_v30 = vsel %vm1338_vm13, %v1422_v0, %v11778_v3  ;;  %v1505_v63 = vsub.s32 0, %v11886_v59  ;;  %v1558_v8 = vshrl.u32 %v17324_v40, %v17369_v25 }
 0x1aa   : > { %v1584_v22 = vsel %vm1576_vm6, %v1567_v17, %v17372_v51  ;;  %v1415_v41 = vor.u32 4788187, %v1414_v46  ;;  %vm1575_vm11 = vcmp.lt.s32.totalorder %v17371_v7, 2  ;;  %v1579_v9 = vsel %vm1577_vm1, %v1567_v17, 2102212464  ;;  %v17374_v46 = vld [vmem:[#allocation24_spill] sm:$0xff] }
 0x1ab   : > { %v1586_v24 = vsel %vm1574_vm0, %v1564_v29, %v1567_v17  ;;  %v9557_v3 = vpop.eup %9556  ;;  %v1418_v35 = vcvt.s32.f32 %v1411_v20  ;;  %v7976_v52 = vmin.u32 %v1505_v63, %v11886_v59  ;;  %v1578_v25 = vsel %vm1574_vm0, %v1558_v8, %v1561_v39 }
 0x1ac   : > { %v1585_v0 = vsel %vm1575_vm11, %v1582_v2, %v1584_v22  ;;  %v9559_v36 = vpop.eup %9558  ;;  %v1332_v23 = vxor.u32 2147483648, %v9557_v3  ;;  %v1416_v56 = vand.u32 2147483647, %v1415_v41  ;;  %v1588_v51 = vsel %vm1576_vm6, %v17374_v46, %v17373_v32 }
 0x1ad   : > { %v1590_v16 = vshll.u32 %v1550_v57, 8  ;;  %v1329_v17 = vxor.u32 2147483648, %v9559_v36  ;;  %v1507_v34 = vclz %v7976_v52  ;;  %v1580_v20 = vsel %vm1576_vm6, %v1564_v29, %v1579_v9 }
 0x1ae   : > { %v1589_v39 = vsel %vm1575_vm11, %v1586_v24, %v1588_v51  ;;  %v1333_v2 = vsel %vm1331_vm3, %v1332_v23, %v9559_v36  ;;  %v1419_v63 = vmul.f32 %v1418_v35, %v1416_v56  ;;  %vm1325_vm1 = vweird.f32 %v10291_v28 }
 0x1af   : > { %v11923_v8 = vmul.u32.u64.low %v1590_v16, %v1589_v39  ;;  %v11924_v22 = vmul.u32.u64.high %v1590_v16, %v1589_v39, %v11923_v8  ;;  %v1330_v41 = vsel %vm1328_vm2, %v9557_v3, %v1329_v17  ;;  %v7977_v32 = vadd.s32 4294967294, %v1507_v34  ;;  %v17379_v3 = vld [vmem:[#allocation6_spill] sm:$0xff] }
 0x1b0   : > { %v11928_v57 = vmul.u32.u64.low %v1590_v16, %v1585_v0  ;;  %v11929_v46 = vmul.u32.u64.high %v1590_v16, %v1585_v0, %v11928_v57  ;;  %v1334_v29 = vsel %vm1327_vm12, %v1330_v41, %v1333_v2  ;;  %v17375_v9 = vand.u32 2147483647, %v17345_v54  ;;  %v17380_v2 = vld [vmem:[#allocation29_spill] sm:$0xff]  ;;  %v17381_v8 = vld [vmem:[#allocation38_spill] sm:$0xff] }
 0x1b1   : > { %v1420_v35 = vxor.u32 2147483648, %v1419_v63  ;;  %v11941_v52 = vsel %vm1325_vm1, nan, %v1334_v29  ;;  %vm7978_vm14 = vcmp.lt.s32.totalorder %v7977_v32, 0  ;;  %v1581_v34 = vsel %vm1575_vm11, %v1578_v25, %v1580_v20 }
 0x1b2   : > { %vm11937_vm7 = vcmp.le.f32.partialorder %v17375_v9, 0.7853982  ;;  %17378 = vst [vmem:[#allocation28_spill] sm:$0xff] %v11941_v52  ;;  %v17080_v0 = vand.u32 2147483647, %v17379_v3  ;;  %8859 = vmatprep.mubr.msk.f32.mxu0 %vm4187_vm8, %v11941_v52  ;;  %9023 = vmatprep.mubr.msk.f32.mxu1 %vm4187_vm8, %v11941_v52  ;;  %v1495_v36 = vadd.s32 %v11797_v61, %v11795_v21  ;;  %v1510_v7 = vsel %vm7978_vm14, 0, %v7977_v32 }
 0x1b3   : > { %v1421_v28 = vsel %vm1338_vm13, %v1420_v35, %v1419_v63  ;;  %v1425_v1 = vsel %vm11937_vm7, 0, %v11895_v30  ;;  %v1511_v23 = vsub.s32 32, %v1510_v7  ;;  %v1515_v56 = vsub.s32 4294967266, %v1510_v7 }
 0x1b4   : > { %v1424_v25 = vsel %vm11937_vm7, %v17345_v54, %v1421_v28  ;;  %vm1599_vm10 = vc.u32 %v11924_v22, %v11928_v57  ;;  %v1512_v51 = vshll.u32 %v11886_v59, %v1510_v7  ;;  %v1597_v17 = vmul.u32 %v1590_v16, %v1581_v34 }
 0x1b5   : > { %9560 = vcosq.f32 %v1424_v25  ;;  %v1600_v20 = vadd.s32 1, %v11929_v46  ;;  %v1513_v30 = vshrl.u32 %v1495_v36, %v1511_v23  ;;  %v1516_v39 = vadd.s32 127, %v1515_v56 }
 0x1b6   : > { %9562 = vsinq.f32 %v1424_v25  ;;  %v1652_v21 = vand.u32 8388607, %v17080_v0  ;;  %v1662_v63 = vshll.u32 %v17324_v40, %v17380_v2  ;;  %v1663_v41 = vshrl.u32 %v17319_v44, %v17381_v8 }
 0x1b7   : > { %v1601_v61 = vsel %vm1599_vm10, %v1600_v20, %v11929_v46  ;;  %v1665_v59 = vshll.u32 %v17319_v44, %v17380_v2  ;;  %v1514_v16 = vor.u32 %v1513_v30, %v1512_v51  ;;  %v1517_v32 = vshll.u32 %v1516_v39, 23  ;;  %v17385_v20 = vld [vmem:[#allocation39_spill] sm:$0xff] }
 0x1b8   : > { %v1602_v29 = vadd.s32 %v1601_v61, %v1597_v17  ;;  %v1666_v9 = vshrl.u32 %v17320_v38, %v17381_v8  ;;  %v11976_v24 = vshrl.u32 %v11848_v31, 5  ;;  %v1664_v35 = vor.u32 %v1663_v41, %v1662_v63 }
 0x1b9   : > { %v1668_v46 = vshll.u32 %v17320_v38, %v17380_v2  ;;  %v1669_v34 = vshrl.u32 %v17177_v45, %v17381_v8  ;;  %v1429_v28 = vand.u32 3, %v1425_v1  ;;  %v17382_v36 = vand.u32 2147483647, %v17357_v55  ;;  %v17386_v1 = vld [vmem:[#allocation55_spill] sm:$0xff]  ;;  %v17387_v2 = vld [vmem:[#allocation44_spill] sm:$0xff] }
 0x1ba   : > { %v1518_v25 = vor.u32 4788187, %v1517_v32  ;;  %v1603_v23 = vadd.s32 536870912, %v1602_v29  ;;  %v1667_v56 = vor.u32 %v1666_v9, %v1665_v59  ;;  %v1653_v51 = vor.u32 8388608, %v1652_v21  ;;  %v17388_v21 = vld [vmem:[#allocation54_spill] sm:$0xff] }
 0x1bb   : > { %vm11984_vm15 = vcmp.le.f32.partialorder %v17382_v36, 0.7853982  ;;  %v1670_v17 = vor.u32 %v1669_v34, %v1668_v46  ;;  %vm1677_vm13 = vcmp.lt.s32.totalorder %v17385_v20, 1  ;;  %vm1679_vm2 = vcmp.lt.s32.totalorder %v17385_v20, 3 }
 0x1bc   : > { %v1519_v30 = vand.u32 2147483647, %v1518_v25  ;;  %v1521_v39 = vcvt.s32.f32 %v1514_v16  ;;  %v11990_v61 = vshrl.u32 %v1603_v23, 30  ;;  %v1691_v63 = vsel %vm1679_vm2, %v17387_v2, %v17386_v1 }
 0x1bd   : > { %v1525_v41 = vsub.s32 4, %v11873_v5  ;;  %v1685_v59 = vsel %vm1677_vm13, %v1664_v35, %v1667_v56  ;;  %v1687_v32 = vsel %vm1679_vm2, %v1670_v17, %v17388_v21  ;;  %v1689_v9 = vsel %vm1677_vm13, %v1667_v56, %v1670_v17 }
 0x1be   : > { %vm1441_vm12 = vcmp.lt.s32.totalorder %v17357_v55, 0  ;;  %v1522_v16 = vmul.f32 %v1521_v39, %v1519_v30  ;;  %v1605_v46 = vshll.u32 %v11990_v61, 30  ;;  %vm1678_vm3 = vcmp.lt.s32.totalorder %v17385_v20, 2 }
 0x1bf   : > { %vm1431_vm0 = vcmp.eq.s32.totalorder %v1429_v28, 0  ;;  %v1682_v34 = vsel %vm1680_vm9, %v1670_v17, 2102212464  ;;  %v1692_v36 = vsel %vm1678_vm3, %v1689_v9, %v1691_v63  ;;  %v1693_v25 = vshll.u32 %v1653_v51, 8 }
 0x1c0   : > { %v1523_v23 = vxor.u32 2147483648, %v1522_v16  ;;  %v12011_v1 = vsub.s32 %v1602_v29, %v1605_v46  ;;  %v1661_v2 = vshrl.u32 %v17324_v40, %v17381_v8  ;;  %v1688_v30 = vsel %vm1678_vm3, %v1685_v59, %v1687_v32 }
 0x1c1   : > { %vm1434_vm6 = vcmp.eq.s32.totalorder %v1429_v28, 2  ;;  %v1526_v39 = vsel %vm1441_vm12, %v1525_v41, %v11873_v5  ;;  %v12020_v21 = vmul.u32.u64.low %v1693_v25, %v1692_v36  ;;  %v12021_v17 = vmul.u32.u64.high %v1693_v25, %v1692_v36, %v12020_v21 }
 0x1c2   : > { %v9561_v0 = vpop.eup %9560  ;;  %v1524_v51 = vsel %vm1441_vm12, %v1523_v23, %v1522_v16  ;;  %v1608_v29 = vsub.s32 0, %v12011_v1  ;;  %v1681_v8 = vsel %vm1677_vm13, %v1661_v2, %v1664_v35  ;;  %v1683_v63 = vsel %vm1679_vm2, %v1667_v56, %v1682_v34  ;;  %v17389_v34 = vld [vmem:[#allocation5_spill] sm:$0xff] }
 0x1c3   : > { %v9563_v59 = vpop.eup %9562  ;;  %v1435_v32 = vxor.u32 2147483648, %v9561_v0  ;;  %v1527_v5 = vsel %vm11984_vm15, %v17357_v55, %v1524_v51  ;;  %v12033_v41 = vmul.u32.u64.low %v1693_v25, %v1688_v30  ;;  %v12034_v9 = vmul.u32.u64.high %v1693_v25, %v1688_v30, %v12033_v41 }
 0x1c4   : > { %v1432_v46 = vxor.u32 2147483648, %v9563_v59  ;;  %v1528_v16 = vsel %vm11984_vm15, 0, %v1526_v39  ;;  %9564 = vcosq.f32 %v1527_v5  ;;  %v7980_v35 = vmin.u32 %v1608_v29, %v12011_v1 }
 0x1c5   : > { %v1436_v36 = vsel %vm1434_vm6, %v1435_v32, %v9563_v59  ;;  %9566 = vsinq.f32 %v1527_v5  ;;  %v1684_v56 = vsel %vm1678_vm3, %v1681_v8, %v1683_v63  ;;  %v17081_v23 = vand.u32 2147483647, %v17389_v34 }
 0x1c6   : > { %vm1430_vm9 = vcmp.lt.s32.totalorder %v1429_v28, 2  ;;  %v1433_v2 = vsel %vm1431_vm0, %v9561_v0, %v1432_v46  ;;  %v1610_v30 = vclz %v7980_v35  ;;  %vm1702_vm11 = vc.u32 %v12021_v17, %v12033_v41 }
 0x1c7   : > { %vm1428_vm1 = vweird.f32 %v17345_v54  ;;  %v1437_v7 = vsel %vm1430_vm9, %v1433_v2, %v1436_v36  ;;  %v12048_v39 = vand.u32 3, %v1528_v16  ;;  %v1703_v21 = vadd.s32 1, %v12034_v9 }
 0x1c8   : > { %v12052_v51 = vand.u32 31, %v11848_v31  ;;  %v12054_v20 = vsel %vm1428_vm1, nan, %v1437_v7  ;;  %v7981_v29 = vadd.s32 4294967294, %v1610_v30  ;;  %v1700_v8 = vmul.u32 %v1693_v25, %v1684_v56  ;;  %v17391_v31 = vld [vmem:[#allocation35_spill] sm:$0xff]  ;;  %v17392_v25 = vld [vmem:[#allocation26_spill] sm:$0xff] }
 0x1c9   : > { %17390 = vst [vmem:[#allocation20_spill] sm:$0xff] %v12054_v20  ;;  %8860 = vmatmul.mubr.msk.f32.gmra.mxu0 %vm4187_vm8, %v12054_v20  ;;  %9024 = vmatmul.mubr.msk.f32.gmra.mxu1 %vm4187_vm8, %v12054_v20  ;;  %v1598_v54 = vadd.s32 %v11928_v57, %v11924_v22  ;;  %v1704_v0 = vsel %vm1702_vm11, %v1703_v21, %v12034_v9  ;;  %v1755_v28 = vand.u32 8388607, %v17081_v23  ;;  %vm1537_vm14 = vcmp.eq.s32.totalorder %v12048_v39, 2  ;;  %v17393_v20 = vld [vmem:[#allocation37_spill] sm:$0xff] }
 0x1ca   : > { %v1766_v63 = vshrl.u32 %v17319_v44, %v17391_v31  ;;  %vm7982_vm7 = vcmp.lt.s32.totalorder %v7981_v29, 0  ;;  %v1705_v59 = vadd.s32 %v1704_v0, %v1700_v8  ;;  %v1765_v32 = vshll.u32 %v17324_v40, %v17392_v25 }
 0x1cb   : > { %v1769_v5 = vshrl.u32 %v17320_v38, %v17391_v31  ;;  %v1613_v46 = vsel %vm7982_vm7, 0, %v7981_v29  ;;  %v1768_v22 = vshll.u32 %v17319_v44, %v17392_v25  ;;  %v1771_v57 = vshll.u32 %v17320_v38, %v17392_v25 }
 0x1cc   : > { %v1772_v9 = vshrl.u32 %v17177_v45, %v17391_v31  ;;  %vm1534_vm10 = vcmp.eq.s32.totalorder %v12048_v39, 0  ;;  %v1614_v16 = vsub.s32 32, %v1613_v46  ;;  %v1618_v35 = vsub.s32 4294967266, %v1613_v46 }
 0x1cd   : > { %v1628_v36 = vsub.s32 4, %v11990_v61  ;;  %v1706_v56 = vadd.s32 536870912, %v1705_v59  ;;  %vm1533_vm15 = vcmp.lt.s32.totalorder %v12048_v39, 2  ;;  %v1764_v2 = vshrl.u32 %v17324_v40, %v17391_v31 }
 0x1ce   : > { %v1767_v30 = vor.u32 %v1766_v63, %v1765_v32  ;;  %v1770_v7 = vor.u32 %v1769_v5, %v1768_v22  ;;  %v1773_v21 = vor.u32 %v1772_v9, %v1771_v57  ;;  %vm1531_vm13 = vweird.f32 %v17357_v55  ;;  %v17395_v57 = vld [vmem:[#allocation42_spill] sm:$0xff] }
 0x1cf   : > { %v1615_v29 = vshll.u32 %v12011_v1, %v1613_v46  ;;  %v1616_v8 = vshrl.u32 %v1598_v54, %v1614_v16  ;;  %v1619_v0 = vadd.s32 127, %v1618_v35  ;;  %v12085_v25 = vshrl.u32 %v1706_v56, 30  ;;  %v17394_v46 = vld [vmem:[#allocation51_spill] sm:$0xff] }
 0x1d0   : > { %v1756_v23 = vor.u32 8388608, %v1755_v28  ;;  %vm1780_vm2 = vcmp.lt.s32.totalorder %v17393_v20, 1  ;;  %vm1782_vm12 = vcmp.lt.s32.totalorder %v17393_v20, 3  ;;  %v1785_v52 = vsel %vm1783_vm5, %v1773_v21, 2102212464 }
 0x1d1   : > { %v1617_v31 = vor.u32 %v1616_v8, %v1615_v29  ;;  %v1620_v63 = vshll.u32 %v1619_v0, 23  ;;  %v1708_v32 = vshll.u32 %v12085_v25, 30  ;;  %v1792_v5 = vsel %vm1780_vm2, %v1770_v7, %v1773_v21  ;;  %v9565_v22 = vpop.eup %9564  ;;  %v17396_v29 = vld [vmem:[#allocation49_spill] sm:$0xff] }
 0x1d2   : > { %vm1781_vm3 = vcmp.lt.s32.totalorder %v17393_v20, 2  ;;  %v1784_v1 = vsel %vm1780_vm2, %v1764_v2, %v1767_v30  ;;  %v1788_v54 = vsel %vm1780_vm2, %v1767_v30, %v1770_v7  ;;  %v1794_v28 = vsel %vm1782_vm12, %v17395_v57, %v17394_v46  ;;  %v9567_v9 = vpop.eup %9566 }
 0x1d3   : > { %v1538_v16 = vxor.u32 2147483648, %v9565_v22  ;;  %v1621_v35 = vor.u32 4788187, %v1620_v63  ;;  %v12097_v56 = vsub.s32 %v1705_v59, %v1708_v32  ;;  %v1790_v8 = vsel %vm1782_vm12, %v1773_v21, %v17396_v29 }
 0x1d4   : > { %v1535_v0 = vxor.u32 2147483648, %v9567_v9  ;;  %v1786_v27 = vsel %vm1782_vm12, %v1770_v7, %v1785_v52  ;;  %v1795_v2 = vsel %vm1781_vm3, %v1792_v5, %v1794_v28  ;;  %v1796_v30 = vshll.u32 %v1756_v23, 8 }
 0x1d5   : > { %v1539_v46 = vsel %vm1537_vm14, %v1538_v16, %v9567_v9  ;;  %v1622_v57 = vand.u32 2147483647, %v1621_v35  ;;  %v1624_v26 = vcvt.s32.f32 %v1617_v31  ;;  %v1711_v59 = vsub.s32 0, %v12097_v56 }
 0x1d6   : > { %v1536_v63 = vsel %vm1534_vm10, %v9565_v22, %v1535_v0  ;;  %v1791_v21 = vsel %vm1781_vm3, %v1788_v54, %v1790_v8  ;;  %v12113_v32 = vmul.u32.u64.low %v1796_v30, %v1795_v2  ;;  %v12114_v29 = vmul.u32.u64.high %v1796_v30, %v1795_v2, %v12113_v32 }
 0x1d7   : > { %v1540_v52 = vsel %vm1533_vm15, %v1536_v63, %v1539_v46  ;;  %vm1544_vm5 = vcmp.lt.s32.totalorder %v17368_v47, 0  ;;  %v1625_v23 = vmul.f32 %v1624_v26, %v1622_v57  ;;  %v7984_v7 = vmin.u32 %v1711_v59, %v12097_v56  ;;  %v17404_v46 = vld [vmem:[#allocation53_spill] sm:$0xff] }
 0x1d8   : > { %v12121_v31 = vshrl.u32 %v11853_v10, 5  ;;  %v12125_v5 = vsel %vm1531_vm13, nan, %v1540_v52  ;;  %v1629_v22 = vsel %vm1544_vm5, %v1628_v36, %v11990_v61  ;;  %v1787_v39 = vsel %vm1781_vm3, %v1784_v1, %v1786_v27  ;;  %v17403_v36 = vld [vmem:[#allocation13_spill] sm:$0xff] }
 0x1d9   : > { %17398 = vst [vmem:[#allocation8_spill] sm:$0xff] %v12125_v5  ;;  %8862 = vmatprep.mubr.msk.f32.mxu0 %vm4187_vm8, %v12125_v5  ;;  %9026 = vmatprep.mubr.msk.f32.mxu1 %vm4187_vm8, %v12125_v5  ;;  %v1626_v26 = vxor.u32 2147483648, %v1625_v23  ;;  %v1713_v54 = vclz %v7984_v7  ;;  %v12136_v28 = vmul.u32.u64.low %v1796_v30, %v1791_v21  ;;  %v12137_v9 = vmul.u32.u64.high %v1796_v30, %v1791_v21, %v12136_v28  ;;  %v17405_v21 = vld [vmem:[#allocation43_spill] sm:$0xff] }
 0x1da   : > { %17397 = vst [vmem:[#allocation2_spill] sm:$0xff] %v12121_v31  ;;  %v12142_v55 = vor.u32 %v11734_v58, %v11425_v13  ;;  %v12145_v61 = vand.u32 31, %v11853_v10  ;;  %v17400_v27 = vand.u32 2147483647, %v17368_v47  ;;  %v17087_v1 = vand.u32 2147483647, %v17403_v36 }
 0x1db   : > { %v1627_v35 = vsel %vm1544_vm5, %v1626_v26, %v1625_v23  ;;  %v7985_v58 = vadd.s32 4294967294, %v1713_v54  ;;  %v1701_v8 = vadd.s32 %v12033_v41, %v12021_v17  ;;  %v1803_v0 = vmul.u32 %v1796_v30, %v1787_v39 }
 0x1dc   : > { %17399 = vst [vmem:[#allocation7_spill] sm:$0xff] %v12145_v61  ;;  %vm12149_vm0 = vcmp.le.f32.partialorder %v17400_v27, 0.7853982  ;;  %vm1805_vm6 = vc.u32 %v12114_v29, %v12136_v28  ;;  %v1806_v2 = vadd.s32 1, %v12137_v9  ;;  %v1869_v57 = vshrl.u32 %v17319_v44, %v17404_v46 }
 0x1dd   : > { %v1631_v13 = vsel %vm12149_vm0, 0, %v1629_v22  ;;  %v1630_v10 = vsel %vm12149_vm0, %v17368_v47, %v1627_v35  ;;  %vm7986_vm9 = vcmp.lt.s32.totalorder %v7985_v58, 0  ;;  %v1858_v63 = vand.u32 8388607, %v17087_v1  ;;  %v17418_v1 = vld [vmem:[#allocation67_spill] sm:$0xff] }
 0x1de   : > { %9568 = vcosq.f32 %v1630_v10  ;;  %v1716_v59 = vsel %vm7986_vm9, 0, %v7985_v58  ;;  %v1868_v32 = vshll.u32 %v17324_v40, %v17405_v21  ;;  %vm1647_vm11 = vcmp.lt.s32.totalorder %v17379_v3, 0 }
 0x1df   : > { %9570 = vsinq.f32 %v1630_v10  ;;  %v1717_v17 = vsub.s32 32, %v1716_v59  ;;  %v1721_v41 = vsub.s32 4294967266, %v1716_v59  ;;  %v1807_v30 = vsel %vm1805_vm6, %v1806_v2, %v12137_v9 }
 0x1e0   : > { %v1871_v52 = vshll.u32 %v17319_v44, %v17405_v21  ;;  %v1718_v23 = vshll.u32 %v12097_v56, %v1716_v59  ;;  %v1808_v7 = vadd.s32 %v1807_v30, %v1803_v0  ;;  %v1870_v22 = vor.u32 %v1869_v57, %v1868_v32  ;;  %v17406_v0 = vld [vmem:[#allocation58_spill] sm:$0xff] }
 0x1e1   : > { %v1872_v39 = vshrl.u32 %v17320_v38, %v17404_v46  ;;  %v1719_v26 = vshrl.u32 %v1701_v8, %v1717_v17  ;;  %v1722_v54 = vadd.s32 127, %v1721_v41  ;;  %v1874_v27 = vshll.u32 %v17320_v38, %v17405_v21  ;;  %v17408_v17 = vld [vmem:[#allocation70_spill] sm:$0xff]  ;;  %v17409_v41 = vld [vmem:[#allocation61_spill] sm:$0xff] }
 0x1e2   : > { %v1875_v20 = vshrl.u32 %v17177_v45, %v17404_v46  ;;  %v1635_v35 = vand.u32 3, %v1631_v13  ;;  %v1809_v9 = vadd.s32 536870912, %v1808_v7  ;;  %v1859_v58 = vor.u32 8388608, %v1858_v63  ;;  %v17407_v63 = vld [vmem:[#allocation68_spill] sm:$0xff] }
 0x1e3   : > { %v1873_v10 = vor.u32 %v1872_v39, %v1871_v52  ;;  %v1720_v2 = vor.u32 %v1719_v26, %v1718_v23  ;;  %v1723_v16 = vshll.u32 %v1722_v54, 23  ;;  %vm1883_vm1 = vcmp.lt.s32.totalorder %v17406_v0, 1 }
 0x1e4   : > { %v1876_v56 = vor.u32 %v1875_v20, %v1874_v27  ;;  %v1731_v57 = vsub.s32 4, %v12085_v25  ;;  %v12187_v59 = vshrl.u32 %v1809_v9, 30  ;;  %vm1885_vm7 = vcmp.lt.s32.totalorder %v17406_v0, 3 }
 0x1e5   : > { %v1891_v8 = vsel %vm1883_vm1, %v1870_v22, %v1873_v10  ;;  %v1724_v21 = vor.u32 4788187, %v1723_v16  ;;  %v1867_v13 = vshrl.u32 %v17324_v40, %v17404_v46  ;;  %v1897_v30 = vsel %vm1885_vm7, %v17409_v41, %v17408_v17 }
 0x1e6   : > { %v1893_v32 = vsel %vm1885_vm7, %v1876_v56, %v17407_v63  ;;  %v1727_v52 = vcvt.s32.f32 %v1720_v2  ;;  %v1811_v23 = vshll.u32 %v12187_v59, 30  ;;  %vm1884_vm14 = vcmp.lt.s32.totalorder %v17406_v0, 2 }
 0x1e7   : > { %v1899_v39 = vshll.u32 %v1859_v58, 8  ;;  %v1725_v26 = vand.u32 2147483647, %v1724_v21  ;;  %v1888_v16 = vsel %vm1886_vm4, %v1876_v56, 2102212464  ;;  %v1894_v46 = vsel %vm1884_vm14, %v1891_v8, %v1893_v32 }
 0x1e8   : > { %v1895_v54 = vsel %vm1883_vm1, %v1873_v10, %v1876_v56  ;;  %v17410_v27 = vand.u32 2147483647, %v17379_v3  ;;  %v1732_v9 = vsel %vm1647_vm11, %v1731_v57, %v12085_v25  ;;  %v12218_v58 = vsub.s32 %v1808_v7, %v1811_v23 }
 0x1e9   : > { %v1898_v2 = vsel %vm1884_vm14, %v1895_v54, %v1897_v30  ;;  %v1728_v21 = vmul.f32 %v1727_v52, %v1725_v26  ;;  %v1887_v8 = vsel %vm1883_vm1, %v1867_v13, %v1870_v22  ;;  %v1889_v41 = vsel %vm1885_vm7, %v1873_v10, %v1888_v16  ;;  %v17413_v16 = vld [vmem:[#allocation10_spill] sm:$0xff] }
 0x1ea   : > { %vm12211_vm10 = vcmp.le.f32.partialorder %v17410_v27, 0.7853982  ;;  %v12224_v56 = vmul.u32.u64.low %v1899_v39, %v1898_v2  ;;  %v12225_v63 = vmul.u32.u64.high %v1899_v39, %v1898_v2, %v12224_v56  ;;  %v1814_v17 = vsub.s32 0, %v12218_v58 }
 0x1eb   : > { %v9569_v32 = vpop.eup %9568  ;;  %v12230_v27 = vmul.u32.u64.low %v1899_v39, %v1894_v46  ;;  %v12231_v25 = vmul.u32.u64.high %v1899_v39, %v1894_v46, %v12230_v27  ;;  %vm1636_vm4 = vcmp.lt.s32.totalorder %v1635_v35, 2  ;;  %vm1637_vm15 = vcmp.eq.s32.totalorder %v1635_v35, 0 }
 0x1ec   : > { %v9571_v7 = vpop.eup %9570  ;;  %v1641_v57 = vxor.u32 2147483648, %v9569_v32  ;;  %v1729_v30 = vxor.u32 2147483648, %v1728_v21  ;;  %vm1640_vm13 = vcmp.eq.s32.totalorder %v1635_v35, 2  ;;  %v1734_v22 = vsel %vm12211_vm10, 0, %v1732_v9 }
 0x1ed   : > { %v1638_v52 = vxor.u32 2147483648, %v9571_v7  ;;  %v7988_v13 = vmin.u32 %v1814_v17, %v12218_v58  ;;  %v1890_v26 = vsel %vm1884_vm14, %v1887_v8, %v1889_v41  ;;  %v17086_v46 = vand.u32 2147483647, %v17413_v16 }
 0x1ee   : > { %v1642_v23 = vsel %vm1640_vm13, %v1641_v57, %v9571_v7  ;;  %v1730_v10 = vsel %vm1647_vm11, %v1729_v30, %v1728_v21  ;;  %vm1908_vm2 = vc.u32 %v12225_v63, %v12230_v27  ;;  %vm1634_vm12 = vweird.f32 %v17368_v47  ;;  %v17415_v57 = vld [vmem:[#allocation45_spill] sm:$0xff] }
 0x1ef   : > { %v1639_v54 = vsel %vm1637_vm15, %v9569_v32, %v1638_v52  ;;  %v1733_v2 = vsel %vm12211_vm10, %v17379_v3, %v1730_v10  ;;  %v1816_v56 = vclz %v7988_v13  ;;  %v1909_v21 = vadd.s32 1, %v12231_v25  ;;  %v17416_v52 = vld [vmem:[#allocation40_spill] sm:$0xff] }
 0x1f0   : > { %v1643_v9 = vsel %vm1636_vm4, %v1639_v54, %v1642_v23  ;;  %9572 = vcosq.f32 %v1733_v2  ;;  %v1906_v32 = vmul.u32 %v1899_v39, %v1890_v26  ;;  %v12253_v17 = vsub.s32 32, %v12052_v51 }
 0x1f1   : > { %v12250_v0 = vsel %vm1634_vm12, nan, %v1643_v9  ;;  %9574 = vsinq.f32 %v1733_v2  ;;  %v7989_v8 = vadd.s32 4294967294, %v1816_v56  ;;  %v12256_v20 = vadd.s32 1, %v11720_v37  ;;  %v17417_v2 = vld [vmem:[#allocation52_spill] sm:$0xff] }
 0x1f2   : > { %17414 = vst [vmem:[#allocation11_spill] sm:$0xff] %v12250_v0  ;;  %8863 = vmatmul.mubr.msk.f32.gmra.mxu0 %vm4187_vm8, %v12250_v0  ;;  %9027 = vmatmul.mubr.msk.f32.gmra.mxu1 %vm4187_vm8, %v12250_v0  ;;  %v12262_v47 = vand.u32 3, %v1734_v22  ;;  %v1910_v35 = vsel %vm1908_vm2, %v1909_v21, %v12231_v25  ;;  %v1804_v41 = vadd.s32 %v12136_v28, %v12114_v29  ;;  %v1961_v7 = vand.u32 8388607, %v17086_v46  ;;  %v17419_v0 = vld [vmem:[#allocation59_spill] sm:$0xff] }
 0x1f3   : > { %vm7990_vm3 = vcmp.lt.s32.totalorder %v7989_v8, 0  ;;  %v1911_v39 = vadd.s32 %v1910_v35, %v1906_v32  ;;  %v1972_v30 = vshrl.u32 %v17319_v44, %v17415_v57  ;;  %v1974_v13 = vshll.u32 %v17319_v44, %v17416_v52 }
 0x1f4   : > { %v1819_v37 = vsel %vm7990_vm3, 0, %v7989_v8  ;;  %v1975_v22 = vshrl.u32 %v17320_v38, %v17415_v57  ;;  %v1971_v29 = vshll.u32 %v17324_v40, %v17416_v52  ;;  %v1977_v26 = vshll.u32 %v17320_v38, %v17416_v52 }
 0x1f5   : > { %v1820_v23 = vsub.s32 32, %v1819_v37  ;;  %v1824_v25 = vsub.s32 4294967266, %v1819_v37  ;;  %v1912_v10 = vadd.s32 536870912, %v1911_v39  ;;  %v1978_v54 = vshrl.u32 %v17177_v45, %v17415_v57 }
 0x1f6   : > { %v1976_v28 = vor.u32 %v1975_v22, %v1974_v13  ;;  %vm1986_vm5 = vcmp.lt.s32.totalorder %v17417_v2, 1  ;;  %v1821_v56 = vshll.u32 %v12218_v58, %v1819_v37  ;;  %vm1750_vm0 = vcmp.lt.s32.totalorder %v17389_v34, 0 }
 0x1f7   : > { %v1822_v9 = vshrl.u32 %v1804_v41, %v1820_v23  ;;  %v1825_v21 = vadd.s32 127, %v1824_v25  ;;  %v12283_v8 = vshrl.u32 %v1912_v10, 30  ;;  %v1962_v32 = vor.u32 8388608, %v1961_v7  ;;  %v17421_v25 = vld [vmem:[#allocation65_spill] sm:$0xff] }
 0x1f8   : > { %v1973_v35 = vor.u32 %v1972_v30, %v1971_v29  ;;  %v1979_v46 = vor.u32 %v1978_v54, %v1977_v26  ;;  %vm1988_vm6 = vcmp.lt.s32.totalorder %v17417_v2, 3  ;;  %vm1737_vm9 = vweird.f32 %v17379_v3 }
 0x1f9   : > { %v1823_v13 = vor.u32 %v1822_v9, %v1821_v56  ;;  %v1826_v52 = vshll.u32 %v1825_v21, 23  ;;  %v1914_v22 = vshll.u32 %v12283_v8, 30  ;;  %v2000_v58 = vsel %vm1988_vm6, %v17419_v0, %v17418_v1 }
 0x1fa   : > { %vm1743_vm11 = vcmp.eq.s32.totalorder %v12262_v47, 2  ;;  %v1834_v41 = vsub.s32 4, %v12187_v59  ;;  %v1970_v7 = vshrl.u32 %v17324_v40, %v17415_v57  ;;  %v1998_v37 = vsel %vm1986_vm5, %v1976_v28, %v1979_v46 }
 0x1fb   : > { %v1827_v30 = vor.u32 4788187, %v1826_v52  ;;  %v12299_v23 = vsub.s32 %v1911_v39, %v1914_v22  ;;  %vm1987_vm1 = vcmp.lt.s32.totalorder %v17417_v2, 2  ;;  %vm17420_vm7 = vcmp.lt.s32.totalorder %v17417_v2, 4 }
 0x1fc   : > { %v1991_v1 = vsel %vm17420_vm7, %v1979_v46, 2102212464  ;;  %v1994_v0 = vsel %vm1986_vm5, %v1973_v35, %v1976_v28  ;;  %v1996_v10 = vsel %vm1988_vm6, %v1979_v46, %v17421_v25  ;;  %v2001_v57 = vsel %vm1987_vm1, %v1998_v37, %v2000_v58 }
 0x1fd   : > { %v2002_v29 = vshll.u32 %v1962_v32, 8  ;;  %v9573_v26 = vpop.eup %9572  ;;  %v1828_v54 = vand.u32 2147483647, %v1827_v30  ;;  %v1830_v39 = vcvt.s32.f32 %v1823_v13  ;;  %v1917_v56 = vsub.s32 0, %v12299_v23 }
 0x1fe   : > { %v1990_v9 = vsel %vm1986_vm5, %v1970_v7, %v1973_v35  ;;  %v9575_v21 = vpop.eup %9574  ;;  %v1744_v52 = vxor.u32 2147483648, %v9573_v26  ;;  %v1992_v22 = vsel %vm1988_vm6, %v1976_v28, %v1991_v1  ;;  %v1997_v13 = vsel %vm1987_vm1, %v1994_v0, %v1996_v10 }
 0x1ff   : > { %v12316_v5 = vmul.u32.u64.low %v2002_v29, %v2001_v57  ;;  %v12317_v11 = vmul.u32.u64.high %v2002_v29, %v2001_v57, %v12316_v5  ;;  %v1741_v46 = vxor.u32 2147483648, %v9575_v21  ;;  %v1831_v25 = vmul.f32 %v1830_v39, %v1828_v54  ;;  %v17426_v39 = vld [vmem:[#allocation21_spill] sm:$0xff] }
 0x200   : > { %v7992_v32 = vmin.u32 %v1917_v56, %v12299_v23  ;;  %vm1739_vm14 = vcmp.lt.s32.totalorder %v12262_v47, 2  ;;  %vm1740_vm10 = vcmp.eq.s32.totalorder %v12262_v47, 0  ;;  %v1745_v35 = vsel %vm1743_vm11, %v1744_v52, %v9575_v21 }
 0x201   : > { %v17422_v58 = vand.u32 2147483647, %v17389_v34  ;;  %v1742_v5 = vsel %vm1740_vm10, %v9573_v26, %v1741_v46  ;;  %v1832_v7 = vxor.u32 2147483648, %v1831_v25  ;;  %v1835_v37 = vsel %vm1750_vm0, %v1834_v41, %v12187_v59 }
 0x202   : > { %v1919_v30 = vclz %v7992_v32  ;;  %v1746_v1 = vsel %vm1739_vm14, %v1742_v5, %v1745_v35  ;;  %v1993_v0 = vsel %vm1987_vm1, %v1990_v9, %v1992_v22  ;;  %v17091_v56 = vand.u32 2147483647, %v17426_v39 }
 0x203   : > { %vm12328_vm4 = vcmp.le.f32.partialorder %v17422_v58, 0.7853982  ;;  %v12337_v10 = vmul.u32.u64.low %v2002_v29, %v1997_v13  ;;  %v12338_v47 = vmul.u32.u64.high %v2002_v29, %v1997_v13, %v12337_v10  ;;  %v12343_v57 = vsel %vm1737_vm9, nan, %v1746_v1  ;;  %v17427_v13 = vld [vmem:[#allocation64_spill] sm:$0xff] }
 0x204   : > { %17425 = vst [vmem:[#allocation19_spill] sm:$0xff] %v12343_v57  ;;  %v1833_v26 = vsel %vm1750_vm0, %v1832_v7, %v1831_v25  ;;  %v7993_v54 = vadd.s32 4294967294, %v1919_v30  ;;  %v12350_v59 = vshll.u32 %v17177_v45, %v12052_v51  ;;  %v12354_v2 = vshll.u32 %v17180_v18, %v12052_v51  ;;  %8865 = vmatprep.mubr.msk.f32.mxu0 %vm4187_vm8, %v12343_v57 }
 0x205   : > { %9029 = vmatprep.mubr.msk.f32.mxu1 %vm4187_vm8, %v12343_v57  ;;  %v1836_v3 = vsel %vm12328_vm4, %v17389_v34, %v1833_v26  ;;  %v1837_v41 = vsel %vm12328_vm4, 0, %v1835_v37  ;;  %v1907_v9 = vadd.s32 %v12230_v27, %v12225_v63  ;;  %vm2011_vm13 = vc.u32 %v12317_v11, %v12337_v10  ;;  %v17428_v63 = vld [vmem:[#allocation60_spill] sm:$0xff] }
 0x206   : > { %9576 = vcosq.f32 %v1836_v3  ;;  %vm7994_vm15 = vcmp.lt.s32.totalorder %v7993_v54, 0  ;;  %v2009_v52 = vmul.u32 %v2002_v29, %v1993_v0  ;;  %v2012_v22 = vadd.s32 1, %v12338_v47 }
 0x207   : > { %9578 = vsinq.f32 %v1836_v3  ;;  %v1922_v21 = vsel %vm7994_vm15, 0, %v7993_v54  ;;  %v2064_v32 = vand.u32 8388607, %v17091_v56  ;;  %v2075_v35 = vshrl.u32 %v17319_v44, %v17427_v13 }
 0x208   : > { %v1923_v46 = vsub.s32 32, %v1922_v21  ;;  %v1927_v25 = vsub.s32 4294967266, %v1922_v21  ;;  %v2013_v58 = vsel %vm2011_vm13, %v2012_v22, %v12338_v47  ;;  %v2074_v27 = vshll.u32 %v17324_v40, %v17428_v63 }
 0x209   : > { %v2077_v28 = vshll.u32 %v17319_v44, %v17428_v63  ;;  %v2078_v29 = vshrl.u32 %v17320_v38, %v17427_v13  ;;  %v1924_v5 = vshll.u32 %v12299_v23, %v1922_v21  ;;  %v2014_v30 = vadd.s32 %v2013_v58, %v2009_v52 }
 0x20a   : > { %v1925_v7 = vshrl.u32 %v1907_v9, %v1923_v46  ;;  %v1928_v37 = vadd.s32 127, %v1927_v25  ;;  %v2076_v1 = vor.u32 %v2075_v35, %v2074_v27  ;;  %v2080_v26 = vshll.u32 %v17320_v38, %v17428_v63  ;;  %v17432_v46 = vld [vmem:[#allocation79_spill] sm:$0xff]  ;;  %v17433_v35 = vld [vmem:[#allocation81_spill] sm:$0xff] }
 0x20b   : > { %v2079_v0 = vor.u32 %v2078_v29, %v2077_v28  ;;  %v2081_v47 = vshrl.u32 %v17177_v45, %v17427_v13  ;;  %vm1853_vm2 = vcmp.lt.s32.totalorder %v17403_v36, 0  ;;  %v2015_v22 = vadd.s32 536870912, %v2014_v30 }
 0x20c   : > { %v1926_v54 = vor.u32 %v1925_v7, %v1924_v5  ;;  %v1929_v3 = vshll.u32 %v1928_v37, 23  ;;  %v1841_v56 = vand.u32 3, %v1837_v41  ;;  %v2065_v57 = vor.u32 8388608, %v2064_v32 }
 0x20d   : > { %v2082_v31 = vor.u32 %v2081_v47, %v2080_v26  ;;  %vm2091_vm12 = vcmp.lt.s32.totalorder %v10739_v6, 3  ;;  %v17429_v23 = vand.u32 2147483647, %v17403_v36  ;;  %v12394_v52 = vshrl.u32 %v2015_v22, 30 }
 0x20e   : > { %v1930_v21 = vor.u32 4788187, %v1929_v3  ;;  %vm2089_vm5 = vcmp.lt.s32.totalorder %v10739_v6, 1  ;;  %v2103_v41 = vsel %vm2091_vm12, %v17432_v46, %v10815_v42  ;;  %v1937_v25 = vsub.s32 4, %v12283_v8 }
 0x20f   : > { %vm12390_vm3 = vcmp.le.f32.partialorder %v17429_v23, 0.7853982  ;;  %v2097_v32 = vsel %vm2089_vm5, %v2076_v1, %v2079_v0  ;;  %v2099_v58 = vsel %vm2091_vm12, %v2082_v31, %v17433_v35  ;;  %v2101_v63 = vsel %vm2089_vm5, %v2079_v0, %v2082_v31 }
 0x210   : > { %vm1840_vm0 = vweird.f32 %v17389_v34  ;;  %v1931_v27 = vand.u32 2147483647, %v1930_v21  ;;  %v1933_v28 = vcvt.s32.f32 %v1926_v54  ;;  %v2017_v29 = vshll.u32 %v12394_v52, 30 }
 0x211   : > { %vm2090_vm6 = vcmp.lt.s32.totalorder %v10739_v6, 2  ;;  %v2073_v42 = vshrl.u32 %v17324_v40, %v17427_v13  ;;  %vm17434_vm9 = vcmp.lt.s32.totalorder %v10739_v6, 4  ;;  %v2105_v37 = vshll.u32 %v2065_v57, 8 }
 0x212   : > { %v2094_v5 = vsel %vm17434_vm9, %v2082_v31, 2102212464  ;;  %v2104_v7 = vsel %vm2090_vm6, %v2101_v63, %v2103_v41  ;;  %vm1842_vm11 = vcmp.lt.s32.totalorder %v1841_v56, 2  ;;  %v1934_v26 = vmul.f32 %v1933_v28, %v1931_v27 }
 0x213   : > { %v12418_v47 = vsub.s32 %v2014_v30, %v2017_v29  ;;  %v2100_v54 = vsel %vm2090_vm6, %v2097_v32, %v2099_v58  ;;  %v9577_v3 = vpop.eup %9576  ;;  %v1938_v22 = vsel %vm1853_vm2, %v1937_v25, %v12283_v8  ;;  %v2093_v13 = vsel %vm2089_vm5, %v2073_v42, %v2076_v1 }
 0x214   : > { %v12427_v31 = vmul.u32.u64.low %v2105_v37, %v2104_v7  ;;  %v12428_v23 = vmul.u32.u64.high %v2105_v37, %v2104_v7, %v12427_v31  ;;  %v9579_v21 = vpop.eup %9578  ;;  %v1847_v57 = vxor.u32 2147483648, %v9577_v3  ;;  %v1935_v46 = vxor.u32 2147483648, %v1934_v26 }
 0x215   : > { %v2020_v30 = vsub.s32 0, %v12418_v47  ;;  %v2095_v41 = vsel %vm2091_vm12, %v2079_v0, %v2094_v5  ;;  %v1844_v32 = vxor.u32 2147483648, %v9579_v21  ;;  %vm1846_vm1 = vcmp.eq.s32.totalorder %v1841_v56, 2  ;;  %v17435_v5 = vld [vmem:[#allocation17_spill] sm:$0xff] }
 0x216   : > { %v12433_v35 = vmul.u32.u64.low %v2105_v37, %v2100_v54  ;;  %v12434_v58 = vmul.u32.u64.high %v2105_v37, %v2100_v54, %v12433_v35  ;;  %vm1843_vm7 = vcmp.eq.s32.totalorder %v1841_v56, 0  ;;  %v1848_v8 = vsel %vm1846_vm1, %v1847_v57, %v9579_v21 }
 0x217   : > { %v1936_v1 = vsel %vm1853_vm2, %v1935_v46, %v1934_v26  ;;  %vm1956_vm14 = vcmp.lt.s32.totalorder %v17413_v16, 0  ;;  %v7996_v25 = vmin.u32 %v2020_v30, %v12418_v47  ;;  %v1845_v63 = vsel %vm1843_vm7, %v9577_v3, %v1844_v32  ;;  %v17438_v30 = vld [vmem:[#allocation50_spill] sm:$0xff] }
 0x218   : > { %v1939_v0 = vsel %vm12390_vm3, %v17403_v36, %v1936_v1  ;;  %v1940_v27 = vsel %vm12390_vm3, 0, %v1938_v22  ;;  %v2096_v28 = vsel %vm2090_vm6, %v2093_v13, %v2095_v41  ;;  %v1849_v29 = vsel %vm1842_vm11, %v1845_v63, %v1848_v8  ;;  %v17437_v13 = vld [vmem:[#allocation56_spill] sm:$0xff] }
 0x219   : > { %9580 = vcosq.f32 %v1939_v0  ;;  %v2022_v42 = vclz %v7996_v25  ;;  %v17094_v7 = vand.u32 2147483647, %v17435_v5  ;;  %v12452_v26 = vsel %vm1840_vm0, nan, %v1849_v29 }
 0x21a   : > { %17436 = vst [vmem:[#allocation25_spill] sm:$0xff] %v12452_v26  ;;  %9582 = vsinq.f32 %v1939_v0  ;;  %vm2114_vm10 = vc.u32 %v12428_v23, %v12433_v35  ;;  %v2115_v9 = vadd.s32 1, %v12434_v58  ;;  %8866 = vmatmul.mubr.msk.f32.gmra.mxu0 %vm4187_vm8, %v12452_v26  ;;  %9030 = vmatmul.mubr.msk.f32.gmra.mxu1 %vm4187_vm8, %v12452_v26  ;;  %v12461_v6 = vand.u32 3, %v1940_v27 }
 0x21b   : > { %v2010_v56 = vadd.s32 %v12337_v10, %v12317_v11  ;;  %v7997_v34 = vadd.s32 4294967294, %v2022_v42  ;;  %v2112_v54 = vmul.u32 %v2105_v37, %v2096_v28  ;;  %v2040_v3 = vsub.s32 4, %v12394_v52 }
 0x21c   : > { %v2116_v22 = vsel %vm2114_vm10, %v2115_v9, %v12434_v58  ;;  %v2178_v31 = vshrl.u32 %v17319_v44, %v17437_v13  ;;  %v2181_v21 = vshrl.u32 %v17320_v38, %v17437_v13  ;;  %v2167_v46 = vand.u32 8388607, %v17094_v7 }
 0x21d   : > { %vm7998_vm4 = vcmp.lt.s32.totalorder %v7997_v34, 0  ;;  %v2117_v57 = vadd.s32 %v2116_v22, %v2112_v54  ;;  %v2180_v11 = vshll.u32 %v17319_v44, %v17438_v30  ;;  %v2177_v37 = vshll.u32 %v17324_v40, %v17438_v30 }
 0x21e   : > { %v2025_v10 = vsel %vm7998_vm4, 0, %v7997_v34  ;;  %v2183_v41 = vshll.u32 %v17320_v38, %v17438_v30  ;;  %v2184_v32 = vshrl.u32 %v17177_v45, %v17437_v13  ;;  %v17439_v63 = vand.u32 2147483647, %v17413_v16  ;;  %v17442_v30 = vld [vmem:[#allocation63_spill] sm:$0xff] }
 0x21f   : > { %v2026_v58 = vsub.s32 32, %v2025_v10  ;;  %v2030_v8 = vsub.s32 4294967266, %v2025_v10  ;;  %v2118_v1 = vadd.s32 536870912, %v2117_v57  ;;  %v2182_v25 = vor.u32 %v2181_v21, %v2180_v11 }
 0x220   : > { %vm12483_vm15 = vcmp.le.f32.partialorder %v17439_v63, 0.7853982  ;;  %v2041_v27 = vsel %vm1956_vm14, %v2040_v3, %v12394_v52  ;;  %v2179_v28 = vor.u32 %v2178_v31, %v2177_v37  ;;  %v2185_v29 = vor.u32 %v2184_v32, %v2183_v41  ;;  %v17446_v63 = vld [vmem:[#allocation73_spill] sm:$0xff] }
 0x221   : > { %vm1946_vm13 = vcmp.eq.s32.totalorder %v12461_v6, 0  ;;  %v2027_v42 = vshll.u32 %v12418_v47, %v2025_v10  ;;  %v2028_v9 = vshrl.u32 %v2010_v56, %v2026_v58  ;;  %v2031_v34 = vadd.s32 127, %v2030_v8  ;;  %v17443_v56 = vld [vmem:[#allocation74_spill] sm:$0xff]  ;;  %v4871_v10 = vld [vmem:[%s16825_s9 + $0x8] sm:$0xff] }
 0x222   : > { %v12492_v54 = vshrl.u32 %v2118_v1, 30  ;;  %v2168_v22 = vor.u32 8388608, %v2167_v46  ;;  %v2176_v21 = vshrl.u32 %v17324_v40, %v17437_v13  ;;  %vm2192_vm2 = vcmp.lt.s32.totalorder %v17442_v30, 1  ;;  %v17444_v13 = vld [vmem:[#allocation66_spill] sm:$0xff]  ;;  %8961 = vmatprep.subr.mxu0 %v4871_v10 }
 0x223   : > { %vm2194_vm12 = vcmp.lt.s32.totalorder %v17442_v30, 3  ;;  %v2029_v11 = vor.u32 %v2028_v9, %v2027_v42  ;;  %v2032_v52 = vshll.u32 %v2031_v34, 23  ;;  %v2204_v31 = vsel %vm2192_vm2, %v2182_v25, %v2185_v29  ;;  %8962 = vmatpush3.msra.mxu0 %v4871_v10 }
 0x224   : > { %v2120_v3 = vshll.u32 %v12492_v54, 30  ;;  %vm1949_vm3 = vcmp.eq.s32.totalorder %v12461_v6, 2  ;;  %v2043_v47 = vsel %vm12483_vm15, 0, %v2041_v27  ;;  %vm2193_vm5 = vcmp.lt.s32.totalorder %v17442_v30, 2 }
 0x225   : > { %v2206_v46 = vsel %vm2194_vm12, %v17444_v13, %v17443_v56  ;;  %v2033_v37 = vor.u32 4788187, %v2032_v52  ;;  %v2196_v32 = vsel %vm2192_vm2, %v2176_v21, %v2179_v28  ;;  %vm17445_vm0 = vcmp.lt.s32.totalorder %v17442_v30, 4 }
 0x226   : > { %v12512_v41 = vsub.s32 %v2117_v57, %v2120_v3  ;;  %v2197_v58 = vsel %vm17445_vm0, %v2185_v29, 2102212464  ;;  %v9581_v8 = vpop.eup %9580  ;;  %v2200_v1 = vsel %vm2192_vm2, %v2179_v28, %v2182_v25  ;;  %v2202_v27 = vsel %vm2194_vm12, %v2185_v29, %v17446_v63 }
 0x227   : > { %v2207_v42 = vsel %vm2193_vm5, %v2204_v31, %v2206_v46  ;;  %v2208_v57 = vshll.u32 %v2168_v22, 8  ;;  %v9583_v9 = vpop.eup %9582  ;;  %v1950_v34 = vxor.u32 2147483648, %v9581_v8  ;;  %v2034_v21 = vand.u32 2147483647, %v2033_v37 }
 0x228   : > { %v2036_v52 = vcvt.s32.f32 %v2029_v11  ;;  %v2123_v3 = vsub.s32 0, %v12512_v41  ;;  %v1947_v56 = vxor.u32 2147483648, %v9583_v9  ;;  %v2198_v13 = vsel %vm2194_vm12, %v2182_v25, %v2197_v58  ;;  %v17447_v25 = vld [vmem:[#allocation36_spill] sm:$0xff] }
 0x229   : > { %v12528_v28 = vmul.u32.u64.low %v2208_v57, %v2207_v42  ;;  %v12529_v7 = vmul.u32.u64.high %v2208_v57, %v2207_v42, %v12528_v28  ;;  %v1951_v29 = vsel %vm1949_vm3, %v1950_v34, %v9583_v9  ;;  %v2203_v31 = vsel %vm2193_vm5, %v2200_v1, %v2202_v27 }
 0x22a   : > { %v2037_v63 = vmul.f32 %v2036_v52, %v2034_v21  ;;  %v8000_v22 = vmin.u32 %v2123_v3, %v12512_v41  ;;  %vm1943_vm6 = vweird.f32 %v17403_v36  ;;  %vm1945_vm9 = vcmp.lt.s32.totalorder %v12461_v6, 2  ;;  %v17449_v52 = vld [vmem:[#allocation71_spill] sm:$0xff] }
 0x22b   : > { %v1948_v11 = vsel %vm1946_vm13, %v9581_v8, %v1947_v56  ;;  %v17095_v46 = vand.u32 2147483647, %v17447_v25  ;;  %v2199_v42 = vsel %vm2193_vm5, %v2196_v32, %v2198_v13  ;;  %v12545_v34 = vand.u32 3, %v2043_v47 }
 0x22c   : > { %v1952_v10 = vsel %vm1945_vm9, %v1948_v11, %v1951_v29  ;;  %v2038_v37 = vxor.u32 2147483648, %v2037_v63  ;;  %v2125_v58 = vclz %v8000_v22  ;;  %v2113_v6 = vadd.s32 %v12433_v35, %v12428_v23  ;;  %v17450_v23 = vld [vmem:[#allocation77_spill] sm:$0xff] }
 0x22d   : > { %v12543_v9 = vsel %vm1943_vm6, nan, %v1952_v10  ;;  %v12547_v1 = vmul.u32.u64.low %v2208_v57, %v2203_v31  ;;  %v12548_v27 = vmul.u32.u64.high %v2208_v57, %v2203_v31, %v12547_v1  ;;  %v2143_v47 = vsub.s32 4, %v12492_v54 }
 0x22e   : > { %17448 = vst [vmem:[#allocation18_spill] sm:$0xff] %v12543_v9  ;;  %8868 = vmatprep.mubr.msk.f32.mxu0 %vm4187_vm8, %v12543_v9  ;;  %9032 = vmatprep.mubr.msk.f32.mxu1 %vm4187_vm8, %v12543_v9  ;;  %v2039_v36 = vsel %vm1956_vm14, %v2038_v37, %v2037_v63  ;;  %v8001_v30 = vadd.s32 4294967294, %v2125_v58  ;;  %v2215_v8 = vmul.u32 %v2208_v57, %v2199_v42  ;;  %v2270_v21 = vand.u32 8388607, %v17095_v46 }
 0x22f   : > { %v2042_v32 = vsel %vm12483_vm15, %v17413_v16, %v2039_v36  ;;  %vm2217_vm11 = vc.u32 %v12529_v7, %v12547_v1  ;;  %v2280_v3 = vshll.u32 %v17324_v40, %v17449_v52  ;;  %v2281_v35 = vshrl.u32 %v17319_v44, %v17450_v23 }
 0x230   : > { %9584 = vcosq.f32 %v2042_v32  ;;  %vm8002_vm1 = vcmp.lt.s32.totalorder %v8001_v30, 0  ;;  %v2218_v0 = vadd.s32 1, %v12548_v27  ;;  %v2279_v57 = vshrl.u32 %v17324_v40, %v17450_v23 }
 0x231   : > { %9586 = vsinq.f32 %v2042_v32  ;;  %v2128_v56 = vsel %vm8002_vm1, 0, %v8001_v30  ;;  %v2282_v29 = vor.u32 %v2281_v35, %v2280_v3  ;;  %v2283_v63 = vshll.u32 %v17319_v44, %v17449_v52  ;;  %v17451_v35 = vld [vmem:[#allocation82_spill] sm:$0xff] }
 0x232   : > { %v2129_v13 = vsub.s32 32, %v2128_v56  ;;  %v2133_v28 = vsub.s32 4294967266, %v2128_v56  ;;  %vm3843_vm7 = vcmp.lt.s32.totalorder %v11408_v62, 4  ;;  %v2219_v22 = vsel %vm2217_vm11, %v2218_v0, %v12548_v27 }
 0x233   : > { %v2284_v31 = vshrl.u32 %v17320_v38, %v17450_v23  ;;  %v2286_v11 = vshll.u32 %v17320_v38, %v17449_v52  ;;  %v2287_v10 = vshrl.u32 %v17177_v45, %v17450_v23  ;;  %v2130_v37 = vshll.u32 %v12512_v41, %v2128_v56  ;;  %v17453_v23 = vld [vmem:[#allocation93_spill] sm:$0xff] }
 0x234   : > { %v2131_v58 = vshrl.u32 %v2113_v6, %v2129_v13  ;;  %v2134_v42 = vadd.s32 127, %v2133_v28  ;;  %v2220_v36 = vadd.s32 %v2219_v22, %v2215_v8  ;;  %v2271_v30 = vor.u32 8388608, %v2270_v21  ;;  %v17454_v28 = vld [vmem:[#allocation95_spill] sm:$0xff] }
 0x235   : > { %v2285_v32 = vor.u32 %v2284_v31, %v2283_v63  ;;  %v2288_v3 = vor.u32 %v2287_v10, %v2286_v11  ;;  %vm2295_vm14 = vcmp.lt.s32.totalorder %v17451_v35, 1  ;;  %vm2297_vm10 = vcmp.lt.s32.totalorder %v17451_v35, 3  ;;  %v17455_v63 = vld [vmem:[#allocation85_spill] sm:$0xff] }
 0x236   : > { %v2132_v27 = vor.u32 %v2131_v58, %v2130_v37  ;;  %v2135_v0 = vshll.u32 %v2134_v42, 23  ;;  %v2221_v46 = vadd.s32 536870912, %v2220_v36  ;;  %vm17452_vm4 = vcmp.lt.s32.totalorder %v17451_v35, 4 }
 0x237   : > { %v2300_v52 = vsel %vm17452_vm4, %v2288_v3, 2102212464  ;;  %v2303_v9 = vsel %vm2295_vm14, %v2282_v29, %v2285_v32  ;;  %v2305_v26 = vsel %vm2297_vm10, %v2288_v3, %v17453_v23  ;;  %v2307_v41 = vsel %vm2295_vm14, %v2285_v32, %v2288_v3 }
 0x238   : > { %v2136_v6 = vor.u32 4788187, %v2135_v0  ;;  %v12590_v56 = vshrl.u32 %v2221_v46, 30  ;;  %vm2296_vm15 = vcmp.lt.s32.totalorder %v17451_v35, 2  ;;  %v2299_v8 = vsel %vm2295_vm14, %v2279_v57, %v2282_v29 }
 0x239   : > { %v2139_v21 = vcvt.s32.f32 %v2132_v27  ;;  %v2306_v13 = vsel %vm2296_vm15, %v2303_v9, %v2305_v26  ;;  %v2309_v22 = vsel %vm2297_vm10, %v17455_v63, %v17454_v28  ;;  %v2311_v31 = vshll.u32 %v2271_v30, 8 }
 0x23a   : > { %v2137_v11 = vand.u32 2147483647, %v2136_v6  ;;  %v2223_v10 = vshll.u32 %v12590_v56, 30  ;;  %v2301_v37 = vsel %vm2297_vm10, %v2285_v32, %v2300_v52  ;;  %v2310_v58 = vsel %vm2296_vm15, %v2307_v41, %v2309_v22 }
 0x23b   : > { %v12600_v46 = vmul.u32.u64.low %v2311_v31, %v2310_v58  ;;  %v12601_v42 = vmul.u32.u64.high %v2311_v31, %v2310_v58, %v12600_v46  ;;  %v12603_v3 = vmul.u32.u64.low %v2311_v31, %v2306_v13  ;;  %v12604_v57 = vmul.u32.u64.high %v2311_v31, %v2306_v13, %v12603_v3 }
 0x23c   : > { %v12610_v26 = vsel %vm3843_vm7, %v12142_v55, 920167782  ;;  %vm2059_vm13 = vcmp.lt.s32.totalorder %v17426_v39, 0  ;;  %v2140_v9 = vmul.f32 %v2139_v21, %v2137_v11  ;;  %v12613_v29 = vsub.s32 %v2220_v36, %v2223_v10 }
 0x23d   : > { %17456 = vst [vmem:[#allocation4_spill] sm:$0xff] %v12610_v26  ;;  %v9585_v30 = vpop.eup %9584  ;;  %vm2046_vm2 = vweird.f32 %v17413_v16  ;;  %vm2048_vm12 = vcmp.lt.s32.totalorder %v12545_v34, 2  ;;  %v17457_v32 = vand.u32 2147483647, %v17426_v39  ;;  %v2144_v0 = vsel %vm2059_vm13, %v2143_v47, %v12492_v54 }
 0x23e   : > { %v9587_v52 = vpop.eup %9586  ;;  %v2053_v23 = vxor.u32 2147483648, %v9585_v30  ;;  %v2141_v41 = vxor.u32 2147483648, %v2140_v9  ;;  %v2226_v36 = vsub.s32 0, %v12613_v29  ;;  %v2302_v6 = vsel %vm2296_vm15, %v2299_v8, %v2301_v37 }
 0x23f   : > { %vm12619_vm3 = vcmp.le.f32.partialorder %v17457_v32, 0.7853982  ;;  %v2050_v21 = vxor.u32 2147483648, %v9587_v52  ;;  %vm2052_vm5 = vcmp.eq.s32.totalorder %v12545_v34, 2  ;;  %vm2320_vm0 = vc.u32 %v12601_v42, %v12603_v3 }
 0x240   : > { %v2321_v13 = vadd.s32 1, %v12604_v57  ;;  %vm2049_vm6 = vcmp.eq.s32.totalorder %v12545_v34, 0  ;;  %v2054_v28 = vsel %vm2052_vm5, %v2053_v23, %v9587_v52  ;;  %v2142_v54 = vsel %vm2059_vm13, %v2141_v41, %v2140_v9  ;;  %v17461_v9 = vld [vmem:[#allocation34_spill] sm:$0xff]  ;;  %v17465_v23 = vld [vmem:[#allocation69_spill] sm:$0xff] }
 0x241   : > { %v8004_v47 = vmin.u32 %v2226_v36, %v12613_v29  ;;  %v2051_v63 = vsel %vm2049_vm6, %v9585_v30, %v2050_v21  ;;  %v2145_v35 = vsel %vm12619_vm3, %v17426_v39, %v2142_v54  ;;  %v2146_v8 = vsel %vm12619_vm3, 0, %v2144_v0 }
 0x242   : > { %v2318_v22 = vmul.u32 %v2311_v31, %v2302_v6  ;;  %v2055_v11 = vsel %vm2048_vm12, %v2051_v63, %v2054_v28  ;;  %9588 = vcosq.f32 %v2145_v35  ;;  %v2322_v37 = vsel %vm2320_vm0, %v2321_v13, %v12604_v57 }
 0x243   : > { %v2228_v10 = vclz %v8004_v47  ;;  %v12647_v58 = vsel %vm2046_vm2, nan, %v2055_v11  ;;  %9590 = vsinq.f32 %v2145_v35  ;;  %v17098_v30 = vand.u32 2147483647, %v17461_v9 }
 0x244   : > { %17460 = vst [vmem:[#allocation31_spill] sm:$0xff] %v12647_v58  ;;  %v2323_v46 = vadd.s32 %v2322_v37, %v2318_v22  ;;  %v17462_v32 = vor.u32 %v11803_v15, %v11717_v43  ;;  %v12658_v34 = vsub.s32 32, %v12145_v61  ;;  %8869 = vmatmul.mubr.msk.f32.gmra.mxu0 %vm4187_vm8, %v12647_v58  ;;  %9033 = vmatmul.mubr.msk.f32.gmra.mxu1 %vm4187_vm8, %v12647_v58  ;;  %v12664_v16 = vand.u32 3, %v2146_v8  ;;  %v17464_v15 = vld [vmem:[#allocation76_spill] sm:$0xff] }
 0x245   : > { %v8005_v57 = vadd.s32 4294967294, %v2228_v10  ;;  %v2216_v27 = vadd.s32 %v12547_v1, %v12529_v7  ;;  %v2384_v0 = vshrl.u32 %v17319_v44, %v17464_v15  ;;  %v2387_v52 = vshrl.u32 %v17320_v38, %v17464_v15 }
 0x246   : > { %v12655_v31 = vsel %vm3843_vm7, %v17462_v32, 1326507024  ;;  %17463 = vst [vmem:[#allocation23_spill] sm:$0xff] %v12658_v34  ;;  %v2324_v43 = vadd.s32 536870912, %v2323_v46  ;;  %v2383_v41 = vshll.u32 %v17324_v40, %v17465_v23  ;;  %v2386_v36 = vshll.u32 %v17319_v44, %v17465_v23 }
 0x247   : > { %vm8006_vm9 = vcmp.lt.s32.totalorder %v8005_v57, 0  ;;  %v2390_v6 = vshrl.u32 %v17177_v45, %v17464_v15  ;;  %v2373_v7 = vand.u32 8388607, %v17098_v30  ;;  %v2389_v1 = vshll.u32 %v17320_v38, %v17465_v23 }
 0x248   : > { %v2231_v21 = vsel %vm8006_vm9, 0, %v8005_v57  ;;  %v12678_v13 = vshrl.u32 %v2324_v43, 30  ;;  %v2385_v47 = vor.u32 %v2384_v0, %v2383_v41  ;;  %v2388_v63 = vor.u32 %v2387_v52, %v2386_v36  ;;  %v17466_v43 = vld [vmem:[#allocation75_spill] sm:$0xff]  ;;  %v17467_v41 = vld [vmem:[#allocation88_spill] sm:$0xff] }
 0x249   : > { %v2232_v28 = vsub.s32 32, %v2231_v21  ;;  %v2236_v54 = vsub.s32 4294967266, %v2231_v21  ;;  %vm2162_vm11 = vcmp.lt.s32.totalorder %v17435_v5, 0  ;;  %v2246_v35 = vsub.s32 4, %v12590_v56 }
 0x24a   : > { %v2326_v8 = vshll.u32 %v12678_v13, 30  ;;  %v2391_v22 = vor.u32 %v2390_v6, %v2389_v1  ;;  %vm2152_vm1 = vcmp.eq.s32.totalorder %v12664_v16, 0  ;;  %v2233_v11 = vshll.u32 %v12613_v29, %v2231_v21 }
 0x24b   : > { %v2234_v10 = vshrl.u32 %v2216_v27, %v2232_v28  ;;  %v2237_v37 = vadd.s32 127, %v2236_v54  ;;  %vm2151_vm14 = vcmp.lt.s32.totalorder %v12664_v16, 2  ;;  %vm2155_vm10 = vcmp.eq.s32.totalorder %v12664_v16, 2 }
 0x24c   : > { %v12691_v32 = vsub.s32 %v2323_v46, %v2326_v8  ;;  %v2374_v57 = vor.u32 8388608, %v2373_v7  ;;  %vm2398_vm4 = vcmp.lt.s32.totalorder %v17466_v43, 1  ;;  %vm2400_vm15 = vcmp.lt.s32.totalorder %v17466_v43, 3 }
 0x24d   : > { %v2235_v0 = vor.u32 %v2234_v10, %v2233_v11  ;;  %v2238_v52 = vshll.u32 %v2237_v37, 23  ;;  %v2406_v23 = vsel %vm2398_vm4, %v2385_v47, %v2388_v63  ;;  %v12700_v29 = vsel %vm2162_vm11, %v2246_v35, %v12590_v56  ;;  %v17469_v10 = vld [vmem:[#allocation90_spill] sm:$0xff]  ;;  %v17470_v37 = vld [vmem:[#allocation84_spill] sm:$0xff] }
 0x24e   : > { %v2329_v27 = vsub.s32 0, %v12691_v32  ;;  %v2382_v46 = vshrl.u32 %v17324_v40, %v17464_v15  ;;  %v2408_v36 = vsel %vm2400_vm15, %v2391_v22, %v17467_v41  ;;  %vm2399_vm13 = vcmp.lt.s32.totalorder %v17466_v43, 2 }
 0x24f   : > { %v2239_v6 = vor.u32 4788187, %v2238_v52  ;;  %vm17468_vm2 = vcmp.lt.s32.totalorder %v17466_v43, 4  ;;  %v2410_v7 = vsel %vm2398_vm4, %v2388_v63, %v2391_v22  ;;  %v9589_v56 = vpop.eup %9588  ;;  %v2242_v1 = vcvt.s32.f32 %v2235_v0 }
 0x250   : > { %v2403_v21 = vsel %vm17468_vm2, %v2391_v22, 2102212464  ;;  %v8008_v28 = vmin.u32 %v2329_v27, %v12691_v32  ;;  %v2402_v15 = vsel %vm2398_vm4, %v2382_v46, %v2385_v47  ;;  %v2409_v54 = vsel %vm2399_vm13, %v2406_v23, %v2408_v36  ;;  %v9591_v35 = vpop.eup %9590 }
 0x251   : > { %v2156_v8 = vxor.u32 2147483648, %v9589_v56  ;;  %v2240_v11 = vand.u32 2147483647, %v2239_v6  ;;  %v2412_v52 = vsel %vm2400_vm15, %v17470_v37, %v17469_v10  ;;  %v2414_v41 = vshll.u32 %v2374_v57, 8 }
 0x252   : > { %v2153_v22 = vxor.u32 2147483648, %v9591_v35  ;;  %v2331_v30 = vclz %v8008_v28  ;;  %v2404_v0 = vsel %vm2400_vm15, %v2388_v63, %v2403_v21  ;;  %v2413_v47 = vsel %vm2399_vm13, %v2410_v7, %v2412_v52 }
 0x253   : > { %v2157_v23 = vsel %vm2155_vm10, %v2156_v8, %v9591_v35  ;;  %v2243_v27 = vmul.f32 %v2242_v1, %v2240_v11  ;;  %v12728_v46 = vmul.u32.u64.low %v2414_v41, %v2413_v47  ;;  %v12729_v36 = vmul.u32.u64.high %v2414_v41, %v2413_v47, %v12728_v46 }
 0x254   : > { %v2154_v6 = vsel %vm2152_vm1, %v9589_v56, %v2153_v22  ;;  %v8009_v10 = vadd.s32 4294967294, %v2331_v30  ;;  %v12733_v57 = vmul.u32.u64.low %v2414_v41, %v2409_v54  ;;  %v12734_v37 = vmul.u32.u64.high %v2414_v41, %v2409_v54, %v12733_v57  ;;  %v17475_v56 = vld [vmem:[#allocation57_spill] sm:$0xff]  ;;  %v17477_v46 = vld [vmem:[#allocation96_spill] sm:$0xff] }
 0x255   : > { %vm2149_vm12 = vweird.f32 %v17426_v39  ;;  %v2158_v63 = vsel %vm2151_vm14, %v2154_v6, %v2157_v23  ;;  %v17471_v21 = vand.u32 2147483647, %v17435_v5  ;;  %v2244_v1 = vxor.u32 2147483648, %v2243_v27  ;;  %v17476_v23 = vld [vmem:[#allocation92_spill] sm:$0xff] }
 0x256   : > { %v12746_v28 = vsel %vm2149_vm12, nan, %v2158_v63  ;;  %vm8010_vm5 = vcmp.lt.s32.totalorder %v8009_v10, 0  ;;  %v2405_v30 = vsel %vm2399_vm13, %v2402_v15, %v2404_v0  ;;  %v17100_v54 = vand.u32 2147483647, %v17475_v56 }
 0x257   : > { %vm12742_vm3 = vcmp.le.f32.partialorder %v17471_v21, 0.7853982  ;;  %17474 = vst [vmem:[#allocation30_spill] sm:$0xff] %v12746_v28  ;;  %8871 = vmatprep.mubr.msk.f32.mxu0 %vm4187_vm8, %v12746_v28  ;;  %9035 = vmatprep.mubr.msk.f32.mxu1 %vm4187_vm8, %v12746_v28  ;;  %v2245_v39 = vsel %vm2162_vm11, %v2244_v1, %v2243_v27  ;;  %v2319_v35 = vadd.s32 %v12603_v3, %v12601_v42  ;;  %v2334_v43 = vsel %vm8010_vm5, 0, %v8009_v10 }
 0x258   : > { %v2249_v16 = vsel %vm12742_vm3, 0, %v12700_v29  ;;  %v2248_v15 = vsel %vm12742_vm3, %v17435_v5, %v2245_v39  ;;  %v2335_v8 = vsub.s32 32, %v2334_v43  ;;  %v2339_v11 = vsub.s32 4294967266, %v2334_v43 }
 0x259   : > { %vm2423_vm0 = vc.u32 %v12729_v36, %v12733_v57  ;;  %9592 = vcosq.f32 %v2248_v15  ;;  %v2336_v52 = vshll.u32 %v12691_v32, %v2334_v43  ;;  %v2421_v22 = vmul.u32 %v2414_v41, %v2405_v30 }
 0x25a   : > { %v2424_v0 = vadd.s32 1, %v12734_v37  ;;  %9594 = vsinq.f32 %v2248_v15  ;;  %v2337_v29 = vshrl.u32 %v2319_v35, %v2335_v8  ;;  %v2340_v47 = vadd.s32 127, %v2339_v11  ;;  %v17478_v11 = vld [vmem:[#allocation99_spill] sm:$0xff] }
 0x25b   : > { %v2476_v42 = vand.u32 8388607, %v17100_v54  ;;  %v2486_v27 = vshll.u32 %v17324_v40, %v17476_v23  ;;  %v2487_v6 = vshrl.u32 %v17319_v44, %v17477_v46  ;;  %v2489_v32 = vshll.u32 %v17319_v44, %v17476_v23 }
 0x25c   : > { %v2425_v3 = vsel %vm2423_vm0, %v2424_v0, %v12734_v37  ;;  %v2338_v41 = vor.u32 %v2337_v29, %v2336_v52  ;;  %v2341_v10 = vshll.u32 %v2340_v47, 23  ;;  %v2490_v21 = vshrl.u32 %v17320_v38, %v17477_v46  ;;  %v17479_v29 = vld [vmem:[#allocation113_spill] sm:$0xff]  ;;  %v17480_v47 = vld [vmem:[#allocation106_spill] sm:$0xff] }
 0x25d   : > { %v2426_v63 = vadd.s32 %v2425_v3, %v2421_v22  ;;  %vm2265_vm6 = vcmp.lt.s32.totalorder %v17447_v25, 0  ;;  %v2488_v7 = vor.u32 %v2487_v6, %v2486_v27  ;;  %v2492_v37 = vshll.u32 %v17320_v38, %v17476_v23 }
 0x25e   : > { %v2493_v1 = vshrl.u32 %v17177_v45, %v17477_v46  ;;  %v2253_v30 = vand.u32 3, %v2249_v16  ;;  %v2342_v39 = vor.u32 4788187, %v2341_v10  ;;  %v2491_v43 = vor.u32 %v2490_v21, %v2489_v32 }
 0x25f   : > { %v2427_v35 = vadd.s32 536870912, %v2426_v63  ;;  %v2477_v15 = vor.u32 8388608, %v2476_v42  ;;  %vm2501_vm9 = vcmp.lt.s32.totalorder %v17478_v11, 1  ;;  %vm2503_vm11 = vcmp.lt.s32.totalorder %v17478_v11, 3  ;;  %v17481_v42 = vld [vmem:[#allocation111_spill] sm:$0xff] }
 0x260   : > { %v2494_v8 = vor.u32 %v2493_v1, %v2492_v37  ;;  %v2343_v52 = vand.u32 2147483647, %v2342_v39  ;;  %v2345_v22 = vcvt.s32.f32 %v2338_v41  ;;  %v2515_v3 = vsel %vm2503_vm11, %v17480_v47, %v17479_v29 }
 0x261   : > { %v12787_v0 = vshrl.u32 %v2427_v35, 30  ;;  %v2349_v16 = vsub.s32 4, %v12678_v13  ;;  %v2509_v23 = vsel %vm2501_vm9, %v2488_v7, %v2491_v43  ;;  %v17482_v32 = vand.u32 2147483647, %v17447_v25 }
 0x262   : > { %v2511_v27 = vsel %vm2503_vm11, %v2494_v8, %v17481_v42  ;;  %v2513_v6 = vsel %vm2501_vm9, %v2491_v43, %v2494_v8  ;;  %v2346_v10 = vmul.f32 %v2345_v22, %v2343_v52  ;;  %vm2502_vm14 = vcmp.lt.s32.totalorder %v17478_v11, 2 }
 0x263   : > { %vm12803_vm1 = vcmp.le.f32.partialorder %v17482_v32, 0.7853982  ;;  %v2429_v21 = vshll.u32 %v12787_v0, 30  ;;  %vm2255_vm10 = vcmp.eq.s32.totalorder %v2253_v30, 0  ;;  %vm17485_vm4 = vcmp.lt.s32.totalorder %v17478_v11, 4 }
 0x264   : > { %v2506_v37 = vsel %vm17485_vm4, %v2494_v8, 2102212464  ;;  %v2516_v1 = vsel %vm2502_vm14, %v2513_v6, %v2515_v3  ;;  %v2517_v39 = vshll.u32 %v2477_v15, 8  ;;  %v2347_v35 = vxor.u32 2147483648, %v2346_v10 }
 0x265   : > { %v12813_v29 = vsub.s32 %v2426_v63, %v2429_v21  ;;  %v2485_v47 = vshrl.u32 %v17324_v40, %v17477_v46  ;;  %v2512_v52 = vsel %vm2502_vm14, %v2509_v23, %v2511_v27  ;;  %vm2258_vm15 = vcmp.eq.s32.totalorder %v2253_v30, 2 }
 0x266   : > { %v2350_v22 = vsel %vm2265_vm6, %v2349_v16, %v12678_v13  ;;  %v12822_v42 = vmul.u32.u64.low %v2517_v39, %v2516_v1  ;;  %v12823_v8 = vmul.u32.u64.high %v2517_v39, %v2516_v1, %v12822_v42  ;;  %v9593_v32 = vpop.eup %9592  ;;  %v2348_v15 = vsel %vm2265_vm6, %v2347_v35, %v2346_v10 }
 0x267   : > { %v2432_v63 = vsub.s32 0, %v12813_v29  ;;  %v2505_v46 = vsel %vm2501_vm9, %v2485_v47, %v2488_v7  ;;  %v2507_v3 = vsel %vm2503_vm11, %v2491_v43, %v2506_v37  ;;  %v9595_v23 = vpop.eup %9594  ;;  %v2259_v27 = vxor.u32 2147483648, %v9593_v32  ;;  %v17486_v37 = vld [vmem:[#allocation46_spill] sm:$0xff] }
 0x268   : > { %v2351_v13 = vsel %vm12803_vm1, %v17447_v25, %v2348_v15  ;;  %v12835_v16 = vmul.u32.u64.low %v2517_v39, %v2512_v52  ;;  %v12836_v6 = vmul.u32.u64.high %v2517_v39, %v2512_v52, %v12835_v16  ;;  %v2256_v21 = vxor.u32 2147483648, %v9595_v23 }
 0x269   : > { %v2352_v10 = vsel %vm12803_vm1, 0, %v2350_v22  ;;  %9596 = vcosq.f32 %v2351_v13  ;;  %v8012_v7 = vmin.u32 %v2432_v63, %v12813_v29  ;;  %v2260_v1 = vsel %vm2258_vm15, %v2259_v27, %v9595_v23 }
 0x26a   : > { %9598 = vsinq.f32 %v2351_v13  ;;  %v2508_v43 = vsel %vm2502_vm14, %v2505_v46, %v2507_v3  ;;  %v17099_v35 = vand.u32 2147483647, %v17486_v37  ;;  %vm2254_vm13 = vcmp.lt.s32.totalorder %v2253_v30, 2  ;;  %v17489_v3 = vld [vmem:[#allocation86_spill] sm:$0xff] }
 0x26b   : > { %v2257_v47 = vsel %vm2255_vm10, %v9593_v32, %v2256_v21  ;;  %v2434_v52 = vclz %v8012_v7  ;;  %vm2526_vm2 = vc.u32 %v12823_v8, %v12835_v16  ;;  %vm2252_vm12 = vweird.f32 %v17435_v5 }
 0x26c   : > { %v2261_v41 = vsel %vm2254_vm13, %v2257_v47, %v2260_v1  ;;  %v12850_v22 = vand.u32 3, %v2352_v10  ;;  %v2527_v42 = vadd.s32 1, %v12836_v6  ;;  %v12855_v11 = vshll.u32 %v17177_v45, %v12145_v61 }
 0x26d   : > { %v12857_v15 = vsel %vm2252_vm12, nan, %v2261_v41  ;;  %v8013_v63 = vadd.s32 4294967294, %v2434_v52  ;;  %v2524_v30 = vmul.u32 %v2517_v39, %v2508_v43  ;;  %v2422_v5 = vadd.s32 %v12733_v57, %v12729_v36  ;;  %v17490_v39 = vld [vmem:[#allocation83_spill] sm:$0xff] }
 0x26e   : > { %17487 = vst [vmem:[#allocation47_spill] sm:$0xff] %v12855_v11  ;;  %17488 = vst [vmem:[#allocation48_spill] sm:$0xff] %v12857_v15  ;;  %8872 = vmatmul.mubr.msk.f32.gmra.mxu0 %vm4187_vm8, %v12857_v15  ;;  %9036 = vmatmul.mubr.msk.f32.gmra.mxu1 %vm4187_vm8, %v12857_v15  ;;  %v2528_v32 = vsel %vm2526_vm2, %v2527_v42, %v12836_v6  ;;  %v2579_v46 = vand.u32 8388607, %v17099_v35  ;;  %v2590_v23 = vshrl.u32 %v17319_v44, %v17489_v3  ;;  %v17491_v15 = vld [vmem:[#allocation91_spill] sm:$0xff] }
 0x26f   : > { %vm8014_vm3 = vcmp.lt.s32.totalorder %v8013_v63, 0  ;;  %v2529_v27 = vadd.s32 %v2528_v32, %v2524_v30  ;;  %v2589_v13 = vshll.u32 %v17324_v40, %v17490_v39  ;;  %v2593_v21 = vshrl.u32 %v17320_v38, %v17489_v3 }
 0x270   : > { %vm2361_vm5 = vcmp.eq.s32.totalorder %v12850_v22, 2  ;;  %v2437_v10 = vsel %vm8014_vm3, 0, %v8013_v63  ;;  %v2592_v36 = vshll.u32 %v17319_v44, %v17490_v39  ;;  %v2595_v57 = vshll.u32 %v17320_v38, %v17490_v39 }
 0x271   : > { %v2596_v6 = vshrl.u32 %v17177_v45, %v17489_v3  ;;  %vm2358_vm0 = vcmp.eq.s32.totalorder %v12850_v22, 0  ;;  %v2438_v7 = vsub.s32 32, %v2437_v10  ;;  %v2442_v1 = vsub.s32 4294967266, %v2437_v10 }
 0x272   : > { %v2452_v43 = vsub.s32 4, %v12787_v0  ;;  %v2530_v47 = vadd.s32 536870912, %v2529_v27  ;;  %vm2357_vm6 = vcmp.lt.s32.totalorder %v12850_v22, 2  ;;  %v2588_v52 = vshrl.u32 %v17324_v40, %v17489_v3 }
 0x273   : > { %v2591_v41 = vor.u32 %v2590_v23, %v2589_v13  ;;  %v2594_v42 = vor.u32 %v2593_v21, %v2592_v36  ;;  %v2597_v63 = vor.u32 %v2596_v6, %v2595_v57  ;;  %vm2355_vm9 = vweird.f32 %v17447_v25  ;;  %v17494_v57 = vld [vmem:[#allocation98_spill] sm:$0xff] }
 0x274   : > { %v2439_v30 = vshll.u32 %v12813_v29, %v2437_v10  ;;  %v2440_v32 = vshrl.u32 %v2422_v5, %v2438_v7  ;;  %v2443_v39 = vadd.s32 127, %v2442_v1  ;;  %v12888_v35 = vshrl.u32 %v2530_v47, 30  ;;  %v17493_v10 = vld [vmem:[#allocation105_spill] sm:$0xff] }
 0x275   : > { %v2580_v54 = vor.u32 8388608, %v2579_v46  ;;  %vm2604_vm11 = vcmp.lt.s32.totalorder %v17491_v15, 1  ;;  %vm2606_vm1 = vcmp.lt.s32.totalorder %v17491_v15, 3  ;;  %vm17492_vm14 = vcmp.lt.s32.totalorder %v17491_v15, 4 }
 0x276   : > { %v2609_v28 = vsel %vm17492_vm14, %v2597_v63, 2102212464  ;;  %v2441_v3 = vor.u32 %v2440_v32, %v2439_v30  ;;  %v2444_v23 = vshll.u32 %v2443_v39, 23  ;;  %v2532_v13 = vshll.u32 %v12888_v35, 30  ;;  %v9597_v36 = vpop.eup %9596  ;;  %v17495_v30 = vld [vmem:[#allocation102_spill] sm:$0xff] }
 0x277   : > { %v2616_v21 = vsel %vm2604_vm11, %v2594_v42, %v2597_v63  ;;  %vm2605_vm10 = vcmp.lt.s32.totalorder %v17491_v15, 2  ;;  %v2608_v29 = vsel %vm2604_vm11, %v2588_v52, %v2591_v41  ;;  %v2612_v5 = vsel %vm2604_vm11, %v2591_v41, %v2594_v42  ;;  %v9599_v6 = vpop.eup %9598 }
 0x278   : > { %v2618_v46 = vsel %vm2606_vm1, %v17494_v57, %v17493_v10  ;;  %v2362_v7 = vxor.u32 2147483648, %v9597_v36  ;;  %v2445_v1 = vor.u32 4788187, %v2444_v23  ;;  %v12900_v47 = vsub.s32 %v2529_v27, %v2532_v13 }
 0x279   : > { %v2614_v32 = vsel %vm2606_vm1, %v2597_v63, %v17495_v30  ;;  %v2359_v39 = vxor.u32 2147483648, %v9599_v6  ;;  %v2610_v58 = vsel %vm2606_vm1, %v2594_v42, %v2609_v28  ;;  %v2619_v52 = vsel %vm2605_vm10, %v2616_v21, %v2618_v46 }
 0x27a   : > { %v2620_v41 = vshll.u32 %v2580_v54, 8  ;;  %v2363_v10 = vsel %vm2361_vm5, %v2362_v7, %v9599_v6  ;;  %v2446_v57 = vand.u32 2147483647, %v2445_v1  ;;  %v2448_v11 = vcvt.s32.f32 %v2441_v3 }
 0x27b   : > { %v2535_v27 = vsub.s32 0, %v12900_v47  ;;  %v2360_v23 = vsel %vm2358_vm0, %v9597_v36, %v2359_v39  ;;  %v2615_v63 = vsel %vm2605_vm10, %v2612_v5, %v2614_v32  ;;  %vm2368_vm4 = vcmp.lt.s32.totalorder %v17461_v9, 0 }
 0x27c   : > { %v12916_v13 = vmul.u32.u64.low %v2620_v41, %v2619_v52  ;;  %v12917_v30 = vmul.u32.u64.high %v2620_v41, %v2619_v52, %v12916_v13  ;;  %v2364_v28 = vsel %vm2357_vm6, %v2360_v23, %v2363_v10  ;;  %v2449_v54 = vmul.f32 %v2448_v11, %v2446_v57  ;;  %v17503_v23 = vld [vmem:[#allocation109_spill] sm:$0xff] }
 0x27d   : > { %v8016_v42 = vmin.u32 %v2535_v27, %v12900_v47  ;;  %v12925_v3 = vshrl.u32 %v17180_v18, %v12253_v17  ;;  %v12929_v21 = vsel %vm2355_vm9, nan, %v2364_v28  ;;  %v2453_v36 = vsel %vm2368_vm4, %v2452_v43, %v12787_v0  ;;  %v17501_v43 = vld [vmem:[#allocation72_spill] sm:$0xff] }
 0x27e   : > { %17496 = vst [vmem:[#allocation41_spill] sm:$0xff] %v12929_v21  ;;  %v2611_v22 = vsel %vm2605_vm10, %v2608_v29, %v2610_v58  ;;  %8874 = vmatprep.mubr.msk.f32.mxu0 %vm4187_vm8, %v12929_v21  ;;  %9038 = vmatprep.mubr.msk.f32.mxu1 %vm4187_vm8, %v12929_v21  ;;  %v2450_v11 = vxor.u32 2147483648, %v2449_v54  ;;  %v12940_v46 = vmul.u32.u64.low %v2620_v41, %v2615_v63  ;;  %v12941_v6 = vmul.u32.u64.high %v2620_v41, %v2615_v63, %v12940_v46 }
 0x27f   : > { %v2537_v5 = vclz %v8016_v42  ;;  %v12946_v25 = vshrl.u32 %v17200_v14, %v12253_v17  ;;  %v12950_v0 = vshll.u32 %v17180_v18, %v12145_v61  ;;  %v17498_v58 = vand.u32 2147483647, %v17461_v9 }
 0x280   : > { %v17104_v29 = vand.u32 2147483647, %v17501_v43  ;;  %v12961_v7 = vshrl.u32 %v17180_v18, %v12658_v34  ;;  %v2451_v1 = vsel %vm2368_vm4, %v2450_v11, %v2449_v54  ;;  %v2525_v10 = vadd.s32 %v12835_v16, %v12823_v8  ;;  %v17504_v54 = vld [vmem:[#allocation104_spill] sm:$0xff] }
 0x281   : > { %17497 = vst [vmem:[#allocation3_spill] sm:$0xff] %v12950_v0  ;;  %vm12954_vm15 = vcmp.le.f32.partialorder %v17498_v58, 0.7853982  ;;  %v8017_v39 = vadd.s32 4294967294, %v2537_v5  ;;  %v2627_v57 = vmul.u32 %v2620_v41, %v2611_v22  ;;  %vm2629_vm13 = vc.u32 %v12917_v30, %v12940_v46 }
 0x282   : > { %17502 = vst [vmem:[#allocation16_spill] sm:$0xff] %v12961_v7  ;;  %v2455_v32 = vsel %vm12954_vm15, 0, %v2453_v36  ;;  %v2454_v52 = vsel %vm12954_vm15, %v17461_v9, %v2451_v1  ;;  %v2630_v27 = vadd.s32 1, %v12941_v6  ;;  %v2693_v63 = vshrl.u32 %v17319_v44, %v17503_v23 }
 0x283   : > { %9600 = vcosq.f32 %v2454_v52  ;;  %vm8018_vm2 = vcmp.lt.s32.totalorder %v8017_v39, 0  ;;  %v2682_v28 = vand.u32 8388607, %v17104_v29  ;;  %v2692_v42 = vshll.u32 %v17324_v40, %v17504_v54 }
 0x284   : > { %9602 = vsinq.f32 %v2454_v52  ;;  %v2540_v13 = vsel %vm8018_vm2, 0, %v8017_v39  ;;  %vm2471_vm12 = vcmp.lt.s32.totalorder %v17475_v56, 0  ;;  %v2631_v41 = vsel %vm2629_vm13, %v2630_v27, %v12941_v6 }
 0x285   : > { %v2541_v8 = vsub.s32 32, %v2540_v13  ;;  %v2545_v16 = vsub.s32 4294967266, %v2540_v13  ;;  %v2695_v36 = vshll.u32 %v17319_v44, %v17504_v54  ;;  %v2542_v22 = vshll.u32 %v12900_v47, %v2540_v13 }
 0x286   : > { %v2632_v11 = vadd.s32 %v2631_v41, %v2627_v57  ;;  %v2694_v5 = vor.u32 %v2693_v63, %v2692_v42  ;;  %v2696_v58 = vshrl.u32 %v17320_v38, %v17503_v23  ;;  %v2698_v39 = vshll.u32 %v17320_v38, %v17504_v54  ;;  %v17505_v57 = vld [vmem:[#allocation112_spill] sm:$0xff] }
 0x287   : > { %v2543_v15 = vshrl.u32 %v2525_v10, %v2541_v8  ;;  %v2546_v1 = vadd.s32 127, %v2545_v16  ;;  %v2699_v52 = vshrl.u32 %v17177_v45, %v17503_v23  ;;  %v2459_v29 = vand.u32 3, %v2455_v32  ;;  %v17507_v8 = vld [vmem:[#allocation131_spill] sm:$0xff]  ;;  %v17508_v16 = vld [vmem:[#allocation120_spill] sm:$0xff] }
 0x288   : > { %v2633_v6 = vadd.s32 536870912, %v2632_v11  ;;  %v2683_v27 = vor.u32 8388608, %v2682_v28  ;;  %v2697_v21 = vor.u32 %v2696_v58, %v2695_v36  ;;  %vm2707_vm3 = vcmp.lt.s32.totalorder %v17505_v57, 1  ;;  %v17506_v28 = vld [vmem:[#allocation129_spill] sm:$0xff] }
 0x289   : > { %v2544_v61 = vor.u32 %v2543_v15, %v2542_v22  ;;  %v2547_v0 = vshll.u32 %v2546_v1, 23  ;;  %v2700_v47 = vor.u32 %v2699_v52, %v2698_v39  ;;  %v2555_v63 = vsub.s32 4, %v12888_v35 }
 0x28a   : > { %v12994_v13 = vshrl.u32 %v2633_v6, 30  ;;  %vm2709_vm5 = vcmp.lt.s32.totalorder %v17505_v57, 3  ;;  %v2715_v10 = vsel %vm2707_vm3, %v2694_v5, %v2697_v21  ;;  %v2691_v32 = vshrl.u32 %v17324_v40, %v17503_v23 }
 0x28b   : > { %v2548_v54 = vor.u32 4788187, %v2547_v0  ;;  %v2717_v42 = vsel %vm2709_vm5, %v2700_v47, %v17506_v28  ;;  %v2721_v41 = vsel %vm2709_vm5, %v17508_v16, %v17507_v8  ;;  %vm3922_vm0 = vcmp.gt.s32.totalorder %v12256_v20, 0 }
 0x28c   : > { %v2551_v36 = vcvt.s32.f32 %v2544_v61  ;;  %v2635_v22 = vshll.u32 %v12994_v13, 30  ;;  %vm2708_vm6 = vcmp.lt.s32.totalorder %v17505_v57, 2  ;;  %v2723_v0 = vshll.u32 %v2683_v27, 8 }
 0x28d   : > { %v2549_v58 = vand.u32 2147483647, %v2548_v54  ;;  %vm17509_vm9 = vcmp.lt.s32.totalorder %v17505_v57, 4  ;;  %v2718_v15 = vsel %vm2708_vm6, %v2715_v10, %v2717_v42  ;;  %v2719_v1 = vsel %vm2707_vm3, %v2697_v21, %v2700_v47 }
 0x28e   : > { %v2712_v23 = vsel %vm17509_vm9, %v2700_v47, 2102212464  ;;  %v17510_v39 = vand.u32 2147483647, %v17475_v56  ;;  %v2556_v61 = vsel %vm2471_vm12, %v2555_v63, %v12888_v35  ;;  %v13026_v6 = vsub.s32 %v2632_v11, %v2635_v22 }
 0x28f   : > { %v2722_v27 = vsel %vm2708_vm6, %v2719_v1, %v2721_v41  ;;  %v2552_v54 = vmul.f32 %v2551_v36, %v2549_v58  ;;  %v2711_v10 = vsel %vm2707_vm3, %v2691_v32, %v2694_v5  ;;  %v2713_v16 = vsel %vm2709_vm5, %v2697_v21, %v2712_v23  ;;  %v17513_v23 = vld [vmem:[#allocation62_spill] sm:$0xff] }
 0x290   : > { %vm13019_vm11 = vcmp.le.f32.partialorder %v17510_v39, 0.7853982  ;;  %v13032_v47 = vmul.u32.u64.low %v2723_v0, %v2722_v27  ;;  %v13033_v28 = vmul.u32.u64.high %v2723_v0, %v2722_v27, %v13032_v47  ;;  %v9601_v42 = vpop.eup %9600  ;;  %v2638_v8 = vsub.s32 0, %v13026_v6 }
 0x291   : > { %v13038_v39 = vmul.u32.u64.low %v2723_v0, %v2718_v15  ;;  %v13039_v35 = vmul.u32.u64.high %v2723_v0, %v2718_v15, %v13038_v39  ;;  %v9603_v11 = vpop.eup %9602  ;;  %vm2460_vm1 = vcmp.lt.s32.totalorder %v2459_v29, 2  ;;  %vm2461_vm14 = vcmp.eq.s32.totalorder %v2459_v29, 0 }
 0x292   : > { %v2465_v63 = vxor.u32 2147483648, %v9601_v42  ;;  %v2553_v41 = vxor.u32 2147483648, %v2552_v54  ;;  %v2462_v36 = vxor.u32 2147483648, %v9603_v11  ;;  %vm2464_vm10 = vcmp.eq.s32.totalorder %v2459_v29, 2 }
 0x293   : > { %v2558_v5 = vsel %vm13019_vm11, 0, %v2556_v61  ;;  %v8020_v32 = vmin.u32 %v2638_v8, %v13026_v6  ;;  %v2714_v58 = vsel %vm2708_vm6, %v2711_v10, %v2713_v16  ;;  %v17108_v15 = vand.u32 2147483647, %v17513_v23  ;;  %v17515_v16 = vld [vmem:[#allocation101_spill] sm:$0xff] }
 0x294   : > { %v2466_v22 = vsel %vm2464_vm10, %v2465_v63, %v9603_v11  ;;  %v2554_v21 = vsel %vm2471_vm12, %v2553_v41, %v2552_v54  ;;  %v2463_v1 = vsel %vm2461_vm14, %v9601_v42, %v2462_v36  ;;  %vm2732_vm4 = vc.u32 %v13033_v28, %v13038_v39  ;;  %v17516_v63 = vld [vmem:[#allocation97_spill] sm:$0xff] }
 0x295   : > { %v2557_v27 = vsel %vm13019_vm11, %v17475_v56, %v2554_v21  ;;  %v2640_v47 = vclz %v8020_v32  ;;  %vm2458_vm15 = vweird.f32 %v17461_v9  ;;  %v2467_v61 = vsel %vm2460_vm1, %v2463_v1, %v2466_v22 }
 0x296   : > { %9604 = vcosq.f32 %v2557_v27  ;;  %v2733_v54 = vadd.s32 1, %v13039_v35  ;;  %v13058_v57 = vsel %vm2458_vm15, nan, %v2467_v61  ;;  %v2730_v42 = vmul.u32 %v2723_v0, %v2714_v58  ;;  %v17517_v58 = vld [vmem:[#allocation103_spill] sm:$0xff] }
 0x297   : > { %17514 = vst [vmem:[#allocation12_spill] sm:$0xff] %v13058_v57  ;;  %9606 = vsinq.f32 %v2557_v27  ;;  %v8021_v10 = vadd.s32 4294967294, %v2640_v47  ;;  %v13062_v52 = vor.u32 %v12925_v3, %v12350_v59  ;;  %v13067_v8 = vsel %vm3922_vm0, %v12256_v20, 0  ;;  %8875 = vmatmul.mubr.msk.f32.gmra.mxu0 %vm4187_vm8, %v13058_v57  ;;  %9039 = vmatmul.mubr.msk.f32.gmra.mxu1 %vm4187_vm8, %v13058_v57 }
 0x298   : > { %v13073_v9 = vand.u32 3, %v2558_v5  ;;  %v2734_v29 = vsel %vm2732_vm4, %v2733_v54, %v13039_v35  ;;  %v2628_v0 = vadd.s32 %v12940_v46, %v12917_v30  ;;  %v2785_v3 = vand.u32 8388607, %v17108_v15  ;;  %v17519_v15 = vld [vmem:[#allocation114_spill] sm:$0xff] }
 0x299   : > { %vm8022_vm13 = vcmp.lt.s32.totalorder %v8021_v10, 0  ;;  %v2735_v59 = vadd.s32 %v2734_v29, %v2730_v42  ;;  %v2796_v11 = vshrl.u32 %v17319_v44, %v17515_v16  ;;  %v2798_v41 = vshll.u32 %v17319_v44, %v17516_v63 }
 0x29a   : > { %v2643_v20 = vsel %vm8022_vm13, 0, %v8021_v10  ;;  %v2799_v36 = vshrl.u32 %v17320_v38, %v17515_v16  ;;  %v2795_v30 = vshll.u32 %v17324_v40, %v17516_v63  ;;  %v2801_v22 = vshll.u32 %v17320_v38, %v17516_v63 }
 0x29b   : > { %v2644_v5 = vsub.s32 32, %v2643_v20  ;;  %v2648_v35 = vsub.s32 4294967266, %v2643_v20  ;;  %v2736_v32 = vadd.s32 536870912, %v2735_v59  ;;  %v2802_v21 = vshrl.u32 %v17177_v45, %v17515_v16 }
 0x29c   : > { %v2800_v46 = vor.u32 %v2799_v36, %v2798_v41  ;;  %vm2810_vm2 = vcmp.lt.s32.totalorder %v17517_v58, 1  ;;  %v2645_v1 = vshll.u32 %v13026_v6, %v2643_v20  ;;  %vm2574_vm12 = vcmp.lt.s32.totalorder %v17486_v37, 0  ;;  %v17518_v36 = vld [vmem:[#allocation127_spill] sm:$0xff] }
 0x29d   : > { %v2646_v27 = vshrl.u32 %v2628_v0, %v2644_v5  ;;  %v2649_v47 = vadd.s32 127, %v2648_v35  ;;  %v13094_v61 = vshrl.u32 %v2736_v32, 30  ;;  %v2786_v54 = vor.u32 8388608, %v2785_v3  ;;  %v17521_v32 = vld [vmem:[#allocation117_spill] sm:$0xff] }
 0x29e   : > { %v2797_v10 = vor.u32 %v2796_v11, %v2795_v30  ;;  %v2803_v42 = vor.u32 %v2802_v21, %v2801_v22  ;;  %vm2812_vm3 = vcmp.lt.s32.totalorder %v17517_v58, 3  ;;  %vm2561_vm5 = vweird.f32 %v17475_v56 }
 0x29f   : > { %v2647_v29 = vor.u32 %v2646_v27, %v2645_v1  ;;  %v2650_v63 = vshll.u32 %v2649_v47, 23  ;;  %v2738_v41 = vshll.u32 %v13094_v61, 30  ;;  %v2824_v6 = vsel %vm2812_vm3, %v17519_v15, %v17518_v36 }
 0x2a0   : > { %vm2567_vm0 = vcmp.eq.s32.totalorder %v13073_v9, 2  ;;  %v2658_v0 = vsub.s32 4, %v12994_v13  ;;  %v2794_v3 = vshrl.u32 %v17324_v40, %v17515_v16  ;;  %v2822_v20 = vsel %vm2810_vm2, %v2800_v46, %v2803_v42 }
 0x2a1   : > { %v2651_v11 = vor.u32 4788187, %v2650_v63  ;;  %v13110_v5 = vsub.s32 %v2735_v59, %v2738_v41  ;;  %vm2811_vm6 = vcmp.lt.s32.totalorder %v17517_v58, 2  ;;  %vm17520_vm9 = vcmp.lt.s32.totalorder %v17517_v58, 4 }
 0x2a2   : > { %v2815_v15 = vsel %vm17520_vm9, %v2803_v42, 2102212464  ;;  %v2818_v35 = vsel %vm2810_vm2, %v2797_v10, %v2800_v46  ;;  %v2820_v30 = vsel %vm2812_vm3, %v2803_v42, %v17521_v32  ;;  %v2825_v16 = vsel %vm2811_vm6, %v2822_v20, %v2824_v6 }
 0x2a3   : > { %v2826_v22 = vshll.u32 %v2786_v54, 8  ;;  %v9605_v21 = vpop.eup %9604  ;;  %v2652_v1 = vand.u32 2147483647, %v2651_v11  ;;  %v2654_v59 = vcvt.s32.f32 %v2647_v29  ;;  %v2741_v27 = vsub.s32 0, %v13110_v5 }
 0x2a4   : > { %v2814_v47 = vsel %vm2810_vm2, %v2794_v3, %v2797_v10  ;;  %v9607_v63 = vpop.eup %9606  ;;  %v2568_v41 = vxor.u32 2147483648, %v9605_v21  ;;  %v2816_v36 = vsel %vm2812_vm3, %v2800_v46, %v2815_v15  ;;  %v2821_v29 = vsel %vm2811_vm6, %v2818_v35, %v2820_v30 }
 0x2a5   : > { %v13127_v57 = vmul.u32.u64.low %v2826_v22, %v2825_v16  ;;  %v13128_v7 = vmul.u32.u64.high %v2826_v22, %v2825_v16, %v13127_v57  ;;  %v2565_v42 = vxor.u32 2147483648, %v9607_v63  ;;  %v2655_v32 = vmul.f32 %v2654_v59, %v2652_v1  ;;  %v17526_v59 = vld [vmem:[#allocation80_spill] sm:$0xff] }
 0x2a6   : > { %v8024_v54 = vmin.u32 %v2741_v27, %v13110_v5  ;;  %vm2563_vm11 = vcmp.lt.s32.totalorder %v13073_v9, 2  ;;  %vm2564_vm1 = vcmp.eq.s32.totalorder %v13073_v9, 0  ;;  %v2569_v10 = vsel %vm2567_vm0, %v2568_v41, %v9607_v63 }
 0x2a7   : > { %v17522_v6 = vand.u32 2147483647, %v17486_v37  ;;  %v2566_v57 = vsel %vm2564_vm1, %v9605_v21, %v2565_v42  ;;  %v2656_v3 = vxor.u32 2147483648, %v2655_v32  ;;  %v2659_v20 = vsel %vm2574_vm12, %v2658_v0, %v12994_v13 }
 0x2a8   : > { %v2743_v11 = vclz %v8024_v54  ;;  %v2570_v15 = vsel %vm2563_vm11, %v2566_v57, %v2569_v10  ;;  %v2817_v35 = vsel %vm2811_vm6, %v2814_v47, %v2816_v36  ;;  %v17110_v27 = vand.u32 2147483647, %v17526_v59 }
 0x2a9   : > { %vm13139_vm14 = vcmp.le.f32.partialorder %v17522_v6, 0.7853982  ;;  %v13148_v30 = vmul.u32.u64.low %v2826_v22, %v2821_v29  ;;  %v13149_v9 = vmul.u32.u64.high %v2826_v22, %v2821_v29, %v13148_v30  ;;  %v13154_v16 = vsel %vm2561_vm5, nan, %v2570_v15  ;;  %v17527_v29 = vld [vmem:[#allocation116_spill] sm:$0xff] }
 0x2aa   : > { %17525 = vst [vmem:[#allocation22_spill] sm:$0xff] %v13154_v16  ;;  %v2657_v21 = vsel %vm2574_vm12, %v2656_v3, %v2655_v32  ;;  %v8025_v1 = vadd.s32 4294967294, %v2743_v11  ;;  %v13162_v58 = vshrl.u32 %v13067_v8, 5  ;;  %8877 = vmatprep.mubr.msk.f32.mxu0 %vm4187_vm8, %v13154_v16  ;;  %9041 = vmatprep.mubr.msk.f32.mxu1 %vm4187_vm8, %v13154_v16  ;;  %v2661_v0 = vsel %vm13139_vm14, 0, %v2659_v20 }
 0x2ab   : > { %v2660_v56 = vsel %vm13139_vm14, %v17486_v37, %v2657_v21  ;;  %v2731_v47 = vadd.s32 %v13038_v39, %v13033_v28  ;;  %vm2835_vm4 = vc.u32 %v13128_v7, %v13148_v30  ;;  %v2833_v41 = vmul.u32 %v2826_v22, %v2817_v35  ;;  %v17528_v28 = vld [vmem:[#allocation110_spill] sm:$0xff] }
 0x2ac   : > { %9608 = vcosq.f32 %v2660_v56  ;;  %vm8026_vm10 = vcmp.lt.s32.totalorder %v8025_v1, 0  ;;  %v2836_v36 = vadd.s32 1, %v13149_v9  ;;  %v2888_v54 = vand.u32 8388607, %v17110_v27 }
 0x2ad   : > { %9610 = vsinq.f32 %v2660_v56  ;;  %v2746_v63 = vsel %vm8026_vm10, 0, %v8025_v1  ;;  %v2899_v10 = vshrl.u32 %v17319_v44, %v17527_v29  ;;  %v2898_v39 = vshll.u32 %v17324_v40, %v17528_v28 }
 0x2ae   : > { %v2747_v42 = vsub.s32 32, %v2746_v63  ;;  %v2751_v32 = vsub.s32 4294967266, %v2746_v63  ;;  %v2837_v6 = vsel %vm2835_vm4, %v2836_v36, %v13149_v9  ;;  %v2901_v46 = vshll.u32 %v17319_v44, %v17528_v28 }
 0x2af   : > { %v2902_v22 = vshrl.u32 %v17320_v38, %v17527_v29  ;;  %v2748_v57 = vshll.u32 %v13110_v5, %v2746_v63  ;;  %v2838_v11 = vadd.s32 %v2837_v6, %v2833_v41  ;;  %v2900_v15 = vor.u32 %v2899_v10, %v2898_v39  ;;  %v17529_v5 = vld [vmem:[#allocation124_spill] sm:$0xff]  ;;  %v17534_v10 = vld [vmem:[#allocation125_spill] sm:$0xff] }
 0x2b0   : > { %v2749_v3 = vshrl.u32 %v2731_v47, %v2747_v42  ;;  %v2752_v20 = vadd.s32 127, %v2751_v32  ;;  %v2904_v21 = vshll.u32 %v17320_v38, %v17528_v28  ;;  %v2905_v9 = vshrl.u32 %v17177_v45, %v17527_v29  ;;  %v17533_v32 = vld [vmem:[#allocation137_spill] sm:$0xff]  ;;  %v17535_v28 = vld [vmem:[#allocation134_spill] sm:$0xff] }
 0x2b1   : > { %v2903_v35 = vor.u32 %v2902_v22, %v2901_v46  ;;  %vm2677_vm15 = vcmp.lt.s32.totalorder %v17501_v43, 0  ;;  %v2839_v36 = vadd.s32 536870912, %v2838_v11  ;;  %v2665_v13 = vand.u32 3, %v2661_v0 }
 0x2b2   : > { %v2750_v1 = vor.u32 %v2749_v3, %v2748_v57  ;;  %v2753_v56 = vshll.u32 %v2752_v20, 23  ;;  %v2889_v27 = vor.u32 8388608, %v2888_v54  ;;  %v2906_v16 = vor.u32 %v2905_v9, %v2904_v21 }
 0x2b3   : > { %vm2915_vm13 = vcmp.lt.s32.totalorder %v17529_v5, 3  ;;  %v17530_v47 = vand.u32 2147483647, %v17501_v43  ;;  %v13202_v42 = vshrl.u32 %v2839_v36, 30  ;;  %vm2913_vm12 = vcmp.lt.s32.totalorder %v17529_v5, 1 }
 0x2b4   : > { %v2754_v41 = vor.u32 4788187, %v2753_v56  ;;  %v2927_v0 = vsel %vm2915_vm13, %v17534_v10, %v17533_v32  ;;  %v2761_v54 = vsub.s32 4, %v13094_v61  ;;  %v2921_v6 = vsel %vm2913_vm12, %v2900_v15, %v2903_v35 }
 0x2b5   : > { %vm13198_vm2 = vcmp.le.f32.partialorder %v17530_v47, 0.7853982  ;;  %v2923_v39 = vsel %vm2915_vm13, %v2906_v16, %v17535_v28  ;;  %v2925_v46 = vsel %vm2913_vm12, %v2903_v35, %v2906_v16  ;;  %vm2664_vm3 = vweird.f32 %v17486_v37 }
 0x2b6   : > { %v2755_v22 = vand.u32 2147483647, %v2754_v41  ;;  %v2757_v57 = vcvt.s32.f32 %v2750_v1  ;;  %v2841_v3 = vshll.u32 %v13202_v42, 30  ;;  %vm2914_vm5 = vcmp.lt.s32.totalorder %v17529_v5, 2 }
 0x2b7   : > { %v2897_v20 = vshrl.u32 %v17324_v40, %v17527_v29  ;;  %vm17536_vm0 = vcmp.lt.s32.totalorder %v17529_v5, 4  ;;  %v2928_v9 = vsel %vm2914_vm5, %v2925_v46, %v2927_v0  ;;  %v2929_v56 = vshll.u32 %v2889_v27, 8 }
 0x2b8   : > { %v2918_v21 = vsel %vm17536_vm0, %v2906_v16, 2102212464  ;;  %vm2666_vm6 = vcmp.lt.s32.totalorder %v2665_v13, 2  ;;  %v2758_v36 = vmul.f32 %v2757_v57, %v2755_v22  ;;  %v13226_v47 = vsub.s32 %v2838_v11, %v2841_v3 }
 0x2b9   : > { %v2924_v1 = vsel %vm2914_vm5, %v2921_v6, %v2923_v39  ;;  %v9609_v41 = vpop.eup %9608  ;;  %v2762_v32 = vsel %vm2677_vm15, %v2761_v54, %v13094_v61  ;;  %v2917_v29 = vsel %vm2913_vm12, %v2897_v20, %v2900_v15  ;;  %v2919_v46 = vsel %vm2915_vm13, %v2903_v35, %v2918_v21 }
 0x2ba   : > { %v13235_v16 = vmul.u32.u64.low %v2929_v56, %v2928_v9  ;;  %v13236_v10 = vmul.u32.u64.high %v2929_v56, %v2928_v9, %v13235_v16  ;;  %v9611_v0 = vpop.eup %9610  ;;  %v2671_v27 = vxor.u32 2147483648, %v9609_v41  ;;  %v2759_v28 = vxor.u32 2147483648, %v2758_v36 }
 0x2bb   : > { %v2844_v11 = vsub.s32 0, %v13226_v47  ;;  %v2668_v6 = vxor.u32 2147483648, %v9611_v0  ;;  %vm2670_vm9 = vcmp.eq.s32.totalorder %v2665_v13, 2  ;;  %vm2667_vm11 = vcmp.eq.s32.totalorder %v2665_v13, 0 }
 0x2bc   : > { %v13241_v39 = vmul.u32.u64.low %v2929_v56, %v2924_v1  ;;  %v13242_v22 = vmul.u32.u64.high %v2929_v56, %v2924_v1, %v13241_v39  ;;  %v2672_v61 = vsel %vm2670_vm9, %v2671_v27, %v9611_v0  ;;  %v2760_v15 = vsel %vm2677_vm15, %v2759_v28, %v2758_v36  ;;  %v17537_v36 = vld [vmem:[#allocation78_spill] sm:$0xff]  ;;  %v17539_v0 = vld [vmem:[#allocation115_spill] sm:$0xff] }
 0x2bd   : > { %vm2780_vm1 = vcmp.lt.s32.totalorder %v17513_v23, 0  ;;  %v8028_v54 = vmin.u32 %v2844_v11, %v13226_v47  ;;  %v2669_v57 = vsel %vm2667_vm11, %v9609_v41, %v2668_v6  ;;  %v2763_v35 = vsel %vm13198_vm2, %v17501_v43, %v2760_v15  ;;  %v17540_v6 = vld [vmem:[#allocation108_spill] sm:$0xff] }
 0x2be   : > { %v2764_v3 = vsel %vm13198_vm2, 0, %v2762_v32  ;;  %v2920_v20 = vsel %vm2914_vm5, %v2917_v29, %v2919_v46  ;;  %v2673_v21 = vsel %vm2666_vm6, %v2669_v57, %v2672_v61  ;;  %9612 = vcosq.f32 %v2763_v35 }
 0x2bf   : > { %v2846_v9 = vclz %v8028_v54  ;;  %v17112_v1 = vand.u32 2147483647, %v17537_v36  ;;  %v13260_v16 = vsel %vm2664_vm3, nan, %v2673_v21  ;;  %9614 = vsinq.f32 %v2763_v35 }
 0x2c0   : > { %17538 = vst [vmem:[#allocation32_spill] sm:$0xff] %v13260_v16  ;;  %vm2938_vm14 = vc.u32 %v13236_v10, %v13241_v39  ;;  %v2939_v63 = vadd.s32 1, %v13242_v22  ;;  %8878 = vmatmul.mubr.msk.f32.gmra.mxu0 %vm4187_vm8, %v13260_v16  ;;  %9042 = vmatmul.mubr.msk.f32.gmra.mxu1 %vm4187_vm8, %v13260_v16  ;;  %v13269_v13 = vand.u32 3, %v2764_v3  ;;  %v2834_v5 = vadd.s32 %v13148_v30, %v13128_v7 }
 0x2c1   : > { %v8029_v37 = vadd.s32 4294967294, %v2846_v9  ;;  %v2936_v41 = vmul.u32 %v2929_v56, %v2920_v20  ;;  %v2864_v32 = vsub.s32 4, %v13202_v42  ;;  %v3002_v27 = vshrl.u32 %v17319_v44, %v17539_v0 }
 0x2c2   : > { %v2940_v29 = vsel %vm2938_vm14, %v2939_v63, %v13242_v22  ;;  %v3005_v28 = vshrl.u32 %v17320_v38, %v17539_v0  ;;  %v2991_v46 = vand.u32 8388607, %v17112_v1  ;;  %v3004_v7 = vshll.u32 %v17319_v44, %v17540_v6 }
 0x2c3   : > { %vm8030_vm10 = vcmp.lt.s32.totalorder %v8029_v37, 0  ;;  %v2941_v11 = vadd.s32 %v2940_v29, %v2936_v41  ;;  %v3001_v56 = vshll.u32 %v17324_v40, %v17540_v6  ;;  %v3007_v22 = vshll.u32 %v17320_v38, %v17540_v6 }
 0x2c4   : > { %v2849_v30 = vsel %vm8030_vm10, 0, %v8029_v37  ;;  %v3008_v61 = vshrl.u32 %v17177_v45, %v17539_v0  ;;  %v3006_v35 = vor.u32 %v3005_v28, %v3004_v7  ;;  %v17541_v3 = vand.u32 2147483647, %v17513_v23 }
 0x2c5   : > { %v2850_v15 = vsub.s32 32, %v2849_v30  ;;  %v2854_v54 = vsub.s32 4294967266, %v2849_v30  ;;  %v2942_v57 = vadd.s32 536870912, %v2941_v11  ;;  %v2865_v21 = vsel %vm2780_vm1, %v2864_v32, %v13202_v42 }
 0x2c6   : > { %vm13291_vm4 = vcmp.le.f32.partialorder %v17541_v3, 0.7853982  ;;  %v3003_v9 = vor.u32 %v3002_v27, %v3001_v56  ;;  %v3009_v63 = vor.u32 %v3008_v61, %v3007_v22  ;;  %vm2770_vm15 = vcmp.eq.s32.totalorder %v13269_v13, 0  ;;  %v17544_v3 = vld [vmem:[#allocation118_spill] sm:$0xff] }
 0x2c7   : > { %v2851_v37 = vshll.u32 %v13226_v47, %v2849_v30  ;;  %v2852_v41 = vshrl.u32 %v2834_v5, %v2850_v15  ;;  %v2855_v29 = vadd.s32 127, %v2854_v54  ;;  %v13300_v6 = vshrl.u32 %v2942_v57, 30  ;;  %v17545_v5 = vld [vmem:[#allocation133_spill] sm:$0xff]  ;;  %v4870_v30 = vld [vmem:[%s16825_s9] sm:$0xff] }
 0x2c8   : > { %v2992_v28 = vor.u32 8388608, %v2991_v46  ;;  %v3000_v7 = vshrl.u32 %v17324_v40, %v17539_v0  ;;  %vm3016_vm13 = vcmp.lt.s32.totalorder %v17544_v3, 1  ;;  %vm3018_vm2 = vcmp.lt.s32.totalorder %v17544_v3, 3  ;;  %v17546_v0 = vld [vmem:[#allocation123_spill] sm:$0xff]  ;;  %8963 = vmatprep.subr.mxu0 %v4870_v30 }
 0x2c9   : > { %v2853_v1 = vor.u32 %v2852_v41, %v2851_v37  ;;  %v2856_v42 = vshll.u32 %v2855_v29, 23  ;;  %v2944_v32 = vshll.u32 %v13300_v6, 30  ;;  %v3028_v27 = vsel %vm3016_vm13, %v3006_v35, %v3009_v63  ;;  %8964 = vmatpush3.msra.mxu0 %v4870_v30 }
 0x2ca   : > { %vm2773_vm12 = vcmp.eq.s32.totalorder %v13269_v13, 2  ;;  %v2867_v47 = vsel %vm13291_vm4, 0, %v2865_v21  ;;  %vm3017_vm3 = vcmp.lt.s32.totalorder %v17544_v3, 2  ;;  %v3030_v46 = vsel %vm3018_vm2, %v17546_v0, %v17545_v5  ;;  %v17548_v21 = vld [vmem:[#allocation132_spill] sm:$0xff] }
 0x2cb   : > { %v2857_v56 = vor.u32 4788187, %v2856_v42  ;;  %v13320_v22 = vsub.s32 %v2941_v11, %v2944_v32  ;;  %v3020_v61 = vsel %vm3016_vm13, %v3000_v7, %v3003_v9  ;;  %vm17547_vm5 = vcmp.lt.s32.totalorder %v17544_v3, 4  ;;  %v9613_v54 = vpop.eup %9612 }
 0x2cc   : > { %v3021_v15 = vsel %vm17547_vm5, %v3009_v63, 2102212464  ;;  %v3024_v57 = vsel %vm3016_vm13, %v3003_v9, %v3006_v35  ;;  %v3026_v37 = vsel %vm3018_vm2, %v3009_v63, %v17548_v21  ;;  %v3031_v41 = vsel %vm3017_vm3, %v3028_v27, %v3030_v46  ;;  %v9615_v29 = vpop.eup %9614 }
 0x2cd   : > { %v3032_v11 = vshll.u32 %v2992_v28, 8  ;;  %v2774_v42 = vxor.u32 2147483648, %v9613_v54  ;;  %v2858_v7 = vand.u32 2147483647, %v2857_v56  ;;  %v2860_v32 = vcvt.s32.f32 %v2853_v1 }
 0x2ce   : > { %v2947_v5 = vsub.s32 0, %v13320_v22  ;;  %v2771_v0 = vxor.u32 2147483648, %v9615_v29  ;;  %v3022_v16 = vsel %vm3018_vm2, %v3006_v35, %v3021_v15  ;;  %v3027_v27 = vsel %vm3017_vm3, %v3024_v57, %v3026_v37  ;;  %v17549_v35 = vld [vmem:[#allocation89_spill] sm:$0xff] }
 0x2cf   : > { %v13336_v9 = vmul.u32.u64.low %v3032_v11, %v3031_v41  ;;  %v13337_v34 = vmul.u32.u64.high %v3032_v11, %v3031_v41, %v13336_v9  ;;  %v2775_v63 = vsel %vm2773_vm12, %v2774_v42, %v9615_v29  ;;  %v2861_v21 = vmul.f32 %v2860_v32, %v2858_v7  ;;  %v17551_v7 = vld [vmem:[#allocation122_spill] sm:$0xff] }
 0x2d0   : > { %v8032_v28 = vmin.u32 %v2947_v5, %v13320_v22  ;;  %vm2767_vm0 = vweird.f32 %v17501_v43  ;;  %vm2769_vm6 = vcmp.lt.s32.totalorder %v13269_v13, 2  ;;  %v2772_v1 = vsel %vm2770_vm15, %v9613_v54, %v2771_v0 }
 0x2d1   : > { %v17116_v46 = vand.u32 2147483647, %v17549_v35  ;;  %v2776_v30 = vsel %vm2769_vm6, %v2772_v1, %v2775_v63  ;;  %v2862_v56 = vxor.u32 2147483648, %v2861_v21  ;;  %v3023_v41 = vsel %vm3017_vm3, %v3020_v61, %v3022_v16 }
 0x2d2   : > { %v2949_v15 = vclz %v8032_v28  ;;  %v13351_v29 = vsel %vm2767_vm0, nan, %v2776_v30  ;;  %v13353_v42 = vand.u32 3, %v2867_v47  ;;  %v2937_v16 = vadd.s32 %v13241_v39, %v13236_v10  ;;  %v17552_v10 = vld [vmem:[#allocation130_spill] sm:$0xff] }
 0x2d3   : > { %17550 = vst [vmem:[#allocation33_spill] sm:$0xff] %v13351_v29  ;;  %v13355_v57 = vmul.u32.u64.low %v3032_v11, %v3027_v27  ;;  %v13356_v37 = vmul.u32.u64.high %v3032_v11, %v3027_v27, %v13355_v57  ;;  %8880 = vmatprep.mubr.msk.f32.mxu0 %vm4187_vm8, %v13351_v29  ;;  %9044 = vmatprep.mubr.msk.f32.mxu1 %vm4187_vm8, %v13351_v29  ;;  %v2863_v43 = vsel %vm2780_vm1, %v2862_v56, %v2861_v21  ;;  %v2967_v3 = vsub.s32 4, %v13300_v6 }
 0x2d4   : > { %v8033_v13 = vadd.s32 4294967294, %v2949_v15  ;;  %v2866_v47 = vsel %vm13291_vm4, %v17513_v23, %v2863_v43  ;;  %v3039_v61 = vmul.u32 %v3032_v11, %v3023_v41  ;;  %v3094_v54 = vand.u32 8388607, %v17116_v46 }
 0x2d5   : > { %vm3041_vm9 = vc.u32 %v13337_v34, %v13355_v57  ;;  %9616 = vcosq.f32 %v2866_v47  ;;  %v3104_v32 = vshll.u32 %v17324_v40, %v17551_v7  ;;  %v3105_v39 = vshrl.u32 %v17319_v44, %v17552_v10 }
 0x2d6   : > { %vm8034_vm11 = vcmp.lt.s32.totalorder %v8033_v13, 0  ;;  %9618 = vsinq.f32 %v2866_v47  ;;  %v3042_v20 = vadd.s32 1, %v13356_v37  ;;  %v3103_v11 = vshrl.u32 %v17324_v40, %v17552_v10 }
 0x2d7   : > { %v2952_v5 = vsel %vm8034_vm11, 0, %v8033_v13  ;;  %v3106_v63 = vor.u32 %v3105_v39, %v3104_v32  ;;  %v3107_v21 = vshll.u32 %v17319_v44, %v17551_v7  ;;  %v3108_v27 = vshrl.u32 %v17320_v38, %v17552_v10  ;;  %v17553_v39 = vld [vmem:[#allocation139_spill] sm:$0xff] }
 0x2d8   : > { %v2953_v0 = vsub.s32 32, %v2952_v5  ;;  %v2957_v9 = vsub.s32 4294967266, %v2952_v5  ;;  %v3043_v28 = vsel %vm3041_vm9, %v3042_v20, %v13356_v37  ;;  %v3110_v1 = vshll.u32 %v17320_v38, %v17551_v7 }
 0x2d9   : > { %v3111_v30 = vshrl.u32 %v17177_v45, %v17552_v10  ;;  %v2954_v56 = vshll.u32 %v13320_v22, %v2952_v5  ;;  %v3044_v43 = vadd.s32 %v3043_v28, %v3039_v61  ;;  %v3095_v13 = vor.u32 8388608, %v3094_v54  ;;  %v17555_v10 = vld [vmem:[#allocation149_spill] sm:$0xff] }
 0x2da   : > { %v2955_v15 = vshrl.u32 %v2937_v16, %v2953_v0  ;;  %v2958_v41 = vadd.s32 127, %v2957_v9  ;;  %v3109_v47 = vor.u32 %v3108_v27, %v3107_v21  ;;  %vm3119_vm1 = vcmp.lt.s32.totalorder %v17553_v39, 1  ;;  %v17556_v9 = vld [vmem:[#allocation152_spill] sm:$0xff]  ;;  %v17557_v21 = vld [vmem:[#allocation143_spill] sm:$0xff] }
 0x2db   : > { %v3112_v32 = vor.u32 %v3111_v30, %v3110_v1  ;;  %v3045_v46 = vadd.s32 536870912, %v3044_v43  ;;  %vm3121_vm14 = vcmp.lt.s32.totalorder %v17553_v39, 3  ;;  %vm17554_vm10 = vcmp.lt.s32.totalorder %v17553_v39, 4 }
 0x2dc   : > { %v2956_v37 = vor.u32 %v2955_v15, %v2954_v56  ;;  %v2959_v20 = vshll.u32 %v2958_v41, 23  ;;  %v3127_v29 = vsel %vm3119_vm1, %v3106_v63, %v3109_v47  ;;  %vm3120_vm4 = vcmp.lt.s32.totalorder %v17553_v39, 2 }
 0x2dd   : > { %v3124_v7 = vsel %vm17554_vm10, %v3112_v32, 2102212464  ;;  %v3129_v26 = vsel %vm3121_vm14, %v3112_v32, %v17555_v10  ;;  %v3131_v22 = vsel %vm3119_vm1, %v3109_v47, %v3112_v32  ;;  %v13397_v5 = vshrl.u32 %v3045_v46, 30 }
 0x2de   : > { %v2960_v16 = vor.u32 4788187, %v2959_v20  ;;  %v3123_v61 = vsel %vm3119_vm1, %v3103_v11, %v3106_v63  ;;  %v2963_v54 = vcvt.s32.f32 %v2956_v37  ;;  %v3130_v0 = vsel %vm3120_vm4, %v3127_v29, %v3129_v26 }
 0x2df   : > { %v3133_v28 = vsel %vm3121_vm14, %v17557_v21, %v17556_v9  ;;  %v3135_v27 = vshll.u32 %v3095_v13, 8  ;;  %v3047_v30 = vshll.u32 %v13397_v5, 30  ;;  %v3125_v56 = vsel %vm3121_vm14, %v3109_v47, %v3124_v7 }
 0x2e0   : > { %v2961_v1 = vand.u32 2147483647, %v2960_v16  ;;  %v3134_v15 = vsel %vm3120_vm4, %v3131_v22, %v3133_v28  ;;  %vm3740_vm15 = vcmp.lt.s32.totalorder %v11976_v24, 4  ;;  %v13416_v26 = vand.u32 31, %v13067_v8 }
 0x2e1   : > { %v13408_v46 = vmul.u32.u64.low %v3135_v27, %v3134_v15  ;;  %v13409_v41 = vmul.u32.u64.high %v3135_v27, %v3134_v15, %v13408_v46  ;;  %v13411_v11 = vmul.u32.u64.low %v3135_v27, %v3130_v0  ;;  %v13412_v63 = vmul.u32.u64.high %v3135_v27, %v3130_v0, %v13411_v11 }
 0x2e2   : > { %vm2883_vm13 = vcmp.lt.s32.totalorder %v17526_v59, 0  ;;  %v2964_v29 = vmul.f32 %v2963_v54, %v2961_v1  ;;  %v13419_v13 = vsub.s32 %v3044_v43, %v3047_v30  ;;  %v9617_v47 = vpop.eup %9616  ;;  %vm2870_vm2 = vweird.f32 %v17513_v23  ;;  %v17562_v46 = vld [vmem:[#allocation87_spill] sm:$0xff] }
 0x2e3   : > { %vm2872_vm12 = vcmp.lt.s32.totalorder %v13353_v42, 2  ;;  %v17558_v32 = vand.u32 2147483647, %v17526_v59  ;;  %v2968_v8 = vsel %vm2883_vm13, %v2967_v3, %v13300_v6  ;;  %v9619_v20 = vpop.eup %9618  ;;  %v2877_v7 = vxor.u32 2147483648, %v9617_v47 }
 0x2e4   : > { %v2965_v10 = vxor.u32 2147483648, %v2964_v29  ;;  %v3050_v43 = vsub.s32 0, %v13419_v13  ;;  %v3126_v22 = vsel %vm3120_vm4, %v3123_v61, %v3125_v56  ;;  %v2874_v16 = vxor.u32 2147483648, %v9619_v20 }
 0x2e5   : > { %vm13425_vm3 = vcmp.le.f32.partialorder %v17558_v32, 0.7853982  ;;  %vm2876_vm5 = vcmp.eq.s32.totalorder %v13353_v42, 2  ;;  %vm3144_vm0 = vc.u32 %v13409_v41, %v13411_v11  ;;  %v3145_v54 = vadd.s32 1, %v13412_v63 }
 0x2e6   : > { %vm2873_vm6 = vcmp.eq.s32.totalorder %v13353_v42, 0  ;;  %v2878_v0 = vsel %vm2876_vm5, %v2877_v7, %v9619_v20  ;;  %v2966_v6 = vsel %vm2883_vm13, %v2965_v10, %v2964_v29  ;;  %v8036_v3 = vmin.u32 %v3050_v43, %v13419_v13  ;;  %v17565_v20 = vld [vmem:[#allocation121_spill] sm:$0xff] }
 0x2e7   : > { %v2875_v9 = vsel %vm2873_vm6, %v9617_v47, %v2874_v16  ;;  %v2969_v39 = vsel %vm13425_vm3, %v17526_v59, %v2966_v6  ;;  %v2970_v61 = vsel %vm13425_vm3, 0, %v2968_v8  ;;  %v3142_v21 = vmul.u32 %v3135_v27, %v3126_v22  ;;  %v17564_v8 = vld [vmem:[#allocation128_spill] sm:$0xff] }
 0x2e8   : > { %v2879_v28 = vsel %vm2872_vm12, %v2875_v9, %v2878_v0  ;;  %9620 = vcosq.f32 %v2969_v39  ;;  %v3052_v1 = vclz %v8036_v3  ;;  %v3146_v30 = vsel %vm3144_vm0, %v3145_v54, %v13412_v63 }
 0x2e9   : > { %v13453_v56 = vsel %vm2870_vm2, nan, %v2879_v28  ;;  %9622 = vsinq.f32 %v2969_v39  ;;  %v3147_v15 = vadd.s32 %v3146_v30, %v3142_v21  ;;  %v17120_v29 = vand.u32 2147483647, %v17562_v46 }
 0x2ea   : > { %17561 = vst [vmem:[#allocation24_spill] sm:$0xff] %v13453_v56  ;;  %v13459_v47 = vsel %vm3740_vm15, %v13062_v52, 920167782  ;;  %v17563_v42 = vor.u32 %v12946_v25, %v12354_v2  ;;  %8881 = vmatmul.mubr.msk.f32.gmra.mxu0 %vm4187_vm8, %v13453_v56  ;;  %9045 = vmatmul.mubr.msk.f32.gmra.mxu1 %vm4187_vm8, %v13453_v56  ;;  %v13472_v23 = vand.u32 3, %v2970_v61  ;;  %v8037_v63 = vadd.s32 4294967294, %v3052_v1 }
 0x2eb   : > { %v3040_v32 = vadd.s32 %v13355_v57, %v13337_v34  ;;  %v3148_v37 = vadd.s32 536870912, %v3147_v15  ;;  %v3208_v2 = vshrl.u32 %v17319_v44, %v17564_v8  ;;  %v3211_v25 = vshrl.u32 %v17320_v38, %v17564_v8 }
 0x2ec   : > { %v13466_v27 = vsel %vm3740_vm15, %v17563_v42, 1326507024  ;;  %vm8038_vm9 = vcmp.lt.s32.totalorder %v8037_v63, 0  ;;  %v3207_v7 = vshll.u32 %v17324_v40, %v17565_v20  ;;  %v3210_v10 = vshll.u32 %v17319_v44, %v17565_v20 }
 0x2ed   : > { %v3214_v43 = vshrl.u32 %v17177_v45, %v17564_v8  ;;  %v3055_v22 = vsel %vm8038_vm9, 0, %v8037_v63  ;;  %v13486_v16 = vshrl.u32 %v3148_v37, 30  ;;  %v3197_v34 = vand.u32 8388607, %v17120_v29  ;;  %v17566_v63 = vld [vmem:[#allocation138_spill] sm:$0xff]  ;;  %v17590_v29 = vld [vmem:[#allocation141_spill] sm:$0xff] }
 0x2ee   : > { %v3213_v57 = vshll.u32 %v17320_v38, %v17565_v20  ;;  %v3056_v54 = vsub.s32 32, %v3055_v22  ;;  %v3060_v0 = vsub.s32 4294967266, %v3055_v22  ;;  %v3209_v6 = vor.u32 %v3208_v2, %v3207_v7  ;;  %v17567_v20 = vld [vmem:[#allocation146_spill] sm:$0xff] }
 0x2ef   : > { %v3212_v3 = vor.u32 %v3211_v25, %v3210_v10  ;;  %vm2986_vm11 = vcmp.lt.s32.totalorder %v17537_v36, 0  ;;  %v3070_v9 = vsub.s32 4, %v13397_v5  ;;  %v3150_v39 = vshll.u32 %v13486_v16, 30 }
 0x2f0   : > { %v3215_v61 = vor.u32 %v3214_v43, %v3213_v57  ;;  %vm2976_vm1 = vcmp.eq.s32.totalorder %v13472_v23, 0  ;;  %v3057_v21 = vshll.u32 %v13419_v13, %v3055_v22  ;;  %v3058_v28 = vshrl.u32 %v3040_v32, %v3056_v54 }
 0x2f1   : > { %v3061_v1 = vadd.s32 127, %v3060_v0  ;;  %vm2975_vm14 = vcmp.lt.s32.totalorder %v13472_v23, 2  ;;  %vm2979_vm10 = vcmp.eq.s32.totalorder %v13472_v23, 2  ;;  %v13499_v30 = vsub.s32 %v3147_v15, %v3150_v39 }
 0x2f2   : > { %v3198_v42 = vor.u32 8388608, %v3197_v34  ;;  %vm3222_vm4 = vcmp.lt.s32.totalorder %v17566_v63, 1  ;;  %v3059_v37 = vor.u32 %v3058_v28, %v3057_v21  ;;  %vm3224_vm13 = vcmp.lt.s32.totalorder %v17566_v63, 3  ;;  %v17569_v21 = vld [vmem:[#allocation148_spill] sm:$0xff] }
 0x2f3   : > { %v3062_v2 = vshll.u32 %v3061_v1, 23  ;;  %v3230_v25 = vsel %vm3222_vm4, %v3209_v6, %v3212_v3  ;;  %v13508_v13 = vsel %vm2986_vm11, %v3070_v9, %v13397_v5  ;;  %v3153_v32 = vsub.s32 0, %v13499_v30  ;;  %v17570_v28 = vld [vmem:[#allocation140_spill] sm:$0xff] }
 0x2f4   : > { %v3206_v15 = vshrl.u32 %v17324_v40, %v17564_v8  ;;  %v3232_v7 = vsel %vm3224_vm13, %v3215_v61, %v17567_v20  ;;  %vm3223_vm2 = vcmp.lt.s32.totalorder %v17566_v63, 2  ;;  %vm17568_vm12 = vcmp.lt.s32.totalorder %v17566_v63, 4 }
 0x2f5   : > { %v3063_v10 = vor.u32 4788187, %v3062_v2  ;;  %v3227_v43 = vsel %vm17568_vm12, %v3215_v61, 2102212464  ;;  %v3234_v22 = vsel %vm3222_vm4, %v3212_v3, %v3215_v61  ;;  %v9621_v5 = vpop.eup %9620  ;;  %v3066_v34 = vcvt.s32.f32 %v3059_v37 }
 0x2f6   : > { %v8040_v57 = vmin.u32 %v3153_v32, %v13499_v30  ;;  %v3226_v8 = vsel %vm3222_vm4, %v3206_v15, %v3209_v6  ;;  %v3233_v54 = vsel %vm3223_vm2, %v3230_v25, %v3232_v7  ;;  %v9623_v0 = vpop.eup %9622  ;;  %v2980_v9 = vxor.u32 2147483648, %v9621_v5 }
 0x2f7   : > { %v3064_v39 = vand.u32 2147483647, %v3063_v10  ;;  %v3236_v1 = vsel %vm3224_vm13, %v17570_v28, %v17569_v21  ;;  %v3238_v2 = vshll.u32 %v3198_v42, 8  ;;  %v2977_v61 = vxor.u32 2147483648, %v9623_v0 }
 0x2f8   : > { %v3155_v20 = vclz %v8040_v57  ;;  %v3228_v37 = vsel %vm3224_vm13, %v3212_v3, %v3227_v43  ;;  %v3237_v6 = vsel %vm3223_vm2, %v3234_v22, %v3236_v1  ;;  %v2981_v25 = vsel %vm2979_vm10, %v2980_v9, %v9623_v0 }
 0x2f9   : > { %v3067_v32 = vmul.f32 %v3066_v34, %v3064_v39  ;;  %v13536_v15 = vmul.u32.u64.low %v3238_v2, %v3237_v6  ;;  %v13537_v7 = vmul.u32.u64.high %v3238_v2, %v3237_v6, %v13536_v15  ;;  %v2978_v10 = vsel %vm2976_vm1, %v9621_v5, %v2977_v61 }
 0x2fa   : > { %v8041_v21 = vadd.s32 4294967294, %v3155_v20  ;;  %v13541_v42 = vmul.u32.u64.low %v3238_v2, %v3233_v54  ;;  %v13542_v28 = vmul.u32.u64.high %v3238_v2, %v3233_v54, %v13541_v42  ;;  %vm2973_vm3 = vweird.f32 %v17526_v59  ;;  %v17575_v54 = vld [vmem:[#allocation100_spill] sm:$0xff]  ;;  %v17577_v15 = vld [vmem:[#allocation142_spill] sm:$0xff] }
 0x2fb   : > { %v2982_v3 = vsel %vm2975_vm14, %v2978_v10, %v2981_v25  ;;  %v17571_v43 = vand.u32 2147483647, %v17537_v36  ;;  %v3068_v34 = vxor.u32 2147483648, %v3067_v32  ;;  %v3229_v5 = vsel %vm3223_vm2, %v3226_v8, %v3228_v37  ;;  %v17576_v25 = vld [vmem:[#allocation136_spill] sm:$0xff] }
 0x2fc   : > { %v13554_v57 = vsel %vm2973_vm3, nan, %v2982_v3  ;;  %vm8042_vm0 = vcmp.lt.s32.totalorder %v8041_v21, 0  ;;  %v17119_v0 = vand.u32 2147483647, %v17575_v54  ;;  %v3143_v9 = vadd.s32 %v13411_v11, %v13409_v41 }
 0x2fd   : > { %vm13550_vm5 = vcmp.le.f32.partialorder %v17571_v43, 0.7853982  ;;  %17574 = vst [vmem:[#allocation6_spill] sm:$0xff] %v13554_v57  ;;  %8883 = vmatprep.mubr.msk.f32.mxu0 %vm4187_vm8, %v13554_v57  ;;  %9047 = vmatprep.mubr.msk.f32.mxu1 %vm4187_vm8, %v13554_v57  ;;  %v3069_v59 = vsel %vm2986_vm11, %v3068_v34, %v3067_v32  ;;  %v3158_v63 = vsel %vm8042_vm0, 0, %v8041_v21  ;;  %vm3247_vm6 = vc.u32 %v13537_v7, %v13541_v42 }
 0x2fe   : > { %v3073_v23 = vsel %vm13550_vm5, 0, %v13508_v13  ;;  %v3072_v8 = vsel %vm13550_vm5, %v17537_v36, %v3069_v59  ;;  %v3159_v39 = vsub.s32 32, %v3158_v63  ;;  %v3163_v1 = vsub.s32 4294967266, %v3158_v63 }
 0x2ff   : > { %9624 = vcosq.f32 %v3072_v8  ;;  %v3160_v61 = vshll.u32 %v13499_v30, %v3158_v63  ;;  %v3245_v20 = vmul.u32 %v3238_v2, %v3229_v5  ;;  %v3248_v37 = vadd.s32 1, %v13542_v28 }
 0x300   : > { %9626 = vsinq.f32 %v3072_v8  ;;  %v3161_v13 = vshrl.u32 %v3143_v9, %v3159_v39  ;;  %v3164_v6 = vadd.s32 127, %v3163_v1  ;;  %v3300_v41 = vand.u32 8388607, %v17119_v0  ;;  %v17578_v1 = vld [vmem:[#allocation147_spill] sm:$0xff] }
 0x301   : > { %v3249_v11 = vsel %vm3247_vm6, %v3248_v37, %v13542_v28  ;;  %v3310_v32 = vshll.u32 %v17324_v40, %v17576_v25  ;;  %v3311_v10 = vshrl.u32 %v17319_v44, %v17577_v15  ;;  %v3313_v30 = vshll.u32 %v17319_v44, %v17576_v25 }
 0x302   : > { %v3162_v2 = vor.u32 %v3161_v13, %v3160_v61  ;;  %v3165_v21 = vshll.u32 %v3164_v6, 23  ;;  %v3250_v3 = vadd.s32 %v3249_v11, %v3245_v20  ;;  %v3314_v43 = vshrl.u32 %v17320_v38, %v17577_v15  ;;  %v17579_v13 = vld [vmem:[#allocation157_spill] sm:$0xff]  ;;  %v17580_v6 = vld [vmem:[#allocation155_spill] sm:$0xff] }
 0x303   : > { %vm3089_vm9 = vcmp.lt.s32.totalorder %v17549_v35, 0  ;;  %v3312_v22 = vor.u32 %v3311_v10, %v3310_v32  ;;  %v3316_v28 = vshll.u32 %v17320_v38, %v17576_v25  ;;  %v3317_v34 = vshrl.u32 %v17177_v45, %v17577_v15 }
 0x304   : > { %v3077_v5 = vand.u32 3, %v3073_v23  ;;  %v3166_v59 = vor.u32 4788187, %v3165_v21  ;;  %v3251_v9 = vadd.s32 536870912, %v3250_v3  ;;  %v3315_v63 = vor.u32 %v3314_v43, %v3313_v30 }
 0x305   : > { %v3301_v8 = vor.u32 8388608, %v3300_v41  ;;  %v3318_v39 = vor.u32 %v3317_v34, %v3316_v28  ;;  %vm3325_vm11 = vcmp.lt.s32.totalorder %v17578_v1, 1  ;;  %vm3327_vm1 = vcmp.lt.s32.totalorder %v17578_v1, 3  ;;  %v17581_v41 = vld [vmem:[#allocation156_spill] sm:$0xff] }
 0x306   : > { %v3167_v61 = vand.u32 2147483647, %v3166_v59  ;;  %v3169_v20 = vcvt.s32.f32 %v3162_v2  ;;  %v13595_v37 = vshrl.u32 %v3251_v9, 30  ;;  %v3339_v11 = vsel %vm3327_vm1, %v17580_v6, %v17579_v13 }
 0x307   : > { %v3173_v23 = vsub.s32 4, %v13486_v16  ;;  %v3333_v25 = vsel %vm3325_vm11, %v3312_v22, %v3315_v63  ;;  %v3335_v32 = vsel %vm3327_vm1, %v3318_v39, %v17581_v41  ;;  %v3337_v10 = vsel %vm3325_vm11, %v3315_v63, %v3318_v39 }
 0x308   : > { %v17582_v30 = vand.u32 2147483647, %v17549_v35  ;;  %v3170_v21 = vmul.f32 %v3169_v20, %v3167_v61  ;;  %v3253_v43 = vshll.u32 %v13595_v37, 30  ;;  %vm3326_vm10 = vcmp.lt.s32.totalorder %v17578_v1, 2 }
 0x309   : > { %vm3079_vm4 = vcmp.eq.s32.totalorder %v3077_v5, 0  ;;  %vm17585_vm13 = vcmp.lt.s32.totalorder %v17578_v1, 4  ;;  %v3340_v34 = vsel %vm3326_vm10, %v3337_v10, %v3339_v11  ;;  %v3341_v59 = vshll.u32 %v3301_v8, 8 }
 0x30a   : > { %vm13611_vm14 = vcmp.le.f32.partialorder %v17582_v30, 0.7853982  ;;  %v3330_v28 = vsel %vm17585_vm13, %v3318_v39, 2102212464  ;;  %v3171_v9 = vxor.u32 2147483648, %v3170_v21  ;;  %v13621_v13 = vsub.s32 %v3250_v3, %v3253_v43 }
 0x30b   : > { %v3309_v6 = vshrl.u32 %v17324_v40, %v17577_v15  ;;  %v3336_v61 = vsel %vm3326_vm10, %v3333_v25, %v3335_v32  ;;  %vm3082_vm2 = vcmp.eq.s32.totalorder %v3077_v5, 2  ;;  %v3174_v20 = vsel %vm3089_vm9, %v3173_v23, %v13486_v16 }
 0x30c   : > { %v13630_v41 = vmul.u32.u64.low %v3341_v59, %v3340_v34  ;;  %v13631_v39 = vmul.u32.u64.high %v3341_v59, %v3340_v34, %v13630_v41  ;;  %v9625_v30 = vpop.eup %9624  ;;  %v3172_v8 = vsel %vm3089_vm9, %v3171_v9, %v3170_v21  ;;  %v3256_v3 = vsub.s32 0, %v13621_v13 }
 0x30d   : > { %v3329_v15 = vsel %vm3325_vm11, %v3309_v6, %v3312_v22  ;;  %v3331_v11 = vsel %vm3327_vm1, %v3315_v63, %v3330_v28  ;;  %v9627_v25 = vpop.eup %9626  ;;  %v3083_v32 = vxor.u32 2147483648, %v9625_v30  ;;  %v3175_v16 = vsel %vm13611_vm14, %v17549_v35, %v3172_v8  ;;  %v17586_v28 = vld [vmem:[#allocation94_spill] sm:$0xff] }
 0x30e   : > { %v13643_v23 = vmul.u32.u64.low %v3341_v59, %v3336_v61  ;;  %v13644_v10 = vmul.u32.u64.high %v3341_v59, %v3336_v61, %v13643_v23  ;;  %v3080_v43 = vxor.u32 2147483648, %v9627_v25  ;;  %v3176_v21 = vsel %vm13611_vm14, 0, %v3174_v20 }
 0x30f   : > { %9628 = vcosq.f32 %v3175_v16  ;;  %v8044_v22 = vmin.u32 %v3256_v3, %v13621_v13  ;;  %v3084_v34 = vsel %vm3082_vm2, %v3083_v32, %v9627_v25  ;;  %v3332_v63 = vsel %vm3326_vm10, %v3329_v15, %v3331_v11  ;;  %v17588_v11 = vld [vmem:[#allocation135_spill] sm:$0xff] }
 0x310   : > { %9630 = vsinq.f32 %v3175_v16  ;;  %v17118_v9 = vand.u32 2147483647, %v17586_v28  ;;  %vm3078_vm12 = vcmp.lt.s32.totalorder %v3077_v5, 2  ;;  %v3081_v6 = vsel %vm3079_vm4, %v9625_v30, %v3080_v43 }
 0x311   : > { %v3258_v61 = vclz %v8044_v22  ;;  %vm3350_vm3 = vc.u32 %v13631_v39, %v13643_v23  ;;  %vm3076_vm5 = vweird.f32 %v17537_v36  ;;  %v3085_v2 = vsel %vm3078_vm12, %v3081_v6, %v3084_v34 }
 0x312   : > { %v13658_v20 = vand.u32 3, %v3176_v21  ;;  %v3351_v41 = vadd.s32 1, %v13644_v10  ;;  %v13662_v8 = vsub.s32 32, %v13416_v26  ;;  %v13664_v1 = vsel %vm3076_vm5, nan, %v3085_v2 }
 0x313   : > { %17587 = vst [vmem:[#allocation29_spill] sm:$0xff] %v13664_v1  ;;  %v8045_v3 = vadd.s32 4294967294, %v3258_v61  ;;  %v3348_v15 = vmul.u32 %v3341_v59, %v3332_v63  ;;  %8884 = vmatmul.mubr.msk.f32.gmra.mxu0 %vm4187_vm8, %v13664_v1  ;;  %9048 = vmatmul.mubr.msk.f32.gmra.mxu1 %vm4187_vm8, %v13664_v1  ;;  %v3246_v36 = vadd.s32 %v13541_v42, %v13537_v7  ;;  %v3403_v30 = vand.u32 8388607, %v17118_v9  ;;  %v17589_v59 = vld [vmem:[#allocation126_spill] sm:$0xff] }
 0x314   : > { %v3352_v5 = vsel %vm3350_vm3, %v3351_v41, %v13644_v10  ;;  %v3414_v25 = vshrl.u32 %v17319_v44, %v17588_v11  ;;  %v3413_v16 = vshll.u32 %v17324_v40, %v17589_v59  ;;  %v3417_v43 = vshrl.u32 %v17320_v38, %v17588_v11 }
 0x315   : > { %vm8046_vm0 = vcmp.lt.s32.totalorder %v8045_v3, 0  ;;  %v3353_v32 = vadd.s32 %v3352_v5, %v3348_v15  ;;  %vm3185_vm6 = vcmp.eq.s32.totalorder %v13658_v20, 2  ;;  %v3416_v7 = vshll.u32 %v17319_v44, %v17589_v59 }
 0x316   : > { %v3261_v21 = vsel %vm8046_vm0, 0, %v8045_v3  ;;  %v3419_v42 = vshll.u32 %v17320_v38, %v17589_v59  ;;  %v3420_v10 = vshrl.u32 %v17177_v45, %v17588_v11  ;;  %vm3182_vm9 = vcmp.eq.s32.totalorder %v13658_v20, 0 }
 0x317   : > { %v3262_v22 = vsub.s32 32, %v3261_v21  ;;  %v3266_v34 = vsub.s32 4294967266, %v3261_v21  ;;  %v3276_v63 = vsub.s32 4, %v13595_v37  ;;  %v3354_v6 = vadd.s32 536870912, %v3353_v32 }
 0x318   : > { %vm3181_vm11 = vcmp.lt.s32.totalorder %v13658_v20, 2  ;;  %v3412_v61 = vshrl.u32 %v17324_v40, %v17588_v11  ;;  %v3415_v2 = vor.u32 %v3414_v25, %v3413_v16  ;;  %v3418_v41 = vor.u32 %v3417_v43, %v3416_v7 }
 0x319   : > { %v3421_v3 = vor.u32 %v3420_v10, %v3419_v42  ;;  %vm3179_vm1 = vweird.f32 %v17549_v35  ;;  %v3263_v15 = vshll.u32 %v13621_v13, %v3261_v21  ;;  %v3264_v5 = vshrl.u32 %v3246_v36, %v3262_v22  ;;  %v17592_v21 = vld [vmem:[#allocation154_spill] sm:$0xff]  ;;  %v17593_v42 = vld [vmem:[#allocation145_spill] sm:$0xff] }
 0x31a   : > { %v3267_v59 = vadd.s32 127, %v3266_v34  ;;  %v13695_v9 = vshrl.u32 %v3354_v6, 30  ;;  %v3404_v0 = vor.u32 8388608, %v3403_v30  ;;  %vm3428_vm14 = vcmp.lt.s32.totalorder %v17590_v29, 1 }
 0x31b   : > { %vm3430_vm10 = vcmp.lt.s32.totalorder %v17590_v29, 3  ;;  %vm17591_vm4 = vcmp.lt.s32.totalorder %v17590_v29, 4  ;;  %v3265_v11 = vor.u32 %v3264_v5, %v3263_v15  ;;  %v3440_v43 = vsel %vm3428_vm14, %v3418_v41, %v3421_v3  ;;  %v17594_v15 = vld [vmem:[#allocation153_spill] sm:$0xff] }
 0x31c   : > { %v3433_v1 = vsel %vm17591_vm4, %v3421_v3, 2102212464  ;;  %v3268_v25 = vshll.u32 %v3267_v59, 23  ;;  %v3356_v16 = vshll.u32 %v13695_v9, 30  ;;  %v9629_v7 = vpop.eup %9628  ;;  %vm3429_vm13 = vcmp.lt.s32.totalorder %v17590_v29, 2 }
 0x31d   : > { %v3432_v13 = vsel %vm3428_vm14, %v3412_v61, %v3415_v2  ;;  %v3436_v36 = vsel %vm3428_vm14, %v3415_v2, %v3418_v41  ;;  %v3442_v30 = vsel %vm3430_vm10, %v17593_v42, %v17592_v21  ;;  %v9631_v10 = vpop.eup %9630  ;;  %v3186_v22 = vxor.u32 2147483648, %v9629_v7 }
 0x31e   : > { %v3269_v34 = vor.u32 4788187, %v3268_v25  ;;  %v13707_v6 = vsub.s32 %v3353_v32, %v3356_v16  ;;  %v3438_v5 = vsel %vm3430_vm10, %v3421_v3, %v17594_v15  ;;  %v3183_v59 = vxor.u32 2147483648, %v9631_v10 }
 0x31f   : > { %v3434_v57 = vsel %vm3430_vm10, %v3418_v41, %v3433_v1  ;;  %v3443_v61 = vsel %vm3429_vm13, %v3440_v43, %v3442_v30  ;;  %v3444_v2 = vshll.u32 %v3404_v0, 8  ;;  %v3187_v21 = vsel %vm3185_vm6, %v3186_v22, %v9631_v10 }
 0x320   : > { %v3270_v42 = vand.u32 2147483647, %v3269_v34  ;;  %v3272_v56 = vcvt.s32.f32 %v3265_v11  ;;  %v3359_v32 = vsub.s32 0, %v13707_v6  ;;  %v3184_v25 = vsel %vm3182_vm9, %v9629_v7, %v3183_v59 }
 0x321   : > { %v3439_v3 = vsel %vm3429_vm13, %v3436_v36, %v3438_v5  ;;  %v13723_v16 = vmul.u32.u64.low %v3444_v2, %v3443_v61  ;;  %v13724_v15 = vmul.u32.u64.high %v3444_v2, %v3443_v61, %v13723_v16  ;;  %v3188_v1 = vsel %vm3181_vm11, %v3184_v25, %v3187_v21 }
 0x322   : > { %vm3192_vm2 = vcmp.lt.s32.totalorder %v17562_v46, 0  ;;  %v3273_v0 = vmul.f32 %v3272_v56, %v3270_v42  ;;  %v8048_v41 = vmin.u32 %v3359_v32, %v13707_v6  ;;  %v13732_v11 = vshll.u32 %v17177_v45, %v13416_v26 }
 0x323   : > { %v13736_v43 = vsel %vm3179_vm1, nan, %v3188_v1  ;;  %v3277_v7 = vsel %vm3192_vm2, %v3276_v63, %v13595_v37  ;;  %v3435_v20 = vsel %vm3429_vm13, %v3432_v13, %v3434_v57  ;;  %v13753_v35 = vshrl.u32 %v17180_v18, %v13662_v8  ;;  %v17598_v63 = vld [vmem:[#allocation119_spill] sm:$0xff] }
 0x324   : > { %8886 = vmatprep.mubr.msk.f32.mxu0 %vm4187_vm8, %v13736_v43  ;;  %9050 = vmatprep.mubr.msk.f32.mxu1 %vm4187_vm8, %v13736_v43  ;;  %v3274_v56 = vxor.u32 2147483648, %v3273_v0  ;;  %v3361_v36 = vclz %v8048_v41  ;;  %v13747_v30 = vmul.u32.u64.low %v3444_v2, %v3439_v3  ;;  %v13748_v10 = vmul.u32.u64.high %v3444_v2, %v3439_v3, %v13747_v30 }
 0x325   : > { %v13757_v29 = vshll.u32 %v17180_v18, %v13416_v26  ;;  %v17595_v57 = vand.u32 2147483647, %v17562_v46  ;;  %v17124_v13 = vand.u32 2147483647, %v17598_v63  ;;  %v13768_v22 = vshrl.u32 %v17200_v14, %v13662_v8 }
 0x326   : > { %v3275_v34 = vsel %vm3192_vm2, %v3274_v56, %v3273_v0  ;;  %v8049_v18 = vadd.s32 4294967294, %v3361_v36  ;;  %v3349_v61 = vadd.s32 %v13643_v23, %v13631_v39  ;;  %v3451_v21 = vmul.u32 %v3444_v2, %v3435_v20 }
 0x327   : > { %vm13761_vm12 = vcmp.le.f32.partialorder %v17595_v57, 0.7853982  ;;  %vm3453_vm3 = vc.u32 %v13724_v15, %v13747_v30  ;;  %v3454_v42 = vadd.s32 1, %v13748_v10  ;;  %v3517_v32 = vshrl.u32 %v17319_v44, %v11200_v19 }
 0x328   : > { %v3279_v5 = vsel %vm13761_vm12, 0, %v3277_v7  ;;  %v3278_v59 = vsel %vm13761_vm12, %v17562_v46, %v3275_v34  ;;  %vm8050_vm5 = vcmp.lt.s32.totalorder %v8049_v18, 0  ;;  %v3506_v3 = vand.u32 8388607, %v17124_v13 }
 0x329   : > { %9632 = vcosq.f32 %v3278_v59  ;;  %v3364_v25 = vsel %vm8050_vm5, 0, %v8049_v18  ;;  %v3516_v16 = vshll.u32 %v17324_v40, %v11177_v60  ;;  %vm3295_vm0 = vcmp.lt.s32.totalorder %v17575_v54, 0 }
 0x32a   : > { %9634 = vsinq.f32 %v3278_v59  ;;  %v3365_v39 = vsub.s32 32, %v3364_v25  ;;  %v3369_v23 = vsub.s32 4294967266, %v3364_v25  ;;  %v3455_v2 = vsel %vm3453_vm3, %v3454_v42, %v13748_v10 }
 0x32b   : > { %v3519_v1 = vshll.u32 %v17319_v44, %v11177_v60  ;;  %v3366_v0 = vshll.u32 %v13707_v6, %v3364_v25  ;;  %v3456_v41 = vadd.s32 %v3455_v2, %v3451_v21  ;;  %v3518_v7 = vor.u32 %v3517_v32, %v3516_v16 }
 0x32c   : > { %v3520_v20 = vshrl.u32 %v17320_v38, %v11200_v19  ;;  %v3367_v56 = vshrl.u32 %v3349_v61, %v3365_v39  ;;  %v3370_v36 = vadd.s32 127, %v3369_v23  ;;  %v3522_v57 = vshll.u32 %v17320_v38, %v11177_v60 }
 0x32d   : > { %v3523_v37 = vshrl.u32 %v17177_v45, %v11200_v19  ;;  %v3283_v34 = vand.u32 3, %v3279_v5  ;;  %v3457_v10 = vadd.s32 536870912, %v3456_v41  ;;  %v3507_v18 = vor.u32 8388608, %v3506_v3 }
 0x32e   : > { %v3521_v59 = vor.u32 %v3520_v20, %v3519_v1  ;;  %v3368_v42 = vor.u32 %v3367_v56, %v3366_v0  ;;  %v3371_v13 = vshll.u32 %v3370_v36, 23  ;;  %vm3531_vm6 = vcmp.lt.s32.totalorder %v11175_v12, 1 }
 0x32f   : > { %v3524_v6 = vor.u32 %v3523_v37, %v3522_v57  ;;  %v3379_v21 = vsub.s32 4, %v13695_v9  ;;  %v13801_v32 = vshrl.u32 %v3457_v10, 30  ;;  %vm3533_vm9 = vcmp.lt.s32.totalorder %v11175_v12, 3 }
 0x330   : > { %v3539_v60 = vsel %vm3531_vm6, %v3518_v7, %v3521_v59  ;;  %v3372_v61 = vor.u32 4788187, %v3371_v13  ;;  %v3515_v5 = vshrl.u32 %v17324_v40, %v11200_v19  ;;  %v3545_v3 = vsel %vm3533_vm9, %v11319_v50, %v11386_v4 }
 0x331   : > { %v3541_v25 = vsel %vm3533_vm9, %v3524_v6, %v11355_v53  ;;  %v3375_v16 = vcvt.s32.f32 %v3368_v42  ;;  %v3459_v39 = vshll.u32 %v13801_v32, 30  ;;  %vm3532_vm11 = vcmp.lt.s32.totalorder %v11175_v12, 2 }
 0x332   : > { %v3547_v23 = vshll.u32 %v3507_v18, 8  ;;  %v3373_v2 = vand.u32 2147483647, %v3372_v61  ;;  %vm17599_vm1 = vcmp.lt.s32.totalorder %v11175_v12, 4  ;;  %v3542_v19 = vsel %vm3532_vm11, %v3539_v60, %v3541_v25 }
 0x333   : > { %v3536_v13 = vsel %vm17599_vm1, %v3524_v6, 2102212464  ;;  %v3543_v53 = vsel %vm3531_vm6, %v3521_v59, %v3524_v6  ;;  %v17600_v1 = vand.u32 2147483647, %v17575_v54  ;;  %v3380_v4 = vsel %vm3295_vm0, %v3379_v21, %v13695_v9 }
 0x334   : > { %v13832_v0 = vsub.s32 %v3456_v41, %v3459_v39  ;;  %v3546_v20 = vsel %vm3532_vm11, %v3543_v53, %v3545_v3  ;;  %v3376_v56 = vmul.f32 %v3375_v16, %v3373_v2  ;;  %v3535_v36 = vsel %vm3531_vm6, %v3515_v5, %v3518_v7  ;;  %v17603_v16 = vld [vmem:[#allocation107_spill] sm:$0xff] }
 0x335   : > { %vm13825_vm14 = vcmp.le.f32.partialorder %v17600_v1, 0.7853982  ;;  %v13838_v57 = vmul.u32.u64.low %v3547_v23, %v3546_v20  ;;  %v13839_v37 = vmul.u32.u64.high %v3547_v23, %v3546_v20, %v13838_v57  ;;  %v3537_v42 = vsel %vm3533_vm9, %v3521_v59, %v3536_v13 }
 0x336   : > { %v9633_v10 = vpop.eup %9632  ;;  %v3462_v18 = vsub.s32 0, %v13832_v0  ;;  %v13844_v6 = vmul.u32.u64.low %v3547_v23, %v3542_v19  ;;  %v13845_v9 = vmul.u32.u64.high %v3547_v23, %v3542_v19, %v13844_v6  ;;  %vm3284_vm10 = vcmp.lt.s32.totalorder %v3283_v34, 2  ;;  %v17604_v57 = vld [vmem:[#allocation150_spill] sm:$0xff] }
 0x337   : > { %v9635_v41 = vpop.eup %9634  ;;  %vm3285_vm4 = vcmp.eq.s32.totalorder %v3283_v34, 0  ;;  %v3289_v21 = vxor.u32 2147483648, %v9633_v10  ;;  %v3377_v60 = vxor.u32 2147483648, %v3376_v56  ;;  %vm3288_vm13 = vcmp.eq.s32.totalorder %v3283_v34, 2 }
 0x338   : > { %v3286_v61 = vxor.u32 2147483648, %v9635_v41  ;;  %v3382_v7 = vsel %vm13825_vm14, 0, %v3380_v4  ;;  %v8052_v5 = vmin.u32 %v3462_v18, %v13832_v0  ;;  %v3538_v3 = vsel %vm3532_vm11, %v3535_v36, %v3537_v42  ;;  %v17605_v18 = vld [vmem:[#allocation144_spill] sm:$0xff] }
 0x339   : > { %v3290_v25 = vsel %vm3288_vm13, %v3289_v21, %v9635_v41  ;;  %v3378_v59 = vsel %vm3295_vm0, %v3377_v60, %v3376_v56  ;;  %v3602_v39 = vand.u32 2147483647, %v17603_v16  ;;  %vm3556_vm2 = vc.u32 %v13839_v37, %v13844_v6 }
 0x33a   : > { %v3287_v2 = vsel %vm3285_vm4, %v9633_v10, %v3286_v61  ;;  %v3381_v13 = vsel %vm13825_vm14, %v17575_v54, %v3378_v59  ;;  %v3464_v19 = vclz %v8052_v5  ;;  %vm3282_vm12 = vweird.f32 %v17562_v46 }
 0x33b   : > { %v3291_v53 = vsel %vm3284_vm10, %v3287_v2, %v3290_v25  ;;  %9636 = vcosq.f32 %v3381_v13  ;;  %v3557_v1 = vadd.s32 1, %v13845_v9  ;;  %v3554_v20 = vmul.u32 %v3547_v23, %v3538_v3 }
 0x33c   : > { %v13864_v12 = vsel %vm3282_vm12, nan, %v3291_v53  ;;  %9638 = vsinq.f32 %v3381_v13  ;;  %v8053_v4 = vadd.s32 4294967294, %v3464_v19  ;;  %v13868_v50 = vor.u32 %v13753_v35, %v13732_v11 }
 0x33d   : > { %v3942_v56 = vor.u32 %v13768_v22, %v13757_v29  ;;  %8887 = vmatmul.mubr.msk.f32.gmra.mxu0 %vm4187_vm8, %v13864_v12  ;;  %9051 = vmatmul.mubr.msk.f32.gmra.mxu1 %vm4187_vm8, %v13864_v12  ;;  %v13876_v46 = vand.u32 3, %v3382_v7  ;;  %v3558_v34 = vsel %vm3556_vm2, %v3557_v1, %v13845_v9  ;;  %v3452_v23 = vadd.s32 %v13747_v30, %v13724_v15 }
 0x33e   : > { %vm8054_vm3 = vcmp.lt.s32.totalorder %v8053_v4, 0  ;;  %v3559_v36 = vadd.s32 %v3558_v34, %v3554_v20  ;;  %v3609_v11 = vand.u32 8388607, %v3602_v39  ;;  %v3620_v10 = vshrl.u32 %v17319_v44, %v17604_v57  ;;  %v17606_v20 = vld [vmem:[#allocation162_spill] sm:$0xff] }
 0x33f   : > { %v3467_v35 = vsel %vm8054_vm3, 0, %v8053_v4  ;;  %v3622_v42 = vshll.u32 %v17319_v44, %v17605_v18  ;;  %v3623_v41 = vshrl.u32 %v17320_v38, %v17604_v57  ;;  %v3619_v15 = vshll.u32 %v17324_v40, %v17605_v18  ;;  %v17607_v34 = vld [vmem:[#allocation158_spill] sm:$0xff] }
 0x340   : > { %v3468_v21 = vsub.s32 32, %v3467_v35  ;;  %v3472_v9 = vsub.s32 4294967266, %v3467_v35  ;;  %v3560_v60 = vadd.s32 536870912, %v3559_v36  ;;  %v3625_v61 = vshll.u32 %v17320_v38, %v17605_v18 }
 0x341   : > { %v3624_v30 = vor.u32 %v3623_v41, %v3622_v42  ;;  %v3626_v7 = vshrl.u32 %v17177_v45, %v17604_v57  ;;  %vm3634_vm5 = vcmp.lt.s32.totalorder %v11144_v33, 1  ;;  %v3469_v5 = vshll.u32 %v13832_v0, %v3467_v35 }
 0x342   : > { %v3470_v25 = vshrl.u32 %v3452_v23, %v3468_v21  ;;  %v3473_v59 = vadd.s32 127, %v3472_v9  ;;  %v13897_v3 = vshrl.u32 %v3560_v60, 30  ;;  %vm3398_vm0 = vcmp.lt.s32.totalorder %v17586_v28, 0  ;;  %v17609_v21 = vld [vmem:[#allocation161_spill] sm:$0xff] }
 0x343   : > { %v3610_v2 = vor.u32 8388608, %v3609_v11  ;;  %v3621_v13 = vor.u32 %v3620_v10, %v3619_v15  ;;  %v3627_v19 = vor.u32 %v3626_v7, %v3625_v61  ;;  %vm3636_vm6 = vcmp.lt.s32.totalorder %v11144_v33, 3 }
 0x344   : > { %v3471_v53 = vor.u32 %v3470_v25, %v3469_v5  ;;  %v3474_v1 = vshll.u32 %v3473_v59, 23  ;;  %v3562_v4 = vshll.u32 %v13897_v3, 30  ;;  %v3648_v0 = vsel %vm3636_vm6, %v17607_v34, %v17606_v20 }
 0x345   : > { %vm3385_vm9 = vweird.f32 %v17575_v54  ;;  %vm3391_vm11 = vcmp.eq.s32.totalorder %v13876_v46, 2  ;;  %v3482_v23 = vsub.s32 4, %v13801_v32  ;;  %v3618_v11 = vshrl.u32 %v17324_v40, %v17604_v57 }
 0x346   : > { %v3646_v35 = vsel %vm3634_vm5, %v3624_v30, %v3627_v19  ;;  %vm3946_vm1 = vcmp.lt.s32.totalorder %v13162_v58, 4  ;;  %v3475_v10 = vor.u32 4788187, %v3474_v1  ;;  %v13914_v18 = vsub.s32 %v3559_v36, %v3562_v4 }
 0x347   : > { %vm3635_vm14 = vcmp.lt.s32.totalorder %v11144_v33, 2  ;;  %vm17608_vm10 = vcmp.lt.s32.totalorder %v11144_v33, 4  ;;  %v3642_v41 = vsel %vm3634_vm5, %v3621_v13, %v3624_v30  ;;  %v3644_v57 = vsel %vm3636_vm6, %v3627_v19, %v17609_v21 }
 0x348   : > { %v3639_v42 = vsel %vm17608_vm10, %v3627_v19, 2102212464  ;;  %v3649_v9 = vsel %vm3635_vm14, %v3646_v35, %v3648_v0  ;;  %v3650_v60 = vshll.u32 %v3610_v2, 8  ;;  %v9637_v15 = vpop.eup %9636  ;;  %v3476_v61 = vand.u32 2147483647, %v3475_v10 }
 0x349   : > { %v3478_v36 = vcvt.s32.f32 %v3471_v53  ;;  %v3565_v7 = vsub.s32 0, %v13914_v18  ;;  %v3638_v5 = vsel %vm3634_vm5, %v3618_v11, %v3621_v13  ;;  %v9639_v25 = vpop.eup %9638  ;;  %v3392_v59 = vxor.u32 2147483648, %v9637_v15 }
 0x34a   : > { %v3640_v1 = vsel %vm3636_vm6, %v3624_v30, %v3639_v42  ;;  %v13931_v4 = vmul.u32.u64.low %v3650_v60, %v3649_v9  ;;  %v13932_v20 = vmul.u32.u64.high %v3650_v60, %v3649_v9, %v13931_v4  ;;  %v3389_v19 = vxor.u32 2147483648, %v9639_v25 }
 0x34b   : > { %v3479_v34 = vmul.f32 %v3478_v36, %v3476_v61  ;;  %v8056_v2 = vmin.u32 %v3565_v7, %v13914_v18  ;;  %v3645_v53 = vsel %vm3635_vm14, %v3642_v41, %v3644_v57  ;;  %vm3387_vm4 = vcmp.lt.s32.totalorder %v13876_v46, 2  ;;  %v17613_v36 = vld [vmem:[#allocation159_spill] sm:$0xff] }
 0x34c   : > { %vm3388_vm13 = vcmp.eq.s32.totalorder %v13876_v46, 0  ;;  %v3393_v13 = vsel %vm3391_vm11, %v3392_v59, %v9639_v25  ;;  %v17610_v0 = vand.u32 2147483647, %v17586_v28  ;;  %v3483_v10 = vsel %vm3398_vm0, %v3482_v23, %v13801_v32 }
 0x34d   : > { %v3390_v11 = vsel %vm3388_vm13, %v9637_v15, %v3389_v19  ;;  %v3480_v35 = vxor.u32 2147483648, %v3479_v34  ;;  %v3567_v42 = vclz %v8056_v2  ;;  %v3641_v21 = vsel %vm3635_vm14, %v3638_v5, %v3640_v1 }
 0x34e   : > { %vm13943_vm2 = vcmp.le.f32.partialorder %v17610_v0, 0.7853982  ;;  %v3394_v41 = vsel %vm3387_vm4, %v3390_v11, %v3393_v13  ;;  %v13952_v57 = vmul.u32.u64.low %v3650_v60, %v3645_v53  ;;  %v13953_v46 = vmul.u32.u64.high %v3650_v60, %v3645_v53, %v13952_v57 }
 0x34f   : > { %v13958_v9 = vsel %vm3385_vm9, nan, %v3394_v41  ;;  %v3481_v15 = vsel %vm3398_vm0, %v3480_v35, %v3479_v34  ;;  %v8057_v61 = vadd.s32 4294967294, %v3567_v42  ;;  %v3705_v7 = vand.u32 2147483647, %v17613_v36 }
 0x350   : > { %v13966_v32 = vsel %vm3946_vm1, %v13868_v50, 920167782  ;;  %v13973_v33 = vsel %vm3946_vm1, %v3942_v56, 1326507024  ;;  %8889 = vmatprep.mubr.msk.f32.mxu0 %vm4187_vm8, %v13958_v9  ;;  %9053 = vmatprep.mubr.msk.f32.mxu1 %vm4187_vm8, %v13958_v9  ;;  %v3484_v54 = vsel %vm13943_vm2, %v17586_v28, %v3481_v15  ;;  %v3485_v23 = vsel %vm13943_vm2, 0, %v3483_v10 }
 0x351   : > { %9640 = vcosq.f32 %v3484_v54  ;;  %v3555_v29 = vadd.s32 %v13844_v6, %v13839_v37  ;;  %vm8058_vm12 = vcmp.lt.s32.totalorder %v8057_v61, 0  ;;  %vm3659_vm3 = vc.u32 %v13932_v20, %v13952_v57 }
 0x352   : > { %9642 = vsinq.f32 %v3484_v54  ;;  %v3570_v22 = vsel %vm8058_vm12, 0, %v8057_v61  ;;  %v3657_v56 = vmul.u32 %v3650_v60, %v3641_v21  ;;  %v3660_v5 = vadd.s32 1, %v13953_v46 }
 0x353   : > { %v3571_v25 = vsub.s32 32, %v3570_v22  ;;  %v3575_v59 = vsub.s32 4294967266, %v3570_v22  ;;  %v3712_v1 = vand.u32 8388607, %v3705_v7  ;;  %v3723_v4 = vshrl.u32 %v17319_v44, %v12253_v17 }
 0x354   : > { %v3661_v19 = vsel %vm3659_vm3, %v3660_v5, %v13953_v46  ;;  %v3722_v37 = vshll.u32 %v17324_v40, %v12052_v51  ;;  %v3725_v6 = vshll.u32 %v17319_v44, %v12052_v51  ;;  %v3726_v60 = vshrl.u32 %v17320_v38, %v12253_v17 }
 0x355   : > { %v3572_v34 = vshll.u32 %v13914_v18, %v3570_v22  ;;  %v3573_v2 = vshrl.u32 %v3555_v29, %v3571_v25  ;;  %v3576_v53 = vadd.s32 127, %v3575_v59  ;;  %v3662_v13 = vadd.s32 %v3661_v19, %v3657_v56 }
 0x356   : > { %v3724_v0 = vor.u32 %v3723_v4, %v3722_v37  ;;  %v3727_v30 = vor.u32 %v3726_v60, %v3725_v6  ;;  %v3728_v11 = vshll.u32 %v17320_v38, %v12052_v51  ;;  %v3729_v35 = vshrl.u32 %v17177_v45, %v12253_v17  ;;  %v14044_v60 = vld [vmem:[%s16822_s6 + $0x38] sm:$0xff] }
 0x357   : > { %vm3501_vm5 = vcmp.lt.s32.totalorder %v17598_v63, 0  ;;  %v3574_v10 = vor.u32 %v3573_v2, %v3572_v34  ;;  %v3577_v42 = vshll.u32 %v3576_v53, 23  ;;  %v3663_v41 = vadd.s32 536870912, %v3662_v13  ;;  %9065 = vmatprep.subr.mxu0 %v14044_v60 }
 0x358   : > { %v3489_v21 = vand.u32 3, %v3485_v23  ;;  %v3713_v46 = vor.u32 8388608, %v3712_v1  ;;  %v3730_v15 = vor.u32 %v3729_v35, %v3728_v11  ;;  %vm3739_vm0 = vcmp.lt.s32.totalorder %v11976_v24, 3 }
 0x359   : > { %v17614_v18 = vand.u32 2147483647, %v17598_v63  ;;  %v3578_v51 = vor.u32 4788187, %v3577_v42  ;;  %v14013_v54 = vshrl.u32 %v3663_v41, 30  ;;  %vm3737_vm9 = vcmp.lt.s32.totalorder %v11976_v24, 1 }
 0x35a   : > { %v3751_v23 = vsel %vm3739_vm0, %v13062_v52, %v13466_v27  ;;  %v3585_v29 = vsub.s32 4, %v13897_v3  ;;  %v3745_v22 = vsel %vm3737_vm9, %v3724_v0, %v3727_v30  ;;  %v3747_v56 = vsel %vm3739_vm0, %v3730_v15, %v13459_v47 }
 0x35b   : > { %vm14009_vm6 = vcmp.le.f32.partialorder %v17614_v18, 0.7853982  ;;  %v3749_v5 = vsel %vm3737_vm9, %v3727_v30, %v3730_v15  ;;  %vm3488_vm11 = vweird.f32 %v17586_v28  ;;  %v3579_v25 = vand.u32 2147483647, %v3578_v51 }
 0x35c   : > { %v3581_v59 = vcvt.s32.f32 %v3574_v10  ;;  %v3665_v1 = vshll.u32 %v14013_v54, 30  ;;  %vm3738_vm14 = vcmp.lt.s32.totalorder %v11976_v24, 2  ;;  %v3721_v52 = vshrl.u32 %v17324_v40, %v12253_v17 }
 0x35d   : > { %v3742_v27 = vsel %vm3740_vm15, %v3730_v15, 2102212464  ;;  %v3752_v47 = vsel %vm3738_vm14, %v3749_v5, %v3751_v23  ;;  %v3753_v4 = vshll.u32 %v3713_v46, 8  ;;  %vm3490_vm10 = vcmp.lt.s32.totalorder %v3489_v21, 2 }
 0x35e   : > { %v3582_v19 = vmul.f32 %v3581_v59, %v3579_v25  ;;  %v14037_v37 = vsub.s32 %v3662_v13, %v3665_v1  ;;  %v3748_v6 = vsel %vm3738_vm14, %v3745_v22, %v3747_v56  ;;  %v9641_v17 = vpop.eup %9640  ;;  %v3586_v34 = vsel %vm3501_vm5, %v3585_v29, %v13897_v3  ;;  %v17617_v25 = vld [vmem:[#allocation151_spill] sm:$0xff] }
 0x35f   : > { %v3741_v2 = vsel %vm3737_vm9, %v3721_v52, %v3724_v0  ;;  %v14051_v53 = vmul.u32.u64.low %v3753_v4, %v3752_v47  ;;  %v14052_v11 = vmul.u32.u64.high %v3753_v4, %v3752_v47, %v14051_v53  ;;  %v9643_v13 = vpop.eup %9642  ;;  %v3495_v35 = vxor.u32 2147483648, %v9641_v17 }
 0x360   : > { %v3583_v10 = vxor.u32 2147483648, %v3582_v19  ;;  %v3668_v42 = vsub.s32 0, %v14037_v37  ;;  %v3743_v41 = vsel %vm3739_vm0, %v3727_v30, %v3742_v27  ;;  %v3492_v46 = vxor.u32 2147483648, %v9643_v13 }
 0x361   : > { %vm3494_vm15 = vcmp.eq.s32.totalorder %v3489_v21, 2  ;;  %v14058_v15 = vmul.u32.u64.low %v3753_v4, %v3748_v6  ;;  %v14059_v3 = vmul.u32.u64.high %v3753_v4, %v3748_v6, %v14058_v15  ;;  %vm3491_vm4 = vcmp.eq.s32.totalorder %v3489_v21, 0 }
 0x362   : > { %v3496_v0 = vsel %vm3494_vm15, %v3495_v35, %v9643_v13  ;;  %v3584_v18 = vsel %vm3501_vm5, %v3583_v10, %v3582_v19  ;;  %vm3604_vm13 = vcmp.lt.s32.totalorder %v17603_v16, 0  ;;  %v8060_v51 = vmin.u32 %v3668_v42, %v14037_v37 }
 0x363   : > { %v3493_v23 = vsel %vm3491_vm4, %v9641_v17, %v3492_v46  ;;  %v3587_v30 = vsel %vm14009_vm6, %v17598_v63, %v3584_v18  ;;  %v3588_v29 = vsel %vm14009_vm6, 0, %v3586_v34  ;;  %v3744_v22 = vsel %vm3738_vm14, %v3741_v2, %v3743_v41 }
 0x364   : > { %v3497_v56 = vsel %vm3490_vm10, %v3493_v23, %v3496_v0  ;;  %9644 = vcosq.f32 %v3587_v30  ;;  %v3670_v5 = vclz %v8060_v51  ;;  %v3808_v59 = vand.u32 2147483647, %v17617_v25 }
 0x365   : > { %v14077_v1 = vsel %vm3488_vm11, nan, %v3497_v56  ;;  %9646 = vsinq.f32 %v3587_v30  ;;  %vm3762_vm2 = vc.u32 %v14052_v11, %v14058_v15  ;;  %v3763_v61 = vadd.s32 1, %v14059_v3 }
 0x366   : > { %8890 = vmatmul.mubr.msk.f32.gmra.mxu0 %vm4187_vm8, %v14077_v1  ;;  %9054 = vmatmul.mubr.msk.f32.gmra.mxu1 %vm4187_vm8, %v14077_v1  ;;  %v14086_v24 = vand.u32 3, %v3588_v29  ;;  %v3658_v21 = vadd.s32 %v13952_v57, %v13932_v20  ;;  %v8061_v28 = vadd.s32 4294967294, %v3670_v5  ;;  %v3760_v52 = vmul.u32 %v3753_v4, %v3744_v22 }
 0x367   : > { %v3688_v27 = vsub.s32 4, %v14013_v54  ;;  %v3764_v47 = vsel %vm3762_vm2, %v3763_v61, %v14059_v3  ;;  %v3826_v19 = vshrl.u32 %v17319_v44, %v11417_v49  ;;  %v3829_v6 = vshrl.u32 %v17320_v38, %v11417_v49 }
 0x368   : > { %vm8062_vm12 = vcmp.lt.s32.totalorder %v8061_v28, 0  ;;  %v3765_v17 = vadd.s32 %v3764_v47, %v3760_v52  ;;  %v3815_v34 = vand.u32 8388607, %v3808_v59  ;;  %v3828_v20 = vshll.u32 %v17319_v44, %v11389_v48  ;;  %v17620_v47 = vld [vmem:[#allocation4_spill] sm:$0xff] }
 0x369   : > { %v3673_v57 = vsel %vm8062_vm12, 0, %v8061_v28  ;;  %v3825_v4 = vshll.u32 %v17324_v40, %v11389_v48  ;;  %v3831_v2 = vshll.u32 %v17320_v38, %v11389_v48  ;;  %v3832_v53 = vshrl.u32 %v17177_v45, %v11417_v49 }
 0x36a   : > { %v3674_v13 = vsub.s32 32, %v3673_v57  ;;  %v3678_v35 = vsub.s32 4294967266, %v3673_v57  ;;  %v3766_v10 = vadd.s32 536870912, %v3765_v17  ;;  %v3830_v42 = vor.u32 %v3829_v6, %v3828_v20 }
 0x36b   : > { %vm14108_vm3 = vcmp.le.f32.partialorder %v3602_v39, 0.7853982  ;;  %v3689_v46 = vsel %vm3604_vm13, %v3688_v27, %v14013_v54  ;;  %v3827_v3 = vor.u32 %v3826_v19, %v3825_v4  ;;  %v3833_v0 = vor.u32 %v3832_v53, %v3831_v2 }
 0x36c   : > { %vm3594_vm5 = vcmp.eq.s32.totalorder %v14086_v24, 0  ;;  %v3675_v48 = vshll.u32 %v14037_v37, %v3673_v57  ;;  %v3676_v18 = vshrl.u32 %v3658_v21, %v3674_v13  ;;  %v3679_v51 = vadd.s32 127, %v3678_v35 }
 0x36d   : > { %v14117_v23 = vshrl.u32 %v3766_v10, 30  ;;  %v3816_v30 = vor.u32 8388608, %v3815_v34  ;;  %v3824_v39 = vshrl.u32 %v17324_v40, %v11417_v49  ;;  %vm3840_vm0 = vcmp.lt.s32.totalorder %v11408_v62, 1 }
 0x36e   : > { %vm3842_vm6 = vcmp.lt.s32.totalorder %v11408_v62, 3  ;;  %v3677_v29 = vor.u32 %v3676_v18, %v3675_v48  ;;  %v3680_v54 = vshll.u32 %v3679_v51, 23  ;;  %v3852_v56 = vsel %vm3840_vm0, %v3830_v42, %v3833_v0  ;;  %v8252_v18 = vld [vmem:[%s16825_s9 + $0x38] sm:$0xff] }
 0x36f   : > { %v3768_v22 = vshll.u32 %v14117_v23, 30  ;;  %vm3597_vm9 = vcmp.eq.s32.totalorder %v14086_v24, 2  ;;  %v3691_v37 = vsel %vm14108_vm3, 0, %v3689_v46  ;;  %vm3841_vm11 = vcmp.lt.s32.totalorder %v11408_v62, 2  ;;  %9121 = vmatprep.subr.mxu1 %v8252_v18 }
 0x370   : > { %v3854_v49 = vsel %vm3842_vm6, %v12142_v55, %v12655_v31  ;;  %v3681_v5 = vor.u32 4788187, %v3680_v54  ;;  %v3844_v21 = vsel %vm3840_vm0, %v3824_v39, %v3827_v3  ;;  %v3845_v28 = vsel %vm3843_vm7, %v3833_v0, 2102212464  ;;  %9122 = vmatpush3.msra.mxu1 %v8252_v18 }
 0x371   : > { %v14132_v61 = vsub.s32 %v3765_v17, %v3768_v22  ;;  %v9645_v52 = vpop.eup %9644  ;;  %v3848_v27 = vsel %vm3840_vm0, %v3827_v3, %v3830_v42  ;;  %v3850_v19 = vsel %vm3842_vm6, %v3833_v0, %v17620_v47  ;;  %v3855_v6 = vsel %vm3841_vm11, %v3852_v56, %v3854_v49 }
 0x372   : > { %v3856_v34 = vshll.u32 %v3816_v30, 8  ;;  %v9647_v20 = vpop.eup %9646  ;;  %v3598_v57 = vxor.u32 2147483648, %v9645_v52  ;;  %v3682_v55 = vand.u32 2147483647, %v3681_v5  ;;  %v3684_v31 = vcvt.s32.f32 %v3677_v29 }
 0x373   : > { %v3771_v17 = vsub.s32 0, %v14132_v61  ;;  %v3595_v4 = vxor.u32 2147483648, %v9647_v20  ;;  %v3846_v2 = vsel %vm3842_vm6, %v3830_v42, %v3845_v28  ;;  %v3851_v3 = vsel %vm3841_vm11, %v3848_v27, %v3850_v19  ;;  %v17621_v42 = vld [vmem:[#allocation163_spill] sm:$0xff] }
 0x374   : > { %v14144_v53 = vmul.u32.u64.low %v3856_v34, %v3855_v6  ;;  %v14145_v13 = vmul.u32.u64.high %v3856_v34, %v3855_v6, %v14144_v53  ;;  %v3599_v35 = vsel %vm3597_vm9, %v3598_v57, %v9647_v20  ;;  %v3685_v10 = vmul.f32 %v3684_v31, %v3682_v55 }
 0x375   : > { %v8064_v46 = vmin.u32 %v3771_v17, %v14132_v61  ;;  %vm3591_vm7 = vweird.f32 %v17598_v63  ;;  %vm3593_vm14 = vcmp.lt.s32.totalorder %v14086_v24, 2  ;;  %v3596_v0 = vsel %vm3594_vm5, %v9645_v52, %v3595_v4 }
 0x376   : > { %v3911_v48 = vand.u32 2147483647, %v17621_v42  ;;  %v3600_v51 = vsel %vm3593_vm14, %v3596_v0, %v3599_v35  ;;  %v3686_v30 = vxor.u32 2147483648, %v3685_v10  ;;  %v3847_v29 = vsel %vm3841_vm11, %v3844_v21, %v3846_v2 }
 0x377   : > { %v3773_v39 = vclz %v8064_v46  ;;  %v14162_v54 = vsel %vm3591_vm7, nan, %v3600_v51  ;;  %v14164_v63 = vand.u32 3, %v3691_v37  ;;  %v3761_v56 = vadd.s32 %v14058_v15, %v14052_v11 }
 0x378   : > { %v14166_v22 = vmul.u32.u64.low %v3856_v34, %v3851_v3  ;;  %v14167_v24 = vmul.u32.u64.high %v3856_v34, %v3851_v3, %v14166_v22  ;;  %8892 = vmatprep.mubr.msk.f32.mxu0 %vm4187_vm8, %v14162_v54  ;;  %9056 = vmatprep.mubr.msk.f32.mxu1 %vm4187_vm8, %v14162_v54  ;;  %v3687_v62 = vsel %vm3604_vm13, %v3686_v30, %v3685_v10  ;;  %v3791_v37 = vsub.s32 4, %v14117_v23 }
 0x379   : > { %v8065_v49 = vadd.s32 4294967294, %v3773_v39  ;;  %v3690_v5 = vsel %vm14108_vm3, %v17603_v16, %v3687_v62  ;;  %v3863_v21 = vmul.u32 %v3856_v34, %v3847_v29  ;;  %v3918_v28 = vand.u32 8388607, %v3911_v48 }
 0x37a   : > { %vm3865_vm10 = vc.u32 %v14145_v13, %v14166_v22  ;;  %9648 = vcosq.f32 %v3690_v5  ;;  %v3928_v52 = vshll.u32 %v17324_v40, %v13416_v26  ;;  %v3929_v11 = vshrl.u32 %v17319_v44, %v13662_v8 }
 0x37b   : > { %vm8066_vm15 = vcmp.lt.s32.totalorder %v8065_v49, 0  ;;  %9650 = vsinq.f32 %v3690_v5  ;;  %v3866_v41 = vadd.s32 1, %v14167_v24  ;;  %v3927_v27 = vshrl.u32 %v17324_v40, %v13662_v8 }
 0x37c   : > { %v3776_v15 = vsel %vm8066_vm15, 0, %v8065_v49  ;;  %v3930_v6 = vor.u32 %v3929_v11, %v3928_v52  ;;  %v3931_v34 = vshll.u32 %v17319_v44, %v13416_v26  ;;  %v3932_v57 = vshrl.u32 %v17320_v38, %v13662_v8 }
 0x37d   : > { %v3777_v47 = vsub.s32 32, %v3776_v15  ;;  %v3781_v19 = vsub.s32 4294967266, %v3776_v15  ;;  %v3867_v20 = vsel %vm3865_vm10, %v3866_v41, %v14167_v24  ;;  %v3934_v55 = vshll.u32 %v17320_v38, %v13416_v26 }
 0x37e   : > { %v3935_v31 = vshrl.u32 %v17177_v45, %v13662_v8  ;;  %v3778_v17 = vshll.u32 %v14132_v61, %v3776_v15  ;;  %v3868_v53 = vadd.s32 %v3867_v20, %v3863_v21  ;;  %v3919_v35 = vor.u32 8388608, %v3918_v28 }
 0x37f   : > { %v3779_v4 = vshrl.u32 %v3761_v56, %v3777_v47  ;;  %v3782_v2 = vadd.s32 127, %v3781_v19  ;;  %v3933_v10 = vor.u32 %v3932_v57, %v3931_v34  ;;  %vm3943_vm4 = vcmp.lt.s32.totalorder %v13162_v58, 1 }
 0x380   : > { %v3936_v46 = vor.u32 %v3935_v31, %v3934_v55  ;;  %v3869_v18 = vadd.s32 536870912, %v3868_v53  ;;  %vm3945_vm13 = vcmp.lt.s32.totalorder %v13162_v58, 3  ;;  %vm3944_vm2 = vcmp.lt.s32.totalorder %v13162_v58, 2 }
 0x381   : > { %v3780_v3 = vor.u32 %v3779_v4, %v3778_v17  ;;  %v3783_v0 = vshll.u32 %v3782_v2, 23  ;;  %v3951_v51 = vsel %vm3943_vm4, %v3930_v6, %v3933_v10  ;;  %v3947_v29 = vsel %vm3943_vm4, %v3927_v27, %v3930_v6  ;;  %v8251_v27 = vld [vmem:[%s16825_s9 + $0x30] sm:$0xff]  ;;  %v17625_v2 = vld [vmem:[#allocation2_spill] sm:$0xff] }
 0x382   : > { %v3948_v26 = vsel %vm3946_vm1, %v3936_v46, 2102212464  ;;  %v3953_v8 = vsel %vm3945_vm13, %v3936_v46, %v13966_v32  ;;  %v3955_v61 = vsel %vm3943_vm4, %v3933_v10, %v3936_v46  ;;  %v14208_v39 = vshrl.u32 %v3869_v18, 30  ;;  %9123 = vmatprep.subr.mxu1 %v8251_v27 }
 0x383   : > { %v3784_v30 = vor.u32 4788187, %v3783_v0  ;;  %v3787_v24 = vcvt.s32.f32 %v3780_v3  ;;  %v3954_v62 = vsel %vm3944_vm2, %v3951_v51, %v3953_v8  ;;  %v3957_v56 = vsel %vm3945_vm13, %v13868_v50, %v13973_v33  ;;  %v17622_v50 = vld [vmem:[#allocation23_spill] sm:$0xff]  ;;  %9124 = vmatpush3.msra.mxu1 %v8251_v27  ;;  %v17626_v8 = vld [vmem:[#allocation160_spill] sm:$0xff] }
 0x384   : > { %v3959_v49 = vshll.u32 %v3919_v35, 8  ;;  %v3871_v21 = vshll.u32 %v14208_v39, 30  ;;  %v3949_v28 = vsel %vm3945_vm13, %v3933_v10, %v3948_v26  ;;  %v3958_v32 = vsel %vm3944_vm2, %v3955_v61, %v3957_v56 }
 0x385   : > { %v3785_v5 = vand.u32 2147483647, %v3784_v30  ;;  %v14230_v33 = vshrl.u32 %v17200_v14, %v17622_v50  ;;  %vm3707_vm1 = vcmp.lt.s32.totalorder %v17613_v36, 0  ;;  %vm3694_vm12 = vweird.f32 %v17603_v16  ;;  %v17627_v30 = vld [vmem:[#allocation47_spill] sm:$0xff] }
 0x386   : > { %v14218_v52 = vmul.u32.u64.low %v3959_v49, %v3958_v32  ;;  %v14219_v11 = vmul.u32.u64.high %v3959_v49, %v3958_v32, %v14218_v52  ;;  %v14221_v15 = vmul.u32.u64.low %v3959_v49, %v3954_v62  ;;  %v14222_v41 = vmul.u32.u64.high %v3959_v49, %v3954_v62, %v14221_v15  ;;  %v17629_v62 = vld [vmem:[#allocation3_spill] sm:$0xff] }
 0x387   : > { %v3788_v47 = vmul.f32 %v3787_v24, %v3785_v5  ;;  %v14233_v19 = vsub.s32 %v3868_v53, %v3871_v21  ;;  %v9649_v6 = vpop.eup %9648  ;;  %vm3696_vm3 = vcmp.lt.s32.totalorder %v14164_v63, 2  ;;  %vm14239_vm5 = vcmp.le.f32.partialorder %v3705_v7, 0.7853982  ;;  %v17630_v32 = vld [vmem:[#allocation7_spill] sm:$0xff] }
 0x388   : > { %v3792_v14 = vsel %vm3707_vm1, %v3791_v37, %v14117_v23  ;;  %v9651_v20 = vpop.eup %9650  ;;  %v3701_v57 = vxor.u32 2147483648, %v9649_v6  ;;  %v3950_v17 = vsel %vm3944_vm2, %v3947_v29, %v3949_v28  ;;  %vm3700_vm0 = vcmp.eq.s32.totalorder %v14164_v63, 2  ;;  %v17628_v29 = vld [vmem:[#allocation16_spill] sm:$0xff] }
 0x389   : > { %v3789_v55 = vxor.u32 2147483648, %v3788_v47  ;;  %v3874_v31 = vsub.s32 0, %v14233_v19  ;;  %v3698_v4 = vxor.u32 2147483648, %v9651_v20  ;;  %vm3968_vm6 = vc.u32 %v14219_v11, %v14221_v15 }
 0x38a   : > { %v3969_v7 = vadd.s32 1, %v14222_v41  ;;  %vm4049_vm9 = vcmp.lt.s32.totalorder %v17625_v2, 4  ;;  %vm3697_vm11 = vcmp.eq.s32.totalorder %v14164_v63, 0  ;;  %v3702_v23 = vsel %vm3700_vm0, %v3701_v57, %v9651_v20 }
 0x38b   : > { %v3790_v37 = vsel %vm3707_vm1, %v3789_v55, %v3788_v47  ;;  %v8068_v53 = vmin.u32 %v3874_v31, %v14233_v19  ;;  %v3699_v58 = vsel %vm3697_vm11, %v9649_v6, %v3698_v4  ;;  %v3794_v10 = vsel %vm14239_vm5, 0, %v3792_v14 }
 0x38c   : > { %v3793_v35 = vsel %vm14239_vm5, %v17613_v36, %v3790_v37  ;;  %v3966_v46 = vmul.u32 %v3959_v49, %v3950_v17  ;;  %v3703_v3 = vsel %vm3696_vm3, %v3699_v58, %v3702_v23  ;;  %v3970_v18 = vsel %vm3968_vm6, %v3969_v7, %v14222_v41  ;;  %v8250_v23 = vld [vmem:[%s16825_s9 + $0x28] sm:$0xff] }
 0x38d   : > { %9652 = vcosq.f32 %v3793_v35  ;;  %v3876_v0 = vclz %v8068_v53  ;;  %v14270_v26 = vsel %vm3694_vm12, nan, %v3703_v3  ;;  %v4014_v61 = vand.u32 2147483647, %v17626_v8  ;;  %9125 = vmatprep.subr.mxu1 %v8250_v23 }
 0x38e   : > { %9654 = vsinq.f32 %v3793_v35  ;;  %v3971_v51 = vadd.s32 %v3970_v18, %v3966_v46  ;;  %v4042_v24 = vor.u32 %v17628_v29, %v17627_v30  ;;  %v4045_v56 = vor.u32 %v14230_v33, %v17629_v62  ;;  %8893 = vmatmul.mubr.msk.f32.gmra.mxu0 %vm4187_vm8, %v14270_v26  ;;  %9057 = vmatmul.mubr.msk.f32.gmra.mxu1 %vm4187_vm8, %v14270_v26 }
 0x38f   : > { %v14281_v63 = vand.u32 3, %v3794_v10  ;;  %v8069_v16 = vadd.s32 4294967294, %v3876_v0  ;;  %v3864_v49 = vadd.s32 %v14166_v22, %v14145_v13  ;;  %v4032_v21 = vshrl.u32 %v17319_v44, %v17622_v50  ;;  %9126 = vmatpush3.msra.mxu1 %v8250_v23 }
 0x390   : > { %v3972_v5 = vadd.s32 536870912, %v3971_v51  ;;  %v4035_v28 = vshrl.u32 %v17320_v38, %v17622_v50  ;;  %v4031_v52 = vshll.u32 %v17324_v40, %v17630_v32  ;;  %v4034_v41 = vshll.u32 %v17319_v44, %v17630_v32 }
 0x391   : > { %vm8070_vm7 = vcmp.lt.s32.totalorder %v8069_v16, 0  ;;  %v4038_v27 = vshrl.u32 %v17177_v45, %v17622_v50  ;;  %v4021_v13 = vand.u32 8388607, %v4014_v61  ;;  %v4037_v22 = vshll.u32 %v17320_v38, %v17630_v32 }
 0x392   : > { %v3879_v33 = vsel %vm8070_vm7, 0, %v8069_v16  ;;  %v14295_v47 = vshrl.u32 %v3972_v5, 30  ;;  %v4033_v14 = vor.u32 %v4032_v21, %v4031_v52  ;;  %v4036_v20 = vor.u32 %v4035_v28, %v4034_v41 }
 0x393   : > { %v3880_v6 = vsub.s32 32, %v3879_v33  ;;  %v3884_v34 = vsub.s32 4294967266, %v3879_v33  ;;  %v4055_v57 = vsel %vm4049_vm9, %v4042_v24, 920167782  ;;  %v4039_v55 = vor.u32 %v4038_v27, %v4037_v22 }
 0x394   : > { %v3974_v44 = vshll.u32 %v14295_v47, 30  ;;  %v4059_v45 = vsel %vm4049_vm9, %v4045_v56, 1326507024  ;;  %v3881_v31 = vshll.u32 %v14233_v19, %v3879_v33  ;;  %vm3799_vm14 = vcmp.lt.s32.totalorder %v14281_v63, 2 }
 0x395   : > { %v3882_v17 = vshrl.u32 %v3864_v49, %v3880_v6  ;;  %v3885_v4 = vadd.s32 127, %v3884_v34  ;;  %vm3800_vm10 = vcmp.eq.s32.totalorder %v14281_v63, 0  ;;  %v4022_v7 = vor.u32 8388608, %v4021_v13  ;;  %v8249_v34 = vld [vmem:[%s16825_s9 + $0x20] sm:$0xff] }
 0x396   : > { %v14309_v38 = vsub.s32 %v3971_v51, %v3974_v44  ;;  %vm4046_vm15 = vcmp.lt.s32.totalorder %v17625_v2, 1  ;;  %vm4048_vm4 = vcmp.lt.s32.totalorder %v17625_v2, 3  ;;  %vm3803_vm13 = vcmp.eq.s32.totalorder %v14281_v63, 2  ;;  %9127 = vmatprep.subr.mxu1 %v8249_v34 }
 0x397   : > { %v3883_v37 = vor.u32 %v3882_v17, %v3881_v31  ;;  %v3886_v53 = vshll.u32 %v3885_v4, 23  ;;  %v4054_v19 = vsel %vm4046_vm15, %v4033_v14, %v4036_v20  ;;  %v4030_v35 = vshrl.u32 %v17324_v40, %v17622_v50  ;;  %9128 = vmatpush3.msra.mxu1 %v8249_v34 }
 0x398   : > { %v3977_v58 = vsub.s32 0, %v14309_v38  ;;  %v4056_v10 = vsel %vm4048_vm4, %v4039_v55, %v4055_v57  ;;  %vm4047_vm2 = vcmp.lt.s32.totalorder %v17625_v2, 2  ;;  %v4051_v3 = vsel %vm4049_vm9, %v4039_v55, 2102212464 }
 0x399   : > { %v3887_v46 = vor.u32 4788187, %v3886_v53  ;;  %v4058_v0 = vsel %vm4046_vm15, %v4036_v20, %v4039_v55  ;;  %v3890_v51 = vcvt.s32.f32 %v3883_v37  ;;  %v4050_v40 = vsel %vm4046_vm15, %v4030_v35, %v4033_v14  ;;  %v14385_v35 = vpop.f32.mrf.mxu1 }
 0x39a   : > { %v9653_v18 = vpop.eup %9652  ;;  %v8072_v30 = vmin.u32 %v3977_v58, %v14309_v38  ;;  %v4057_v50 = vsel %vm4047_vm2, %v4054_v19, %v4056_v10  ;;  %v4060_v16 = vsel %vm4048_vm4, %v4042_v24, %v4059_v45  ;;  %v4062_v49 = vshll.u32 %v4022_v7, 8 }
 0x39b   : > { %v9655_v29 = vpop.eup %9654  ;;  %v3804_v62 = vxor.u32 2147483648, %v9653_v18  ;;  %v3888_v56 = vand.u32 2147483647, %v3887_v46  ;;  %v4052_v28 = vsel %vm4048_vm4, %v4036_v20, %v4051_v3  ;;  %v4061_v32 = vsel %vm4047_vm2, %v4058_v0, %v4060_v16 }
 0x39c   : > { %v3801_v5 = vxor.u32 2147483648, %v9655_v29  ;;  %v3979_v21 = vclz %v8072_v30  ;;  %v14342_v27 = vmul.u32.u64.low %v4062_v49, %v4061_v32  ;;  %v14343_v33 = vmul.u32.u64.high %v4062_v49, %v4061_v32, %v14342_v27 }
 0x39d   : > { %v3805_v52 = vsel %vm3803_vm13, %v3804_v62, %v9655_v29  ;;  %v3891_v41 = vmul.f32 %v3890_v51, %v3888_v56  ;;  %v14347_v22 = vmul.u32.u64.low %v4062_v49, %v4057_v50  ;;  %v14348_v6 = vmul.u32.u64.high %v4062_v49, %v4057_v50, %v14347_v22 }
 0x39e   : > { %v3802_v13 = vsel %vm3800_vm10, %v9653_v18, %v3801_v5  ;;  %v8073_v24 = vadd.s32 4294967294, %v3979_v21  ;;  %vm3797_vm1 = vweird.f32 %v17613_v36  ;;  %vm3810_vm12 = vcmp.lt.s32.totalorder %v17617_v25, 0 }
 0x39f   : > { %v3806_v14 = vsel %vm3799_vm14, %v3802_v13, %v3805_v52  ;;  %v3892_v20 = vxor.u32 2147483648, %v3891_v41  ;;  %v4053_v44 = vsel %vm4047_vm2, %v4050_v40, %v4052_v28  ;;  %vm14368_vm5 = vcmp.le.f32.partialorder %v3808_v59, 0.7853982 }
 0x3a0   : > { %v14357_v57 = vsel %vm3797_vm1, nan, %v3806_v14  ;;  %vm8074_vm3 = vcmp.lt.s32.totalorder %v8073_v24, 0  ;;  %v3967_v2 = vadd.s32 %v14221_v15, %v14219_v11  ;;  %vm4071_vm0 = vc.u32 %v14343_v33, %v14347_v22 }
 0x3a1   : > { %8895 = vmatprep.mubr.msk.f32.mxu0 %vm4187_vm8, %v14357_v57  ;;  %9059 = vmatprep.mubr.msk.f32.mxu1 %vm4187_vm8, %v14357_v57  ;;  %v3893_v63 = vsel %vm3810_vm12, %v3892_v20, %v3891_v41  ;;  %v3982_v55 = vsel %vm8074_vm3, 0, %v8073_v24  ;;  %v3894_v59 = vsub.s32 4, %v14208_v39  ;;  %v4069_v4 = vmul.u32 %v4062_v49, %v4053_v44 }
 0x3a2   : > { %v3896_v45 = vsel %vm14368_vm5, %v17617_v25, %v3893_v63  ;;  %v3983_v31 = vsub.s32 32, %v3982_v55  ;;  %v3987_v17 = vsub.s32 4294967266, %v3982_v55  ;;  %v4072_v7 = vadd.s32 1, %v14348_v6  ;;  %v14422_v63 = vld [vmem:[%s16822_s6 + $0x58] sm:$0xff] }
 0x3a3   : > { %9656 = vcosq.f32 %v3896_v45  ;;  %v3984_v23 = vshll.u32 %v14309_v38, %v3982_v55  ;;  %v3895_v10 = vsel %vm3810_vm12, %v3894_v59, %v14208_v39  ;;  %v14392_v38 = vpop.f32.mrf.mxu1  ;;  %vm3913_vm6 = vcmp.lt.s32.totalorder %v17621_v42, 0  ;;  %9229 = vmatprep.subr.mxu1 %v14422_v63 }
 0x3a4   : > { %9658 = vsinq.f32 %v3896_v45  ;;  %v3985_v11 = vshrl.u32 %v3967_v2, %v3983_v31  ;;  %v3988_v15 = vadd.s32 127, %v3987_v17  ;;  %v4073_v37 = vsel %vm4071_vm0, %v4072_v7, %v14348_v6 }
 0x3a5   : > { %v4074_v58 = vadd.s32 %v4073_v37, %v4069_v4  ;;  %v3897_v30 = vsel %vm14368_vm5, 0, %v3895_v10  ;;  %v14397_v16 = vpop.f32.mrf.mxu1  ;;  %vm14402_vm9 = vcmp.le.f32.partialorder %v3911_v48, 0.7853982  ;;  %v3997_v24 = vsub.s32 4, %v14295_v47 }
 0x3a6   : > { %v3986_v53 = vor.u32 %v3985_v11, %v3984_v23  ;;  %v3989_v19 = vshll.u32 %v3988_v15, 23  ;;  %v3901_v29 = vand.u32 3, %v3897_v30  ;;  %vm3900_vm10 = vweird.f32 %v17617_v25 }
 0x3a7   : > { %v4075_v3 = vadd.s32 536870912, %v4074_v58  ;;  %v14411_v13 = vpop.f32.mrf.mxu1  ;;  %v3998_v25 = vsel %vm3913_vm6, %v3997_v24, %v14295_v47  ;;  %v4070_v45 = vadd.s32 %v14347_v22, %v14343_v33  ;;  %vm4003_vm1 = vweird.f32 %v17621_v42 }
 0x3a8   : > { %v3990_v46 = vor.u32 4788187, %v3989_v19  ;;  %v3993_v18 = vcvt.s32.f32 %v3986_v53  ;;  %vm3906_vm11 = vcmp.eq.s32.totalorder %v3901_v29, 2  ;;  %vm3903_vm7 = vcmp.eq.s32.totalorder %v3901_v29, 0 }
 0x3a9   : > { %v14390_v51 = vshrl.u32 %v4075_v3, 30  ;;  %vm3902_vm14 = vcmp.lt.s32.totalorder %v3901_v29, 2  ;;  %v14417_v36 = vpop.f32.mrf.mxu1  ;;  %v4000_v55 = vsel %vm14402_vm9, 0, %v3998_v25  ;;  %vm4016_vm12 = vcmp.lt.s32.totalorder %v17626_v8, 0 }
 0x3aa   : > { %v3991_v0 = vand.u32 2147483647, %v3990_v46  ;;  %v4004_v11 = vand.u32 3, %v4000_v55  ;;  %vm4015_vm3 = vcmp.le.f32.partialorder %v4014_v61, 0.7853982  ;;  %v14488_v55 = vld [vmem:[%s14469_s18 + $0x8] sm:$0xff] }
 0x3ab   : > { %v4077_v50 = vshll.u32 %v14390_v51, 30  ;;  %v14436_v59 = vpop.f32.mrf.mxu1  ;;  %v4100_v49 = vsub.s32 4, %v14390_v51 }
 0x3ac   : > { %v3994_v40 = vmul.f32 %v3993_v18, %v3991_v0  ;;  %vm4009_vm4 = vcmp.eq.s32.totalorder %v4004_v11, 2  ;;  %vm4006_vm13 = vcmp.eq.s32.totalorder %v4004_v11, 0  ;;  %vm4005_vm2 = vcmp.lt.s32.totalorder %v4004_v11, 2  ;;  %v14519_v11 = vld [vmem:[%s14469_s18 + $0x20] sm:$0xff] }
 0x3ad   : > { %v4078_v56 = vsub.s32 %v4074_v58, %v4077_v50  ;;  %v14438_v37 = vpop.f32.mrf.mxu1 }
 0x3ae   : > { %v3995_v62 = vxor.u32 2147483648, %v3994_v40 }
 0x3af   : > { %v4080_v21 = vsub.s32 0, %v4078_v56  ;;  %v14440_v0 = vpop.f32.mrf.mxu1 }
 0x3b0   : > { %v9657_v39 = vpop.eup %9656  ;;  %v3996_v5 = vsel %vm3913_vm6, %v3995_v62, %v3994_v40 }
 0x3b1   : > { %v9659_v28 = vpop.eup %9658  ;;  %v3907_v32 = vxor.u32 2147483648, %v9657_v39  ;;  %v3999_v52 = vsel %vm14402_vm9, %v17621_v42, %v3996_v5  ;;  %v8076_v27 = vmin.u32 %v4080_v21, %v4078_v56  ;;  %v14449_v62 = vpop.f32.mrf.mxu1  ;;  %v4101_v21 = vsel %vm4016_vm12, %v4100_v49, %v14390_v51  ;;  %v14594_v49 = vld [vmem:[%s14469_s18 + $0x48] sm:$0xff] }
 0x3b2   : > { %v3904_v41 = vxor.u32 2147483648, %v9659_v28  ;;  %9660 = vcosq.f32 %v3999_v52  ;;  %vm4106_vm9 = vweird.f32 %v17626_v8 }
 0x3b3   : > { %v3908_v48 = vsel %vm3906_vm11, %v3907_v32, %v9659_v28  ;;  %9662 = vsinq.f32 %v3999_v52  ;;  %v4082_v34 = vclz %v8076_v27  ;;  %v4103_v28 = vsel %vm4015_vm3, 0, %v4101_v21 }
 0x3b4   : > { %v3905_v6 = vsel %vm3903_vm7, %v9657_v39, %v3904_v41  ;;  %v14455_v39 = vpop.f32.mrf.mxu1  ;;  %v4107_v52 = vand.u32 3, %v4103_v28  ;;  %vm17638_vm11 = vcmask 261120   ;;  %v14599_v28 = vld [vmem:[%s14469_s18 + $0x50] sm:$0xff] }
 0x3b5   : > { %v3909_v14 = vsel %vm3902_vm14, %v3905_v6, %v3908_v48  ;;  %v8077_v44 = vadd.s32 4294967294, %v4082_v34  ;;  %17635 = vst [vmem:[#allocation38_spill] sm:$0xff] %v14455_v39  ;;  %vm17639_vm7 = vmmov %vm17638_vm11  ;;  %v14765_v39 = vld [vmem:[%s14469_s18 + $0xd0] sm:$0xff] }
 0x3b6   : > { %v14415_v20 = vsel %vm3900_vm10, nan, %v3909_v14  ;;  %v14458_v5 = vpop.f32.mrf.mxu1  ;;  %vm4112_vm5 = vcmp.eq.s32.totalorder %v4107_v52, 2  ;;  %vm4109_vm0 = vcmp.eq.s32.totalorder %v4107_v52, 0  ;;  %vm4108_vm6 = vcmp.lt.s32.totalorder %v4107_v52, 2  ;;  %vm17640_vm14 = vmmov %vm17639_vm7  ;;  %17701 = vst [vmem:[#allocation45_spill] sm:$0xff] %v14765_v39 }
 0x3b7   : > { %8896 = vmatmul.mubr.msk.f32.gmra.mxu0 %vm4187_vm8, %v14415_v20  ;;  %9060 = vmatmul.mubr.msk.f32.gmra.mxu1 %vm4187_vm8, %v14415_v20  ;;  %vm8078_vm15 = vcmp.lt.s32.totalorder %v8077_v44, 0  ;;  %vm17641_vm10 = vmmov %vm17639_vm7 }
 0x3b8   : > { %v4085_v2 = vsel %vm8078_vm15, 0, %v8077_v44  ;;  %v14461_v32 = vpop.f32.mrf.mxu1  ;;  %v14475_v44 = vld [vmem:[%s14469_s18] sm:$0xff]  ;;  %vm17643_vm15 = vmmov %vm17639_vm7 }
 0x3b9   : > { %v4086_v31 = vsub.s32 32, %v4085_v2  ;;  %v4090_v17 = vsub.s32 4294967266, %v4085_v2  ;;  %v4087_v4 = vshll.u32 %v4078_v56, %v4085_v2  ;;  %17636 = vst [vmem:[#allocation39_spill] sm:$0xff] %v14461_v32 }
 0x3ba   : > { %v14463_v41 = vpop.f32.mrf.mxu1 }
 0x3bb   : > { %v4088_v7 = vshrl.u32 %v4070_v45, %v4086_v31  ;;  %v4091_v23 = vadd.s32 127, %v4090_v17  ;;  %v14493_v45 = vld [vmem:[%s14469_s18 + $0x10] sm:$0xff] }
 0x3bc   : > { %v14471_v6 = vpop.f32.mrf.mxu1  ;;  %v8179_v17 = vld [vmem:[%s16822_s6 + $0x30] sm:$0xff] }
 0x3bd   : > { %v4089_v15 = vor.u32 %v4088_v7, %v4087_v4  ;;  %v4092_v47 = vshll.u32 %v4091_v23, 23  ;;  %17637 = vst [vmem:[#allocation55_spill] sm:$0xff] %v14471_v6  ;;  %v8178_v7 = vld [vmem:[%s16822_s6 + $0x28] sm:$0xff]  ;;  %v14727_v6 = vld [vmem:[%s14469_s18 + $0xb0] sm:$0xff] }
 0x3be   : > { %v14483_v2 = vpop.f32.mrf.mxu1 }
 0x3bf   : > { %v9661_v53 = vpop.eup %9660  ;;  %v4093_v10 = vor.u32 4788187, %v4092_v47  ;;  %v4096_v3 = vcvt.s32.f32 %v4089_v15 }
 0x3c0   : > { %v9663_v19 = vpop.eup %9662  ;;  %v4010_v58 = vxor.u32 2147483648, %v9661_v53  ;;  %v14505_v4 = vpop.f32.mrf.mxu1 }
 0x3c1   : > { %v4007_v46 = vxor.u32 2147483648, %v9663_v19  ;;  %v4094_v22 = vand.u32 2147483647, %v4093_v10  ;;  %17642 = vst [vmem:[#allocation44_spill] sm:$0xff] %v14505_v4  ;;  %v14547_v10 = vld [vmem:[%s14469_s18 + $0x30] sm:$0xff]  ;;  %v14706_v4 = vld [vmem:[%s14469_s18 + $0xa0] sm:$0xff] }
 0x3c2   : > { %v4011_v33 = vsel %vm4009_vm4, %v4010_v58, %v9663_v19  ;;  %vm17644_vm4 = vmmov %vm17639_vm7  ;;  %v14529_v47 = vpop.f32.mrf.mxu1  ;;  %v14537_v19 = vld [vmem:[%s14469_s18 + $0x28] sm:$0xff] }
 0x3c3   : > { %v4008_v18 = vsel %vm4006_vm13, %v9661_v53, %v4007_v46  ;;  %v4097_v40 = vmul.f32 %v4096_v3, %v4094_v22  ;;  %vm17645_vm13 = vmmov %vm17644_vm4  ;;  %v14567_v3 = vld [vmem:[%s14469_s18 + $0x38] sm:$0xff] }
 0x3c4   : > { %v4012_v30 = vsel %vm4005_vm2, %v4008_v18, %v4011_v33  ;;  %vm17646_vm2 = vmmov %vm17644_vm4  ;;  %v14559_v33 = vpop.f32.mrf.mxu1  ;;  %v8288_v18 = vld [vmem:[%s16822_s6 + $0x48] sm:$0xff] }
 0x3c5   : > { %v14443_v50 = vsel %vm4003_vm1, nan, %v4012_v30  ;;  %v4098_v29 = vxor.u32 2147483648, %v4097_v40  ;;  %vm17647_vm1 = vmmov %vm17646_vm2  ;;  %17650 = vst [vmem:[#allocation54_spill] sm:$0xff] %v14559_v33 }
 0x3c6   : > { %8898 = vmatprep.mubr.msk.f32.mxu0 %vm4187_vm8, %v14443_v50  ;;  %9062 = vmatprep.mubr.msk.f32.mxu1 %vm4187_vm8, %v14443_v50 }
 0x3c7   : > { %v4099_v56 = vsel %vm4016_vm12, %v4098_v29, %v4097_v40  ;;  %vm17648_vm12 = vmmov %vm17647_vm1  ;;  %v14575_v40 = vld [vmem:[%s14469_s18 + $0x40] sm:$0xff] }
 0x3c8   : > { %v4102_v42 = vsel %vm4015_vm3, %v17626_v8, %v4099_v56  ;;  %v8855_v8 = vpop.f32.mrf.mxu0  ;;  %vm17649_vm3 = vmmov %vm17647_vm1  ;;  %v14586_v56 = vpop.f32.mrf.mxu1 }
 0x3c9   : > { %9664 = vcosq.f32 %v4102_v42  ;;  %v14496_v31 = vadd.f32 %v14385_v35, %v8855_v8  ;;  %v14511_v35 = vld [vmem:[%s14469_s18 + $0x18] sm:$0xff]  ;;  %v14639_v8 = vld [vmem:[%s16827_s11 + $0x10] sm:$0xff] }
 0x3ca   : > { %9666 = vsinq.f32 %v4102_v42  ;;  %v14516_v23 = vpop.f32.mrf.mxu0  ;;  %v14607_v52 = vpop.f32.mrf.mxu1 }
 0x3cb   : > { %17659 = vst [vmem:[#allocation5_spill] sm:$0xff] %v14607_v52  ;;  %v14701_v52 = vld [vmem:[%s14469_s18 + $0x98] sm:$0xff] }
 0x3cc   : > { %v8858_v15 = vpop.f32.mrf.mxu0 }
 0x3cd   : > { %v14532_v53 = vadd.f32 %v14397_v16, %v8858_v15  ;;  %v8289_v16 = vld [vmem:[%s16822_s6 + $0x50] sm:$0xff] }
 0x3ce   : > { %v14544_v58 = vpop.f32.mrf.mxu0 }
 0x3d0   : > { %v8861_v46 = vpop.f32.mrf.mxu0 }
 0x3d1   : > { %v14562_v22 = vadd.f32 %v14417_v36, %v8861_v46  ;;  %v8287_v36 = vld [vmem:[%s16822_s6 + $0x40] sm:$0xff] }
 0x3d2   : > { %v14572_v30 = vpop.f32.mrf.mxu0 }
 0x3d4   : > { %v8864_v29 = vpop.f32.mrf.mxu0 }
 0x3d5   : > { %v14589_v42 = vadd.f32 %v14438_v37, %v8864_v29 }
 0x3d6   : > { %v9665_v61 = vpop.eup %9664  ;;  %v14596_v21 = vpop.f32.mrf.mxu0 }
 0x3d7   : > { %v9667_v27 = vpop.eup %9666  ;;  %v4113_v48 = vxor.u32 2147483648, %v9665_v61 }
 0x3d8   : > { %v4110_v24 = vxor.u32 2147483648, %v9667_v27  ;;  %v8867_v37 = vpop.f32.mrf.mxu0 }
 0x3d9   : > { %v4114_v51 = vsel %vm4112_vm5, %v4113_v48, %v9667_v27  ;;  %vm17651_vm5 = vmmov %vm17647_vm1  ;;  %v14615_v27 = vld [vmem:[%s14469_s18 + $0x58] sm:$0xff] }
 0x3da   : > { %v4111_v34 = vsel %vm4109_vm0, %v9665_v61, %v4110_v24  ;;  %vm17652_vm0 = vmmov %vm17647_vm1  ;;  %v14610_v61 = vadd.f32 %v14449_v62, %v8867_v37  ;;  %v14617_v48 = vpop.f32.mrf.mxu0  ;;  %v14620_v24 = vld [vmem:[%s14469_s18 + $0x60] sm:$0xff]  ;;  %v8941_v62 = vpop.f32.mrf.mxu1  ;;  %v14680_v37 = vld [vmem:[%s14469_s18 + $0x88] sm:$0xff] }
 0x3db   : > { %v4115_v14 = vsel %vm4108_vm6, %v4111_v34, %v4114_v51  ;;  %vm17653_vm6 = vmmov %vm17652_vm0  ;;  %17661 = vst [vmem:[#allocation35_spill] sm:$0xff] %v14617_v48 }
 0x3dc   : > { %v14477_v25 = vsel %vm4106_vm9, nan, %v4115_v14  ;;  %vm17654_vm9 = vmmov %vm17652_vm0  ;;  %v8870_v51 = vpop.f32.mrf.mxu0  ;;  %v14634_v14 = vld [vmem:[%s14469_s18 + $0x68] sm:$0xff] }
 0x3dd   : > { %8899 = vmatmul.mubr.msk.f32.gmra.mxu0 %vm4187_vm8, %v14477_v25  ;;  %9063 = vmatmul.mubr.msk.f32.gmra.mxu1 %vm4187_vm8, %v14477_v25  ;;  %v14629_v34 = vadd.f32 %v14458_v5, %v8870_v51 }
 0x3de   : > { %8965 = vmatprep.mubr.msk.f32.mxu0 %vm17638_vm11, %v14475_v44  ;;  %9129 = vmatprep.mubr.msk.f32.mxu1 %vm17639_vm7, %v14475_v44  ;;  %vm17655_vm11 = vmmov %vm17652_vm0 }
 0x3df   : > { %vm17656_vm7 = vmmov %vm17652_vm0 }
 0x3e1   : > { %8966 = vmatmul.mubr.msk.f32.vlgmr.msra.gmra.mxu0 %vm17640_vm14, %v14488_v55  ;;  %9130 = vmatmul.mubr.msk.f32.vlgmr.msra.gmra.mxu1 %vm17641_vm10, %v14488_v55  ;;  %vm17657_vm14 = vmmov %vm17652_vm0 }
 0x3e2   : > { %9066 = vmatpush3.msra.mxu0 %v14044_v60  ;;  %8968 = vmatprep.mubr.msk.f32.mxu0 %vm17643_vm15, %v14493_v45  ;;  %v8177_v60 = vld [vmem:[%s16822_s6 + $0x20] sm:$0xff]  ;;  %vm17658_vm10 = vmmov %vm17652_vm0 }
 0x3e3   : > { %9067 = vmatprep.subr.mxu0 %v8179_v17  ;;  %9132 = vmatprep.mubr.msk.f32.mxu1 %vm17644_vm4, %v14493_v45  ;;  %vm17660_vm15 = vmmov %vm17652_vm0 }
 0x3e4   : > { %9068 = vmatpush3.msra.mxu0 %v8179_v17  ;;  %9230 = vmatpush3.msra.mxu1 %v14422_v63  ;;  %v14542_v63 = vld [vmem:[%s16823_s7 + $0x28] sm:$0xff]  ;;  %vm17662_vm4 = vmmov %vm17652_vm0  ;;  %v14641_v17 = vpop.f32.mrf.mxu0 }
 0x3e5   : > { %8969 = vmatmul.mubr.msk.f32.gmra.mxu0 %vm17645_vm13, %v14511_v35  ;;  %9069 = vmatprep.subr.mxu0 %v8178_v7  ;;  %vm17663_vm13 = vmmov %vm17652_vm0  ;;  %17666 = vst [vmem:[#allocation26_spill] sm:$0xff] %v14641_v17  ;;  %v14747_v17 = vld [vmem:[%s14469_s18 + $0xc0] sm:$0xff] }
 0x3e6   : > { %8971 = vmatprep.mubr.msk.f32.mxu0 %vm17646_vm2, %v14519_v11  ;;  %9070 = vmatpush3.msra.mxu0 %v8178_v7  ;;  %vm17664_vm2 = vmmov %vm17652_vm0  ;;  %v14644_v7 = vld [vmem:[%s14469_s18 + $0x70] sm:$0xff]  ;;  %v8873_v5 = vpop.f32.mrf.mxu0  ;;  %17694 = vst [vmem:[#allocation70_spill] sm:$0xff] %v14747_v17 }
 0x3e7   : > { %9071 = vmatprep.subr.mxu0 %v8177_v60  ;;  %9133 = vmatmul.mubr.msk.f32.gmra.mxu1 %vm17647_vm1, %v14511_v35  ;;  %vm17665_vm1 = vmmov %vm17652_vm0  ;;  %v14656_v15 = vadd.f32 %v14463_v41, %v8873_v5  ;;  %v14685_v5 = vld [vmem:[%s14469_s18 + $0x90] sm:$0xff] }
 0x3e8   : > { %9072 = vmatpush3.msra.mxu0 %v8177_v60  ;;  %9135 = vmatprep.mubr.msk.f32.mxu1 %vm17648_vm12, %v14519_v11  ;;  %vm17667_vm12 = vmmov %vm17652_vm0  ;;  %v14653_v60 = vpop.f32.mrf.mxu1  ;;  %v14663_v46 = vpop.f32.mrf.mxu0 }
 0x3e9   : > { %8972 = vmatmul.mubr.msk.f32.gmra.mxu0 %vm17649_vm3, %v14537_v19  ;;  %9177 = vmatprep.subr.mxu0 %v14542_v63  ;;  %vm17668_vm3 = vmmov %vm17652_vm0  ;;  %17670 = vst [vmem:[#allocation37_spill] sm:$0xff] %v14653_v60 }
 0x3ea   : > { %8974 = vmatprep.mubr.msk.f32.mxu0 %vm17651_vm5, %v14547_v10  ;;  %9231 = vmatprep.subr.mxu1 %v8289_v16  ;;  %vm17669_vm5 = vmmov %vm17652_vm0  ;;  %17671 = vst [vmem:[#allocation51_spill] sm:$0xff] %v14663_v46  ;;  %v8944_v41 = vpop.f32.mrf.mxu1 }
 0x3eb   : > { %9136 = vmatmul.mubr.msk.f32.gmra.mxu1 %vm17652_vm0, %v14537_v19 }
 0x3ec   : > { %9138 = vmatprep.mubr.msk.f32.mxu1 %vm17653_vm6, %v14547_v10  ;;  %9232 = vmatpush3.msra.mxu1 %v8289_v16  ;;  %v14661_v16 = vld [vmem:[%s14469_s18 + $0x78] sm:$0xff]  ;;  %vm17672_vm6 = vmmov %vm17652_vm0 }
 0x3ed   : > { %8975 = vmatmul.mubr.msk.f32.gmra.mxu0 %vm17654_vm9, %v14567_v3  ;;  %9233 = vmatprep.subr.mxu1 %v8288_v18  ;;  %vm17673_vm9 = vmmov %vm17652_vm0 }
 0x3ee   : > { %8977 = vmatprep.mubr.msk.f32.mxu0 %vm17655_vm11, %v14575_v40  ;;  %9234 = vmatpush3.msra.mxu1 %v8288_v18  ;;  %v14666_v18 = vld [vmem:[%s14469_s18 + $0x80] sm:$0xff]  ;;  %vm17674_vm11 = vmmov %vm17652_vm0 }
 0x3ef   : > { %9139 = vmatmul.mubr.msk.f32.gmra.mxu1 %vm17656_vm7, %v14567_v3  ;;  %9235 = vmatprep.subr.mxu1 %v8287_v36  ;;  %vm17675_vm7 = vmmov %vm17652_vm0 }
 0x3f0   : > { %9141 = vmatprep.mubr.msk.f32.mxu1 %vm17657_vm14, %v14575_v40  ;;  %9236 = vmatpush3.msra.mxu1 %v8287_v36  ;;  %v8876_v36 = vpop.f32.mrf.mxu0  ;;  %vm17677_vm14 = vmmov %vm17652_vm0 }
 0x3f1   : > { %8978 = vmatmul.mubr.msk.f32.gmra.mxu0 %vm17658_vm10, %v14594_v49  ;;  %9341 = vmatprep.subr.mxu1 %v14639_v8  ;;  %v14675_v29 = vadd.f32 %v14483_v2, %v8876_v36  ;;  %vm17678_vm10 = vmmov %vm17652_vm0  ;;  %v14693_v2 = vpop.f32.mrf.mxu1 }
 0x3f2   : > { %8980 = vmatprep.mubr.msk.f32.mxu0 %vm17660_vm15, %v14599_v28  ;;  %v14682_v51 = vpop.f32.mrf.mxu0  ;;  %vm17679_vm15 = vmmov %vm17652_vm0  ;;  %17680 = vst [vmem:[#allocation49_spill] sm:$0xff] %v14693_v2 }
 0x3f3   : > { %9142 = vmatmul.mubr.msk.f32.gmra.mxu1 %vm17662_vm4, %v14594_v49  ;;  %17676 = vst [vmem:[#allocation42_spill] sm:$0xff] %v14682_v51  ;;  %vm17681_vm4 = vmmov %vm17652_vm0 }
 0x3f4   : > { %9144 = vmatprep.mubr.msk.f32.mxu1 %vm17663_vm13, %v14599_v28  ;;  %v8879_v60 = vpop.f32.mrf.mxu0  ;;  %vm17683_vm13 = vmmov %vm17652_vm0 }
 0x3f5   : > { %8981 = vmatmul.mubr.msk.f32.gmra.mxu0 %vm17664_vm2, %v14615_v27  ;;  %v14696_v36 = vadd.f32 %v14529_v47, %v8879_v60  ;;  %vm17684_vm2 = vmmov %vm17652_vm0  ;;  %v14714_v47 = vpop.f32.mrf.mxu1 }
 0x3f6   : > { %8983 = vmatprep.mubr.msk.f32.mxu0 %vm17665_vm1, %v14620_v24  ;;  %v14703_v33 = vpop.f32.mrf.mxu0  ;;  %vm17685_vm1 = vmmov %vm17652_vm0  ;;  %17686 = vst [vmem:[#allocation53_spill] sm:$0xff] %v14714_v47  ;;  %v17808_v47 = vld [vmem:[#allocation28_spill] sm:$0xff] }
 0x3f7   : > { %9145 = vmatmul.mubr.msk.f32.gmra.mxu1 %vm17667_vm12, %v14615_v27  ;;  %17682 = vst [vmem:[#allocation13_spill] sm:$0xff] %v14703_v33  ;;  %vm17687_vm12 = vmmov %vm17652_vm0  ;;  %v14722_v33 = vld [vmem:[%s14469_s18 + $0xa8] sm:$0xff] }
 0x3f8   : > { %9147 = vmatprep.mubr.msk.f32.mxu1 %vm17668_vm3, %v14620_v24  ;;  %v8882_v2 = vpop.f32.mrf.mxu0  ;;  %vm17689_vm3 = vmmov %vm17652_vm0 }
 0x3f9   : > { %8984 = vmatmul.mubr.msk.f32.gmra.mxu0 %vm17669_vm5, %v14634_v14  ;;  %v14717_v60 = vadd.f32 %v14586_v56, %v8882_v2  ;;  %vm17690_vm5 = vmmov %vm17652_vm0  ;;  %v14735_v56 = vpop.f32.mrf.mxu1 }
 0x3fa   : > { %8986 = vmatprep.mubr.msk.f32.mxu0 %vm17652_vm0, %v14644_v7  ;;  %v14724_v51 = vpop.f32.mrf.mxu0  ;;  %17691 = vst [vmem:[#allocation58_spill] sm:$0xff] %v14735_v56 }
 0x3fb   : > { %9148 = vmatmul.mubr.msk.f32.gmra.mxu1 %vm17672_vm6, %v14634_v14  ;;  %17688 = vst [vmem:[#allocation43_spill] sm:$0xff] %v14724_v51  ;;  %vm17692_vm6 = vmmov %vm17652_vm0  ;;  %v14742_v51 = vld [vmem:[%s14469_s18 + $0xb8] sm:$0xff] }
 0x3fc   : > { %9150 = vmatprep.mubr.msk.f32.mxu1 %vm17673_vm9, %v14644_v7  ;;  %v8885_v46 = vpop.f32.mrf.mxu0  ;;  %vm17695_vm9 = vmmov %vm17652_vm0 }
 0x3fd   : > { %8987 = vmatmul.mubr.msk.f32.gmra.mxu0 %vm17674_vm11, %v14661_v16  ;;  %v14737_v2 = vadd.f32 %v8941_v62, %v8885_v46  ;;  %vm17696_vm11 = vmmov %vm17652_vm0  ;;  %v14755_v62 = vpop.f32.mrf.mxu1 }
 0x3fe   : > { %8989 = vmatprep.mubr.msk.f32.mxu0 %vm17675_vm7, %v14666_v18  ;;  %v14744_v32 = vpop.f32.mrf.mxu0  ;;  %vm17697_vm7 = vmmov %vm17652_vm0  ;;  %17698 = vst [vmem:[#allocation61_spill] sm:$0xff] %v14755_v62  ;;  %v14781_v62 = vld [vmem:[%s14469_s18 + $0xe0] sm:$0xff] }
 0x3ff   : > { %9151 = vmatmul.mubr.msk.f32.gmra.mxu1 %vm17677_vm14, %v14661_v16  ;;  %17693 = vst [vmem:[#allocation68_spill] sm:$0xff] %v14744_v32  ;;  %vm17699_vm14 = vmmov %vm17652_vm0  ;;  %v14762_v32 = vld [vmem:[%s14469_s18 + $0xc8] sm:$0xff] }
 0x400   : > { %9153 = vmatprep.mubr.msk.f32.mxu1 %vm17678_vm10, %v14666_v18  ;;  %v8888_v56 = vpop.f32.mrf.mxu0  ;;  %17700 = vst [vmem:[#allocation10_spill] sm:$0xff] %v14762_v32  ;;  %vm17702_vm10 = vmmov %vm17652_vm0 }
 0x401   : > { %8990 = vmatmul.mubr.msk.f32.gmra.mxu0 %vm17679_vm15, %v14680_v37  ;;  %v14757_v46 = vadd.f32 %v8944_v41, %v8888_v56  ;;  %vm17703_vm15 = vmmov %vm17652_vm0  ;;  %v14773_v41 = vpop.f32.mrf.mxu1  ;;  %v14778_v56 = vld [vmem:[%s14469_s18 + $0xd8] sm:$0xff]  ;;  %17708 = vst [vmem:[#allocation67_spill] sm:$0xff] %v14781_v62 }
 0x402   : > { %8992 = vmatprep.mubr.msk.f32.mxu0 %vm17681_vm4, %v14685_v5  ;;  %vm17704_vm4 = vmmov %vm17652_vm0  ;;  %17705 = vst [vmem:[#allocation40_spill] sm:$0xff] %v14773_v41  ;;  %v14794_v41 = vld [vmem:[%s14469_s18 + $0xe8] sm:$0xff] }
 0x403   : > { %9154 = vmatmul.mubr.msk.f32.gmra.mxu1 %vm17683_vm13, %v14680_v37  ;;  %vm17706_vm13 = vmmov %vm17652_vm0  ;;  %17707 = vst [vmem:[#allocation52_spill] sm:$0xff] %v14778_v56  ;;  %v14789_v48 = vpop.f32.mrf.mxu1 }
 0x404   : > { %9156 = vmatprep.mubr.msk.f32.mxu1 %vm17684_vm2, %v14685_v5  ;;  %vm17709_vm2 = vmmov %vm17652_vm0  ;;  %17712 = vst [vmem:[#allocation59_spill] sm:$0xff] %v14789_v48  ;;  %v14810_v48 = vld [vmem:[%s14469_s18 + $0xf8] sm:$0xff] }
 0x405   : > { %8993 = vmatmul.mubr.msk.f32.gmra.mxu0 %vm17685_vm1, %v14701_v52  ;;  %vm17710_vm1 = vmmov %vm17652_vm0  ;;  %17714 = vst [vmem:[#allocation65_spill] sm:$0xff] %v14794_v41 }
 0x406   : > { %8995 = vmatprep.mubr.msk.f32.mxu0 %vm17687_vm12, %v14706_v4  ;;  %vm17711_vm12 = vmmov %vm17652_vm0  ;;  %17720 = vst [vmem:[#allocation60_spill] sm:$0xff] %v14810_v48 }
 0x407   : > { %9157 = vmatmul.mubr.msk.f32.gmra.mxu1 %vm17689_vm3, %v14701_v52  ;;  %vm17713_vm3 = vmmov %vm17652_vm0 }
 0x408   : > { %9159 = vmatprep.mubr.msk.f32.mxu1 %vm17690_vm5, %v14706_v4  ;;  %vm17716_vm5 = vmmov %vm17652_vm0 }
 0x409   : > { %8996 = vmatmul.mubr.msk.f32.gmra.mxu0 %vm17652_vm0, %v14722_v33 }
 0x40a   : > { %8998 = vmatprep.mubr.msk.f32.mxu0 %vm17692_vm6, %v14727_v6  ;;  %vm17717_vm6 = vmmov %vm17652_vm0 }
 0x40b   : > { %9160 = vmatmul.mubr.msk.f32.gmra.mxu1 %vm17695_vm9, %v14722_v33  ;;  %vm17719_vm9 = vmmov %vm17652_vm0 }
 0x40c   : > { %9162 = vmatprep.mubr.msk.f32.mxu1 %vm17696_vm11, %v14727_v6  ;;  %vm17721_vm11 = vmmov %vm17652_vm0 }
 0x40d   : > { %8999 = vmatmul.mubr.msk.f32.gmra.mxu0 %vm17697_vm7, %v14742_v51  ;;  %vm17722_vm7 = vmmov %vm17652_vm0 }
 0x40e   : > { %9001 = vmatprep.mubr.msk.f32.mxu0 %vm17699_vm14, %v14747_v17  ;;  %vm17723_vm14 = vmmov %vm17652_vm0 }
 0x40f   : > { %9163 = vmatmul.mubr.msk.f32.gmra.mxu1 %vm17702_vm10, %v14742_v51  ;;  %vm17725_vm10 = vmmov %vm17652_vm0 }
 0x410   : > { %9165 = vmatprep.mubr.msk.f32.mxu1 %vm17703_vm15, %v14747_v17  ;;  %v14797_v17 = vld [vmem:[%s14469_s18 + $0xf0] sm:$0xff]  ;;  %vm17726_vm15 = vmmov %vm17652_vm0 }
 0x411   : > { %9002 = vmatmul.mubr.msk.f32.gmra.mxu0 %vm17704_vm4, %v14762_v32  ;;  %17715 = vst [vmem:[#allocation21_spill] sm:$0xff] %v14797_v17  ;;  %vm17727_vm4 = vmmov %vm17652_vm0 }
 0x412   : > { %9004 = vmatprep.mubr.msk.f32.mxu0 %vm17706_vm13, %v14765_v39  ;;  %vm17728_vm13 = vmmov %vm17652_vm0 }
 0x413   : > { %9166 = vmatmul.mubr.msk.f32.gmra.mxu1 %vm17709_vm2, %v14762_v32  ;;  %vm17730_vm2 = vmmov %vm17652_vm0  ;;  %v9995_v32 = vld [vmem:[%s10208_s15 + $0x20] sm:$0xff] }
 0x414   : > { %9168 = vmatprep.mubr.msk.f32.mxu1 %vm17710_vm1, %v14765_v39  ;;  %v14805_v39 = vpop.f32.mrf.mxu1  ;;  %vm17731_vm1 = vmmov %vm17652_vm0 }
 0x415   : > { %9005 = vmatmul.mubr.msk.f32.gmra.mxu0 %vm17711_vm12, %v14778_v56  ;;  %17718 = vst [vmem:[#allocation64_spill] sm:$0xff] %v14805_v39  ;;  %v8291_v39 = vld [vmem:[%s16823_s7 + $0x20] sm:$0xff]  ;;  %vm17732_vm12 = vmmov %vm17652_vm0 }
 0x416   : > { %9007 = vmatprep.mubr.msk.f32.mxu0 %vm17713_vm3, %v14781_v62  ;;  %vm17733_vm3 = vmmov %vm17652_vm0 }
 0x417   : > { %9169 = vmatmul.mubr.msk.f32.gmra.mxu1 %vm17716_vm5, %v14778_v56  ;;  %v9991_v56 = vld [vmem:[%s10208_s15] sm:$0xff]  ;;  %vm17735_vm5 = vmmov %vm17652_vm0 }
 0x418   : > { %9171 = vmatprep.mubr.msk.f32.mxu1 %vm17652_vm0, %v14781_v62  ;;  %v14818_v62 = vpop.f32.mrf.mxu1 }
 0x419   : > { %9008 = vmatmul.mubr.msk.f32.gmra.mxu0 %vm17717_vm6, %v14794_v41  ;;  %17724 = vst [vmem:[#allocation79_spill] sm:$0xff] %v14818_v62  ;;  %v9993_v62 = vld [vmem:[%s10208_s15 + $0x10] sm:$0xff]  ;;  %vm17736_vm6 = vmmov %vm17652_vm0 }
 0x41a   : > { %9010 = vmatprep.mubr.msk.f32.mxu0 %vm17719_vm9, %v14797_v17  ;;  %vm17737_vm9 = vmmov %vm17652_vm0 }
 0x41b   : > { %9172 = vmatmul.mubr.msk.f32.gmra.mxu1 %vm17721_vm11, %v14794_v41  ;;  %v9992_v41 = vld [vmem:[%s10208_s15 + $0x8] sm:$0xff]  ;;  %vm17739_vm11 = vmmov %vm17652_vm0 }
 0x41c   : > { %9174 = vmatprep.mubr.msk.f32.mxu1 %vm17722_vm7, %v14797_v17  ;;  %v14830_v17 = vpop.f32.mrf.mxu1  ;;  %vm17740_vm7 = vmmov %vm17652_vm0 }
 0x41d   : > { %9011 = vmatmul.mubr.msk.f32.gmra.mxu0 %vm17723_vm14, %v14810_v48  ;;  %17729 = vst [vmem:[#allocation81_spill] sm:$0xff] %v14830_v17  ;;  %vm17741_vm14 = vmmov %vm17652_vm0 }
 0x41e   : > { %9073 = vmatprep.mubr.msk.f32.mxu0 %vm17725_vm10, %v9991_v56  ;;  %v14848_v17 = vpop.f32.mrf.mxu1  ;;  %vm17742_vm10 = vmmov %vm17652_vm0 }
 0x41f   : > { %9175 = vmatmul.mubr.msk.f32.gmra.mxu1 %vm17726_vm15, %v14810_v48  ;;  %v14838_v48 = vld [vmem:[%s16825_s9 + $0x58] sm:$0xff]  ;;  %17734 = vst [vmem:[#allocation17_spill] sm:$0xff] %v14848_v17  ;;  %vm17744_vm15 = vmmov %vm17652_vm0  ;;  %v7380_v17 = vld [vmem:[%s14964_s21 + $0x10] sm:$0xff] }
 0x420   : > { %9237 = vmatprep.mubr.msk.f32.mxu1 %vm17727_vm4, %v9991_v56  ;;  %v9994_v56 = vld [vmem:[%s10208_s15 + $0x18] sm:$0xff]  ;;  %vm17745_vm4 = vmmov %vm17652_vm0 }
 0x421   : > { %9074 = vmatmul.mubr.msk.f32.vlgmr.msra.gmra.mxu0 %vm17728_vm13, %v9992_v41  ;;  %vm17746_vm13 = vmmov %vm17652_vm0 }
 0x422   : > { %9178 = vmatpush3.msra.mxu0 %v14542_v63  ;;  %9076 = vmatprep.mubr.msk.f32.mxu0 %vm17730_vm2, %v9993_v62  ;;  %v7411_v63 = vld [vmem:[%s16827_s11 + $0x8] sm:$0xff]  ;;  %vm17747_vm2 = vmmov %vm17652_vm0 }
 0x423   : > { %9179 = vmatprep.subr.mxu0 %v8291_v39  ;;  %9238 = vmatmul.mubr.msk.f32.vlgmr.msra.gmra.mxu1 %vm17731_vm1, %v9992_v41  ;;  %v9997_v41 = vld [vmem:[%s10208_s15 + $0x30] sm:$0xff]  ;;  %vm17749_vm1 = vmmov %vm17652_vm0 }
 0x424   : > { %9180 = vmatpush3.msra.mxu0 %v8291_v39  ;;  %9240 = vmatprep.mubr.msk.f32.mxu1 %vm17732_vm12, %v9993_v62  ;;  %v9996_v39 = vld [vmem:[%s10208_s15 + $0x28] sm:$0xff]  ;;  %v14857_v62 = vpop.f32.mrf.mxu1  ;;  %vm17750_vm12 = vmmov %vm17652_vm0 }
 0x425   : > { %9077 = vmatmul.mubr.msk.f32.gmra.mxu0 %vm17733_vm3, %v9994_v56  ;;  %9285 = vmatprep.subr.mxu0 %v14838_v48  ;;  %17738 = vst [vmem:[#allocation56_spill] sm:$0xff] %v14857_v62  ;;  %vm17751_vm3 = vmmov %vm17652_vm0  ;;  %v10007_v62 = vld [vmem:[%s10208_s15 + $0x80] sm:$0xff] }
 0x426   : > { %9079 = vmatprep.mubr.msk.f32.mxu0 %vm17735_vm5, %v9995_v32  ;;  %9342 = vmatpush3.msra.mxu1 %v14639_v8  ;;  %v9998_v8 = vld [vmem:[%s10208_s15 + $0x38] sm:$0xff]  ;;  %vm17752_vm5 = vmmov %vm17652_vm0 }
 0x427   : > { %9241 = vmatmul.mubr.msk.f32.gmra.mxu1 %vm17652_vm0, %v9994_v56  ;;  %9343 = vmatprep.subr.mxu1 %v7411_v63  ;;  %v10000_v56 = vld [vmem:[%s10208_s15 + $0x48] sm:$0xff] }
 0x428   : > { %9243 = vmatprep.mubr.msk.f32.mxu1 %vm17736_vm6, %v9995_v32  ;;  %9344 = vmatpush3.msra.mxu1 %v7411_v63  ;;  %v14865_v32 = vpop.f32.mrf.mxu1  ;;  %v9999_v63 = vld [vmem:[%s10208_s15 + $0x40] sm:$0xff]  ;;  %vm17754_vm6 = vmmov %vm17652_vm0 }
 0x429   : > { %9080 = vmatmul.mubr.msk.f32.gmra.mxu0 %vm17737_vm9, %v9996_v39  ;;  %17743 = vst [vmem:[#allocation50_spill] sm:$0xff] %v14865_v32  ;;  %v10002_v32 = vld [vmem:[%s10208_s15 + $0x58] sm:$0xff]  ;;  %vm17755_vm9 = vmmov %vm17652_vm0 }
 0x42a   : > { %9082 = vmatprep.mubr.msk.f32.mxu0 %vm17739_vm11, %v9997_v41  ;;  %vm17756_vm11 = vmmov %vm17652_vm0 }
 0x42b   : > { %9244 = vmatmul.mubr.msk.f32.gmra.mxu1 %vm17740_vm7, %v9996_v39  ;;  %v14873_v39 = vpop.f32.mrf.mxu1  ;;  %vm17758_vm7 = vmmov %vm17652_vm0 }
 0x42c   : > { %9246 = vmatprep.mubr.msk.f32.mxu1 %vm17741_vm14, %v9997_v41  ;;  %17748 = vst [vmem:[#allocation63_spill] sm:$0xff] %v14873_v39  ;;  %v10001_v41 = vld [vmem:[%s10208_s15 + $0x50] sm:$0xff]  ;;  %v10004_v39 = vld [vmem:[%s10208_s15 + $0x68] sm:$0xff]  ;;  %vm17759_vm14 = vmmov %vm17652_vm0 }
 0x42d   : > { %9083 = vmatmul.mubr.msk.f32.gmra.mxu0 %vm17742_vm10, %v9998_v8  ;;  %vm17760_vm10 = vmmov %vm17652_vm0 }
 0x42e   : > { %9085 = vmatprep.mubr.msk.f32.mxu0 %vm17744_vm15, %v9999_v63  ;;  %vm17761_vm15 = vmmov %vm17652_vm0 }
 0x42f   : > { %9247 = vmatmul.mubr.msk.f32.gmra.mxu1 %vm17745_vm4, %v9998_v8  ;;  %v14881_v8 = vpop.f32.mrf.mxu1  ;;  %vm17763_vm4 = vmmov %vm17652_vm0 }
 0x430   : > { %9249 = vmatprep.mubr.msk.f32.mxu1 %vm17746_vm13, %v9999_v63  ;;  %17753 = vst [vmem:[#allocation74_spill] sm:$0xff] %v14881_v8  ;;  %v10003_v63 = vld [vmem:[%s10208_s15 + $0x60] sm:$0xff]  ;;  %v10005_v8 = vld [vmem:[%s10208_s15 + $0x70] sm:$0xff]  ;;  %vm17764_vm13 = vmmov %vm17652_vm0 }
 0x431   : > { %9086 = vmatmul.mubr.msk.f32.gmra.mxu0 %vm17747_vm2, %v10000_v56  ;;  %vm17765_vm2 = vmmov %vm17652_vm0 }
 0x432   : > { %9088 = vmatprep.mubr.msk.f32.mxu0 %vm17749_vm1, %v10001_v41  ;;  %vm17766_vm1 = vmmov %vm17652_vm0 }
 0x433   : > { %9250 = vmatmul.mubr.msk.f32.gmra.mxu1 %vm17750_vm12, %v10000_v56  ;;  %v7410_v56 = vld [vmem:[%s16827_s11] sm:$0xff]  ;;  %vm17768_vm12 = vmmov %vm17652_vm0 }
 0x434   : > { %9252 = vmatprep.mubr.msk.f32.mxu1 %vm17751_vm3, %v10001_v41  ;;  %v14892_v41 = vpop.f32.mrf.mxu1  ;;  %9345 = vmatprep.subr.mxu1 %v7410_v56  ;;  %vm17769_vm3 = vmmov %vm17652_vm0 }
 0x435   : > { %9089 = vmatmul.mubr.msk.f32.gmra.mxu0 %vm17752_vm5, %v10002_v32  ;;  %17757 = vst [vmem:[#allocation66_spill] sm:$0xff] %v14892_v41  ;;  %9346 = vmatpush3.msra.mxu1 %v7410_v56  ;;  %v10008_v56 = vld [vmem:[%s10208_s15 + $0x88] sm:$0xff]  ;;  %vm17770_vm5 = vmmov %vm17652_vm0 }
 0x436   : > { %9091 = vmatprep.mubr.msk.f32.mxu0 %vm17652_vm0, %v10003_v63 }
 0x437   : > { %9253 = vmatmul.mubr.msk.f32.gmra.mxu1 %vm17754_vm6, %v10002_v32  ;;  %v10006_v32 = vld [vmem:[%s10208_s15 + $0x78] sm:$0xff]  ;;  %vm17772_vm6 = vmmov %vm17652_vm0 }
 0x438   : > { %9255 = vmatprep.mubr.msk.f32.mxu1 %vm17755_vm9, %v10003_v63  ;;  %v14900_v63 = vpop.f32.mrf.mxu1  ;;  %vm17773_vm9 = vmmov %vm17652_vm0 }
 0x439   : > { %9092 = vmatmul.mubr.msk.f32.gmra.mxu0 %vm17756_vm11, %v10004_v39  ;;  %17762 = vst [vmem:[#allocation73_spill] sm:$0xff] %v14900_v63  ;;  %v10010_v63 = vld [vmem:[%s10208_s15 + $0x98] sm:$0xff]  ;;  %vm17774_vm11 = vmmov %vm17652_vm0 }
 0x43a   : > { %9094 = vmatprep.mubr.msk.f32.mxu0 %vm17758_vm7, %v10005_v8  ;;  %vm17775_vm7 = vmmov %vm17652_vm0 }
 0x43b   : > { %9256 = vmatmul.mubr.msk.f32.gmra.mxu1 %vm17759_vm14, %v10004_v39  ;;  %v14908_v39 = vpop.f32.mrf.mxu1  ;;  %vm17777_vm14 = vmmov %vm17652_vm0 }
 0x43c   : > { %9258 = vmatprep.mubr.msk.f32.mxu1 %vm17760_vm10, %v10005_v8  ;;  %17767 = vst [vmem:[#allocation36_spill] sm:$0xff] %v14908_v39  ;;  %v10009_v8 = vld [vmem:[%s10208_s15 + $0x90] sm:$0xff]  ;;  %v10012_v39 = vld [vmem:[%s10208_s15 + $0xa8] sm:$0xff]  ;;  %vm17778_vm10 = vmmov %vm17652_vm0 }
 0x43d   : > { %9095 = vmatmul.mubr.msk.f32.gmra.mxu0 %vm17761_vm15, %v10006_v32  ;;  %vm17779_vm15 = vmmov %vm17652_vm0 }
 0x43e   : > { %9097 = vmatprep.mubr.msk.f32.mxu0 %vm17763_vm4, %v10007_v62  ;;  %vm17780_vm4 = vmmov %vm17652_vm0 }
 0x43f   : > { %9259 = vmatmul.mubr.msk.f32.gmra.mxu1 %vm17764_vm13, %v10006_v32  ;;  %v14916_v32 = vpop.f32.mrf.mxu1  ;;  %vm17782_vm13 = vmmov %vm17652_vm0 }
 0x440   : > { %9261 = vmatprep.mubr.msk.f32.mxu1 %vm17765_vm2, %v10007_v62  ;;  %17771 = vst [vmem:[#allocation71_spill] sm:$0xff] %v14916_v32  ;;  %v10011_v62 = vld [vmem:[%s10208_s15 + $0xa0] sm:$0xff]  ;;  %v10014_v32 = vld [vmem:[%s10208_s15 + $0xb8] sm:$0xff]  ;;  %vm17783_vm2 = vmmov %vm17652_vm0 }
 0x441   : > { %9098 = vmatmul.mubr.msk.f32.gmra.mxu0 %vm17766_vm1, %v10008_v56  ;;  %vm17784_vm1 = vmmov %vm17652_vm0 }
 0x442   : > { %9100 = vmatprep.mubr.msk.f32.mxu0 %vm17768_vm12, %v10009_v8  ;;  %vm17785_vm12 = vmmov %vm17652_vm0 }
 0x443   : > { %9262 = vmatmul.mubr.msk.f32.gmra.mxu1 %vm17769_vm3, %v10008_v56  ;;  %v14924_v56 = vpop.f32.mrf.mxu1  ;;  %vm17787_vm3 = vmmov %vm17652_vm0 }
 0x444   : > { %9264 = vmatprep.mubr.msk.f32.mxu1 %vm17770_vm5, %v10009_v8  ;;  %17776 = vst [vmem:[#allocation77_spill] sm:$0xff] %v14924_v56  ;;  %v10013_v8 = vld [vmem:[%s10208_s15 + $0xb0] sm:$0xff]  ;;  %v10016_v56 = vld [vmem:[%s10208_s15 + $0xc8] sm:$0xff]  ;;  %vm17788_vm5 = vmmov %vm17652_vm0 }
 0x445   : > { %9101 = vmatmul.mubr.msk.f32.gmra.mxu0 %vm17652_vm0, %v10010_v63 }
 0x446   : > { %9103 = vmatprep.mubr.msk.f32.mxu0 %vm17772_vm6, %v10011_v62  ;;  %vm17789_vm6 = vmmov %vm17652_vm0 }
 0x447   : > { %9265 = vmatmul.mubr.msk.f32.gmra.mxu1 %vm17773_vm9, %v10010_v63  ;;  %v14932_v63 = vpop.f32.mrf.mxu1  ;;  %vm17791_vm9 = vmmov %vm17652_vm0 }
 0x448   : > { %9267 = vmatprep.mubr.msk.f32.mxu1 %vm17774_vm11, %v10011_v62  ;;  %17781 = vst [vmem:[#allocation82_spill] sm:$0xff] %v14932_v63  ;;  %v10015_v62 = vld [vmem:[%s10208_s15 + $0xc0] sm:$0xff]  ;;  %v10018_v63 = vld [vmem:[%s10208_s15 + $0xd8] sm:$0xff]  ;;  %vm17792_vm11 = vmmov %vm17652_vm0 }
 0x449   : > { %9104 = vmatmul.mubr.msk.f32.gmra.mxu0 %vm17775_vm7, %v10012_v39  ;;  %vm17793_vm7 = vmmov %vm17652_vm0 }
 0x44a   : > { %9106 = vmatprep.mubr.msk.f32.mxu0 %vm17777_vm14, %v10013_v8  ;;  %vm17794_vm14 = vmmov %vm17652_vm0 }
 0x44b   : > { %9268 = vmatmul.mubr.msk.f32.gmra.mxu1 %vm17778_vm10, %v10012_v39  ;;  %v14940_v39 = vpop.f32.mrf.mxu1  ;;  %vm17796_vm10 = vmmov %vm17652_vm0 }
 0x44c   : > { %9270 = vmatprep.mubr.msk.f32.mxu1 %vm17779_vm15, %v10013_v8  ;;  %17786 = vst [vmem:[#allocation93_spill] sm:$0xff] %v14940_v39  ;;  %v10017_v8 = vld [vmem:[%s10208_s15 + $0xd0] sm:$0xff]  ;;  %v10020_v39 = vld [vmem:[%s10208_s15 + $0xe8] sm:$0xff]  ;;  %vm17797_vm15 = vmmov %vm17652_vm0 }
 0x44d   : > { %9107 = vmatmul.mubr.msk.f32.gmra.mxu0 %vm17780_vm4, %v10014_v32  ;;  %vm17798_vm4 = vmmov %vm17652_vm0 }
 0x44e   : > { %9109 = vmatprep.mubr.msk.f32.mxu0 %vm17782_vm13, %v10015_v62  ;;  %vm17799_vm13 = vmmov %vm17652_vm0 }
 0x44f   : > { %9271 = vmatmul.mubr.msk.f32.gmra.mxu1 %vm17783_vm2, %v10014_v32  ;;  %v14948_v32 = vpop.f32.mrf.mxu1  ;;  %vm7420_vm2 = vcmask 195584  }
 0x450   : > { %9273 = vmatprep.mubr.msk.f32.mxu1 %vm17784_vm1, %v10015_v62  ;;  %17790 = vst [vmem:[#allocation95_spill] sm:$0xff] %v14948_v32  ;;  %v10019_v62 = vld [vmem:[%s10208_s15 + $0xe0] sm:$0xff]  ;;  %vm17802_vm1 = vmmov %vm17652_vm0  ;;  %v8361_v32 = vld [vmem:[%s16825_s9 + $0x50] sm:$0xff] }
 0x451   : > { %9110 = vmatmul.mubr.msk.f32.gmra.mxu0 %vm17785_vm12, %v10016_v56  ;;  %v14956_v41 = vpop.f32.mrf.mxu1  ;;  %vm17841_vm12 = vmmov %vm17652_vm0 }
 0x452   : > { %9112 = vmatprep.mubr.msk.f32.mxu0 %vm17787_vm3, %v10017_v8  ;;  %17795 = vst [vmem:[#allocation85_spill] sm:$0xff] %v14956_v41  ;;  %v17801_v41 = vld [vmem:[#allocation9_spill] sm:$0xff]  ;;  %vm17844_vm3 = vmmov %vm17652_vm0 }
 0x453   : > { %9274 = vmatmul.mubr.msk.f32.gmra.mxu1 %vm17788_vm5, %v10016_v56  ;;  %v10021_v56 = vld [vmem:[%s10208_s15 + $0xf0] sm:$0xff]  ;;  %vm17845_vm5 = vmmov %vm17652_vm0 }
 0x454   : > { %9276 = vmatprep.mubr.msk.f32.mxu1 %vm17652_vm0, %v10017_v8  ;;  %v14970_v8 = vpop.f32.mrf.mxu1 }
 0x455   : > { %9113 = vmatmul.mubr.msk.f32.gmra.mxu0 %vm17789_vm6, %v10018_v63  ;;  %17800 = vst [vmem:[#allocation34_spill] sm:$0xff] %v14970_v8  ;;  %vm17846_vm6 = vmmov %vm17652_vm0 }
 0x456   : > { %9115 = vmatprep.mubr.msk.f32.mxu0 %vm17791_vm9, %v10019_v62  ;;  %v14983_v8 = vpop.f32.mrf.mxu1  ;;  %vm17847_vm9 = vmmov %vm17652_vm0 }
 0x457   : > { %9277 = vmatmul.mubr.msk.f32.gmra.mxu1 %vm17792_vm11, %v10018_v63  ;;  %v10022_v63 = vld [vmem:[%s10208_s15 + $0xf8] sm:$0xff]  ;;  %17804 = vst [vmem:[#allocation76_spill] sm:$0xff] %v14983_v8  ;;  %v7382_v8 = vld [vmem:[%s14964_s21 + $0x20] sm:$0xff]  ;;  %vm17848_vm11 = vmmov %vm17652_vm0 }
 0x458   : > { %9279 = vmatprep.mubr.msk.f32.mxu1 %vm17793_vm7, %v10019_v62  ;;  %v7378_v62 = vld [vmem:[%s14964_s21] sm:$0xff]  ;;  %vm17849_vm7 = vmmov %vm17652_vm0 }
 0x459   : > { %9116 = vmatmul.mubr.msk.f32.gmra.mxu0 %vm17794_vm14, %v10020_v39  ;;  %vm17850_vm14 = vmmov %vm17652_vm0 }
 0x45a   : > { %9118 = vmatprep.mubr.msk.f32.mxu0 %vm17796_vm10, %v10021_v56  ;;  %vm17852_vm10 = vmmov %vm17652_vm0 }
 0x45b   : > { %9280 = vmatmul.mubr.msk.f32.gmra.mxu1 %vm17797_vm15, %v10020_v39  ;;  %v7379_v39 = vld [vmem:[%s14964_s21 + $0x8] sm:$0xff]  ;;  %vm17853_vm15 = vmmov %vm17652_vm0 }
 0x45c   : > { %9282 = vmatprep.mubr.msk.f32.mxu1 %vm17798_vm4, %v10021_v56  ;;  %v17803_v56 = vld [vmem:[#allocation14_spill] sm:$0xff]  ;;  %vm17855_vm4 = vmmov %vm17652_vm0 }
 0x45d   : > { %9119 = vmatmul.mubr.msk.f32.gmra.mxu0 %vm17799_vm13, %v10022_v63  ;;  %vm17856_vm13 = vmmov %vm17652_vm0 }
 0x45e   : > { %9181 = vmatprep.mubr.msk.f32.mxu0 %vm4187_vm8, %v17801_v41  ;;  %v17805_v41 = vld [vmem:[#allocation15_spill] sm:$0xff] }
 0x45f   : > { %9283 = vmatmul.mubr.msk.f32.gmra.mxu1 %vm17802_vm1, %v10022_v63  ;;  %v8360_v63 = vld [vmem:[%s16825_s9 + $0x48] sm:$0xff]  ;;  %vm17859_vm1 = vmmov %vm17652_vm0 }
 0x460   : > { %9347 = vmatprep.mubr.msk.f32.mxu1 %vm7420_vm2, %v7378_v62  ;;  %v8359_v62 = vld [vmem:[%s16825_s9 + $0x40] sm:$0xff] }
 0x461   : > { %9182 = vmatmul.mubr.msk.f32.vlgmr.msra.gmra.mxu0 %vm4187_vm8, %v17803_v56  ;;  %v17806_v56 = vld [vmem:[#allocation27_spill] sm:$0xff] }
 0x462   : > { %9286 = vmatpush3.msra.mxu0 %v14838_v48  ;;  %9184 = vmatprep.mubr.msk.f32.mxu0 %vm4187_vm8, %v17805_v41  ;;  %v7381_v48 = vld [vmem:[%s14964_s21 + $0x18] sm:$0xff]  ;;  %v15000_v41 = vpop.f32.mrf.mxu1 }
 0x463   : > { %9287 = vmatprep.subr.mxu0 %v8361_v32  ;;  %9348 = vmatmul.mubr.msk.f32.vlgmr.msra.gmra.mxu1 %vm7420_vm2, %v7379_v39  ;;  %17807 = vst [vmem:[#allocation69_spill] sm:$0xff] %v15000_v41  ;;  %v17811_v41 = vld [vmem:[#allocation8_spill] sm:$0xff] }
 0x464   : > { %9288 = vmatpush3.msra.mxu0 %v8361_v32  ;;  %9350 = vmatprep.mubr.msk.f32.mxu1 %vm7420_vm2, %v7380_v17  ;;  %v7383_v17 = vld [vmem:[%s14964_s21 + $0x28] sm:$0xff]  ;;  %v17809_v32 = vld [vmem:[#allocation20_spill] sm:$0xff]  ;;  %v15010_v39 = vpop.f32.mrf.mxu1 }
 0x465   : > { %9185 = vmatmul.mubr.msk.f32.gmra.mxu0 %vm4187_vm8, %v17806_v56  ;;  %9289 = vmatprep.subr.mxu0 %v8360_v63  ;;  %17810 = vst [vmem:[#allocation75_spill] sm:$0xff] %v15010_v39  ;;  %v7384_v56 = vld [vmem:[%s14964_s21 + $0x30] sm:$0xff]  ;;  %v7398_v39 = vld [vmem:[%s14964_s21 + $0xa0] sm:$0xff] }
 0x466   : > { %9187 = vmatprep.mubr.msk.f32.mxu0 %vm4187_vm8, %v17808_v47  ;;  %9290 = vmatpush3.msra.mxu0 %v8360_v63  ;;  %v7385_v47 = vld [vmem:[%s14964_s21 + $0x38] sm:$0xff]  ;;  %v17812_v63 = vld [vmem:[#allocation11_spill] sm:$0xff] }
 0x467   : > { %9291 = vmatprep.subr.mxu0 %v8359_v62  ;;  %9351 = vmatmul.mubr.msk.f32.gmra.mxu1 %vm7420_vm2, %v7381_v48  ;;  %v17814_v48 = vld [vmem:[#allocation19_spill] sm:$0xff] }
 0x468   : > { %9292 = vmatpush3.msra.mxu0 %v8359_v62  ;;  %9353 = vmatprep.mubr.msk.f32.mxu1 %vm7420_vm2, %v7382_v8  ;;  %v15020_v8 = vpop.f32.mrf.mxu1  ;;  %v7386_v62 = vld [vmem:[%s14964_s21 + $0x40] sm:$0xff] }
 0x469   : > { %9188 = vmatmul.mubr.msk.f32.gmra.mxu0 %vm4187_vm8, %v17809_v32  ;;  %17813 = vst [vmem:[#allocation88_spill] sm:$0xff] %v15020_v8  ;;  %v17820_v8 = vld [vmem:[#allocation30_spill] sm:$0xff] }
 0x46a   : > { %9190 = vmatprep.mubr.msk.f32.mxu0 %vm4187_vm8, %v17811_v41  ;;  %v7387_v41 = vld [vmem:[%s14964_s21 + $0x48] sm:$0xff]  ;;  %v15030_v32 = vpop.f32.mrf.mxu1 }
 0x46b   : > { %9354 = vmatmul.mubr.msk.f32.gmra.mxu1 %vm7420_vm2, %v7383_v17  ;;  %v17815_v17 = vld [vmem:[#allocation25_spill] sm:$0xff]  ;;  %17816 = vst [vmem:[#allocation90_spill] sm:$0xff] %v15030_v32 }
 0x46c   : > { %9356 = vmatprep.mubr.msk.f32.mxu1 %vm7420_vm2, %v7384_v56  ;;  %v7388_v56 = vld [vmem:[%s14964_s21 + $0x50] sm:$0xff]  ;;  %v17823_v32 = vld [vmem:[#allocation41_spill] sm:$0xff] }
 0x46d   : > { %9191 = vmatmul.mubr.msk.f32.gmra.mxu0 %vm4187_vm8, %v17812_v63  ;;  %v17817_v63 = vld [vmem:[#allocation18_spill] sm:$0xff] }
 0x46e   : > { %9193 = vmatprep.mubr.msk.f32.mxu0 %vm4187_vm8, %v17814_v48  ;;  %v17818_v48 = vld [vmem:[#allocation31_spill] sm:$0xff] }
 0x46f   : > { %9357 = vmatmul.mubr.msk.f32.gmra.mxu1 %vm7420_vm2, %v7385_v47  ;;  %v7389_v47 = vld [vmem:[%s14964_s21 + $0x58] sm:$0xff] }
 0x470   : > { %9359 = vmatprep.mubr.msk.f32.mxu1 %vm7420_vm2, %v7386_v62  ;;  %v15040_v62 = vpop.f32.mrf.mxu1 }
 0x471   : > { %9194 = vmatmul.mubr.msk.f32.gmra.mxu0 %vm4187_vm8, %v17815_v17  ;;  %17819 = vst [vmem:[#allocation84_spill] sm:$0xff] %v15040_v62  ;;  %v7390_v17 = vld [vmem:[%s14964_s21 + $0x60] sm:$0xff] }
 0x472   : > { %9196 = vmatprep.mubr.msk.f32.mxu0 %vm4187_vm8, %v17817_v63  ;;  %v17821_v63 = vld [vmem:[#allocation48_spill] sm:$0xff]  ;;  %v7394_v62 = vld [vmem:[%s14964_s21 + $0x80] sm:$0xff] }
 0x473   : > { %9360 = vmatmul.mubr.msk.f32.gmra.mxu1 %vm7420_vm2, %v7387_v41  ;;  %v7391_v41 = vld [vmem:[%s14964_s21 + $0x68] sm:$0xff] }
 0x474   : > { %9362 = vmatprep.mubr.msk.f32.mxu1 %vm7420_vm2, %v7388_v56  ;;  %v15050_v56 = vpop.f32.mrf.mxu1 }
 0x475   : > { %9197 = vmatmul.mubr.msk.f32.gmra.mxu0 %vm4187_vm8, %v17818_v48  ;;  %17822 = vst [vmem:[#allocation57_spill] sm:$0xff] %v15050_v56  ;;  %v7392_v48 = vld [vmem:[%s14964_s21 + $0x70] sm:$0xff] }
 0x476   : > { %9199 = vmatprep.mubr.msk.f32.mxu0 %vm4187_vm8, %v17820_v8  ;;  %v7393_v8 = vld [vmem:[%s14964_s21 + $0x78] sm:$0xff] }
 0x477   : > { %9363 = vmatmul.mubr.msk.f32.gmra.mxu1 %vm7420_vm2, %v7389_v47  ;;  %v17824_v47 = vld [vmem:[#allocation12_spill] sm:$0xff] }
 0x478   : > { %9365 = vmatprep.mubr.msk.f32.mxu1 %vm7420_vm2, %v7390_v17  ;;  %v15060_v17 = vpop.f32.mrf.mxu1 }
 0x479   : > { %9200 = vmatmul.mubr.msk.f32.gmra.mxu0 %vm4187_vm8, %v17821_v63  ;;  %17825 = vst [vmem:[#allocation92_spill] sm:$0xff] %v15060_v17  ;;  %v17826_v63 = vld [vmem:[#allocation22_spill] sm:$0xff]  ;;  %v17830_v17 = vld [vmem:[#allocation33_spill] sm:$0xff] }
 0x47a   : > { %9202 = vmatprep.mubr.msk.f32.mxu0 %vm4187_vm8, %v17823_v32  ;;  %v7395_v32 = vld [vmem:[%s14964_s21 + $0x88] sm:$0xff]  ;;  %v15072_v56 = vpop.f32.mrf.mxu1 }
 0x47b   : > { %9366 = vmatmul.mubr.msk.f32.gmra.mxu1 %vm7420_vm2, %v7391_v41  ;;  %v17827_v41 = vld [vmem:[#allocation32_spill] sm:$0xff]  ;;  %17829 = vst [vmem:[#allocation99_spill] sm:$0xff] %v15072_v56  ;;  %v17833_v56 = vld [vmem:[#allocation6_spill] sm:$0xff] }
 0x47c   : > { %9368 = vmatprep.mubr.msk.f32.mxu1 %vm7420_vm2, %v7392_v48  ;;  %v15070_v48 = vpop.f32.mrf.mxu0 }
 0x47d   : > { %9203 = vmatmul.mubr.msk.f32.gmra.mxu0 %vm4187_vm8, %v17824_v47  ;;  %17828 = vst [vmem:[#allocation96_spill] sm:$0xff] %v15070_v48  ;;  %v7396_v47 = vld [vmem:[%s14964_s21 + $0x90] sm:$0xff] }
 0x47e   : > { %9205 = vmatprep.mubr.msk.f32.mxu0 %vm4187_vm8, %v17826_v63  ;;  %v15082_v63 = vpop.f32.mrf.mxu0  ;;  %v7400_v48 = vld [vmem:[%s14964_s21 + $0xb0] sm:$0xff] }
 0x47f   : > { %9369 = vmatmul.mubr.msk.f32.gmra.mxu1 %vm7420_vm2, %v7393_v8  ;;  %v7397_v8 = vld [vmem:[%s14964_s21 + $0x98] sm:$0xff] }
 0x480   : > { %9371 = vmatprep.mubr.msk.f32.mxu1 %vm7420_vm2, %v7394_v62  ;;  %v17831_v62 = vld [vmem:[#allocation24_spill] sm:$0xff] }
 0x481   : > { %9206 = vmatmul.mubr.msk.f32.gmra.mxu0 %vm4187_vm8, %v17827_v41  ;;  %v15084_v41 = vpop.f32.mrf.mxu1 }
 0x482   : > { %9208 = vmatprep.mubr.msk.f32.mxu0 %vm4187_vm8, %v17830_v17  ;;  %17832 = vst [vmem:[#allocation113_spill] sm:$0xff] %v15084_v41  ;;  %v7399_v17 = vld [vmem:[%s14964_s21 + $0xa8] sm:$0xff] }
 0x483   : > { %9372 = vmatmul.mubr.msk.f32.gmra.mxu1 %vm7420_vm2, %v7395_v32  ;;  %v17834_v32 = vld [vmem:[#allocation29_spill] sm:$0xff] }
 0x484   : > { %9374 = vmatprep.mubr.msk.f32.mxu1 %vm7420_vm2, %v7396_v47  ;;  %v15094_v47 = vpop.f32.mrf.mxu0 }
 0x485   : > { %9209 = vmatmul.mubr.msk.f32.gmra.mxu0 %vm4187_vm8, %v17831_v62  ;;  %v15096_v62 = vpop.f32.mrf.mxu1 }
 0x486   : > { %9211 = vmatprep.mubr.msk.f32.mxu0 %vm4187_vm8, %v17833_v56  ;;  %17835 = vst [vmem:[#allocation106_spill] sm:$0xff] %v15096_v62  ;;  %v7401_v56 = vld [vmem:[%s14964_s21 + $0xb8] sm:$0xff] }
 0x487   : > { %9375 = vmatmul.mubr.msk.f32.gmra.mxu1 %vm7420_vm2, %v7397_v8  ;;  %v15108_v8 = vpop.f32.mrf.mxu1 }
 0x488   : > { %9377 = vmatprep.mubr.msk.f32.mxu1 %vm7420_vm2, %v7398_v39  ;;  %v15106_v39 = vpop.f32.mrf.mxu0  ;;  %17836 = vst [vmem:[#allocation111_spill] sm:$0xff] %v15108_v8 }
 0x489   : > { %9212 = vmatmul.mubr.msk.f32.gmra.mxu0 %vm4187_vm8, %v17834_v32  ;;  %v7402_v32 = vld [vmem:[%s14964_s21 + $0xc0] sm:$0xff] }
 0x48a   : > { %9214 = vmatprep.mubr.msk.f32.mxu0 %vm4187_vm8, %v13736_v43  ;;  %v7403_v43 = vld [vmem:[%s14964_s21 + $0xc8] sm:$0xff] }
 0x48b   : > { %9378 = vmatmul.mubr.msk.f32.gmra.mxu1 %vm7420_vm2, %v7399_v17  ;;  %v7404_v17 = vld [vmem:[%s14964_s21 + $0xd0] sm:$0xff] }
 0x48c   : > { %9380 = vmatprep.mubr.msk.f32.mxu1 %vm7420_vm2, %v7400_v48  ;;  %v15118_v48 = vpop.f32.mrf.mxu0 }
 0x48d   : > { %9215 = vmatmul.mubr.msk.f32.gmra.mxu0 %vm4187_vm8, %v13864_v12  ;;  %v15120_v12 = vpop.f32.mrf.mxu1 }
 0x48e   : > { %9217 = vmatprep.mubr.msk.f32.mxu0 %vm4187_vm8, %v13958_v9  ;;  %17837 = vst [vmem:[#allocation46_spill] sm:$0xff] %v15120_v12  ;;  %v7405_v9 = vld [vmem:[%s14964_s21 + $0xd8] sm:$0xff] }
 0x48f   : > { %9381 = vmatmul.mubr.msk.f32.gmra.mxu1 %vm7420_vm2, %v7401_v56  ;;  %v15130_v56 = vpop.f32.mrf.mxu0 }
 0x490   : > { %9383 = vmatprep.mubr.msk.f32.mxu1 %vm7420_vm2, %v7402_v32  ;;  %v7406_v32 = vld [vmem:[%s14964_s21 + $0xe0] sm:$0xff] }
 0x491   : > { %9218 = vmatmul.mubr.msk.f32.gmra.mxu0 %vm4187_vm8, %v14077_v1  ;;  %v15132_v1 = vpop.f32.mrf.mxu1 }
 0x492   : > { %9220 = vmatprep.mubr.msk.f32.mxu0 %vm4187_vm8, %v14162_v54  ;;  %17838 = vst [vmem:[#allocation86_spill] sm:$0xff] %v15132_v1  ;;  %v7407_v54 = vld [vmem:[%s14964_s21 + $0xe8] sm:$0xff] }
 0x493   : > { %9384 = vmatmul.mubr.msk.f32.gmra.mxu1 %vm7420_vm2, %v7403_v43  ;;  %v15142_v43 = vpop.f32.mrf.mxu0 }
 0x494   : > { %9386 = vmatprep.mubr.msk.f32.mxu1 %vm7420_vm2, %v7404_v17  ;;  %v15144_v17 = vpop.f32.mrf.mxu1 }
 0x495   : > { %9221 = vmatmul.mubr.msk.f32.gmra.mxu0 %vm4187_vm8, %v14270_v26  ;;  %17839 = vst [vmem:[#allocation83_spill] sm:$0xff] %v15144_v17  ;;  %v7408_v26 = vld [vmem:[%s14964_s21 + $0xf0] sm:$0xff] }
 0x496   : > { %9223 = vmatprep.mubr.msk.f32.mxu0 %vm4187_vm8, %v14357_v57  ;;  %v7409_v57 = vld [vmem:[%s14964_s21 + $0xf8] sm:$0xff]  ;;  %s16438_s21 = scalar_lea.vmem %s16830_s14, %s10154_s16 }
 0x497   : > { %9387 = vmatmul.mubr.msk.f32.gmra.mxu1 %vm7420_vm2, %v7405_v9 }
 0x498   : > { %9389 = vmatprep.mubr.msk.f32.mxu1 %vm7420_vm2, %v7406_v32 }
 0x499   : > { %9224 = vmatmul.mubr.msk.f32.gmra.mxu0 %vm4187_vm8, %v14415_v20  ;;  %v15163_v20 = vld [vmem:[%s16824_s8] ss:$0 sm:$0xff] }
 0x49a   : > { %9226 = vmatprep.mubr.msk.f32.mxu0 %vm4187_vm8, %v14443_v50 }
 0x49b   : > { %9390 = vmatmul.mubr.msk.f32.gmra.mxu1 %vm7420_vm2, %v7407_v54 }
 0x49c   : > { %9392 = vmatprep.mubr.msk.f32.mxu1 %vm7420_vm2, %v7408_v26  ;;  %v15172_v26 = vld [vmem:[%s16826_s10] ss:$0 sm:$0xff] }
 0x49d   : > { %v15152_v9 = vpop.f32.mrf.mxu0  ;;  %v15154_v32 = vpop.f32.mrf.mxu1  ;;  %9227 = vmatmul.mubr.msk.f32.gmra.mxu0 %vm4187_vm8, %v14477_v25  ;;  %vm17843_vm8 = vmmov %vm17652_vm0 }
 0x49e   : > { %17840 = vst [vmem:[#allocation91_spill] sm:$0xff] %v15154_v32  ;;  %9293 = vmatprep.mubr.msk.f32.mxu0 %vm17841_vm12, %v14475_v44  ;;  %v4839_v32 = vadd.f32 %v15163_v20, %v14496_v31  ;;  %vm17860_vm12 = vmmov %vm17652_vm0 }
 0x49f   : > { %v15165_v50 = vpop.f32.mrf.mxu0  ;;  %v15167_v54 = vpop.f32.mrf.mxu1  ;;  %9393 = vmatmul.mubr.msk.f32.gmra.mxu1 %vm7420_vm2, %v7409_v57  ;;  %vm17858_vm2 = vmmov %vm17652_vm0 }
 0x4a0   : > { %17842 = vst [vmem:[#allocation105_spill] sm:$0xff] %v15167_v54 }
 0x4a1   : > { %v8967_v25 = vpop.f32.mrf.mxu0  ;;  %9294 = vmatmul.mubr.msk.f32.vlgmr.msra.gmra.mxu0 %vm17843_vm8, %v14488_v55  ;;  %v15177_v44 = vpop.f32.mrf.mxu1  ;;  %v4841_v55 = vadd.f32 %v15163_v20, %v14532_v53  ;;  %vm17862_vm8 = vmmov %vm17652_vm0 }
 0x4a2   : > { %v5049_v17 = vadd.f32 %v8967_v25, %v15172_v26  ;;  %9296 = vmatprep.mubr.msk.f32.mxu0 %vm17844_vm3, %v14493_v45  ;;  %vm17864_vm3 = vmmov %vm17652_vm0 }
 0x4a3   : > { %v15184_v54 = vpop.f32.mrf.mxu0  ;;  %v15186_v1 = vpop.f32.mrf.mxu1 }
 0x4a4   : > { %v15188_v12 = vadd.f32 %v5049_v17, %v4839_v32 }
 0x4a5   : > { %v8970_v57 = vpop.f32.mrf.mxu0  ;;  %9297 = vmatmul.mubr.msk.f32.gmra.mxu0 %vm17845_vm5, %v14511_v35  ;;  %v4843_v35 = vadd.f32 %v15163_v20, %v14562_v22  ;;  %v4845_v22 = vadd.f32 %v15163_v20, %v14589_v42  ;;  %v4847_v42 = vadd.f32 %v15163_v20, %v14610_v61  ;;  %v4849_v61 = vadd.f32 %v15163_v20, %v14629_v34  ;;  %vm17865_vm5 = vmmov %vm17652_vm0 }
 0x4a6   : > { %v5059_v31 = vadd.f32 %v8970_v57, %v15172_v26  ;;  %9299 = vmatprep.mubr.msk.f32.mxu0 %vm17652_vm0, %v14519_v11 }
 0x4a7   : > { %v15197_v25 = vpop.f32.mrf.mxu0  ;;  %v15199_v45 = vpop.f32.mrf.mxu1 }
 0x4a8   : > { %v15201_v8 = vadd.f32 %v5059_v31, %v4841_v55 }
 0x4a9   : > { %v8973_v17 = vpop.f32.mrf.mxu0  ;;  %9300 = vmatmul.mubr.msk.f32.gmra.mxu0 %vm17846_vm6, %v14537_v19  ;;  %v15205_v32 = vpop.f32.mrf.mxu1  ;;  %vm17868_vm6 = vmmov %vm17652_vm0 }
 0x4aa   : > { %v5069_v53 = vadd.f32 %v8973_v17, %v15172_v26  ;;  %9302 = vmatprep.mubr.msk.f32.mxu0 %vm17847_vm9, %v14547_v10  ;;  %vm17870_vm9 = vmmov %vm17652_vm0 }
 0x4ab   : > { %v15212_v11 = vpop.f32.mrf.mxu0  ;;  %v15214_v57 = vpop.f32.mrf.mxu1 }
 0x4ac   : > { %v15216_v55 = vadd.f32 %v5069_v53, %v4843_v35 }
 0x4ad   : > { %v8976_v31 = vpop.f32.mrf.mxu0  ;;  %9303 = vmatmul.mubr.msk.f32.gmra.mxu0 %vm17848_vm11, %v14567_v3  ;;  %v15220_v19 = vpop.f32.mrf.mxu1  ;;  %vm17872_vm11 = vmmov %vm17652_vm0 }
 0x4ae   : > { %v5079_v17 = vadd.f32 %v8976_v31, %v15172_v26  ;;  %9305 = vmatprep.mubr.msk.f32.mxu0 %vm17849_vm7, %v14575_v40  ;;  %vm17876_vm7 = vmmov %vm17652_vm0 }
 0x4af   : > { %v15227_v10 = vpop.f32.mrf.mxu0  ;;  %v15229_v62 = vpop.f32.mrf.mxu1 }
 0x4b0   : > { %v15231_v35 = vadd.f32 %v5079_v17, %v4845_v22 }
 0x4b1   : > { %v8979_v53 = vpop.f32.mrf.mxu0  ;;  %9306 = vmatmul.mubr.msk.f32.gmra.mxu0 %vm17850_vm14, %v14594_v49  ;;  %v15235_v3 = vpop.f32.mrf.mxu1  ;;  %vm17887_vm14 = vmmov %vm17652_vm0 }
 0x4b2   : > { %17851 = vst [vmem:[#allocation98_spill] sm:$0xff] %v15235_v3  ;;  %v5089_v31 = vadd.f32 %v8979_v53, %v15172_v26  ;;  %9308 = vmatprep.mubr.msk.f32.mxu0 %vm17852_vm10, %v14599_v28  ;;  %vm17891_vm10 = vmmov %vm17652_vm0 }
 0x4b3   : > { %v15242_v40 = vpop.f32.mrf.mxu0  ;;  %v15244_v41 = vpop.f32.mrf.mxu1 }
 0x4b4   : > { %v15246_v22 = vadd.f32 %v5089_v31, %v4847_v42 }
 0x4b5   : > { %v8982_v17 = vpop.f32.mrf.mxu0  ;;  %9309 = vmatmul.mubr.msk.f32.gmra.mxu0 %vm17853_vm15, %v14615_v27  ;;  %v15250_v49 = vpop.f32.mrf.mxu1  ;;  %vm17903_vm15 = vmmov %vm17652_vm0 }
 0x4b6   : > { %17854 = vst [vmem:[#allocation102_spill] sm:$0xff] %v15250_v49  ;;  %9311 = vmatprep.mubr.msk.f32.mxu0 %vm17855_vm4, %v14620_v24  ;;  %v5099_v28 = vadd.f32 %v8982_v17, %v15172_v26  ;;  %v4851_v24 = vadd.f32 %v15163_v20, %v14656_v15  ;;  %v4853_v15 = vadd.f32 %v15163_v20, %v14675_v29  ;;  %vm17907_vm4 = vmmov %vm17652_vm0 }
 0x4b7   : > { %v15257_v53 = vpop.f32.mrf.mxu0  ;;  %v15259_v3 = vpop.f32.mrf.mxu1 }
 0x4b8   : > { %v15261_v42 = vadd.f32 %v5099_v28, %v4849_v61  ;;  %v4673_v28 = vadd.f32 %v14392_v38, %v14516_v23 }
 0x4b9   : > { %v8985_v31 = vpop.f32.mrf.mxu0  ;;  %9312 = vmatmul.mubr.msk.f32.gmra.mxu0 %vm17856_vm13, %v14634_v14  ;;  %v15265_v27 = vpop.f32.mrf.mxu1  ;;  %vm17913_vm13 = vmmov %vm17652_vm0 }
 0x4ba   : > { %17857 = vst [vmem:[#allocation72_spill] sm:$0xff] %v15265_v27  ;;  %v5109_v49 = vadd.f32 %v8985_v31, %v15172_v26  ;;  %9314 = vmatprep.mubr.msk.f32.mxu0 %vm17858_vm2, %v14644_v7  ;;  %vm17917_vm2 = vmmov %vm17652_vm0 }
 0x4bb   : > { %v15272_v34 = vpop.f32.mrf.mxu0  ;;  %v15274_v17 = vpop.f32.mrf.mxu1 }
 0x4bc   : > { %v15276_v61 = vadd.f32 %v5109_v49, %v4851_v24  ;;  %v5044_v49 = vadd.f32 %v15172_v26, %v15184_v54  ;;  %v4855_v54 = vadd.f32 %v15163_v20, %v14696_v36  ;;  %v4693_v36 = vadd.f32 %v14436_v59, %v14572_v30 }
 0x4bd   : > { %v8988_v14 = vpop.f32.mrf.mxu0  ;;  %9315 = vmatmul.mubr.msk.f32.gmra.mxu0 %vm17859_vm1, %v14661_v16  ;;  %v15282_v27 = vpop.f32.mrf.mxu1  ;;  %v4838_v16 = vadd.f32 %v15163_v20, %v4673_v28  ;;  %v8400_v59 = vmul.f32 -1.442695, %v15201_v8  ;;  %vm17920_vm1 = vmmov %vm17652_vm0 }
 0x4be   : > { %v5119_v7 = vadd.f32 %v8988_v14, %v15172_v26  ;;  %9317 = vmatprep.mubr.msk.f32.mxu0 %vm17860_vm12, %v14666_v18  ;;  %v4683_v18 = vadd.f32 %v14411_v13, %v14544_v58  ;;  %vm18127_vm12 = vmmov %vm17652_vm0 }
 0x4bf   : > { %v15291_v31 = vpop.f32.mrf.mxu0  ;;  %v15293_v38 = vpop.f32.mrf.mxu1  ;;  %v6674_v14 = vadd.f32 %v5044_v49, %v4838_v16  ;;  %v4857_v49 = vadd.f32 %v15163_v20, %v14717_v60 }
 0x4c0   : > { %17861 = vst [vmem:[#allocation109_spill] sm:$0xff] %v15293_v38  ;;  %v15295_v23 = vadd.f32 %v5119_v7, %v4853_v15 }
 0x4c1   : > { %v8991_v24 = vpop.f32.mrf.mxu0  ;;  %9318 = vmatmul.mubr.msk.f32.gmra.mxu0 %vm17862_vm8, %v14680_v37  ;;  %v15300_v29 = vpop.f32.mrf.mxu1  ;;  %v5054_v37 = vadd.f32 %v15172_v26, %v15197_v25  ;;  %vm18133_vm8 = vmmov %vm17652_vm0 }
 0x4c2   : > { %17863 = vst [vmem:[#allocation104_spill] sm:$0xff] %v15300_v29  ;;  %9320 = vmatprep.mubr.msk.f32.mxu0 %vm17864_vm3, %v14685_v5  ;;  %v5129_v15 = vadd.f32 %v8991_v24, %v15172_v26  ;;  %v8398_v29 = vmul.f32 -1.442695, %v15188_v12  ;;  %v4840_v5 = vadd.f32 %v15163_v20, %v4683_v18  ;;  %v8397_v12 = vmul.f32 -1.442695, %v6674_v14  ;;  %vm18134_vm3 = vmmov %vm17652_vm0 }
 0x4c3   : > { %v15309_v7 = vpop.f32.mrf.mxu0  ;;  %v15311_v28 = vpop.f32.mrf.mxu1  ;;  %v5064_v18 = vadd.f32 %v15172_v26, %v15212_v11  ;;  %v4859_v14 = vadd.f32 %v15163_v20, %v14737_v2 }
 0x4c4   : > { %v15316_v38 = vadd.f32 %v5129_v15, %v4855_v54  ;;  %9668 = vpow2.f32 %v8398_v29 }
 0x4c5   : > { %v8994_v13 = vpop.f32.mrf.mxu0  ;;  %9321 = vmatmul.mubr.msk.f32.gmra.mxu0 %vm17865_vm5, %v14701_v52  ;;  %v15320_v58 = vpop.f32.mrf.mxu1  ;;  %v6676_v52 = vadd.f32 %v5054_v37, %v4840_v5  ;;  %9670 = vpow2.f32 %v8397_v12  ;;  %vm18139_vm5 = vmmov %vm17652_vm0 }
 0x4c6   : > { %17866 = vst [vmem:[#allocation112_spill] sm:$0xff] %v15320_v58  ;;  %v5139_v25 = vadd.f32 %v8994_v13, %v15172_v26  ;;  %9323 = vmatprep.mubr.msk.f32.mxu0 %vm17652_vm0, %v14706_v4  ;;  %v4842_v4 = vadd.f32 %v15163_v20, %v4693_v36  ;;  %v4703_v13 = vadd.f32 %v14440_v0, %v14596_v21  ;;  %9672 = vpow2.f32 %v8400_v59  ;;  %v17874_v36 = vld [vmem:[#allocation53_spill] sm:$0xff]  ;;  %v17877_v0 = vld [vmem:[#allocation35_spill] sm:$0xff]  ;;  %v17878_v21 = vld [vmem:[#allocation38_spill] sm:$0xff] }
 0x4c7   : > { %v15330_v16 = vpop.f32.mrf.mxu0  ;;  %v15332_v24 = vpop.f32.mrf.mxu1  ;;  %v8399_v29 = vmul.f32 -1.442695, %v6676_v52  ;;  %v17875_v52 = vld [vmem:[#allocation70_spill] sm:$0xff] }
 0x4c8   : > { %17867 = vst [vmem:[#allocation129_spill] sm:$0xff] %v15332_v24  ;;  %v15336_v54 = vadd.f32 %v5139_v25, %v4857_v49  ;;  %v6678_v37 = vadd.f32 %v5064_v18, %v4842_v4  ;;  %v4798_v49 = vadd.f32 %v17874_v36, %v15082_v63  ;;  %v8402_v25 = vmul.f32 -1.442695, %v15216_v55  ;;  %v17880_v4 = vld [vmem:[#allocation26_spill] sm:$0xff]  ;;  %v17883_v36 = vld [vmem:[#allocation55_spill] sm:$0xff] }
 0x4c9   : > { %v8997_v30 = vpop.f32.mrf.mxu0  ;;  %9324 = vmatmul.mubr.msk.f32.gmra.mxu0 %vm17868_vm6, %v14722_v33  ;;  %v15341_v60 = vpop.f32.mrf.mxu1  ;;  %v4713_v18 = vadd.f32 %v17878_v21, %v17877_v0  ;;  %9674 = vpow2.f32 %v8399_v29  ;;  %v4844_v55 = vadd.f32 %v15163_v20, %v4703_v13  ;;  %v17884_v0 = vld [vmem:[#allocation42_spill] sm:$0xff]  ;;  %v17885_v21 = vld [vmem:[#allocation44_spill] sm:$0xff]  ;;  %vm18144_vm6 = vmmov %vm17652_vm0 }
 0x4ca   : > { %17869 = vst [vmem:[#allocation131_spill] sm:$0xff] %v15341_v60  ;;  %v5149_v15 = vadd.f32 %v8997_v30, %v15172_v26  ;;  %9326 = vmatprep.mubr.msk.f32.mxu0 %vm17870_vm9, %v14727_v6  ;;  %v4861_v6 = vadd.f32 %v15163_v20, %v14757_v46  ;;  %v8401_v30 = vmul.f32 -1.442695, %v6678_v37  ;;  %v5074_v46 = vadd.f32 %v15172_v26, %v15227_v10  ;;  %v17889_v37 = vld [vmem:[#allocation61_spill] sm:$0xff]  ;;  %vm18145_vm9 = vmmov %vm17652_vm0 }
 0x4cb   : > { %v15349_v11 = vpop.f32.mrf.mxu0  ;;  %v15351_v8 = vpop.f32.mrf.mxu1  ;;  %v4863_v10 = vadd.f32 %v15163_v20, %v4798_v49  ;;  %v4808_v13 = vadd.f32 %v17889_v37, %v15106_v39  ;;  %9676 = vpow2.f32 %v8402_v25 }
 0x4cc   : > { %17871 = vst [vmem:[#allocation120_spill] sm:$0xff] %v15351_v8  ;;  %v15353_v33 = vadd.f32 %v5149_v15, %v4859_v14  ;;  %v17881_v14 = vld [vmem:[#allocation39_spill] sm:$0xff]  ;;  %9678 = vpow2.f32 %v8401_v30  ;;  %v6680_v39 = vadd.f32 %v5074_v46, %v4844_v55 }
 0x4cd   : > { %v9000_v5 = vpop.f32.mrf.mxu0  ;;  %9327 = vmatmul.mubr.msk.f32.gmra.mxu0 %vm17872_vm11, %v14742_v51  ;;  %v15359_v2 = vpop.f32.mrf.mxu1  ;;  %v4723_v15 = vadd.f32 %v17881_v14, %v17880_v4  ;;  %v4846_v4 = vadd.f32 %v15163_v20, %v4713_v18  ;;  %v17892_v14 = vld [vmem:[#allocation13_spill] sm:$0xff]  ;;  %v4865_v55 = vadd.f32 %v15163_v20, %v4808_v13  ;;  %vm18150_vm11 = vmmov %vm17652_vm0 }
 0x4ce   : > { %17873 = vst [vmem:[#allocation62_spill] sm:$0xff] %v15359_v2  ;;  %v5159_v12 = vadd.f32 %v9000_v5, %v15172_v26  ;;  %9329 = vmatprep.mubr.msk.f32.mxu0 %vm17876_vm7, %v17875_v52  ;;  %v17882_v5 = vld [vmem:[#allocation51_spill] sm:$0xff]  ;;  %v4743_v2 = vadd.f32 %v17885_v21, %v17884_v0  ;;  %vm18151_vm7 = vmmov %vm17652_vm0 }
 0x4cf   : > { %v15371_v59 = vpop.f32.mrf.mxu0  ;;  %v15373_v51 = vpop.f32.mrf.mxu1  ;;  %v4733_v52 = vadd.f32 %v17883_v36, %v17882_v5  ;;  %v17893_v5 = vld [vmem:[#allocation54_spill] sm:$0xff]  ;;  %v17894_v0 = vld [vmem:[#allocation43_spill] sm:$0xff]  ;;  %v4848_v18 = vadd.f32 %v15163_v20, %v4723_v15 }
 0x4d0   : > { %17879 = vst [vmem:[#allocation101_spill] sm:$0xff] %v15373_v51  ;;  %v15377_v63 = vadd.f32 %v5159_v12, %v4861_v6  ;;  %v17886_v51 = vld [vmem:[#allocation10_spill] sm:$0xff]  ;;  %v17890_v12 = vld [vmem:[#allocation45_spill] sm:$0xff]  ;;  %v4753_v36 = vadd.f32 %v17893_v5, %v17892_v14  ;;  %v15423_v46 = vadd.f32 %v15163_v20, %v4743_v2  ;;  %v17905_v15 = vld [vmem:[#allocation59_spill] sm:$0xff] }
 0x4d1   : > { %v9003_v8 = vpop.f32.mrf.mxu0  ;;  %9330 = vmatmul.mubr.msk.f32.gmra.mxu0 %vm17887_vm14, %v17886_v51  ;;  %v15388_v29 = vpop.f32.mrf.mxu1  ;;  %v17895_v51 = vld [vmem:[#allocation5_spill] sm:$0xff]  ;;  %v15412_v37 = vadd.f32 %v15163_v20, %v4733_v52  ;;  %v4818_v52 = vadd.f32 %v17905_v15, %v15130_v56  ;;  %v8403_v15 = vmul.f32 -1.442695, %v6680_v39  ;;  %vm18155_vm14 = vmmov %vm17652_vm0 }
 0x4d2   : > { %17888 = vst [vmem:[#allocation97_spill] sm:$0xff] %v15388_v29  ;;  %v5169_v6 = vadd.f32 %v9003_v8, %v15172_v26  ;;  %9332 = vmatprep.mubr.msk.f32.mxu0 %vm17891_vm10, %v17890_v12  ;;  %v4763_v21 = vadd.f32 %v17895_v51, %v17894_v0  ;;  %v8404_v29 = vmul.f32 -1.442695, %v15231_v35  ;;  %v5084_v8 = vadd.f32 %v15172_v26, %v15242_v40  ;;  %v17898_v12 = vld [vmem:[#allocation68_spill] sm:$0xff]  ;;  %v17899_v14 = vld [vmem:[#allocation37_spill] sm:$0xff]  ;;  %v9669_v40 = vpop.eup %9668  ;;  %vm18156_vm10 = vmmov %vm17652_vm0 }
 0x4d3   : > { %v15402_v49 = vpop.f32.mrf.mxu0  ;;  %v15404_v60 = vpop.f32.mrf.mxu1  ;;  %v4773_v5 = vadd.f32 %v17899_v14, %v17898_v12  ;;  %v17900_v35 = vld [vmem:[#allocation96_spill] sm:$0xff]  ;;  %v17901_v0 = vld [vmem:[#allocation49_spill] sm:$0xff]  ;;  %v15432_v12 = vadd.f32 %v15163_v20, %v4753_v36 }
 0x4d4   : > { %17896 = vst [vmem:[#allocation103_spill] sm:$0xff] %v15404_v60  ;;  %v15408_v25 = vadd.f32 %v5169_v6, %v4863_v10  ;;  %v4783_v51 = vadd.f32 %v17901_v0, %v17900_v35  ;;  %v17902_v60 = vld [vmem:[#allocation52_spill] sm:$0xff]  ;;  %v17906_v6 = vld [vmem:[#allocation67_spill] sm:$0xff]  ;;  %9680 = vpow2.f32 %v8404_v29  ;;  %v9671_v56 = vpop.eup %9670  ;;  %v5094_v29 = vadd.f32 %v15172_v26, %v15257_v53 }
 0x4d5   : > { %v9006_v24 = vpop.f32.mrf.mxu0  ;;  %9333 = vmatmul.mubr.msk.f32.gmra.mxu0 %vm17903_vm15, %v17902_v60  ;;  %v15420_v30 = vpop.f32.mrf.mxu1  ;;  %v17908_v60 = vld [vmem:[#allocation58_spill] sm:$0xff]  ;;  %v17909_v35 = vld [vmem:[#allocation64_spill] sm:$0xff]  ;;  %v15448_v36 = vadd.f32 %v15163_v20, %v4773_v5  ;;  %9682 = vpow2.f32 %v8403_v15  ;;  %vm18161_vm15 = vmmov %vm17652_vm0 }
 0x4d6   : > { %17897 = vst [vmem:[#allocation127_spill] sm:$0xff] %v15408_v25  ;;  %17904 = vst [vmem:[#allocation114_spill] sm:$0xff] %v15420_v30  ;;  %v5179_v10 = vadd.f32 %v9006_v24, %v15172_v26  ;;  %9335 = vmatprep.mubr.msk.f32.mxu0 %vm17907_vm4, %v17906_v6  ;;  %v4793_v14 = vadd.f32 %v17908_v60, %v15094_v47  ;;  %v4813_v2 = vadd.f32 %v17909_v35, %v15142_v43  ;;  %v17912_v35 = vld [vmem:[#allocation65_spill] sm:$0xff]  ;;  %v9673_v39 = vpop.eup %9672  ;;  %v17919_v25 = vld [vmem:[#allocation60_spill] sm:$0xff] }
 0x4d7   : > { %v15438_v0 = vpop.f32.mrf.mxu0  ;;  %v15440_v13 = vpop.f32.mrf.mxu1  ;;  %v15443_v24 = vadd.f32 %v15163_v20, %v4763_v21  ;;  %v6682_v6 = vadd.f32 %v5084_v8, %v4846_v4  ;;  %v15451_v47 = vadd.f32 %v15163_v20, %v4783_v51  ;;  %v6803_v43 = vadd.f32 1.0, %v9669_v40  ;;  %v17915_v8 = vld [vmem:[#allocation79_spill] sm:$0xff]  ;;  %v17916_v40 = vld [vmem:[#allocation21_spill] sm:$0xff]  ;;  %v17921_v15 = vld [vmem:[#allocation40_spill] sm:$0xff] }
 0x4d8   : > { %17910 = vst [vmem:[#allocation117_spill] sm:$0xff] %v15440_v13  ;;  %v15445_v30 = vadd.f32 %v5179_v10, %v4865_v55  ;;  %v4867_v4 = vadd.f32 %v15163_v20, %v4818_v52  ;;  %v4828_v5 = vadd.f32 %v17915_v8, %v15152_v9  ;;  %v8406_v55 = vmul.f32 -1.442695, %v15246_v22  ;;  %v9675_v8 = vpop.eup %9674  ;;  %vm18162_vm4 = vmmov %vm17652_vm0 }
 0x4d9   : > { %v9009_v60 = vpop.f32.mrf.mxu0  ;;  %9336 = vmatmul.mubr.msk.f32.gmra.mxu0 %vm17913_vm13, %v17912_v35  ;;  %v15457_v21 = vpop.f32.mrf.mxu1  ;;  %v15467_v53 = vadd.f32 %v15163_v20, %v4793_v14  ;;  %v4866_v10 = vadd.f32 %v15163_v20, %v4813_v2  ;;  %v17918_v35 = vld [vmem:[#allocation81_spill] sm:$0xff]  ;;  %v6802_v13 = vadd.f32 1.0, %v9671_v56  ;;  %v8405_v9 = vmul.f32 -1.442695, %v6682_v6  ;;  %vm18167_vm13 = vmmov %vm17652_vm0 }
 0x4da   : > { %17911 = vst [vmem:[#allocation80_spill] sm:$0xff] %v15445_v30  ;;  %17914 = vst [vmem:[#allocation116_spill] sm:$0xff] %v15457_v21  ;;  %v5189_v51 = vadd.f32 %v9009_v60, %v15172_v26  ;;  %9338 = vmatprep.mubr.msk.f32.mxu0 %vm17917_vm2, %v17916_v40  ;;  %v4823_v21 = vadd.f32 %v17918_v35, %v15165_v50  ;;  %9684 = vrcp.f32 %v6803_v43  ;;  %v6805_v40 = vadd.f32 1.0, %v9673_v39  ;;  %v15484_v50 = vld [vmem:[%s16826_s10 + $0x1] ss:$0 sm:$0xff] }
 0x4db   : > { %v5183_v52 = vpop.f32.mrf.mxu0  ;;  %v15472_v30 = vpop.f32.mrf.mxu1  ;;  %v6684_v14 = vadd.f32 %v5094_v29, %v4848_v18  ;;  %v5104_v2 = vadd.f32 %v15172_v26, %v15272_v34  ;;  %v4803_v6 = vadd.f32 %v17921_v15, %v15118_v48  ;;  %v4869_v43 = vadd.f32 %v15163_v20, %v4828_v5  ;;  %vm18168_vm2 = vmmov %vm17652_vm0 }
 0x4dc   : > { %v15474_v22 = vadd.f32 %v5189_v51, %v4867_v4  ;;  %v5184_v60 = vadd.f32 %v15172_v26, %v5183_v52  ;;  %9686 = vpow2.f32 %v8406_v55  ;;  %v9677_v34 = vpop.eup %9676  ;;  %v4868_v29 = vadd.f32 %v15163_v20, %v4823_v21 }
 0x4dd   : > { %v9012_v58 = vpop.f32.mrf.mxu0  ;;  %9339 = vmatmul.mubr.msk.f32.gmra.mxu0 %vm17920_vm1, %v17919_v25  ;;  %v15486_v56 = vpop.f32.mrf.mxu1  ;;  %9688 = vrcp.f32 %v6802_v13  ;;  %v8408_v25 = vmul.f32 -1.442695, %v15261_v42  ;;  %v6804_v35 = vadd.f32 1.0, %v9675_v8  ;;  %v5785_v5 = vadd.f32 %v15177_v44, %v15484_v50  ;;  %v17922_v8 = vld [vmem:[#allocation17_spill] sm:$0xff]  ;;  %vm18174_vm1 = vmmov %vm17652_vm0 }
 0x4de   : > { %v15491_v18 = vadd.f32 %v5184_v60, %v4866_v10  ;;  %v5199_v39 = vadd.f32 %v9012_v58, %v15172_v26  ;;  %9690 = vpow2.f32 %v8405_v9  ;;  %v9679_v55 = vpop.eup %9678  ;;  %v8407_v10 = vmul.f32 -1.442695, %v6684_v14  ;;  %v15507_v58 = vld [vmem:[%s16824_s8 + $0x1] ss:$0 sm:$0xff] }
 0x4df   : > { %v5193_v4 = vpop.f32.mrf.mxu0  ;;  %v15496_v51 = vpop.f32.mrf.mxu1  ;;  %9692 = vrcp.f32 %v6805_v40  ;;  %v6686_v21 = vadd.f32 %v5104_v2, %v15412_v37  ;;  %v6807_v9 = vadd.f32 1.0, %v9677_v34  ;;  %v5114_v60 = vadd.f32 %v15172_v26, %v15291_v31 }
 0x4e0   : > { %v5194_v48 = vadd.f32 %v15172_v26, %v5193_v4  ;;  %v15502_v13 = vadd.f32 %v5199_v39, %v4869_v43  ;;  %v15517_v37 = vadd.f32 %v15163_v20, %v4803_v6  ;;  %9694 = vpow2.f32 %v8408_v25  ;;  %v17923_v6 = vld [vmem:[#allocation56_spill] sm:$0xff] }
 0x4e1   : > { %v9075_v42 = vpop.f32.mrf.mxu0  ;;  %v15509_v52 = vpop.f32.mrf.mxu1  ;;  %v8410_v14 = vmul.f32 -1.442695, %v15276_v61  ;;  %v5780_v15 = vadd.f32 %v15484_v50, %v15186_v1  ;;  %9696 = vrcp.f32 %v6804_v35  ;;  %v6806_v39 = vadd.f32 1.0, %v9679_v55  ;;  %v17924_v55 = vld [vmem:[#allocation50_spill] sm:$0xff] }
 0x4e2   : > { %v15513_v44 = vadd.f32 %v5194_v48, %v4868_v29  ;;  %v5507_v40 = vadd.f32 %v9075_v42, %v17922_v8  ;;  %v9681_v34 = vpop.eup %9680  ;;  %v5795_v29 = vadd.f32 %v15199_v45, %v15484_v50  ;;  %9698 = vpow2.f32 %v8407_v10 }
 0x4e3   : > { %v5501_v2 = vpop.f32.mrf.mxu0  ;;  %v15522_v43 = vpop.f32.mrf.mxu1  ;;  %v8409_v20 = vmul.f32 -1.442695, %v6686_v21  ;;  %v5790_v61 = vadd.f32 %v15484_v50, %v15205_v32  ;;  %9700 = vrcp.f32 %v6807_v9  ;;  %v6688_v1 = vadd.f32 %v5114_v60, %v15423_v46  ;;  %v17925_v9 = vld [vmem:[#allocation63_spill] sm:$0xff] }
 0x4e4   : > { %v5669_v31 = vadd.f32 %v15507_v58, %v5507_v40  ;;  %v5502_v25 = vadd.f32 %v5501_v2, %v17923_v6  ;;  %v6809_v8 = vadd.f32 1.0, %v9681_v34  ;;  %9702 = vpow2.f32 %v8410_v14 }
 0x4e5   : > { %v9078_v4 = vpop.f32.mrf.mxu0  ;;  %v15530_v48 = vpop.f32.mrf.mxu1  ;;  %v5124_v45 = vadd.f32 %v15172_v26, %v15309_v7  ;;  %9704 = vrcp.f32 %v6806_v39  ;;  %v5805_v46 = vadd.f32 %v15214_v57, %v15484_v50  ;;  %v8412_v60 = vmul.f32 -1.442695, %v15295_v23  ;;  %v17927_v57 = vld [vmem:[#allocation74_spill] sm:$0xff] }
 0x4e6   : > { %v15533_v35 = vadd.f32 %v5785_v5, %v5669_v31  ;;  %v5517_v42 = vadd.f32 %v9078_v4, %v17924_v55  ;;  %v5668_v10 = vadd.f32 %v15507_v58, %v5502_v25  ;;  %v9683_v5 = vpop.eup %9682  ;;  %9706 = vpow2.f32 %v8409_v20 }
 0x4e7   : > { %v5511_v21 = vpop.f32.mrf.mxu0  ;;  %v15539_v40 = vpop.f32.mrf.mxu1  ;;  %v5800_v34 = vadd.f32 %v15484_v50, %v15220_v19  ;;  %v8411_v6 = vmul.f32 -1.442695, %v6688_v1  ;;  %9708 = vrcp.f32 %v6809_v8  ;;  %v6690_v23 = vadd.f32 %v5124_v45, %v15432_v12  ;;  %v17930_v45 = vld [vmem:[#allocation98_spill] sm:$0xff] }
 0x4e8   : > { %v5671_v32 = vadd.f32 %v15507_v58, %v5517_v42  ;;  %v5512_v2 = vadd.f32 %v5511_v21, %v17925_v9  ;;  %v15546_v14 = vadd.f32 %v5780_v15, %v5668_v10  ;;  %v15552_v39 = vpop.eup %9684  ;;  %v5134_v15 = vadd.f32 %v15172_v26, %v15330_v16  ;;  %v17929_v9 = vld [vmem:[#allocation66_spill] sm:$0xff] }
 0x4e9   : > { %v9081_v7 = vpop.f32.mrf.mxu0  ;;  %v15550_v31 = vpop.f32.mrf.mxu1  ;;  %17926 = vst [vmem:[#allocation110_spill] sm:$0xff] %v15552_v39  ;;  %v5815_v19 = vadd.f32 %v15229_v62, %v15484_v50  ;;  %9710 = vpow2.f32 %v8412_v60  ;;  %v8414_v12 = vmul.f32 -1.442695, %v15316_v38  ;;  %v5825_v62 = vadd.f32 %v15244_v41, %v15484_v50 }
 0x4ea   : > { %v15554_v25 = vadd.f32 %v5795_v29, %v5671_v32  ;;  %v5670_v4 = vadd.f32 %v15507_v58, %v5512_v2  ;;  %v5527_v55 = vadd.f32 %v9081_v7, %v17927_v57  ;;  %v9687_v20 = vpop.eup %9686  ;;  %v6808_v29 = vadd.f32 1.0, %v9683_v5 }
 0x4eb   : > { %v5521_v42 = vpop.f32.mrf.mxu0  ;;  %v15563_v10 = vpop.f32.mrf.mxu1  ;;  %v5810_v7 = vadd.f32 %v15484_v50, %v17930_v45  ;;  %9712 = vpow2.f32 %v8411_v6  ;;  %v8413_v60 = vmul.f32 -1.442695, %v6690_v23  ;;  %v6692_v38 = vadd.f32 %v5134_v15, %v15443_v24  ;;  %v17933_v6 = vld [vmem:[#allocation36_spill] sm:$0xff] }
 0x4ec   : > { %v15565_v1 = vpop.eup %9688  ;;  %v15567_v21 = vadd.f32 %v5790_v61, %v5670_v4  ;;  %v5673_v32 = vadd.f32 %v15507_v58, %v5527_v55  ;;  %v5522_v8 = vadd.f32 %v5521_v42, %v17929_v9  ;;  %v6811_v61 = vadd.f32 1.0, %v9687_v20  ;;  %v17932_v9 = vld [vmem:[#allocation73_spill] sm:$0xff]  ;;  %v17934_v20 = vld [vmem:[#allocation102_spill] sm:$0xff] }
 0x4ed   : > { %17928 = vst [vmem:[#allocation124_spill] sm:$0xff] %v15565_v1  ;;  %v9691_v2 = vpop.eup %9690  ;;  %v9084_v16 = vpop.f32.mrf.mxu0  ;;  %v5144_v42 = vadd.f32 %v15172_v26, %v15349_v11  ;;  %9714 = vrcp.f32 %v6808_v29  ;;  %v8416_v24 = vmul.f32 -1.442695, %v15336_v54 }
 0x4ee   : > { %v15576_v57 = vpop.f32.mrf.mxu1  ;;  %v15578_v5 = vpop.eup %9692  ;;  %v15580_v4 = vadd.f32 %v5805_v46, %v5673_v32  ;;  %v5672_v55 = vadd.f32 %v15507_v58, %v5522_v8  ;;  %v5537_v45 = vadd.f32 %v9084_v16, %v17932_v9  ;;  %v5820_v32 = vadd.f32 %v15484_v50, %v17934_v20 }
 0x4ef   : > { %17931 = vst [vmem:[#allocation137_spill] sm:$0xff] %v15578_v5  ;;  %v5531_v1 = vpop.f32.mrf.mxu0  ;;  %v9695_v39 = vpop.eup %9694  ;;  %9716 = vpow2.f32 %v8414_v12  ;;  %v5835_v8 = vadd.f32 %v15259_v3, %v15484_v50  ;;  %v6810_v29 = vadd.f32 1.0, %v9691_v2  ;;  %v8415_v12 = vmul.f32 -1.442695, %v6692_v38 }
 0x4f0   : > { %v15587_v41 = vpop.f32.mrf.mxu1  ;;  %v15589_v5 = vadd.f32 %v5800_v34, %v5672_v55  ;;  %v5532_v46 = vadd.f32 %v5531_v1, %v17933_v6  ;;  %v15594_v23 = vpop.eup %9696  ;;  %v5675_v11 = vadd.f32 %v15507_v58, %v5537_v45  ;;  %9718 = vrcp.f32 %v6811_v61  ;;  %v17937_v55 = vld [vmem:[#allocation71_spill] sm:$0xff] }
 0x4f1   : > { %17935 = vst [vmem:[#allocation125_spill] sm:$0xff] %v15594_v23  ;;  %v9087_v15 = vpop.f32.mrf.mxu0  ;;  %v9699_v34 = vpop.eup %9698  ;;  %9720 = vpow2.f32 %v8413_v60  ;;  %v6694_v54 = vadd.f32 %v5144_v42, %v15448_v36  ;;  %v5154_v36 = vadd.f32 %v15172_v26, %v15371_v59  ;;  %v17941_v60 = vld [vmem:[#allocation72_spill] sm:$0xff]  ;;  %v5845_v42 = vadd.f32 %v15274_v17, %v15484_v50 }
 0x4f2   : > { %v15600_v16 = vpop.f32.mrf.mxu1  ;;  %v5674_v1 = vadd.f32 %v15507_v58, %v5532_v46  ;;  %v5547_v9 = vadd.f32 %v9087_v15, %v17937_v55  ;;  %v15604_v6 = vpop.eup %9700  ;;  %v15607_v45 = vadd.f32 %v5815_v19, %v5675_v11  ;;  %v17939_v46 = vld [vmem:[#allocation77_spill] sm:$0xff]  ;;  %9722 = vpow2.f32 %v8416_v24 }
 0x4f3   : > { %17936 = vst [vmem:[#allocation134_spill] sm:$0xff] %v15600_v16  ;;  %17938 = vst [vmem:[#allocation78_spill] sm:$0xff] %v15604_v6  ;;  %v5541_v20 = vpop.f32.mrf.mxu0  ;;  %v9703_v3 = vpop.eup %9702  ;;  %v8418_v16 = vmul.f32 -1.442695, %v15353_v33  ;;  %v5830_v38 = vadd.f32 %v15484_v50, %v17941_v60  ;;  %9724 = vrcp.f32 %v6810_v29  ;;  %v6813_v11 = vadd.f32 1.0, %v9695_v39  ;;  %v17945_v39 = vld [vmem:[#allocation109_spill] sm:$0xff] }
 0x4f4   : > { %v15609_v23 = vpop.f32.mrf.mxu1  ;;  %v15612_v61 = vadd.f32 %v5810_v7, %v5674_v1  ;;  %v5677_v2 = vadd.f32 %v15507_v58, %v5547_v9  ;;  %v5542_v15 = vadd.f32 %v5541_v20, %v17939_v46  ;;  %v15616_v55 = vpop.eup %9704  ;;  %9726 = vpow2.f32 %v8415_v12  ;;  %v17942_v20 = vld [vmem:[#allocation82_spill] sm:$0xff] }
 0x4f5   : > { %17940 = vst [vmem:[#allocation115_spill] sm:$0xff] %v15616_v55  ;;  %v9090_v19 = vpop.f32.mrf.mxu0  ;;  %v9707_v7 = vpop.eup %9706  ;;  %v8417_v24 = vmul.f32 -1.442695, %v6694_v54  ;;  %v5840_v60 = vadd.f32 %v15484_v50, %v15282_v27  ;;  %v6812_v6 = vadd.f32 1.0, %v9699_v34  ;;  %9728 = vpow2.f32 %v8418_v16  ;;  %v17948_v16 = vld [vmem:[#allocation95_spill] sm:$0xff] }
 0x4f6   : > { %v15624_v33 = vpop.f32.mrf.mxu1  ;;  %v15626_v1 = vadd.f32 %v5825_v62, %v5677_v2  ;;  %v5676_v9 = vadd.f32 %v15507_v58, %v5542_v15  ;;  %v5557_v59 = vadd.f32 %v9090_v19, %v17942_v20  ;;  %v15634_v17 = vpop.eup %9708  ;;  %v5855_v62 = vadd.f32 %v17945_v39, %v15484_v50  ;;  %v17946_v15 = vld [vmem:[#allocation93_spill] sm:$0xff] }
 0x4f7   : > { %v5551_v46 = vpop.f32.mrf.mxu0  ;;  %17944 = vst [vmem:[#allocation118_spill] sm:$0xff] %v15634_v17  ;;  %v8420_v12 = vmul.f32 -1.442695, %v15377_v63  ;;  %v6696_v54 = vadd.f32 %v5154_v36, %v15451_v47  ;;  %9730 = vrcp.f32 %v6813_v11  ;;  %v6815_v17 = vadd.f32 1.0, %v9703_v3 }
 0x4f8   : > { %v15632_v55 = vpop.f32.mrf.mxu1  ;;  %v15636_v29 = vadd.f32 %v5820_v32, %v5676_v9  ;;  %v5679_v2 = vadd.f32 %v15507_v58, %v5557_v59  ;;  %v5552_v19 = vadd.f32 %v5551_v46, %v17946_v15  ;;  %v5164_v32 = vadd.f32 %v15172_v26, %v15402_v49  ;;  %v17949_v9 = vld [vmem:[#allocation104_spill] sm:$0xff]  ;;  %v17950_v49 = vld [vmem:[#allocation85_spill] sm:$0xff] }
 0x4f9   : > { %17943 = vst [vmem:[#allocation108_spill] sm:$0xff] %v15632_v55  ;;  %v9093_v27 = vpop.f32.mrf.mxu0  ;;  %v9711_v55 = vpop.eup %9710  ;;  %v5850_v39 = vadd.f32 %v15484_v50, %v17949_v9  ;;  %9732 = vpow2.f32 %v8417_v24  ;;  %v6814_v11 = vadd.f32 1.0, %v9707_v7  ;;  %v8419_v9 = vmul.f32 -1.442695, %v6696_v54 }
 0x4fa   : > { %v15644_v20 = vpop.f32.mrf.mxu1  ;;  %v5567_v34 = vadd.f32 %v9093_v27, %v17948_v16  ;;  %v9713_v63 = vpop.eup %9712  ;;  %v15651_v47 = vadd.f32 %v5835_v8, %v5679_v2  ;;  %v5678_v36 = vadd.f32 %v15507_v58, %v5552_v19  ;;  %9734 = vrcp.f32 %v6812_v6 }
 0x4fb   : > { %17947 = vst [vmem:[#allocation133_spill] sm:$0xff] %v15644_v20  ;;  %v5561_v59 = vpop.f32.mrf.mxu0  ;;  %v15658_v27 = vpop.eup %9714  ;;  %v6817_v16 = vadd.f32 1.0, %v9711_v55  ;;  %9736 = vpow2.f32 %v8420_v12  ;;  %v6698_v19 = vadd.f32 %v5164_v32, %v15467_v53  ;;  %v5174_v6 = vadd.f32 %v15172_v26, %v15438_v0  ;;  %v17953_v12 = vld [vmem:[#allocation34_spill] sm:$0xff]  ;;  %v17955_v32 = vld [vmem:[#allocation127_spill] sm:$0xff] }
 0x4fc   : > { %v15654_v46 = vpop.f32.mrf.mxu1  ;;  %v5681_v15 = vadd.f32 %v15507_v58, %v5567_v34  ;;  %v5562_v20 = vadd.f32 %v5561_v59, %v17950_v49  ;;  %17951 = vst [vmem:[#allocation123_spill] sm:$0xff] %v15658_v27  ;;  %v15660_v3 = vadd.f32 %v5830_v38, %v5678_v36  ;;  %v9717_v2 = vpop.eup %9716  ;;  %9738 = vrcp.f32 %v6815_v17 }
 0x4fd   : > { %v9096_v8 = vpop.f32.mrf.mxu0  ;;  %v15670_v59 = vpop.eup %9718  ;;  %v6816_v55 = vadd.f32 1.0, %v9713_v63  ;;  %v5865_v36 = vadd.f32 %v15311_v28, %v15484_v50  ;;  %9740 = vrcp.f32 %v6814_v11  ;;  %v8422_v26 = vmul.f32 -1.442695, %v17955_v32  ;;  %v17957_v63 = vld [vmem:[#allocation76_spill] sm:$0xff]  ;;  %v17959_v32 = vld [vmem:[#allocation69_spill] sm:$0xff] }
 0x4fe   : > { %v15662_v24 = vpop.f32.mrf.mxu1  ;;  %v15667_v7 = vadd.f32 %v5845_v42, %v5681_v15  ;;  %v5680_v34 = vadd.f32 %v15507_v58, %v5562_v20  ;;  %17952 = vst [vmem:[#allocation132_spill] sm:$0xff] %v15670_v59  ;;  %v5577_v38 = vadd.f32 %v9096_v8, %v17953_v12  ;;  %v9721_v53 = vpop.eup %9720  ;;  %v17956_v42 = vld [vmem:[#allocation112_spill] sm:$0xff]  ;;  %v6819_v15 = vadd.f32 1.0, %v9717_v2 }
 0x4ff   : > { %v5571_v54 = vpop.f32.mrf.mxu0  ;;  %v5860_v20 = vadd.f32 %v15484_v50, %v17956_v42  ;;  %9742 = vpow2.f32 %v8419_v9  ;;  %v9723_v28 = vpop.eup %9722  ;;  %v8421_v27 = vmul.f32 -1.442695, %v6698_v19  ;;  %v6700_v11 = vadd.f32 %v5174_v6, %v15517_v37  ;;  %v17963_v37 = vld [vmem:[#allocation75_spill] sm:$0xff] }
 0x500   : > { %v15675_v49 = vpop.f32.mrf.mxu1  ;;  %v15678_v0 = vadd.f32 %v5840_v60, %v5680_v34  ;;  %v5683_v17 = vadd.f32 %v15507_v58, %v5577_v38  ;;  %v5572_v8 = vadd.f32 %v5571_v54, %v17957_v63  ;;  %9744 = vrcp.f32 %v6817_v16  ;;  %v15688_v34 = vpop.eup %9724 }
 0x501   : > { %17954 = vst [vmem:[#allocation89_spill] sm:$0xff] %v15675_v49  ;;  %v9099_v12 = vpop.f32.mrf.mxu0  ;;  %17960 = vst [vmem:[#allocation130_spill] sm:$0xff] %v15688_v34  ;;  %9746 = vrcp.f32 %v6816_v55  ;;  %v6818_v42 = vadd.f32 1.0, %v9721_v53  ;;  %v9727_v63 = vpop.eup %9726  ;;  %v17964_v53 = vld [vmem:[#allocation129_spill] sm:$0xff]  ;;  %v8423_v34 = vmul.f32 -1.442695, %v6700_v11 }
 0x502   : > { %v15684_v59 = vpop.f32.mrf.mxu1  ;;  %v5587_v60 = vadd.f32 %v9099_v12, %v17959_v32  ;;  %v15690_v2 = vadd.f32 %v5855_v62, %v5683_v17  ;;  %v5682_v9 = vadd.f32 %v15507_v58, %v5572_v8  ;;  %9748 = vpow2.f32 %v8422_v26  ;;  %v9729_v12 = vpop.eup %9728  ;;  %v17970_v11 = vld [vmem:[#allocation90_spill] sm:$0xff] }
 0x503   : > { %17958 = vst [vmem:[#allocation122_spill] sm:$0xff] %v15684_v59  ;;  %v5581_v38 = vpop.f32.mrf.mxu0  ;;  %v17962_v59 = vld [vmem:[#allocation80_spill] sm:$0xff]  ;;  %9750 = vrcp.f32 %v6819_v15  ;;  %v6821_v32 = vadd.f32 1.0, %v9723_v28  ;;  %v5875_v17 = vadd.f32 %v17964_v53, %v15484_v50 }
 0x504   : > { %v15693_v54 = vpop.f32.mrf.mxu1  ;;  %v8424_v16 = vmul.f32 -1.442695, %v17962_v59  ;;  %v5685_v19 = vadd.f32 %v15507_v58, %v5587_v60  ;;  %v5582_v6 = vadd.f32 %v5581_v38, %v17963_v37  ;;  %v15698_v55 = vadd.f32 %v5850_v39, %v5682_v9  ;;  %v15707_v60 = vpop.eup %9730  ;;  %v17967_v15 = vld [vmem:[#allocation88_spill] sm:$0xff]  ;;  %v17968_v9 = vld [vmem:[#allocation131_spill] sm:$0xff] }
 0x505   : > { %17961 = vst [vmem:[#allocation139_spill] sm:$0xff] %v15693_v54  ;;  %v9102_v62 = vpop.f32.mrf.mxu0  ;;  %9752 = vpow2.f32 %v8421_v27  ;;  %17966 = vst [vmem:[#allocation152_spill] sm:$0xff] %v15707_v60  ;;  %v6820_v38 = vadd.f32 1.0, %v9727_v63  ;;  %v5870_v37 = vadd.f32 %v15484_v50, %v17968_v9  ;;  %v8426_v27 = vmul.f32 -1.442695, %v15474_v22  ;;  %v17973_v22 = vld [vmem:[#allocation120_spill] sm:$0xff] }
 0x506   : > { %v15702_v8 = vpop.f32.mrf.mxu1  ;;  %v15704_v26 = vadd.f32 %v5865_v36, %v5685_v19  ;;  %v5684_v59 = vadd.f32 %v15507_v58, %v5582_v6  ;;  %9754 = vrcp.f32 %v6818_v42  ;;  %v5597_v28 = vadd.f32 %v9102_v62, %v17967_v15  ;;  %v9733_v53 = vpop.eup %9732 }
 0x507   : > { %17965 = vst [vmem:[#allocation149_spill] sm:$0xff] %v15702_v8  ;;  %v5591_v39 = vpop.f32.mrf.mxu0  ;;  %9756 = vpow2.f32 %v8424_v16  ;;  %v15718_v6 = vpop.eup %9734  ;;  %v6823_v42 = vadd.f32 1.0, %v9729_v12  ;;  %v8425_v60 = vmul.f32 -1.442695, %v15491_v18  ;;  %v17977_v18 = vld [vmem:[#allocation57_spill] sm:$0xff] }
 0x508   : > { %v15712_v54 = vpop.f32.mrf.mxu1  ;;  %v15715_v36 = vadd.f32 %v5860_v20, %v5684_v59  ;;  %v5592_v19 = vadd.f32 %v5591_v39, %v17970_v11  ;;  %17971 = vst [vmem:[#allocation87_spill] sm:$0xff] %v15718_v6  ;;  %9758 = vrcp.f32 %v6821_v32  ;;  %v5687_v63 = vadd.f32 %v15507_v58, %v5597_v28  ;;  %v9737_v9 = vpop.eup %9736  ;;  %v17974_v32 = vld [vmem:[#allocation84_spill] sm:$0xff] }
 0x509   : > { %17969 = vst [vmem:[#allocation143_spill] sm:$0xff] %v15712_v54  ;;  %v9105_v62 = vpop.f32.mrf.mxu0  ;;  %9760 = vpow2.f32 %v8423_v34  ;;  %v5885_v20 = vadd.f32 %v17973_v22, %v15484_v50  ;;  %v6822_v59 = vadd.f32 1.0, %v9733_v53  ;;  %v15732_v6 = vpop.eup %9738 }
 0x50a   : > { %v15721_v15 = vpop.f32.mrf.mxu1  ;;  %v5686_v16 = vadd.f32 %v15507_v58, %v5592_v19  ;;  %9762 = vrcp.f32 %v6820_v38  ;;  %v15727_v39 = vadd.f32 %v5875_v17, %v5687_v63  ;;  %v5607_v12 = vadd.f32 %v9105_v62, %v17974_v32  ;;  %17976 = vst [vmem:[#allocation138_spill] sm:$0xff] %v15732_v6  ;;  %v17978_v19 = vld [vmem:[#allocation62_spill] sm:$0xff]  ;;  %v15739_v22 = vpop.eup %9740  ;;  %v17980_v63 = vld [vmem:[#allocation101_spill] sm:$0xff] }
 0x50b   : > { %17972 = vst [vmem:[#allocation128_spill] sm:$0xff] %v15721_v15  ;;  %v5601_v11 = vpop.f32.mrf.mxu0  ;;  %9764 = vpow2.f32 %v8426_v27  ;;  %v5880_v54 = vadd.f32 %v15484_v50, %v17978_v19  ;;  %17979 = vst [vmem:[#allocation146_spill] sm:$0xff] %v15739_v22  ;;  %v8428_v17 = vmul.f32 -1.442695, %v15502_v13  ;;  %v5895_v62 = vadd.f32 %v17980_v63, %v15484_v50  ;;  %v17984_v22 = vld [vmem:[#allocation97_spill] sm:$0xff] }
 0x50c   : > { %v15730_v28 = vpop.f32.mrf.mxu1  ;;  %v15734_v34 = vadd.f32 %v5870_v37, %v5686_v16  ;;  %v5602_v15 = vadd.f32 %v5601_v11, %v17977_v18  ;;  %9766 = vrcp.f32 %v6823_v42  ;;  %v5689_v38 = vadd.f32 %v15507_v58, %v5607_v12  ;;  %v9743_v37 = vpop.eup %9742  ;;  %v17982_v11 = vld [vmem:[#allocation92_spill] sm:$0xff] }
 0x50d   : > { %17975 = vst [vmem:[#allocation121_spill] sm:$0xff] %v15730_v28  ;;  %v9108_v53 = vpop.f32.mrf.mxu0  ;;  %v6825_v27 = vadd.f32 1.0, %v9737_v9  ;;  %9768 = vpow2.f32 %v8425_v60  ;;  %v15749_v19 = vpop.eup %9744  ;;  %v8427_v13 = vmul.f32 -1.442695, %v15513_v44  ;;  %v5890_v63 = vadd.f32 %v15484_v50, %v17984_v22 }
 0x50e   : > { %v15745_v32 = vpop.f32.mrf.mxu1  ;;  %v5688_v16 = vadd.f32 %v15507_v58, %v5602_v15  ;;  %v5617_v18 = vadd.f32 %v9108_v53, %v17982_v11  ;;  %17983 = vst [vmem:[#allocation140_spill] sm:$0xff] %v15749_v19  ;;  %9770 = vrcp.f32 %v6822_v59  ;;  %v15752_v42 = vadd.f32 %v5885_v20, %v5689_v38  ;;  %v17987_v53 = vld [vmem:[#allocation99_spill] sm:$0xff] }
 0x50f   : > { %17981 = vst [vmem:[#allocation148_spill] sm:$0xff] %v15745_v32  ;;  %v5611_v12 = vpop.f32.mrf.mxu0  ;;  %v15758_v32 = vpop.eup %9746  ;;  %v8430_v60 = vmul.f32 -1.442695, %v15533_v35  ;;  %v6824_v44 = vadd.f32 1.0, %v9743_v37  ;;  %9772 = vpow2.f32 %v8428_v17  ;;  %v17988_v38 = vld [vmem:[#allocation103_spill] sm:$0xff]  ;;  %v17991_v17 = vld [vmem:[#allocation113_spill] sm:$0xff] }
 0x510   : > { %v15756_v6 = vpop.f32.mrf.mxu1  ;;  %17986 = vst [vmem:[#allocation136_spill] sm:$0xff] %v15758_v32  ;;  %v15761_v15 = vadd.f32 %v5880_v54, %v5688_v16  ;;  %v5691_v9 = vadd.f32 %v15507_v58, %v5617_v18  ;;  %v5612_v59 = vadd.f32 %v5611_v12, %v17987_v53  ;;  %v9749_v11 = vpop.eup %9748  ;;  %v5905_v19 = vadd.f32 %v17988_v38, %v15484_v50  ;;  %v17992_v32 = vld [vmem:[#allocation114_spill] sm:$0xff] }
 0x511   : > { %17985 = vst [vmem:[#allocation100_spill] sm:$0xff] %v15756_v6  ;;  %v9111_v20 = vpop.f32.mrf.mxu0  ;;  %v15769_v6 = vpop.eup %9750  ;;  %9774 = vrcp.f32 %v6825_v27  ;;  %v8429_v35 = vmul.f32 -1.442695, %v15546_v14  ;;  %v8432_v37 = vmul.f32 -1.442695, %v15554_v25  ;;  %v5900_v38 = vadd.f32 %v15484_v50, %v17992_v32  ;;  %v17995_v27 = vld [vmem:[#allocation106_spill] sm:$0xff] }
 0x512   : > { %v15767_v22 = vpop.f32.mrf.mxu1  ;;  %17990 = vst [vmem:[#allocation147_spill] sm:$0xff] %v15769_v6  ;;  %v15772_v54 = vadd.f32 %v5895_v62, %v5691_v9  ;;  %v5690_v16 = vadd.f32 %v15507_v58, %v5612_v59  ;;  %v9753_v18 = vpop.eup %9752  ;;  %9776 = vpow2.f32 %v8427_v13  ;;  %v5627_v12 = vadd.f32 %v9111_v20, %v17991_v17  ;;  %v17996_v17 = vld [vmem:[#allocation117_spill] sm:$0xff] }
 0x513   : > { %17989 = vst [vmem:[#allocation142_spill] sm:$0xff] %v15767_v22  ;;  %v5621_v53 = vpop.f32.mrf.mxu0  ;;  %v15781_v6 = vpop.eup %9754  ;;  %9778 = vpow2.f32 %v8430_v60  ;;  %v8431_v14 = vmul.f32 -1.442695, %v15567_v21  ;;  %v6827_v25 = vadd.f32 1.0, %v9749_v11  ;;  %v5915_v32 = vadd.f32 %v17996_v17, %v15484_v50  ;;  %v17999_v60 = vld [vmem:[#allocation111_spill] sm:$0xff] }
 0x514   : > { %v15779_v22 = vpop.f32.mrf.mxu1  ;;  %17994 = vst [vmem:[#allocation155_spill] sm:$0xff] %v15781_v6  ;;  %v15784_v62 = vadd.f32 %v5890_v63, %v5690_v16  ;;  %v5622_v9 = vadd.f32 %v5621_v53, %v17995_v27  ;;  %v9757_v13 = vpop.eup %9756  ;;  %9780 = vrcp.f32 %v6824_v44  ;;  %v5693_v59 = vadd.f32 %v15507_v58, %v5627_v12  ;;  %v18000_v27 = vld [vmem:[#allocation116_spill] sm:$0xff] }
 0x515   : > { %17993 = vst [vmem:[#allocation157_spill] sm:$0xff] %v15779_v22  ;;  %v9114_v20 = vpop.f32.mrf.mxu0  ;;  %v15792_v22 = vpop.eup %9758  ;;  %9782 = vpow2.f32 %v8429_v35  ;;  %v8434_v21 = vmul.f32 -1.442695, %v15580_v4  ;;  %v6826_v44 = vadd.f32 1.0, %v9753_v18  ;;  %v5910_v17 = vadd.f32 %v15484_v50, %v18000_v27 }
 0x516   : > { %v15790_v28 = vpop.f32.mrf.mxu1  ;;  %17998 = vst [vmem:[#allocation94_spill] sm:$0xff] %v15792_v22  ;;  %v5692_v63 = vadd.f32 %v15507_v58, %v5622_v9  ;;  %v5637_v16 = vadd.f32 %v9114_v20, %v17999_v60  ;;  %v9761_v53 = vpop.eup %9760  ;;  %9784 = vpow2.f32 %v8432_v37  ;;  %v15797_v11 = vadd.f32 %v5905_v19, %v5693_v59  ;;  %v18003_v19 = vld [vmem:[#allocation46_spill] sm:$0xff] }
 0x517   : > { %17997 = vst [vmem:[#allocation156_spill] sm:$0xff] %v15790_v28  ;;  %v5631_v12 = vpop.f32.mrf.mxu0  ;;  %v15803_v28 = vpop.eup %9762  ;;  %9786 = vpow2.f32 %v8431_v14  ;;  %v8433_v4 = vmul.f32 -1.442695, %v15589_v5  ;;  %v6829_v18 = vadd.f32 1.0, %v9757_v13  ;;  %v5925_v60 = vadd.f32 %v15472_v30, %v15484_v50  ;;  %v18006_v14 = vld [vmem:[#allocation86_spill] sm:$0xff] }
 0x518   : > { %v15801_v6 = vpop.f32.mrf.mxu1  ;;  %18002 = vst [vmem:[#allocation126_spill] sm:$0xff] %v15803_v28  ;;  %v15806_v35 = vadd.f32 %v5900_v38, %v5692_v63  ;;  %v5695_v9 = vadd.f32 %v15507_v58, %v5637_v16  ;;  %v9765_v20 = vpop.eup %9764  ;;  %9788 = vrcp.f32 %v6827_v25  ;;  %v5632_v37 = vadd.f32 %v5631_v12, %v18003_v19 }
 0x519   : > { %18001 = vst [vmem:[#allocation135_spill] sm:$0xff] %v15801_v6  ;;  %v9117_v59 = vpop.f32.mrf.mxu0  ;;  %v15814_v6 = vpop.eup %9766  ;;  %9790 = vpow2.f32 %v8434_v21  ;;  %v8436_v5 = vmul.f32 -1.442695, %v15607_v45  ;;  %v6828_v13 = vadd.f32 1.0, %v9761_v53  ;;  %v5920_v30 = vadd.f32 %v15484_v50, %v15486_v56 }
 0x51a   : > { %v15812_v27 = vpop.f32.mrf.mxu1  ;;  %18005 = vst [vmem:[#allocation154_spill] sm:$0xff] %v15814_v6  ;;  %v15817_v38 = vadd.f32 %v5915_v32, %v5695_v9  ;;  %v5647_v63 = vadd.f32 %v9117_v59, %v18006_v14  ;;  %v9769_v16 = vpop.eup %9768  ;;  %9792 = vrcp.f32 %v6826_v44  ;;  %v5694_v25 = vadd.f32 %v15507_v58, %v5632_v37  ;;  %v18009_v9 = vld [vmem:[#allocation83_spill] sm:$0xff] }
 0x51b   : > { %18004 = vst [vmem:[#allocation141_spill] sm:$0xff] %v15812_v27  ;;  %v5641_v12 = vpop.f32.mrf.mxu0  ;;  %v15825_v27 = vpop.eup %9770  ;;  %9794 = vpow2.f32 %v8433_v4  ;;  %v8435_v45 = vmul.f32 -1.442695, %v15612_v61  ;;  %v5935_v21 = vadd.f32 %v15496_v51, %v15484_v50  ;;  %v6831_v53 = vadd.f32 1.0, %v9765_v20  ;;  %v18011_v61 = vld [vmem:[#allocation91_spill] sm:$0xff] }
 0x51c   : > { %v15823_v19 = vpop.f32.mrf.mxu1  ;;  %18008 = vst [vmem:[#allocation153_spill] sm:$0xff] %v15825_v27  ;;  %v5697_v32 = vadd.f32 %v15507_v58, %v5647_v63  ;;  %9796 = vrcp.f32 %v6829_v18  ;;  %v15831_v44 = vadd.f32 %v5910_v17, %v5694_v25  ;;  %v5642_v37 = vadd.f32 %v5641_v12, %v18009_v9  ;;  %v9773_v14 = vpop.eup %9772 }
 0x51d   : > { %18007 = vst [vmem:[#allocation145_spill] sm:$0xff] %v15823_v19  ;;  %v9120_v59 = vpop.f32.mrf.mxu0  ;;  %9798 = vpow2.f32 %v8436_v5  ;;  %v8438_v4 = vmul.f32 -1.442695, %v15626_v1  ;;  %v6830_v51 = vadd.f32 1.0, %v9769_v16  ;;  %v8437_v25 = vmul.f32 -1.442695, %v15636_v29 }
 0x51e   : > { %v15834_v56 = vpop.f32.mrf.mxu1  ;;  %v15837_v19 = vadd.f32 %v5925_v60, %v5697_v32  ;;  %v5657_v63 = vadd.f32 %v9120_v59, %v18011_v61  ;;  %v15840_v27 = vpop.eup %9774  ;;  %9800 = vrcp.f32 %v6828_v13  ;;  %v5696_v17 = vadd.f32 %v15507_v58, %v5642_v37  ;;  %v18014_v16 = vld [vmem:[#allocation105_spill] sm:$0xff] }
 0x51f   : > { %18010 = vst [vmem:[#allocation119_spill] sm:$0xff] %v15834_v56  ;;  %18012 = vst [vmem:[#allocation107_spill] sm:$0xff] %v15840_v27  ;;  %v5651_v20 = vpop.f32.mrf.mxu0  ;;  %v9777_v18 = vpop.eup %9776  ;;  %9802 = vpow2.f32 %v8435_v45  ;;  %v5930_v1 = vadd.f32 %v15484_v50, %v15509_v52  ;;  %v6833_v32 = vadd.f32 1.0, %v9773_v14  ;;  %v8440_v29 = vmul.f32 -1.442695, %v15651_v47 }
 0x520   : > { %v5699_v12 = vadd.f32 %v15507_v58, %v5657_v63  ;;  %v15847_v60 = vpop.f32.mrf.mxu1  ;;  %v9779_v5 = vpop.eup %9778  ;;  %9804 = vrcp.f32 %v6831_v53  ;;  %v15849_v9 = vadd.f32 %v5920_v30, %v5696_v17  ;;  %v5652_v13 = vadd.f32 %v5651_v20, %v18014_v16 }
 0x521   : > { %18013 = vst [vmem:[#allocation150_spill] sm:$0xff] %v15847_v60  ;;  %v15852_v37 = vpop.f32.mrf.mxu0  ;;  %v15854_v59 = vpop.eup %9780  ;;  %9806 = vpow2.f32 %v8438_v4  ;;  %v6832_v50 = vadd.f32 1.0, %v9777_v18  ;;  %v7027_v14 = vadd.f32 1.0, %v9779_v5  ;;  %v8439_v4 = vmul.f32 -1.442695, %v15660_v3 }
 0x522   : > { %18015 = vst [vmem:[#allocation144_spill] sm:$0xff] %v15854_v59  ;;  %v15857_v45 = vadd.f32 %v5935_v21, %v5699_v12  ;;  %v9783_v61 = vpop.eup %9782  ;;  %9808 = vrcp.f32 %v6830_v51  ;;  %v5698_v52 = vadd.f32 %v15507_v58, %v5652_v13  ;;  %v15862_v63 = vpop.f32.mrf.mxu1  ;;  %v8449_v56 = vmul.f32 -1.442695, %v15761_v15 }
 0x523   : > { %v15860_v53 = vpop.f32.mrf.mxu0  ;;  %v9785_v30 = vpop.eup %9784  ;;  %9810 = vpow2.f32 %v8437_v25  ;;  %18016 = vst [vmem:[#allocation162_spill] sm:$0xff] %v15862_v63  ;;  %v7026_v51 = vadd.f32 1.0, %v9783_v61  ;;  %v8454_v27 = vmul.f32 -1.442695, %v15797_v11  ;;  %v8456_v11 = vmul.f32 -1.442695, %v15817_v38 }
 0x524   : > { %v9787_v17 = vpop.eup %9786  ;;  %9812 = vrcp.f32 %v6833_v32  ;;  %v15865_v20 = vadd.f32 %v5930_v1, %v5698_v52  ;;  %v15871_v58 = vpop.f32.mrf.mxu1  ;;  %v7029_v12 = vadd.f32 1.0, %v9785_v30  ;;  %v8442_v1 = vmul.f32 -1.442695, %v15667_v7 }
 0x525   : > { %v15867_v47 = vpop.f32.mrf.mxu0  ;;  %v15869_v21 = vpop.eup %9788  ;;  %9814 = vpow2.f32 %v8440_v29  ;;  %v7028_v32 = vadd.f32 1.0, %v9787_v17  ;;  %v8441_v52 = vmul.f32 -1.442695, %v15678_v0  ;;  %v8444_v7 = vmul.f32 -1.442695, %v15690_v2 }
 0x526   : > { %18017 = vst [vmem:[#allocation158_spill] sm:$0xff] %v15869_v21  ;;  %v9791_v18 = vpop.eup %9790  ;;  %9816 = vrcp.f32 %v6832_v50  ;;  %v15882_v61 = vpop.f32.mrf.mxu1  ;;  %v8443_v0 = vmul.f32 -1.442695, %v15698_v55  ;;  %v8446_v2 = vmul.f32 -1.442695, %v15704_v26 }
 0x527   : > { %v15873_v25 = vpop.f32.mrf.mxu0  ;;  %v15875_v5 = vpop.eup %9792  ;;  %9818 = vrcp.f32 %v7027_v14  ;;  %v7031_v29 = vadd.f32 1.0, %v9791_v18  ;;  %v8445_v55 = vmul.f32 -1.442695, %v15715_v36  ;;  %v8448_v26 = vmul.f32 -1.442695, %v15727_v39 }
 0x528   : > { %18018 = vst [vmem:[#allocation161_spill] sm:$0xff] %v15875_v5  ;;  %v9795_v3 = vpop.eup %9794  ;;  %9820 = vpow2.f32 %v8439_v4  ;;  %v15894_v60 = vpop.f32.mrf.mxu1  ;;  %v8447_v36 = vmul.f32 -1.442695, %v15734_v34  ;;  %v8452_v21 = vmul.f32 -1.442695, %v15772_v54 }
 0x529   : > { %v15878_v16 = vpop.f32.mrf.mxu0  ;;  %v15880_v13 = vpop.eup %9796  ;;  %9822 = vrcp.f32 %v7026_v51  ;;  %v7030_v17 = vadd.f32 1.0, %v9795_v3  ;;  %v8453_v54 = vmul.f32 -1.442695, %v15806_v35  ;;  %v8458_v38 = vmul.f32 -1.442695, %v15837_v19 }
 0x52a   : > { %18019 = vst [vmem:[#allocation159_spill] sm:$0xff] %v15880_v13  ;;  %v9799_v50 = vpop.eup %9798  ;;  %9824 = vrcp.f32 %v7029_v12 }
 0x52b   : > { %v15885_v30 = vpop.f32.mrf.mxu0  ;;  %v15887_v14 = vpop.eup %9800  ;;  %9826 = vrcp.f32 %v7028_v32  ;;  %v7033_v18 = vadd.f32 1.0, %v9799_v50 }
 0x52c   : > { %18020 = vst [vmem:[#allocation151_spill] sm:$0xff] %v15887_v14  ;;  %v9803_v4 = vpop.eup %9802  ;;  %9828 = vpow2.f32 %v8442_v1 }
 0x52d   : > { %v15890_v63 = vpop.f32.mrf.mxu0  ;;  %v15892_v51 = vpop.eup %9804  ;;  %9830 = vrcp.f32 %v7031_v29  ;;  %v7032_v3 = vadd.f32 1.0, %v9803_v4 }
 0x52e   : > { %18021 = vst [vmem:[#allocation4_spill] sm:$0xff] %v15892_v51  ;;  %v9807_v12 = vpop.eup %9806  ;;  %9832 = vpow2.f32 %v8441_v52  ;;  %v15906_v51 = vpop.f32.mrf.mxu1 }
 0x52f   : > { %v15897_v13 = vpop.f32.mrf.mxu0  ;;  %v15899_v32 = vpop.eup %9808  ;;  %9834 = vrcp.f32 %v7030_v17  ;;  %v7035_v50 = vadd.f32 1.0, %v9807_v12 }
 0x530   : > { %18022 = vst [vmem:[#allocation163_spill] sm:$0xff] %v15899_v32  ;;  %v9811_v1 = vpop.eup %9810  ;;  %9836 = vpow2.f32 %v8444_v7  ;;  %v15918_v32 = vpop.f32.mrf.mxu1 }
 0x531   : > { %v15902_v14 = vpop.f32.mrf.mxu0  ;;  %v15904_v29 = vpop.eup %9812  ;;  %9838 = vrcp.f32 %v7033_v18  ;;  %v7034_v4 = vadd.f32 1.0, %v9811_v1  ;;  %v8450_v1 = vmul.f32 -1.442695, %v15752_v42 }
 0x532   : > { %18023 = vst [vmem:[#allocation23_spill] sm:$0xff] %v15904_v29  ;;  %v9815_v52 = vpop.eup %9814  ;;  %9840 = vpow2.f32 %v8443_v0 }
 0x533   : > { %v15909_v5 = vpop.f32.mrf.mxu0  ;;  %v15911_v17 = vpop.eup %9816  ;;  %9842 = vrcp.f32 %v7032_v3  ;;  %v7037_v12 = vadd.f32 1.0, %v9815_v52 }
 0x534   : > { %18024 = vst [vmem:[#allocation2_spill] sm:$0xff] %v15911_v17  ;;  %v15913_v7 = vpop.eup %9818  ;;  %9844 = vpow2.f32 %v8446_v2 }
 0x535   : > { %18025 = vst [vmem:[#allocation160_spill] sm:$0xff] %v15913_v7  ;;  %v15916_v29 = vpop.f32.mrf.mxu0  ;;  %v9821_v18 = vpop.eup %9820  ;;  %9846 = vrcp.f32 %v7035_v50 }
 0x536   : > { %v15920_v0 = vpop.eup %9822  ;;  %9848 = vpow2.f32 %v8445_v55  ;;  %v7036_v2 = vadd.f32 1.0, %v9821_v18  ;;  %v15933_v55 = vpop.f32.mrf.mxu1  ;;  %v8451_v18 = vmul.f32 -1.442695, %v15784_v62 }
 0x537   : > { %18026 = vst [vmem:[#allocation47_spill] sm:$0xff] %v15920_v0  ;;  %v15923_v17 = vpop.f32.mrf.mxu0  ;;  %v15925_v3 = vpop.eup %9824  ;;  %9850 = vrcp.f32 %v7034_v4 }
 0x538   : > { %v15928_v39 = vpop.eup %9826  ;;  %9852 = vpow2.f32 %v8448_v26  ;;  %v15946_v6 = vpop.f32.mrf.mxu1 }
 0x539   : > { %18027 = vst [vmem:[#allocation16_spill] sm:$0xff] %v15928_v39  ;;  %v15930_v50 = vpop.f32.mrf.mxu0  ;;  %v9829_v52 = vpop.eup %9828  ;;  %9854 = vrcp.f32 %v7037_v12 }
 0x53a   : > { %v15935_v34 = vpop.eup %9830  ;;  %9856 = vpow2.f32 %v8447_v36  ;;  %v7039_v59 = vadd.f32 1.0, %v9829_v52  ;;  %v15958_v8 = vpop.f32.mrf.mxu1 }
 0x53b   : > { %18028 = vst [vmem:[#allocation3_spill] sm:$0xff] %v15935_v34  ;;  %v15938_v4 = vpop.f32.mrf.mxu0  ;;  %v9833_v42 = vpop.eup %9832  ;;  %9858 = vpow2.f32 %v8450_v1 }
 0x53c   : > { %v15941_v26 = vpop.eup %9834  ;;  %9860 = vrcp.f32 %v7036_v2  ;;  %v7038_v28 = vadd.f32 1.0, %v9833_v42  ;;  %v15970_v49 = vpop.f32.mrf.mxu1 }
 0x53d   : > { %v15943_v12 = vpop.f32.mrf.mxu0  ;;  %v9837_v15 = vpop.eup %9836  ;;  %9862 = vpow2.f32 %v8449_v56 }
 0x53e   : > { %18029 = vst [vmem:[#allocation7_spill] sm:$0xff] %v15943_v12  ;;  %v15948_v36 = vpop.eup %9838  ;;  %9864 = vpow2.f32 %v8452_v21  ;;  %v7041_v52 = vadd.f32 1.0, %v9837_v15 }
 0x53f   : > { %v15951_v1 = vpop.f32.mrf.mxu0  ;;  %v9841_v62 = vpop.eup %9840  ;;  %9866 = vpow2.f32 %v8451_v18  ;;  %v8455_v18 = vmul.f32 -1.442695, %v15831_v44 }
 0x540   : > { %18030 = vst [vmem:[#allocation9_spill] sm:$0xff] %v15951_v1  ;;  %v15953_v2 = vpop.eup %9842  ;;  %9868 = vrcp.f32 %v7039_v59  ;;  %v7040_v35 = vadd.f32 1.0, %v9841_v62 }
 0x541   : > { %18031 = vst [vmem:[#allocation14_spill] sm:$0xff] %v15953_v2  ;;  %v15955_v22 = vpop.f32.mrf.mxu0  ;;  %v9845_v56 = vpop.eup %9844  ;;  %9870 = vpow2.f32 %v8454_v27 }
 0x542   : > { %18032 = vst [vmem:[#allocation15_spill] sm:$0xff] %v15955_v22  ;;  %v15960_v21 = vpop.eup %9846  ;;  %9872 = vpow2.f32 %v8453_v54  ;;  %v7043_v15 = vadd.f32 1.0, %v9845_v56 }
 0x543   : > { %18033 = vst [vmem:[#allocation27_spill] sm:$0xff] %v15960_v21  ;;  %v15962_v1 = vpop.f32.mrf.mxu0  ;;  %v9849_v42 = vpop.eup %9848  ;;  %9874 = vrcp.f32 %v7038_v28 }
 0x544   : > { %18034 = vst [vmem:[#allocation28_spill] sm:$0xff] %v15962_v1  ;;  %v15965_v59 = vpop.eup %9850  ;;  %9876 = vrcp.f32 %v7041_v52  ;;  %v7042_v62 = vadd.f32 1.0, %v9849_v42  ;;  %v8457_v52 = vmul.f32 -1.442695, %v15849_v9  ;;  %v8460_v42 = vmul.f32 -1.442695, %v15857_v45 }
 0x545   : > { %v15967_v22 = vpop.f32.mrf.mxu0  ;;  %v9853_v27 = vpop.eup %9852  ;;  %9878 = vpow2.f32 %v8456_v11  ;;  %v10023_v11 = vld [vmem:[%s14469_s18 + $0x8] sm:$0xff] }
 0x546   : > { %18035 = vst [vmem:[#allocation20_spill] sm:$0xff] %v15967_v22  ;;  %v15972_v54 = vpop.eup %9854  ;;  %9880 = vrcp.f32 %v7040_v35  ;;  %v7045_v22 = vadd.f32 1.0, %v9853_v27  ;;  %v15982_v12 = vmul.f32 %v10023_v11, %v15913_v7  ;;  %v15992_v27 = vpop.f32.mrf.mxu1 }
 0x547   : > { %18036 = vst [vmem:[#allocation8_spill] sm:$0xff] %v15972_v54  ;;  %v15974_v28 = vpop.f32.mrf.mxu0  ;;  %v9857_v44 = vpop.eup %9856  ;;  %9882 = vpow2.f32 %v8455_v18  ;;  %v10024_v18 = vld [vmem:[%s14469_s18] sm:$0xff] }
 0x548   : > { %v9859_v56 = vpop.eup %9858  ;;  %9884 = vrcp.f32 %v7043_v15  ;;  %18038 = vst [vmem:[#allocation19_spill] sm:$0xff] %v15982_v12  ;;  %v15990_v15 = vmul.f32 %v10024_v18, %v15920_v0  ;;  %v7044_v19 = vadd.f32 1.0, %v9857_v44  ;;  %v8459_v44 = vmul.f32 -1.442695, %v15865_v20  ;;  %v16019_v18 = vpop.f32.mrf.mxu1 }
 0x549   : > { %v15977_v1 = vpop.f32.mrf.mxu0  ;;  %v15984_v35 = vpop.eup %9860  ;;  %9886 = vpow2.f32 %v8458_v38  ;;  %v10025_v38 = vld [vmem:[%s14469_s18 + $0x18] sm:$0xff]  ;;  %v7047_v9 = vadd.f32 1.0, %v9859_v56 }
 0x54a   : > { %18037 = vst [vmem:[#allocation11_spill] sm:$0xff] %v15977_v1  ;;  %18039 = vst [vmem:[#allocation25_spill] sm:$0xff] %v15984_v35  ;;  %v9863_v1 = vpop.eup %9862  ;;  %9888 = vrcp.f32 %v7042_v62  ;;  %v15999_v45 = vmul.f32 %v10025_v38, %v15925_v3  ;;  %v10027_v38 = vld [vmem:[%s14469_s18 + $0x28] sm:$0xff] }
 0x54b   : > { %18040 = vst [vmem:[#allocation18_spill] sm:$0xff] %v15990_v15  ;;  %v15994_v11 = vpop.f32.mrf.mxu0  ;;  %v9865_v7 = vpop.eup %9864  ;;  %9890 = vpow2.f32 %v8457_v52  ;;  %v10026_v15 = vld [vmem:[%s14469_s18 + $0x10] sm:$0xff]  ;;  %v7046_v56 = vadd.f32 1.0, %v9863_v1  ;;  %v16031_v1 = vld [vmem:[%s16828_s12] ss:$0 sm:$0xff] }
 0x54c   : > { %18041 = vst [vmem:[#allocation31_spill] sm:$0xff] %v15994_v11  ;;  %18042 = vst [vmem:[#allocation30_spill] sm:$0xff] %v15999_v45  ;;  %v16004_v0 = vmul.f32 %v10026_v15, %v15928_v39  ;;  %v9867_v62 = vpop.eup %9866  ;;  %9892 = vrcp.f32 %v7045_v22  ;;  %v16012_v45 = vmul.f32 %v10027_v38, %v15935_v34  ;;  %v6243_v15 = vadd.f32 %v15522_v43, %v15852_v37  ;;  %v16024_v38 = vld [vmem:[%s16824_s8 + $0x2] ss:$0 sm:$0xff] }
 0x54d   : > { %v16007_v11 = vpop.f32.mrf.mxu0  ;;  %v16014_v52 = vpop.eup %9868  ;;  %9894 = vpow2.f32 %v8460_v42  ;;  %v10028_v43 = vld [vmem:[%s14469_s18 + $0x20] sm:$0xff]  ;;  %v7048_v42 = vadd.f32 1.0, %v9867_v62  ;;  %v6238_v22 = vadd.f32 %v15530_v48, %v15860_v53  ;;  %v6248_v39 = vadd.f32 %v15550_v31, %v15873_v25 }
 0x54e   : > { %18043 = vst [vmem:[#allocation48_spill] sm:$0xff] %v16004_v0  ;;  %18044 = vst [vmem:[#allocation41_spill] sm:$0xff] %v16012_v45  ;;  %v9871_v20 = vpop.eup %9870  ;;  %9896 = vrcp.f32 %v7044_v19  ;;  %v7049_v0 = vadd.f32 1.0, %v9865_v7  ;;  %v16035_v37 = vmul.f32 %v10028_v43, %v15941_v26  ;;  %v6253_v45 = vadd.f32 %v15539_v40, %v15867_v47  ;;  %v10029_v43 = vld [vmem:[%s14469_s18 + $0x38] sm:$0xff]  ;;  %v16062_v31 = vpop.f32.mrf.mxu1 }
 0x54f   : > { %18045 = vst [vmem:[#allocation12_spill] sm:$0xff] %v16014_v52  ;;  %v16026_v12 = vpop.f32.mrf.mxu0  ;;  %v9873_v7 = vpop.eup %9872  ;;  %9898 = vrcp.f32 %v7047_v9  ;;  %v16050_v19 = vmul.f32 %v10029_v43, %v15948_v36  ;;  %v7051_v48 = vadd.f32 1.0, %v9871_v20  ;;  %v16056_v40 = vadd.f32 %v16024_v38, %v6243_v15 }
 0x550   : > { %18046 = vst [vmem:[#allocation22_spill] sm:$0xff] %v16026_v12  ;;  %v16042_v34 = vpop.eup %9874  ;;  %9900 = vpow2.f32 %v8459_v44  ;;  %v16060_v53 = vadd.f32 %v15871_v58, %v16031_v1  ;;  %v7050_v25 = vadd.f32 1.0, %v9873_v7  ;;  %v6263_v44 = vadd.f32 %v15563_v10, %v15878_v16 }
 0x551   : > { %18047 = vst [vmem:[#allocation32_spill] sm:$0xff] %v16042_v34  ;;  %v16046_v12 = vpop.f32.mrf.mxu0  ;;  %18048 = vst [vmem:[#allocation33_spill] sm:$0xff] %v16050_v19  ;;  %v16053_v62 = vpop.eup %9876  ;;  %9902 = vrcp.f32 %v7046_v56  ;;  %v16070_v56 = vadd.f32 %v16031_v1, %v15882_v61  ;;  %v16075_v58 = vadd.f32 %v16024_v38, %v6238_v22  ;;  %v16078_v20 = vadd.f32 %v16024_v38, %v6253_v45  ;;  %v10031_v19 = vld [vmem:[%s14469_s18 + $0x48] sm:$0xff] }
 0x552   : > { %18049 = vst [vmem:[#allocation24_spill] sm:$0xff] %v16053_v62  ;;  %v9879_v47 = vpop.eup %9878  ;;  %9904 = vrcp.f32 %v7049_v0  ;;  %v16082_v0 = vadd.f32 %v15894_v60, %v16031_v1  ;;  %v16085_v16 = vadd.f32 %v16024_v38, %v6248_v39  ;;  %v6258_v61 = vadd.f32 %v15576_v57, %v15885_v30  ;;  %v16106_v30 = vpop.f32.mrf.mxu1 }
 0x553   : > { %v16066_v43 = vpop.f32.mrf.mxu0  ;;  %v16072_v15 = vpop.eup %9880  ;;  %9906 = vrcp.f32 %v7048_v42  ;;  %v10030_v42 = vld [vmem:[%s14469_s18 + $0x30] sm:$0xff]  ;;  %v7053_v60 = vadd.f32 1.0, %v9879_v47  ;;  %v16100_v39 = vadd.f32 %v16031_v1, %v15906_v51  ;;  %v16104_v57 = vmul.f32 %v10031_v19, %v15960_v21 }
 0x554   : > { %18050 = vst [vmem:[#allocation6_spill] sm:$0xff] %v16072_v15  ;;  %v9883_v10 = vpop.eup %9882  ;;  %v16093_v22 = vmul.f32 %v10030_v42, %v15953_v2  ;;  %9908 = vrcp.f32 %v7051_v48  ;;  %v16109_v42 = vadd.f32 %v16024_v38, %v6263_v44  ;;  %v6273_v48 = vadd.f32 %v15587_v41, %v15890_v63  ;;  %v18058_v63 = vld [vmem:[#allocation134_spill] sm:$0xff] }
 0x555   : > { %v16089_v7 = vpop.f32.mrf.mxu0  ;;  %v16096_v9 = vpop.eup %9884  ;;  %18054 = vst [vmem:[#allocation35_spill] sm:$0xff] %v16104_v57  ;;  %9910 = vrcp.f32 %v7050_v25  ;;  %v16120_v19 = vadd.f32 %v15918_v32, %v16031_v1  ;;  %v10032_v25 = vld [vmem:[%s14469_s18 + $0x40] sm:$0xff]  ;;  %v16128_v41 = vadd.f32 %v16024_v38, %v6258_v61  ;;  %v6268_v51 = vadd.f32 %v18058_v63, %v15897_v13  ;;  %v10033_v32 = vld [vmem:[%s14469_s18 + $0x58] sm:$0xff] }
 0x556   : > { %18051 = vst [vmem:[#allocation29_spill] sm:$0xff] %v16089_v7  ;;  %18052 = vst [vmem:[#allocation53_spill] sm:$0xff] %v16093_v22  ;;  %v9887_v7 = vpop.eup %9886  ;;  %v7052_v22 = vadd.f32 1.0, %v9883_v10  ;;  %v16124_v57 = vmul.f32 %v10032_v25, %v15965_v59  ;;  %v16136_v10 = vadd.f32 %v16031_v1, %v15933_v55  ;;  %v16140_v2 = vmul.f32 %v10033_v32, %v15972_v54  ;;  %v16149_v63 = vpop.f32.mrf.mxu1 }
 0x557   : > { %18053 = vst [vmem:[#allocation70_spill] sm:$0xff] %v16096_v9  ;;  %v16113_v47 = vpop.f32.mrf.mxu0  ;;  %v16116_v45 = vpop.eup %9888  ;;  %9912 = vrcp.f32 %v7053_v60  ;;  %v7055_v44 = vadd.f32 1.0, %v9887_v7  ;;  %v16152_v55 = vadd.f32 %v16024_v38, %v6273_v48  ;;  %v6283_v32 = vadd.f32 %v15609_v23, %v15902_v14 }
 0x558   : > { %18055 = vst [vmem:[#allocation38_spill] sm:$0xff] %v16113_v47  ;;  %18056 = vst [vmem:[#allocation26_spill] sm:$0xff] %v16116_v45  ;;  %v9891_v21 = vpop.eup %9890  ;;  %v16160_v7 = vadd.f32 %v15946_v6, %v16031_v1  ;;  %9914 = vrcp.f32 %v7052_v22  ;;  %v16173_v14 = vadd.f32 %v16024_v38, %v6268_v51  ;;  %v6278_v6 = vadd.f32 %v15624_v33, %v15909_v5  ;;  %v16192_v5 = vpop.f32.mrf.mxu1 }
 0x559   : > { %18057 = vst [vmem:[#allocation39_spill] sm:$0xff] %v16124_v57  ;;  %v16132_v47 = vpop.f32.mrf.mxu0  ;;  %18060 = vst [vmem:[#allocation55_spill] sm:$0xff] %v16140_v2  ;;  %v16142_v25 = vpop.eup %9892  ;;  %v10034_v57 = vld [vmem:[%s14469_s18 + $0x50] sm:$0xff]  ;;  %v7054_v61 = vadd.f32 1.0, %v9891_v21  ;;  %v16181_v22 = vadd.f32 %v16031_v1, %v15958_v8  ;;  %v10036_v21 = vld [vmem:[%s14469_s18 + $0x60] sm:$0xff]  ;;  %9916 = vrcp.f32 %v7055_v44  ;;  %v16197_v8 = vadd.f32 %v16024_v38, %v6283_v32 }
 0x55a   : > { %18059 = vst [vmem:[#allocation51_spill] sm:$0xff] %v16132_v47  ;;  %v16147_v13 = vmul.f32 %v10034_v57, %v15984_v35  ;;  %v9895_v47 = vpop.eup %9894  ;;  %v16210_v44 = vadd.f32 %v15970_v49, %v16031_v1  ;;  %v10038_v32 = vld [vmem:[%s14469_s18 + $0x70] sm:$0xff] }
 0x55b   : > { %v16156_v2 = vpop.f32.mrf.mxu0  ;;  %v16163_v57 = vpop.eup %9896  ;;  %v7057_v35 = vadd.f32 1.0, %v9895_v47  ;;  %v16206_v47 = vld [vmem:[%s16826_s10 + $0x2] ss:$0 sm:$0xff]  ;;  %9918 = vrcp.f32 %v7054_v61  ;;  %v16231_v61 = vadd.f32 %v16031_v1, %v15992_v27 }
 0x55c   : > { %18061 = vst [vmem:[#allocation42_spill] sm:$0xff] %v16147_v13  ;;  %18062 = vst [vmem:[#allocation44_spill] sm:$0xff] %v16156_v2  ;;  %v10035_v13 = vld [vmem:[%s14469_s18 + $0x68] sm:$0xff]  ;;  %v16170_v23 = vpop.eup %9898 }
 0x55d   : > { %v16167_v48 = vmul.f32 %v10035_v13, %v16014_v52  ;;  %18064 = vst [vmem:[#allocation61_spill] sm:$0xff] %v16170_v23  ;;  %v16177_v60 = vpop.f32.mrf.mxu0  ;;  %v16185_v13 = vmul.f32 %v10036_v21, %v16042_v34  ;;  %v9901_v2 = vpop.eup %9900  ;;  %v18069_v21 = vld [vmem:[#allocation108_spill] sm:$0xff]  ;;  %18075 = vst [vmem:[#allocation52_spill] sm:$0xff] %v16231_v61  ;;  %9920 = vrcp.f32 %v7057_v35  ;;  %v16250_v35 = vadd.f32 %v16019_v18, %v16031_v1 }
 0x55e   : > { %18065 = vst [vmem:[#allocation45_spill] sm:$0xff] %v16177_v60  ;;  %v16194_v60 = vpop.eup %9902  ;;  %v7056_v49 = vadd.f32 1.0, %v9901_v2  ;;  %v10040_v2 = vld [vmem:[%s14469_s18 + $0x80] sm:$0xff]  ;;  %v10042_v61 = vld [vmem:[%s14469_s18 + $0x90] sm:$0xff]  ;;  %v6303_v18 = vadd.f32 %v15654_v46, %v15930_v50  ;;  %v16285_v50 = vadd.f32 %v16031_v1, %v16062_v31 }
 0x55f   : > { %18063 = vst [vmem:[#allocation10_spill] sm:$0xff] %v16167_v48  ;;  %18066 = vst [vmem:[#allocation13_spill] sm:$0xff] %v16185_v13  ;;  %v10037_v48 = vld [vmem:[%s14469_s18 + $0x78] sm:$0xff]  ;;  %v6293_v13 = vadd.f32 %v18069_v21, %v15916_v29  ;;  %v16201_v34 = vpop.f32.mrf.mxu0  ;;  %v16213_v51 = vpop.eup %9904  ;;  %v16217_v29 = vmul.f32 %v10038_v32, %v16072_v15  ;;  %v16264_v54 = vmul.f32 %v10042_v61, %v16163_v57 }
 0x560   : > { %v16190_v33 = vmul.f32 %v10037_v48, %v16053_v62  ;;  %18068 = vst [vmem:[#allocation43_spill] sm:$0xff] %v16194_v60  ;;  %18070 = vst [vmem:[#allocation5_spill] sm:$0xff] %v16201_v34  ;;  %v10039_v34 = vld [vmem:[%s14469_s18 + $0x88] sm:$0xff]  ;;  %v16224_v62 = vpop.eup %9906  ;;  %v16227_v48 = vadd.f32 %v16024_v38, %v6278_v6  ;;  %v18076_v21 = vld [vmem:[#allocation133_spill] sm:$0xff]  ;;  %v16241_v6 = vmul.f32 %v10040_v2, %v16116_v45  ;;  %9922 = vrcp.f32 %v7056_v49 }
 0x561   : > { %18071 = vst [vmem:[#allocation68_spill] sm:$0xff] %v16213_v51  ;;  %18072 = vst [vmem:[#allocation37_spill] sm:$0xff] %v16217_v29  ;;  %v9295_v52 = vpop.f32.mrf.mxu0  ;;  %v6288_v29 = vadd.f32 %v18076_v21, %v15923_v17  ;;  %v16246_v27 = vadd.f32 %v16024_v38, %v6293_v13  ;;  %v18081_v2 = vld [vmem:[#allocation110_spill] sm:$0xff]  ;;  %v16299_v31 = vadd.f32 %v16024_v38, %v6303_v18 }
 0x562   : > { %18067 = vst [vmem:[#allocation54_spill] sm:$0xff] %v16190_v33  ;;  %v16222_v33 = vmul.f32 %v10039_v34, %v16096_v9  ;;  %18074 = vst [vmem:[#allocation49_spill] sm:$0xff] %v16224_v62  ;;  %v6521_v34 = vadd.f32 %v9295_v52, %v16206_v47  ;;  %v16243_v9 = vpop.eup %9908  ;;  %v10041_v52 = vld [vmem:[%s14469_s18 + $0x98] sm:$0xff] }
 0x563   : > { %18077 = vst [vmem:[#allocation59_spill] sm:$0xff] %v16241_v6  ;;  %18078 = vst [vmem:[#allocation67_spill] sm:$0xff] %v16243_v9  ;;  %v6515_v32 = vpop.f32.mrf.mxu0  ;;  %v16255_v21 = vmul.f32 %v10041_v52, %v16142_v25  ;;  %v16257_v15 = vpop.eup %9910 }
 0x564   : > { %18073 = vst [vmem:[#allocation96_spill] sm:$0xff] %v16222_v33  ;;  %v16237_v33 = vpop.f32.mrf.mxu1  ;;  %18080 = vst [vmem:[#allocation64_spill] sm:$0xff] %v16257_v15  ;;  %v7123_v6 = vmul.f32 %v18081_v2, %v6521_v34  ;;  %v6516_v45 = vadd.f32 %v16206_v47, %v6515_v32  ;;  %v16274_v32 = vadd.f32 %v16024_v38, %v6288_v29  ;;  %v18084_v2 = vld [vmem:[#allocation124_spill] sm:$0xff]  ;;  %v10044_v29 = vld [vmem:[%s14469_s18 + $0xa0] sm:$0xff] }
 0x565   : > { %18079 = vst [vmem:[#allocation58_spill] sm:$0xff] %v16255_v21  ;;  %18082 = vst [vmem:[#allocation65_spill] sm:$0xff] %v16264_v54  ;;  %v9298_v17 = vpop.f32.mrf.mxu0  ;;  %v10043_v21 = vld [vmem:[%s14469_s18 + $0xa8] sm:$0xff]  ;;  %v16281_v54 = vpop.eup %9912  ;;  %v16290_v52 = vmul.f32 %v10044_v29, %v16194_v60  ;;  %v18094_v60 = vld [vmem:[#allocation9_spill] sm:$0xff] }
 0x566   : > { %v16271_v15 = vmul.f32 %v10043_v21, %v16170_v23  ;;  %v7155_v34 = vadd.f32 %v7123_v6, %v16056_v40  ;;  %v7122_v61 = vmul.f32 %v18084_v2, %v6516_v45  ;;  %v6531_v13 = vadd.f32 %v9298_v17, %v16206_v47  ;;  %v16279_v49 = vpop.f32.mrf.mxu1  ;;  %18085 = vst [vmem:[#allocation21_spill] sm:$0xff] %v16281_v54  ;;  %v18087_v6 = vld [vmem:[#allocation137_spill] sm:$0xff]  ;;  %v16296_v54 = vpop.eup %9914 }
 0x567   : > { %v6525_v46 = vpop.f32.mrf.mxu0  ;;  %18086 = vst [vmem:[#allocation81_spill] sm:$0xff] %v16290_v52  ;;  %18088 = vst [vmem:[#allocation60_spill] sm:$0xff] %v16296_v54  ;;  %v6298_v21 = vadd.f32 %v15662_v24, %v15938_v4  ;;  %v16305_v40 = vadd.f32 %v16106_v30, %v16031_v1  ;;  %v16314_v54 = vpop.eup %9916  ;;  %v18092_v24 = vld [vmem:[#allocation7_spill] sm:$0xff]  ;;  %v18093_v4 = vld [vmem:[#allocation89_spill] sm:$0xff] }
 0x568   : > { %18083 = vst [vmem:[#allocation79_spill] sm:$0xff] %v16271_v15  ;;  %9924 = vtanh.f32 %v7155_v34  ;;  %v7154_v45 = vadd.f32 %v7122_v61, %v16075_v58  ;;  %v7125_v17 = vmul.f32 %v18087_v6, %v6531_v13  ;;  %v6526_v2 = vadd.f32 %v16206_v47, %v6525_v46  ;;  %v10045_v34 = vld [vmem:[%s14469_s18 + $0xb8] sm:$0xff]  ;;  %v7663_v6 = vpop.f32.mrf.mxu1  ;;  %18091 = vst [vmem:[#allocation17_spill] sm:$0xff] %v16314_v54  ;;  %v18095_v30 = vld [vmem:[#allocation122_spill] sm:$0xff] }
 0x569   : > { %v9301_v29 = vpop.f32.mrf.mxu0  ;;  %v16309_v58 = vmul.f32 %v10045_v34, %v16213_v51  ;;  %v18090_v61 = vld [vmem:[#allocation125_spill] sm:$0xff]  ;;  %v6313_v52 = vadd.f32 %v18093_v4, %v18092_v24  ;;  %v6308_v15 = vadd.f32 %v18095_v30, %v18094_v60  ;;  %v16331_v24 = vadd.f32 %v16024_v38, %v6298_v21  ;;  %v18099_v60 = vld [vmem:[#allocation15_spill] sm:$0xff] }
 0x56a   : > { %9926 = vtanh.f32 %v7154_v45  ;;  %v7157_v13 = vadd.f32 %v7125_v17, %v16078_v20  ;;  %v7124_v46 = vmul.f32 %v18090_v61, %v6526_v2  ;;  %v6541_v18 = vadd.f32 %v9301_v29, %v16206_v47  ;;  %v18097_v17 = vld [vmem:[#allocation78_spill] sm:$0xff]  ;;  %v16328_v61 = vpop.eup %9918  ;;  %v18100_v4 = vld [vmem:[#allocation139_spill] sm:$0xff] }
 0x56b   : > { %18089 = vst [vmem:[#allocation40_spill] sm:$0xff] %v16309_v58  ;;  %v6535_v23 = vpop.f32.mrf.mxu0  ;;  %v10046_v58 = vld [vmem:[%s14469_s18 + $0xb0] sm:$0xff]  ;;  %18098 = vst [vmem:[#allocation50_spill] sm:$0xff] %v16328_v61  ;;  %v6323_v30 = vadd.f32 %v18100_v4, %v18099_v60  ;;  %v16343_v21 = vpop.eup %9920  ;;  %v16346_v61 = vadd.f32 %v16024_v38, %v6313_v52  ;;  %v16349_v60 = vadd.f32 %v16024_v38, %v6308_v15  ;;  %v18104_v4 = vld [vmem:[#allocation149_spill] sm:$0xff] }
 0x56c   : > { %v16323_v45 = vmul.f32 %v10046_v58, %v16224_v62  ;;  %9928 = vtanh.f32 %v7157_v13  ;;  %v7156_v20 = vadd.f32 %v7124_v46, %v16085_v16  ;;  %v7127_v2 = vmul.f32 %v18097_v17, %v6541_v18  ;;  %v18101_v46 = vld [vmem:[#allocation115_spill] sm:$0xff]  ;;  %v9376_v17 = vpop.f32.mrf.mxu1  ;;  %18102 = vst [vmem:[#allocation63_spill] sm:$0xff] %v16343_v21  ;;  %v18106_v15 = vld [vmem:[#allocation20_spill] sm:$0xff] }
 0x56d   : > { %v6536_v29 = vadd.f32 %v16206_v47, %v6535_v23  ;;  %v9304_v34 = vpop.f32.mrf.mxu0  ;;  %v16337_v58 = vadd.f32 %v16031_v1, %v16149_v63  ;;  %v18103_v63 = vld [vmem:[#allocation28_spill] sm:$0xff]  ;;  %v16361_v52 = vadd.f32 %v16024_v38, %v6323_v30 }
 0x56e   : > { %18096 = vst [vmem:[#allocation56_spill] sm:$0xff] %v16323_v45  ;;  %9930 = vtanh.f32 %v7156_v20  ;;  %v7159_v16 = vadd.f32 %v7127_v2, %v16109_v42  ;;  %v6551_v18 = vadd.f32 %v9304_v34, %v16206_v47  ;;  %v6318_v54 = vadd.f32 %v18104_v4, %v18103_v63  ;;  %v18105_v20 = vld [vmem:[#allocation118_spill] sm:$0xff]  ;;  %v18108_v63 = vld [vmem:[#allocation128_spill] sm:$0xff] }
 0x56f   : > { %v7126_v23 = vmul.f32 %v18101_v46, %v6536_v29  ;;  %v6545_v13 = vpop.f32.mrf.mxu0  ;;  %v16355_v42 = vadd.f32 %v16192_v5, %v16031_v1  ;;  %v18107_v46 = vld [vmem:[#allocation143_spill] sm:$0xff]  ;;  %v6328_v4 = vadd.f32 %v18108_v63, %v15974_v28  ;;  %v16369_v5 = vadd.f32 %v16031_v1, %v16237_v33  ;;  %v18112_v28 = vld [vmem:[#allocation121_spill] sm:$0xff] }
 0x570   : > { %9932 = vtanh.f32 %v7159_v16  ;;  %v7129_v2 = vmul.f32 %v18105_v20, %v6551_v18  ;;  %v6546_v29 = vadd.f32 %v16206_v47, %v6545_v13  ;;  %v6333_v21 = vadd.f32 %v18107_v46, %v18106_v15  ;;  %v16371_v16 = vpop.eup %9922  ;;  %v18110_v13 = vld [vmem:[#allocation123_spill] sm:$0xff]  ;;  %v7673_v18 = vpop.f32.mrf.mxu1 }
 0x571   : > { %v7158_v34 = vadd.f32 %v7126_v23, %v16128_v41  ;;  %v9307_v45 = vpop.f32.mrf.mxu0  ;;  %18109 = vst [vmem:[#allocation74_spill] sm:$0xff] %v16371_v16  ;;  %v16377_v20 = vadd.f32 %v16024_v38, %v6318_v54  ;;  %v18111_v15 = vld [vmem:[#allocation11_spill] sm:$0xff]  ;;  %v16383_v33 = vadd.f32 %v16279_v49, %v16031_v1  ;;  %v18115_v49 = vld [vmem:[#allocation148_spill] sm:$0xff] }
 0x572   : > { %v7161_v41 = vadd.f32 %v7129_v2, %v16152_v55  ;;  %v7128_v23 = vmul.f32 %v18110_v13, %v6546_v29  ;;  %v6561_v30 = vadd.f32 %v9307_v45, %v16206_v47  ;;  %v6343_v46 = vadd.f32 %v18112_v28, %v18111_v15  ;;  %v18113_v2 = vld [vmem:[#allocation132_spill] sm:$0xff]  ;;  %v18114_v28 = vld [vmem:[#allocation31_spill] sm:$0xff] }
 0x573   : > { %9934 = vtanh.f32 %v7158_v34  ;;  %v6555_v63 = vpop.f32.mrf.mxu0  ;;  %v16386_v34 = vadd.f32 %v16031_v1, %v7663_v6  ;;  %v16392_v13 = vadd.f32 %v16024_v38, %v6333_v21  ;;  %v16395_v15 = vadd.f32 %v16024_v38, %v6328_v4  ;;  %v9379_v21 = vpop.f32.mrf.mxu1 }
 0x574   : > { %9936 = vtanh.f32 %v7161_v41  ;;  %v7160_v55 = vadd.f32 %v7128_v23, %v16173_v14  ;;  %v7131_v45 = vmul.f32 %v18113_v2, %v6561_v30  ;;  %v6556_v29 = vadd.f32 %v16206_v47, %v6555_v63  ;;  %v18116_v41 = vld [vmem:[#allocation130_spill] sm:$0xff]  ;;  %v18117_v2 = vld [vmem:[#allocation100_spill] sm:$0xff] }
 0x575   : > { %v9925_v54 = vpop.eup %9924  ;;  %v6338_v16 = vadd.f32 %v18115_v49, %v18114_v28  ;;  %v9310_v62 = vpop.f32.mrf.mxu0  ;;  %v16400_v6 = vadd.f32 %v9376_v17, %v16031_v1  ;;  %v16406_v4 = vadd.f32 %v16024_v38, %v6343_v46  ;;  %v6353_v28 = vadd.f32 %v18117_v2, %v16007_v11  ;;  %v18118_v49 = vld [vmem:[#allocation160_spill] sm:$0xff]  ;;  %v18125_v2 = vld [vmem:[#allocation87_spill] sm:$0xff] }
 0x576   : > { %9938 = vtanh.f32 %v7160_v55  ;;  %v7163_v14 = vadd.f32 %v7131_v45, %v16197_v8  ;;  %v7130_v23 = vmul.f32 %v18116_v41, %v6556_v29  ;;  %v6571_v30 = vadd.f32 %v9310_v62, %v16206_v47  ;;  %v18120_v62 = vld [vmem:[#allocation152_spill] sm:$0xff]  ;;  %v18121_v29 = vld [vmem:[#allocation19_spill] sm:$0xff] }
 0x577   : > { %v9927_v63 = vpop.eup %9926  ;;  %v18119_v9 = vsub.f32 1.0, %v18118_v49  ;;  %v6565_v17 = vpop.f32.mrf.mxu0  ;;  %v16413_v55 = vadd.f32 %v16031_v1, %v7673_v18 }
 0x578   : > { %9940 = vtanh.f32 %v7163_v14  ;;  %v7162_v8 = vadd.f32 %v7130_v23, %v16227_v48  ;;  %v7133_v45 = vmul.f32 %v18120_v62, %v6571_v30  ;;  %v6566_v11 = vadd.f32 %v16206_v47, %v6565_v17  ;;  %v16442_v49 = vpop.f32.mrf.mxu1  ;;  %v18128_v17 = vld [vmem:[#allocation18_spill] sm:$0xff] }
 0x579   : > { %v7251_v51 = vmul.f32 %v9925_v54, %v18119_v9  ;;  %v9929_v46 = vpop.eup %9928  ;;  %v16425_v9 = vadd.f32 %v16024_v38, %v6338_v16  ;;  %v18122_v54 = vld [vmem:[#allocation47_spill] sm:$0xff]  ;;  %v9313_v48 = vpop.f32.mrf.mxu0  ;;  %v16431_v23 = vadd.f32 %v9379_v21, %v16031_v1  ;;  %18126 = vst [vmem:[#allocation98_spill] sm:$0xff] %v16442_v49  ;;  %v16445_v21 = vadd.f32 %v16024_v38, %v6353_v28  ;;  %v18132_v49 = vld [vmem:[#allocation142_spill] sm:$0xff] }
 0x57a   : > { %v18123_v14 = vsub.f32 1.0, %v18122_v54  ;;  %9942 = vtanh.f32 %v7162_v8  ;;  %v7165_v30 = vadd.f32 %v7133_v45, %v16246_v27  ;;  %v7132_v16 = vmul.f32 %v18125_v2, %v6566_v11  ;;  %v18130_v54 = vld [vmem:[#allocation138_spill] sm:$0xff] }
 0x57b   : > { %v7315_v18 = vadd.f32 %v18121_v29, %v7251_v51  ;;  %18124 = vst [vmem:[#allocation66_spill] sm:$0xff] %v16431_v23  ;;  %v6581_v51 = vadd.f32 %v9313_v48, %v16206_v47  ;;  %v18129_v62 = vsub.f32 1.0, %v15925_v3  ;;  %v6575_v11 = vpop.f32.mrf.mxu0  ;;  %v18131_v2 = vld [vmem:[#allocation22_spill] sm:$0xff] }
 0x57c   : > { %v7250_v41 = vmul.f32 %v9927_v63, %v18123_v14  ;;  %v9931_v63 = vpop.eup %9930  ;;  %9944 = vtanh.f32 %v7165_v30  ;;  %v7164_v29 = vadd.f32 %v7132_v16, %v16274_v32  ;;  %v6576_v48 = vadd.f32 %v16206_v47, %v6575_v11 }
 0x57d   : > { %7347 = vst.msk [vmem:[%s16421_s17 + $0x8] sm:$0xff] %vm18127_vm12, %v7315_v18  ;;  %v7743_v27 = vadd.f32 %v16060_v53, %v7315_v18  ;;  %v7253_v45 = vmul.f32 %v9929_v46, %v18129_v62  ;;  %v7135_v14 = vmul.f32 %v18130_v54, %v6581_v51  ;;  %v9933_v28 = vpop.eup %9932  ;;  %v6348_v23 = vadd.f32 %v18132_v49, %v18131_v2  ;;  %v18135_v53 = vld [vmem:[#allocation30_spill] sm:$0xff]  ;;  %v18136_v18 = vld [vmem:[#allocation16_spill] sm:$0xff]  ;;  %v9316_v30 = vpop.f32.mrf.mxu0  ;;  %vm18175_vm12 = vmmov %vm17652_vm0 }
 0x57e   : > { %v7314_v8 = vadd.f32 %v18128_v17, %v7250_v41  ;;  %v18137_v32 = vsub.f32 1.0, %v18136_v18  ;;  %9946 = vtanh.f32 %v7164_v29  ;;  %v18138_v51 = vld [vmem:[#allocation146_spill] sm:$0xff]  ;;  %v6591_v62 = vadd.f32 %v9316_v30, %v16206_v47  ;;  %v9382_v49 = vpop.f32.mrf.mxu1 }
 0x57f   : > { %7775 = vst.msk [vmem:[%s16438_s21 + $0x8] sm:$0xff] %vm18133_vm8, %v7743_v27  ;;  %v7317_v46 = vadd.f32 %v18135_v53, %v7253_v45  ;;  %v7167_v16 = vadd.f32 %v7135_v14, %v16299_v31  ;;  %v7134_v17 = vmul.f32 %v18138_v51, %v6576_v48  ;;  %v18141_v45 = vld [vmem:[#allocation3_spill] sm:$0xff]  ;;  %v6585_v31 = vpop.f32.mrf.mxu0  ;;  %v16478_v54 = vadd.f32 %v9382_v49, %v16031_v1  ;;  %v18143_v48 = vld [vmem:[#allocation140_spill] sm:$0xff]  ;;  %vm18182_vm8 = vmmov %vm17652_vm0 }
 0x580   : > { %7346 = vst.msk [vmem:[%s16421_s17] sm:$0xff] %vm18134_vm3, %v7314_v8  ;;  %v7742_v3 = vadd.f32 %v16070_v56, %v7314_v8  ;;  %v7252_v41 = vmul.f32 %v9931_v63, %v18137_v32  ;;  %v9935_v27 = vpop.eup %9934  ;;  %v18140_v8 = vld [vmem:[#allocation48_spill] sm:$0xff]  ;;  %v18142_v11 = vsub.f32 1.0, %v18141_v45  ;;  %v7137_v2 = vmul.f32 %v18143_v48, %v6591_v62  ;;  %v18149_v62 = vld [vmem:[#allocation157_spill] sm:$0xff]  ;;  %vm18183_vm3 = vmmov %vm17652_vm0 }
 0x581   : > { %7349 = vst.msk [vmem:[%s16421_s17 + $0x18] sm:$0xff] %vm17652_vm0, %v7317_v46  ;;  %v7745_v56 = vadd.f32 %v16082_v0, %v7317_v46  ;;  %9948 = vtanh.f32 %v7167_v16  ;;  %v7166_v14 = vadd.f32 %v7134_v17, %v16331_v24  ;;  %v9937_v53 = vpop.eup %9936  ;;  %v16484_v0 = vadd.f32 %v16024_v38, %v6348_v23  ;;  %v18146_v46 = vld [vmem:[#allocation41_spill] sm:$0xff]  ;;  %v18148_v16 = vld [vmem:[#allocation136_spill] sm:$0xff] }
 0x582   : > { %7774 = vst.msk [vmem:[%s16438_s21] sm:$0xff] %vm18139_vm5, %v7742_v3  ;;  %v7316_v63 = vadd.f32 %v18140_v8, %v7252_v41  ;;  %v7255_v29 = vmul.f32 %v9933_v28, %v18142_v11  ;;  %v6586_v3 = vadd.f32 %v16206_v47, %v6585_v31  ;;  %v18147_v24 = vsub.f32 1.0, %v15941_v26  ;;  %v9319_v41 = vpop.f32.mrf.mxu0  ;;  %vm18189_vm5 = vmmov %vm17652_vm0 }
 0x583   : > { %7777 = vst.msk [vmem:[%s16438_s21 + $0x18] sm:$0xff] %vm18144_vm6, %v7745_v56  ;;  %9950 = vtanh.f32 %v7166_v14  ;;  %v7169_v30 = vadd.f32 %v7137_v2, %v16346_v61  ;;  %v6601_v23 = vadd.f32 %v9319_v41, %v16206_v47  ;;  %v9939_v17 = vpop.eup %9938  ;;  %v6363_v49 = vadd.f32 %v18149_v62, %v16046_v12  ;;  %v18158_v14 = vld [vmem:[#allocation14_spill] sm:$0xff]  ;;  %v18164_v41 = vld [vmem:[#allocation27_spill] sm:$0xff]  ;;  %vm18194_vm6 = vmmov %vm17652_vm0 }
 0x584   : > { %7348 = vst.msk [vmem:[%s16421_s17 + $0x10] sm:$0xff] %vm18145_vm9, %v7316_v63  ;;  %v7744_v28 = vadd.f32 %v16100_v39, %v7316_v63  ;;  %v7319_v18 = vadd.f32 %v18146_v46, %v7255_v29  ;;  %v7254_v32 = vmul.f32 %v9935_v27, %v18147_v24  ;;  %v7136_v51 = vmul.f32 %v18148_v16, %v6586_v3  ;;  %v6595_v56 = vpop.f32.mrf.mxu0  ;;  %v18153_v63 = vld [vmem:[#allocation147_spill] sm:$0xff]  ;;  %v18154_v29 = vld [vmem:[#allocation156_spill] sm:$0xff]  ;;  %v18163_v24 = vld [vmem:[#allocation53_spill] sm:$0xff] }
 0x585   : > { %v18152_v61 = vsub.f32 1.0, %v15948_v36  ;;  %9952 = vtanh.f32 %v7169_v30  ;;  %v7139_v45 = vmul.f32 %v18153_v63, %v6601_v23  ;;  %v6596_v12 = vadd.f32 %v16206_v47, %v6595_v56  ;;  %v9941_v11 = vpop.eup %9940  ;;  %v18166_v23 = vld [vmem:[#allocation94_spill] sm:$0xff]  ;;  %vm18195_vm9 = vmmov %vm17652_vm0 }
 0x586   : > { %7776 = vst.msk [vmem:[%s16438_s21 + $0x10] sm:$0xff] %vm18150_vm11, %v7744_v28  ;;  %v7747_v26 = vadd.f32 %v16120_v19, %v7319_v18  ;;  %v7318_v39 = vadd.f32 %v16035_v37, %v7254_v32  ;;  %v7168_v8 = vadd.f32 %v7136_v51, %v16349_v60  ;;  %v6358_v31 = vadd.f32 %v18154_v29, %v16066_v43  ;;  %v18157_v37 = vld [vmem:[#allocation33_spill] sm:$0xff]  ;;  %v9322_v2 = vpop.f32.mrf.mxu0  ;;  %v18171_v63 = vld [vmem:[#allocation126_spill] sm:$0xff]  ;;  %vm18202_vm11 = vmmov %vm17652_vm0 }
 0x587   : > { %7351 = vst.msk [vmem:[%s16421_s17 + $0x28] sm:$0xff] %vm18151_vm7, %v7319_v18  ;;  %v7257_v27 = vmul.f32 %v9937_v53, %v18152_v61  ;;  %v18159_v60 = vsub.f32 1.0, %v18158_v14  ;;  %v7171_v3 = vadd.f32 %v7139_v45, %v16361_v52  ;;  %v18160_v53 = vld [vmem:[#allocation155_spill] sm:$0xff]  ;;  %v6611_v43 = vadd.f32 %v9322_v2, %v16206_v47  ;;  %v9943_v46 = vpop.eup %9942  ;;  %v18172_v29 = vld [vmem:[#allocation29_spill] sm:$0xff]  ;;  %v18179_v2 = vld [vmem:[#allocation154_spill] sm:$0xff] }
 0x588   : > { %7779 = vst.msk [vmem:[%s16438_s21 + $0x28] sm:$0xff] %vm18155_vm14, %v7747_v26  ;;  %v7746_v36 = vadd.f32 %v16136_v10, %v7318_v39  ;;  %9954 = vtanh.f32 %v7168_v8  ;;  %v7138_v28 = vmul.f32 %v18160_v53, %v6596_v12  ;;  %v16524_v18 = vadd.f32 %v16024_v38, %v6363_v49  ;;  %v6605_v16 = vpop.f32.mrf.mxu0  ;;  %vm18203_vm7 = vmmov %vm17652_vm0 }
 0x589   : > { %7350 = vst.msk [vmem:[%s16421_s17 + $0x20] sm:$0xff] %vm18156_vm10, %v7318_v39  ;;  %v7321_v19 = vadd.f32 %v18157_v37, %v7257_v27  ;;  %v7256_v48 = vmul.f32 %v9939_v17, %v18159_v60  ;;  %v18165_v52 = vsub.f32 1.0, %v18164_v41  ;;  %9956 = vtanh.f32 %v7171_v3  ;;  %v9945_v49 = vpop.eup %9944  ;;  %v18169_v39 = vld [vmem:[#allocation35_spill] sm:$0xff]  ;;  %vm18210_vm14 = vmmov %vm17652_vm0 }
 0x58a   : > { %7778 = vst.msk [vmem:[%s16438_s21 + $0x20] sm:$0xff] %vm18161_vm15, %v7746_v36  ;;  %v7170_v51 = vadd.f32 %v7138_v28, %v16377_v20  ;;  %v7141_v17 = vmul.f32 %v18166_v23, %v6611_v43  ;;  %v6606_v62 = vadd.f32 %v16206_v47, %v6605_v16  ;;  %v16538_v26 = vadd.f32 %v16024_v38, %v6358_v31  ;;  %v9325_v56 = vpop.f32.mrf.mxu0  ;;  %v18173_v31 = vld [vmem:[#allocation135_spill] sm:$0xff]  ;;  %v18180_v43 = vld [vmem:[#allocation38_spill] sm:$0xff]  ;;  %v18188_v23 = vld [vmem:[#allocation153_spill] sm:$0xff] }
 0x58b   : > { %7353 = vst.msk [vmem:[%s16421_s17 + $0x38] sm:$0xff] %vm18162_vm4, %v7321_v19  ;;  %v7749_v10 = vadd.f32 %v16160_v7, %v7321_v19  ;;  %v7320_v32 = vadd.f32 %v18163_v24, %v7256_v48  ;;  %v7259_v30 = vmul.f32 %v9941_v11, %v18165_v52  ;;  %v18170_v20 = vsub.f32 1.0, %v15965_v59  ;;  %v9947_v11 = vpop.eup %9946  ;;  %v18177_v19 = vld [vmem:[#allocation8_spill] sm:$0xff]  ;;  %v18186_v52 = vld [vmem:[#allocation25_spill] sm:$0xff]  ;;  %vm18211_vm10 = vmmov %vm17652_vm0 }
 0x58c   : > { %9958 = vtanh.f32 %v7170_v51  ;;  %v7173_v8 = vadd.f32 %v7141_v17, %v16392_v13  ;;  %v7140_v45 = vmul.f32 %v18171_v63, %v6606_v62  ;;  %v6621_v12 = vadd.f32 %v9325_v56, %v16206_v47  ;;  %v6615_v60 = vpop.f32.mrf.mxu0  ;;  %vm18216_vm15 = vmmov %vm17652_vm0 }
 0x58d   : > { %7781 = vst.msk [vmem:[%s16438_s21 + $0x38] sm:$0xff] %vm18167_vm13, %v7749_v10  ;;  %v7748_v7 = vadd.f32 %v16181_v22, %v7320_v32  ;;  %v7323_v61 = vadd.f32 %v18169_v39, %v7259_v30  ;;  %v7258_v27 = vmul.f32 %v9943_v46, %v18170_v20  ;;  %v6373_v36 = vadd.f32 %v18173_v31, %v18172_v29  ;;  %v18176_v22 = vld [vmem:[#allocation39_spill] sm:$0xff]  ;;  %v18181_v46 = vld [vmem:[#allocation141_spill] sm:$0xff]  ;;  %vm18217_vm4 = vmmov %vm17652_vm0 }
 0x58e   : > { %7352 = vst.msk [vmem:[%s16421_s17 + $0x30] sm:$0xff] %vm18168_vm2, %v7320_v32  ;;  %v18178_v13 = vsub.f32 1.0, %v18177_v19  ;;  %9960 = vtanh.f32 %v7173_v8  ;;  %v7172_v48 = vadd.f32 %v7140_v45, %v16395_v15  ;;  %v7143_v3 = vmul.f32 %v18179_v2, %v6621_v12  ;;  %v9949_v28 = vpop.eup %9948  ;;  %v18185_v32 = vld [vmem:[#allocation55_spill] sm:$0xff]  ;;  %v9328_v16 = vpop.f32.mrf.mxu0  ;;  %vm18222_vm13 = vmmov %vm17652_vm0 }
 0x58f   : > { %7780 = vst.msk [vmem:[%s16438_s21 + $0x30] sm:$0xff] %vm18174_vm1, %v7748_v7  ;;  %v7751_v59 = vadd.f32 %v16210_v44, %v7323_v61  ;;  %v7322_v37 = vadd.f32 %v18176_v22, %v7258_v27  ;;  %v6616_v53 = vadd.f32 %v16206_v47, %v6615_v60  ;;  %v6368_v10 = vadd.f32 %v18181_v46, %v18180_v43  ;;  %v18184_v44 = vld [vmem:[#allocation52_spill] sm:$0xff]  ;;  %v18193_v45 = vld [vmem:[#allocation107_spill] sm:$0xff]  ;;  %v18204_v43 = vld [vmem:[#allocation13_spill] sm:$0xff] }
 0x590   : > { %7355 = vst.msk [vmem:[%s16421_s17 + $0x48] sm:$0xff] %vm18175_vm12, %v7323_v61  ;;  %v7261_v14 = vmul.f32 %v9945_v49, %v18178_v13  ;;  %v18187_v15 = vsub.f32 1.0, %v18186_v52  ;;  %9962 = vtanh.f32 %v7172_v48  ;;  %v7175_v51 = vadd.f32 %v7143_v3, %v16406_v4  ;;  %v9951_v49 = vpop.eup %9950  ;;  %v18190_v61 = vld [vmem:[#allocation42_spill] sm:$0xff]  ;;  %v18191_v27 = vld [vmem:[#allocation12_spill] sm:$0xff]  ;;  %v6625_v8 = vpop.f32.mrf.mxu0  ;;  %v18200_v3 = vld [vmem:[#allocation51_spill] sm:$0xff] }
 0x591   : > { %7783 = vst.msk [vmem:[%s16438_s21 + $0x48] sm:$0xff] %vm18182_vm8, %v7751_v59  ;;  %v7750_v24 = vadd.f32 %v18184_v44, %v7322_v37  ;;  %v7142_v17 = vmul.f32 %v18188_v23, %v6616_v53  ;;  %v6631_v62 = vadd.f32 %v9328_v16, %v16206_v47  ;;  %v16578_v7 = vadd.f32 %v16024_v38, %v6373_v36  ;;  %v18196_v36 = vld [vmem:[#allocation10_spill] sm:$0xff]  ;;  %v18197_v22 = vld [vmem:[#allocation32_spill] sm:$0xff]  ;;  %v18201_v53 = vld [vmem:[#allocation145_spill] sm:$0xff] }
 0x592   : > { %7354 = vst.msk [vmem:[%s16421_s17 + $0x40] sm:$0xff] %vm18183_vm3, %v7322_v37  ;;  %v7325_v41 = vadd.f32 %v18185_v32, %v7261_v14  ;;  %v7260_v30 = vmul.f32 %v9947_v11, %v18187_v15  ;;  %v18192_v4 = vsub.f32 1.0, %v18191_v27  ;;  %9964 = vtanh.f32 %v7175_v51  ;;  %v9953_v29 = vpop.eup %9952  ;;  %v9331_v19 = vpop.f32.mrf.mxu0  ;;  %v18199_v14 = vld [vmem:[#allocation144_spill] sm:$0xff]  ;;  %v18207_v52 = vld [vmem:[#allocation158_spill] sm:$0xff]  ;;  %vm18223_vm2 = vmmov %vm17652_vm0 }
 0x593   : > { %7782 = vst.msk [vmem:[%s16438_s21 + $0x40] sm:$0xff] %vm18189_vm5, %v7750_v24  ;;  %v7174_v63 = vadd.f32 %v7142_v17, %v16425_v9  ;;  %v7145_v12 = vmul.f32 %v18193_v45, %v6631_v62  ;;  %v6626_v11 = vadd.f32 %v16206_v47, %v6625_v8  ;;  %v16592_v31 = vadd.f32 %v16024_v38, %v6368_v10  ;;  %v18205_v10 = vld [vmem:[#allocation24_spill] sm:$0xff]  ;;  %v16615_v32 = vpop.f32.mrf.mxu1  ;;  %v18212_v62 = vld [vmem:[#allocation54_spill] sm:$0xff]  ;;  %vm18230_vm1 = vmmov %vm17652_vm0 }
 0x594   : > { %7357 = vst.msk [vmem:[%s16421_s17 + $0x58] sm:$0xff] %vm17652_vm0, %v7325_v41  ;;  %v7753_v39 = vadd.f32 %v16250_v35, %v7325_v41  ;;  %v7324_v20 = vadd.f32 %v18190_v61, %v7260_v30  ;;  %v7263_v56 = vmul.f32 %v9949_v28, %v18192_v4  ;;  %v18198_v9 = vsub.f32 1.0, %v18197_v22  ;;  %v6635_v24 = vpop.f32.mrf.mxu0  ;;  %v18208_v51 = vld [vmem:[#allocation44_spill] sm:$0xff]  ;;  %v18215_v4 = vld [vmem:[#allocation161_spill] sm:$0xff]  ;;  %vm18231_vm12 = vmmov %vm17652_vm0 }
 0x595   : > { %9966 = vtanh.f32 %v7174_v63  ;;  %v7177_v13 = vadd.f32 %v7145_v12, %v16445_v21  ;;  %v7144_v60 = vmul.f32 %v18199_v14, %v6626_v11  ;;  %v6641_v48 = vadd.f32 %v9331_v19, %v16206_v47  ;;  %v9955_v2 = vpop.eup %9954  ;;  %v18218_v12 = vld [vmem:[#allocation37_spill] sm:$0xff]  ;;  %vm18237_vm8 = vmmov %vm17652_vm0 }
 0x596   : > { %7785 = vst.msk [vmem:[%s16438_s21 + $0x58] sm:$0xff] %vm18194_vm6, %v7753_v39  ;;  %v7752_v35 = vadd.f32 %v16285_v50, %v7324_v20  ;;  %v7327_v59 = vadd.f32 %v18196_v36, %v7263_v56  ;;  %v7262_v37 = vmul.f32 %v9951_v49, %v18198_v9  ;;  %v6383_v28 = vadd.f32 %v18201_v53, %v18200_v3  ;;  %v9957_v16 = vpop.eup %9956  ;;  %v18213_v39 = vld [vmem:[#allocation6_spill] sm:$0xff]  ;;  %v18221_v9 = vld [vmem:[#allocation159_spill] sm:$0xff]  ;;  %vm18238_vm3 = vmmov %vm17652_vm0 }
 0x597   : > { %7356 = vst.msk [vmem:[%s16421_s17 + $0x50] sm:$0xff] %vm18195_vm9, %v7324_v20  ;;  %v18206_v21 = vsub.f32 1.0, %v18205_v10  ;;  %9968 = vtanh.f32 %v7177_v13  ;;  %v7176_v41 = vadd.f32 %v7144_v60, %v16484_v0  ;;  %v7147_v15 = vmul.f32 %v18207_v52, %v6641_v48  ;;  %v9334_v20 = vpop.f32.mrf.mxu0  ;;  %v18224_v60 = vld [vmem:[#allocation96_spill] sm:$0xff]  ;;  %vm18242_vm5 = vmmov %vm17652_vm0 }
 0x598   : > { %7784 = vst.msk [vmem:[%s16438_s21 + $0x50] sm:$0xff] %vm18202_vm11, %v7752_v35  ;;  %v7755_v50 = vadd.f32 %v16305_v40, %v7327_v59  ;;  %v7326_v46 = vadd.f32 %v18204_v43, %v7262_v37  ;;  %v6636_v30 = vadd.f32 %v16206_v47, %v6635_v24  ;;  %v18209_v40 = vld [vmem:[#allocation119_spill] sm:$0xff]  ;;  %v18214_v0 = vsub.f32 1.0, %v18213_v39  ;;  %vm18247_vm6 = vmmov %vm17652_vm0 }
 0x599   : > { %7359 = vst.msk [vmem:[%s16421_s17 + $0x68] sm:$0xff] %vm18203_vm7, %v7327_v59  ;;  %v7265_v44 = vmul.f32 %v9953_v29, %v18206_v21  ;;  %v6378_v23 = vadd.f32 %v18209_v40, %v18208_v51  ;;  %9970 = vtanh.f32 %v7176_v41  ;;  %v7179_v27 = vadd.f32 %v7147_v15, %v16524_v18  ;;  %v9959_v63 = vpop.eup %9958  ;;  %v18219_v29 = vld [vmem:[#allocation70_spill] sm:$0xff]  ;;  %v6645_v36 = vpop.f32.mrf.mxu0  ;;  %v18228_v21 = vld [vmem:[#allocation45_spill] sm:$0xff]  ;;  %v18232_v41 = vld [vmem:[#allocation59_spill] sm:$0xff] }
 0x59a   : > { %7787 = vst.msk [vmem:[%s16438_s21 + $0x68] sm:$0xff] %vm18210_vm14, %v7755_v50  ;;  %v7754_v17 = vadd.f32 %v16337_v58, %v7326_v46  ;;  %v7264_v61 = vmul.f32 %v9955_v2, %v18214_v0  ;;  %v7146_v56 = vmul.f32 %v18215_v4, %v6636_v30  ;;  %v6651_v8 = vadd.f32 %v9334_v20, %v16206_v47  ;;  %v16642_v59 = vpop.f32.mrf.mxu1  ;;  %v18225_v2 = vld [vmem:[#allocation26_spill] sm:$0xff]  ;;  %v18227_v50 = vld [vmem:[#allocation151_spill] sm:$0xff]  ;;  %v18234_v40 = vld [vmem:[#allocation4_spill] sm:$0xff] }
 0x59b   : > { %7358 = vst.msk [vmem:[%s16421_s17 + $0x60] sm:$0xff] %vm18211_vm10, %v7326_v46  ;;  %v7329_v49 = vadd.f32 %v18212_v62, %v7265_v44  ;;  %v6433_v45 = vadd.f32 %v16024_v38, %v6383_v28  ;;  %v18220_v35 = vsub.f32 1.0, %v18219_v29  ;;  %9972 = vtanh.f32 %v7179_v27  ;;  %v9961_v13 = vpop.eup %9960  ;;  %v9337_v53 = vpop.f32.mrf.mxu0  ;;  %v18229_v44 = vld [vmem:[#allocation150_spill] sm:$0xff]  ;;  %v18244_v29 = vld [vmem:[#allocation61_spill] sm:$0xff]  ;;  %vm18248_vm9 = vmmov %vm17652_vm0 }
 0x59c   : > { %7786 = vst.msk [vmem:[%s16438_s21 + $0x60] sm:$0xff] %vm18216_vm15, %v7754_v17  ;;  %v7328_v11 = vadd.f32 %v18218_v12, %v7264_v61  ;;  %v7178_v22 = vadd.f32 %v7146_v56, %v16538_v26  ;;  %v7149_v37 = vmul.f32 %v18221_v9, %v6651_v8  ;;  %v6646_v19 = vadd.f32 %v16206_v47, %v6645_v36  ;;  %v18239_v0 = vld [vmem:[#allocation58_spill] sm:$0xff]  ;;  %v18241_v56 = vld [vmem:[#allocation163_spill] sm:$0xff]  ;;  %vm18255_vm11 = vmmov %vm17652_vm0 }
 0x59d   : > { %7361 = vst.msk [vmem:[%s16421_s17 + $0x78] sm:$0xff] %vm18217_vm4, %v7329_v49  ;;  %v7757_v58 = vadd.f32 %v16355_v42, %v7329_v49  ;;  %v7267_v18 = vmul.f32 %v9957_v16, %v18220_v35  ;;  %v6432_v42 = vadd.f32 %v16024_v38, %v6378_v23  ;;  %v18226_v3 = vsub.f32 1.0, %v18225_v2  ;;  %v9963_v10 = vpop.eup %9962  ;;  %v6655_v30 = vpop.f32.mrf.mxu0  ;;  %v18235_v49 = vld [vmem:[#allocation5_spill] sm:$0xff]  ;;  %v18246_v9 = vld [vmem:[#allocation23_spill] sm:$0xff]  ;;  %vm18256_vm7 = vmmov %vm17652_vm0 }
 0x59e   : > { %7360 = vst.msk [vmem:[%s16421_s17 + $0x70] sm:$0xff] %vm18223_vm2, %v7328_v11  ;;  %v7756_v14 = vadd.f32 %v16369_v5, %v7328_v11  ;;  %9974 = vtanh.f32 %v7178_v22  ;;  %v7181_v28 = vadd.f32 %v7149_v37, %v16578_v7  ;;  %v7148_v43 = vmul.f32 %v18227_v50, %v6646_v19  ;;  %v16669_v16 = vpop.f32.mrf.mxu1  ;;  %v18250_v2 = vld [vmem:[#allocation43_spill] sm:$0xff]  ;;  %vm18264_vm14 = vmmov %vm17652_vm0 }
 0x59f   : > { %7789 = vst.msk [vmem:[%s16438_s21 + $0x78] sm:$0xff] %vm18222_vm13, %v7757_v58  ;;  %v7331_v48 = vadd.f32 %v18224_v60, %v7267_v18  ;;  %v7266_v26 = vmul.f32 %v9959_v63, %v18226_v3  ;;  %v6661_v46 = vadd.f32 %v9337_v53, %v16206_v47  ;;  %v6393_v24 = vadd.f32 %v18229_v44, %v18228_v21  ;;  %v9965_v62 = vpop.eup %9964  ;;  %v9340_v27 = vpop.f32.mrf.mxu0  ;;  %v18249_v60 = vld [vmem:[#allocation79_spill] sm:$0xff]  ;;  %v18252_v53 = vld [vmem:[#allocation2_spill] sm:$0xff]  ;;  %vm18265_vm10 = vmmov %vm17652_vm0 }
 0x5a0   : > { %7788 = vst.msk [vmem:[%s16438_s21 + $0x70] sm:$0xff] %vm18230_vm1, %v7756_v14  ;;  %v18233_v7 = vsub.f32 1.0, %v16142_v25  ;;  %9976 = vtanh.f32 %v7181_v28  ;;  %v7180_v51 = vadd.f32 %v7148_v43, %v16592_v31  ;;  %v6656_v17 = vadd.f32 %v16206_v47, %v6655_v30  ;;  %v16695_v36 = vpop.f32.mrf.mxu1  ;;  %v18259_v44 = vld [vmem:[#allocation98_spill] sm:$0xff]  ;;  %v18261_v30 = vld [vmem:[#allocation40_spill] sm:$0xff]  ;;  %vm18267_vm15 = vmmov %vm17652_vm0 }
 0x5a1   : > { %7363 = vst.msk [vmem:[%s16421_s17 + $0x88] sm:$0xff] %vm18231_vm12, %v7331_v48  ;;  %v7759_v5 = vadd.f32 %v16383_v33, %v7331_v48  ;;  %v7330_v52 = vadd.f32 %v18232_v41, %v7266_v26  ;;  %v7151_v23 = vmul.f32 %v18234_v40, %v6661_v46  ;;  %v18236_v33 = vld [vmem:[#allocation162_spill] sm:$0xff]  ;;  %v18240_v31 = vsub.f32 1.0, %v16163_v57  ;;  %v18243_v57 = vld [vmem:[#allocation65_spill] sm:$0xff]  ;;  %v6665_v18 = vpop.f32.mrf.mxu0  ;;  %v18260_v41 = vld [vmem:[#allocation67_spill] sm:$0xff] }
 0x5a2   : > { %v7269_v15 = vmul.f32 %v9961_v13, %v18233_v7  ;;  %v6388_v39 = vadd.f32 %v18236_v33, %v18235_v49  ;;  %9978 = vtanh.f32 %v7180_v51  ;;  %v7150_v8 = vmul.f32 %v18241_v56, %v6656_v17  ;;  %v9967_v58 = vpop.eup %9966  ;;  %v7713_v7 = vpop.f32.mrf.mxu1  ;;  %v18262_v40 = vld [vmem:[#allocation49_spill] sm:$0xff]  ;;  %vm18270_vm4 = vmmov %vm17652_vm0 }
 0x5a3   : > { %7791 = vst.msk [vmem:[%s16438_s21 + $0x88] sm:$0xff] %vm18237_vm8, %v7759_v5  ;;  %v7758_v25 = vadd.f32 %v16386_v34, %v7330_v52  ;;  %v7268_v20 = vmul.f32 %v9963_v10, %v18240_v31  ;;  %v7183_v4 = vadd.f32 %v7151_v23, %v6433_v45  ;;  %v6671_v63 = vadd.f32 %v9340_v27, %v16206_v47  ;;  %v18258_v10 = vld [vmem:[#allocation81_spill] sm:$0xff]  ;;  %v10047_v5 = vld [vmem:[%s14469_s18 + $0xc8] sm:$0xff]  ;;  %v18268_v31 = vld [vmem:[#allocation56_spill] sm:$0xff] }
 0x5a4   : > { %7362 = vst.msk [vmem:[%s16421_s17 + $0x80] sm:$0xff] %vm18238_vm3, %v7330_v52  ;;  %v7333_v61 = vadd.f32 %v18239_v0, %v7269_v15  ;;  %v6435_v12 = vadd.f32 %v16024_v38, %v6393_v24  ;;  %v18245_v35 = vsub.f32 1.0, %v18244_v29  ;;  %v7182_v22 = vadd.f32 %v7150_v8, %v6432_v42  ;;  %v9969_v13 = vpop.eup %9968  ;;  %vm18271_vm13 = vmmov %vm17652_vm0  ;;  %v10050_v29 = vld [vmem:[%s14469_s18 + $0xd8] sm:$0xff] }
 0x5a5   : > { %7790 = vst.msk [vmem:[%s16438_s21 + $0x80] sm:$0xff] %vm18242_vm5, %v7758_v25  ;;  %v7332_v11 = vadd.f32 %v18243_v57, %v7268_v20  ;;  %9980 = vtanh.f32 %v7183_v4  ;;  %v7153_v37 = vmul.f32 %v18246_v9, %v6671_v63  ;;  %v6666_v19 = vadd.f32 %v16206_v47, %v6665_v18  ;;  %v18253_v47 = vld [vmem:[#allocation68_spill] sm:$0xff]  ;;  %vm18272_vm2 = vmmov %vm17652_vm0  ;;  %v16751_v57 = vld [vmem:[%s16828_s12] ss:$0 sm:$0xff] }
 0x5a6   : > { %7365 = vst.msk [vmem:[%s16421_s17 + $0x98] sm:$0xff] %vm17652_vm0, %v7333_v61  ;;  %v7761_v34 = vadd.f32 %v16400_v6, %v7333_v61  ;;  %v7271_v45 = vmul.f32 %v9965_v62, %v18245_v35  ;;  %v6434_v14 = vadd.f32 %v16024_v38, %v6388_v39  ;;  %v18251_v3 = vsub.f32 1.0, %v18250_v2  ;;  %v9971_v43 = vpop.eup %9970  ;;  %v18266_v25 = vld [vmem:[#allocation64_spill] sm:$0xff]  ;;  %vm18275_vm1 = vmmov %vm17652_vm0 }
 0x5a7   : > { %7364 = vst.msk [vmem:[%s16421_s17 + $0x90] sm:$0xff] %vm18248_vm9, %v7332_v11  ;;  %v7760_v6 = vadd.f32 %v16413_v55, %v7332_v11  ;;  %9982 = vtanh.f32 %v7182_v22  ;;  %v7185_v26 = vadd.f32 %v7153_v37, %v6435_v12  ;;  %v7152_v28 = vmul.f32 %v18252_v53, %v6666_v19  ;;  %v18257_v55 = vld [vmem:[#allocation66_spill] sm:$0xff]  ;;  %vm18276_vm12 = vmmov %vm17652_vm0  ;;  %v10052_v53 = vld [vmem:[%s14469_s18 + $0xe8] sm:$0xff] }
 0x5a8   : > { %7793 = vst.msk [vmem:[%s16438_s21 + $0x98] sm:$0xff] %vm18247_vm6, %v7761_v34  ;;  %v7335_v48 = vadd.f32 %v18249_v60, %v7271_v45  ;;  %v7270_v42 = vmul.f32 %v9967_v58, %v18251_v3  ;;  %v18254_v50 = vsub.f32 1.0, %v18253_v47  ;;  %v7684_v24 = vadd.f32 %v16031_v1, %v18259_v44  ;;  %v9973_v62 = vpop.eup %9972  ;;  %v18273_v58 = vld [vmem:[#allocation21_spill] sm:$0xff]  ;;  %v18274_v45 = vld [vmem:[#allocation60_spill] sm:$0xff]  ;;  %vm18277_vm8 = vmmov %vm17652_vm0 }
 0x5a9   : > { %7792 = vst.msk [vmem:[%s16438_s21 + $0x90] sm:$0xff] %vm18255_vm11, %v7760_v6  ;;  %v7307_v52 = vmul.f32 %v10047_v5, %v18260_v41  ;;  %9984 = vtanh.f32 %v7185_v26  ;;  %v7184_v15 = vadd.f32 %v7152_v28, %v6434_v14  ;;  %v18263_v23 = vsub.f32 1.0, %v18262_v40  ;;  %vm18278_vm3 = vmmov %vm17652_vm0  ;;  %v18279_v3 = vld [vmem:[#allocation17_spill] sm:$0xff]  ;;  %v18280_v47 = vld [vmem:[#allocation50_spill] sm:$0xff] }
 0x5aa   : > { %v7273_v38 = vmul.f32 %v9969_v13, %v18254_v50  ;;  %7367 = vst.msk [vmem:[%s16421_s17 + $0xa8] sm:$0xff] %vm18256_vm7, %v7335_v48  ;;  %v7763_v46 = vadd.f32 %v18257_v55, %v7335_v48  ;;  %v7334_v21 = vadd.f32 %v18258_v10, %v7270_v42  ;;  %v7694_v33 = vadd.f32 %v16031_v1, %v16615_v32  ;;  %v10048_v32 = vld [vmem:[%s14469_s18 + $0xc0] sm:$0xff]  ;;  %vm18281_vm5 = vmmov %vm17652_vm0  ;;  %v10054_v40 = vld [vmem:[%s14469_s18 + $0xf8] sm:$0xff] }
 0x5ab   : > { %v7272_v17 = vmul.f32 %v9971_v43, %v18263_v23  ;;  %v7709_v39 = vadd.f32 %v16642_v59, %v16031_v1  ;;  %v7242_v0 = vsub.f32 1.0, %v18266_v25  ;;  %9986 = vtanh.f32 %v7184_v15  ;;  %v9975_v56 = vpop.eup %9974  ;;  %v9391_v59 = vpop.f32.mrf.mxu1  ;;  %vm18282_vm6 = vmmov %vm17652_vm0 }
 0x5ac   : > { %v7337_v51 = vadd.f32 %v18261_v30, %v7273_v38  ;;  %7795 = vst.msk [vmem:[%s16438_s21 + $0xa8] sm:$0xff] %vm18264_vm14, %v7763_v46  ;;  %v7762_v49 = vadd.f32 %v7684_v24, %v7334_v21  ;;  %v18269_v27 = vsub.f32 1.0, %v18260_v41  ;;  %v7306_v1 = vmul.f32 %v10048_v32, %v18266_v25  ;;  %vm18283_vm9 = vmmov %vm17652_vm0 }
 0x5ad   : > { %7366 = vst.msk [vmem:[%s16421_s17 + $0xa0] sm:$0xff] %vm18265_vm10, %v7334_v21  ;;  %v7336_v20 = vadd.f32 %v18268_v31, %v7272_v17  ;;  %v7274_v63 = vmul.f32 %v9975_v56, %v7242_v0  ;;  %v7245_v12 = vsub.f32 1.0, %v18273_v58  ;;  %v9977_v34 = vpop.eup %9976  ;;  %v7704_v11 = vadd.f32 %v16751_v57, %v16669_v16  ;;  %v10051_v16 = vld [vmem:[%s14469_s18 + $0xd0] sm:$0xff]  ;;  %v7723_v6 = vpop.f32.mrf.mxu1  ;;  %v10053_v21 = vld [vmem:[%s14469_s18 + $0xe0] sm:$0xff]  ;;  %vm18286_vm11 = vmmov %vm17652_vm0 }
 0x5ae   : > { %7369 = vst.msk [vmem:[%s16421_s17 + $0xb8] sm:$0xff] %vm18267_vm15, %v7337_v51  ;;  %v7765_v61 = vadd.f32 %v16478_v54, %v7337_v51  ;;  %v7275_v4 = vmul.f32 %v9973_v62, %v18269_v27  ;;  %v7309_v35 = vmul.f32 %v10050_v29, %v18273_v58  ;;  %v7244_v18 = vsub.f32 1.0, %v18274_v45  ;;  %v18285_v17 = vld [vmem:[#allocation74_spill] sm:$0xff]  ;;  %vm18287_vm7 = vmmov %vm17652_vm0 }
 0x5af   : > { %7794 = vst.msk [vmem:[%s16438_s21 + $0xa0] sm:$0xff] %vm18270_vm4, %v7762_v49  ;;  %v7764_v54 = vadd.f32 %v7694_v33, %v7336_v20  ;;  %v7338_v9 = vadd.f32 %v7306_v1, %v7274_v63  ;;  %v7277_v37 = vmul.f32 %v9977_v34, %v7245_v12  ;;  %v7719_v19 = vadd.f32 %v16751_v57, %v16695_v36  ;;  %v9979_v13 = vpop.eup %9978  ;;  %v9394_v24 = vpop.f32.mrf.mxu1  ;;  %vm18288_vm14 = vmmov %vm17652_vm0 }
 0x5b0   : > { %7797 = vst.msk [vmem:[%s16438_s21 + $0xb8] sm:$0xff] %vm18271_vm13, %v7765_v61  ;;  %v7339_v8 = vadd.f32 %v7307_v52, %v7275_v4  ;;  %v7308_v14 = vmul.f32 %v10051_v16, %v18274_v45  ;;  %v7276_v2 = vmul.f32 %v9979_v13, %v7244_v18  ;;  %v7247_v42 = vsub.f32 1.0, %v18279_v3  ;;  %vm18289_vm10 = vmmov %vm17652_vm0  ;;  %v10055_v4 = vld [vmem:[%s14469_s18 + $0xf0] sm:$0xff] }
 0x5b1   : > { %7368 = vst.msk [vmem:[%s16421_s17 + $0xb0] sm:$0xff] %vm18272_vm2, %v7336_v20  ;;  %v7766_v60 = vadd.f32 %v7704_v11, %v7338_v9  ;;  %v7341_v48 = vadd.f32 %v7309_v35, %v7277_v37  ;;  %v7714_v36 = vadd.f32 %v16751_v57, %v7713_v7  ;;  %v7311_v28 = vmul.f32 %v10052_v53, %v18279_v3  ;;  %v18284_v7 = vld [vmem:[#allocation63_spill] sm:$0xff]  ;;  %v7733_v61 = vpop.f32.mrf.mxu1  ;;  %vm18290_vm15 = vmmov %vm17652_vm0 }
 0x5b2   : > { %7796 = vst.msk [vmem:[%s16438_s21 + $0xb0] sm:$0xff] %vm18275_vm1, %v7764_v54  ;;  %v7767_v22 = vadd.f32 %v7709_v39, %v7339_v8  ;;  %v9981_v26 = vpop.eup %9980  ;;  %v7246_v50 = vsub.f32 1.0, %v18280_v47  ;;  %v7340_v43 = vadd.f32 %v7308_v14, %v7276_v2  ;;  %v7729_v46 = vadd.f32 %v16751_v57, %v9391_v59  ;;  %vm18291_vm4 = vmmov %vm17652_vm0 }
 0x5b3   : > { %7371 = vst.msk [vmem:[%s16421_s17 + $0xc8] sm:$0xff] %vm18276_vm12, %v7339_v8  ;;  %v7769_v38 = vadd.f32 %v7719_v19, %v7341_v48  ;;  %v7279_v55 = vmul.f32 %v9981_v26, %v7247_v42  ;;  %v7310_v44 = vmul.f32 %v10053_v21, %v18280_v47  ;;  %v7249_v15 = vsub.f32 1.0, %v18284_v7  ;;  %vm18292_vm13 = vmmov %vm17652_vm0 }
 0x5b4   : > { %7799 = vst.msk [vmem:[%s16438_s21 + $0xc8] sm:$0xff] %vm18277_vm8, %v7767_v22  ;;  %v9983_v10 = vpop.eup %9982  ;;  %v7768_v5 = vadd.f32 %v7714_v36, %v7340_v43  ;;  %v7724_v51 = vadd.f32 %v16751_v57, %v7723_v6  ;;  %v7313_v23 = vmul.f32 %v10054_v40, %v18284_v7  ;;  %v7248_v62 = vsub.f32 1.0, %v18285_v17  ;;  %vm18293_vm2 = vmmov %vm17652_vm0 }
 0x5b5   : > { %7370 = vst.msk [vmem:[%s16421_s17 + $0xc0] sm:$0xff] %vm18278_vm3, %v7338_v9  ;;  %v7343_v41 = vadd.f32 %v7311_v28, %v7279_v55  ;;  %v7278_v52 = vmul.f32 %v9983_v10, %v7246_v50  ;;  %v7739_v25 = vadd.f32 %v16751_v57, %v9394_v24  ;;  %v7312_v56 = vmul.f32 %v10055_v4, %v18285_v17  ;;  %vm18294_vm1 = vmmov %vm17652_vm0 }
 0x5b6   : > { %7798 = vst.msk [vmem:[%s16438_s21 + $0xc0] sm:$0xff] %vm18281_vm5, %v7766_v60  ;;  %v9985_v30 = vpop.eup %9984  ;;  %v7734_v59 = vadd.f32 %v16751_v57, %v7733_v61 }
 0x5b7   : > { %7373 = vst.msk [vmem:[%s16421_s17 + $0xd8] sm:$0xff] %vm17652_vm0, %v7341_v48  ;;  %v7771_v49 = vadd.f32 %v7729_v46, %v7343_v41  ;;  %v7342_v33 = vadd.f32 %v7310_v44, %v7278_v52  ;;  %v7281_v39 = vmul.f32 %v9985_v30, %v7249_v15 }
 0x5b8   : > { %7801 = vst.msk [vmem:[%s16438_s21 + $0xd8] sm:$0xff] %vm18282_vm6, %v7769_v38  ;;  %v9987_v0 = vpop.eup %9986 }
 0x5b9   : > { %7372 = vst.msk [vmem:[%s16421_s17 + $0xd0] sm:$0xff] %vm18283_vm9, %v7340_v43  ;;  %v7770_v31 = vadd.f32 %v7724_v51, %v7342_v33  ;;  %v7345_v20 = vadd.f32 %v7313_v23, %v7281_v39  ;;  %v7280_v27 = vmul.f32 %v9987_v0, %v7248_v62 }
 0x5ba   : > { %7800 = vst.msk [vmem:[%s16438_s21 + $0xd0] sm:$0xff] %vm18286_vm11, %v7768_v5 }
 0x5bb   : > { %7375 = vst.msk [vmem:[%s16421_s17 + $0xe8] sm:$0xff] %vm18287_vm7, %v7343_v41  ;;  %v7773_v32 = vadd.f32 %v7739_v25, %v7345_v20  ;;  %v7344_v1 = vadd.f32 %v7312_v56, %v7280_v27 }
 0x5bc   : > { %7803 = vst.msk [vmem:[%s16438_s21 + $0xe8] sm:$0xff] %vm18288_vm14, %v7771_v49 }
 0x5bd   : > { %7374 = vst.msk [vmem:[%s16421_s17 + $0xe0] sm:$0xff] %vm18289_vm10, %v7342_v33  ;;  %v7772_v54 = vadd.f32 %v7734_v59, %v7344_v1 }
 0x5be   : > { %7802 = vst.msk [vmem:[%s16438_s21 + $0xe0] sm:$0xff] %vm18290_vm15, %v7770_v31 }
 0x5bf   : > { %7377 = vst.msk [vmem:[%s16421_s17 + $0xf8] sm:$0xff] %vm18291_vm4, %v7345_v20 }
 0x5c0   : > { %7805 = vst.msk [vmem:[%s16438_s21 + $0xf8] sm:$0xff] %vm18292_vm13, %v7773_v32 }
 0x5c1   : > { %7376 = vst.msk [vmem:[%s16421_s17 + $0xf0] sm:$0xff] %vm18293_vm2, %v7344_v1 }
 0x5c2   : > { %7804 = vst.msk [vmem:[%s16438_s21 + $0xf0] sm:$0xff] %vm18294_vm1, %v7772_v54 }
 0x5c3 PF: > { %s25_s29 = sadd.s32 1, %s10062_s29  }
 0x5c4   : > { %p22_p4 = scmp.ge.s32.totalorder %s25_s29, 4  }
 0x5c6   :  { %24 = sbr.rel (!%p22_p4) target bundleno = 1 (0x1), region = 133 }

</bundles_post_ra>
